<compile_context>
chip_gen: v5e
topology: v5e:2x2
jax: 0.10.0
libtpu: 0.0.40
codegen_flags: <defaults>
</compile_context>

<pallas_src>
import jax
import jax.numpy as jnp
from jax.experimental import pallas as pl
from jax.experimental.pallas import tpu as pltpu

FEAT = 1024  # hidden size of the Feedback module


def _lrelu(v):
    # LeakyReLU(0.2): for slope < 1, max(v, 0.2*v) == where(v > 0, v, 0.2*v).
    return jnp.maximum(v, 0.2 * v)


def feedback_kernel(x_ref, w1_ref, b1_ref, w2_ref, b2_ref, o_ref, h1_ref):
    # Cast the activation tile to bf16 in-kernel (x lives in HBM as f32; no extra
    # wrapper-side materialized cast / HBM round trip).
    x = x_ref[...].astype(jnp.bfloat16)
    # fc1: bf16 x bf16 operands, f32 accumulation on the MXU.
    h1 = jnp.dot(x, w1_ref[...], preferred_element_type=jnp.float32)
    # Bias + LeakyReLU in f32, then stage in bf16 (fc2 consumes bf16 anyway).
    h1_ref[...] = _lrelu(h1 + b1_ref[...]).astype(jnp.bfloat16)
    # fc2: bf16 operands, f32 accumulation.
    h2 = jnp.dot(h1_ref[...], w2_ref[...], preferred_element_type=jnp.float32)
    o_ref[...] = _lrelu(h2 + b2_ref[...]).astype(o_ref.dtype)


def feedback_forward(x, w1, b1, w2, b2, *, tile_b=None):
    """x: (B, 1024) f32; w*: (1024, 1024) bf16 (or f32) in [in, out] layout; b*: (1024,) or (1, 1024).

    Returns f32 (B, 1024). Matmuls run with bf16 operands / f32 accumulation.
    """
    B, F = x.shape
    assert F == FEAT, f"expected feature dim {FEAT}, got {F}"

    x = x.astype(jnp.float32)                       # kernel casts to bf16 internally
    w1 = w1 if w1.dtype == jnp.bfloat16 else w1.astype(jnp.bfloat16)
    w2 = w2 if w2.dtype == jnp.bfloat16 else w2.astype(jnp.bfloat16)
    b1 = b1.reshape(1, FEAT).astype(jnp.float32)
    b2 = b2.reshape(1, FEAT).astype(jnp.float32)

    # Batch tile: 256 by default, 512 for large batches; minimum 16 rows (dense bf16
    # layouts). Pad B up to a whole number of tiles.
    if tile_b is None:
        tile_b = 512 if B >= 1024 else 256
    tb = min(tile_b, max(16, ((B + 15) // 16) * 16))
    b_pad = ((B + tb - 1) // tb) * tb
    if b_pad != B:
        x = jnp.pad(x, ((0, b_pad - B), (0, 0)))

    grid = b_pad // tb
    # Only split across TensorCores (v7x megacore) when each core gets >= 512 rows;
    # otherwise duplicating the resident weights per core costs more HBM traffic than
    # the second core saves in this HBM-bound regime.
    dims = ("parallel",) if (grid >= 2 and (b_pad // 2) >= 512) else ("arbitrary",)

    resident = dict(pipeline_mode=pl.Buffered(1))   # fetched once; no double-buffer VMEM

    out = pl.pallas_call(
        feedback_kernel,
        out_shape=jax.ShapeDtypeStruct((b_pad, FEAT), jnp.float32),
        grid_spec=pltpu.PrefetchScalarGridSpec(
            num_scalar_prefetch=0,
            grid=(grid,),
            in_specs=[
                pl.BlockSpec((tb, FEAT), lambda i: (i, 0)),                  # x tile (f32)
                pl.BlockSpec((FEAT, FEAT), lambda i: (0, 0), **resident),    # W1 (bf16, resident)
                pl.BlockSpec((1, FEAT), lambda i: (0, 0), **resident),       # b1 (f32)
                pl.BlockSpec((FEAT, FEAT), lambda i: (0, 0), **resident),    # W2 (bf16, resident)
                pl.BlockSpec((1, FEAT), lambda i: (0, 0), **resident),       # b2 (f32)
            ],
            out_specs=pl.BlockSpec((tb, FEAT), lambda i: (i, 0)),
            scratch_shapes=[pltpu.VMEM((tb, FEAT), jnp.bfloat16)],           # h1 staging (bf16)
        ),
        compiler_params=pltpu.CompilerParams(
            dimension_semantics=dims,
            vmem_limit_bytes=48 << 20,   # headroom on v7x (64 MiB physical/TC)
        ),
    )(x, w1, b1, w2, b2)

    return out[:B] if b_pad != B else out


def init_params(key):
    """Mirror weights_init: Linear.weight ~ N(0, 0.02), Linear.bias = 0.

    Weights are emitted directly in bf16 (the kernel's MXU operand dtype) so no
    per-call cast is materialized. PyTorch stores weight as (out, in); we keep the
    mathematically equivalent (in, out) layout so the kernel computes x @ W + b.
    """
    k1, k2 = jax.random.split(key)
    w1 = (0.02 * jax.random.normal(k1, (FEAT, FEAT), dtype=jnp.float32)).astype(jnp.bfloat16)
    w2 = (0.02 * jax.random.normal(k2, (FEAT, FEAT), dtype=jnp.float32)).astype(jnp.bfloat16)
    b1 = jnp.zeros((1, FEAT), dtype=jnp.float32)
    b2 = jnp.zeros((1, FEAT), dtype=jnp.float32)
    return w1, b1, w2, b2


def feedback_ref(x, w1, b1, w2, b2):
    """Reference with the same bf16-operand / f32-accumulation numerics."""
    xb = x.astype(jnp.bfloat16)
    w1b = w1.astype(jnp.bfloat16)
    w2b = w2.astype(jnp.bfloat16)
    h1 = _lrelu(jnp.dot(xb, w1b, preferred_element_type=jnp.float32) + b1)
    h2 = jnp.dot(h1.astype(jnp.bfloat16), w2b, preferred_element_type=jnp.float32) + b2
    return _lrelu(h2)


if __name__ == "__main__":
    key = jax.random.PRNGKey(0)
    kx, kp = jax.random.split(key)

    B = 16  # small batch for the smoke test; feature dim fixed at 1024 by the module
    x = jax.random.normal(kx, (B, FEAT), dtype=jnp.float32)
    w1, b1, w2, b2 = init_params(kp)

    out = feedback_forward(x, w1, b1, w2, b2)
    out = jax.block_until_ready(out)

    ref = feedback_ref(x, w1, b1, w2, b2)
    assert out.shape == (B, FEAT)
    # bf16 MXU operands -> loosened tolerance vs the matching bf16 reference.
    assert jnp.allclose(out, ref, atol=1e-2, rtol=1e-2), "mismatch vs reference"
    print("KERNEL_OK")
</pallas_src>

<mosaic_0001>
module attributes {stable_mosaic.version = 11 : i64} {
  func.func @feedback_kernel(%arg0: i32, %arg1: memref<16x1024xf32, #tpu.memory_space<vmem>>, %arg2: memref<1024x1024xbf16, #tpu.memory_space<vmem>>, %arg3: memref<1x1024xf32, #tpu.memory_space<vmem>>, %arg4: memref<1024x1024xbf16, #tpu.memory_space<vmem>>, %arg5: memref<1x1024xf32, #tpu.memory_space<vmem>>, %arg6: memref<16x1024xf32, #tpu.memory_space<vmem>>, %arg7: memref<16x1024xbf16, #tpu.memory_space<vmem>>) attributes {dimension_semantics = [#tpu.dimension_semantics<arbitrary>], iteration_bounds = array<i64: 1>, scalar_prefetch = 0 : i64, scratch_operands = 1 : i64, tpu.core_type = #tpu.core_type<tc>, window_params = [{transform_indices = @transform_0, window_bounds = array<i64: 16, 1024>}, {pipeline_mode = #tpu.pipeline_mode<synchronous>, transform_indices = @transform_1, window_bounds = array<i64: 1024, 1024>}, {pipeline_mode = #tpu.pipeline_mode<synchronous>, transform_indices = @transform_2, window_bounds = array<i64: 1, 1024>}, {pipeline_mode = #tpu.pipeline_mode<synchronous>, transform_indices = @transform_3, window_bounds = array<i64: 1024, 1024>}, {pipeline_mode = #tpu.pipeline_mode<synchronous>, transform_indices = @transform_4, window_bounds = array<i64: 1, 1024>}, {transform_indices = @transform_5, window_bounds = array<i64: 16, 1024>}]} {
    %c0 = arith.constant 0 : index
    %c0_0 = arith.constant 0 : index
    %0 = vector.load %arg1[%c0, %c0_0] : memref<16x1024xf32, #tpu.memory_space<vmem>>, vector<16x1024xf32>
    %1 = arith.truncf %0 : vector<16x1024xf32> to vector<16x1024xbf16>
    %c0_1 = arith.constant 0 : index
    %c0_2 = arith.constant 0 : index
    %2 = vector.load %arg2[%c0_1, %c0_2] : memref<1024x1024xbf16, #tpu.memory_space<vmem>>, vector<1024x1024xbf16>
    %cst = arith.constant dense<0.000000e+00> : vector<16x1024xf32>
    %3 = tpu.matmul %1, %2, %cst {dimension_numbers = #tpu.dot_dimension_numbers<[1], [0], [0], [1], [0, 0, 1, 1], [], []>} : vector<16x1024xbf16>, vector<1024x1024xbf16>, vector<16x1024xf32> -> vector<16x1024xf32>
    %c0_3 = arith.constant 0 : index
    %c0_4 = arith.constant 0 : index
    %4 = vector.load %arg3[%c0_3, %c0_4] : memref<1x1024xf32, #tpu.memory_space<vmem>>, vector<1x1024xf32>
    %5 = vector.broadcast %4 : vector<1x1024xf32> to vector<16x1024xf32>
    %6 = arith.addf %3, %5 : vector<16x1024xf32>
    %cst_5 = arith.constant 2.000000e-01 : f32
    %7 = vector.broadcast %cst_5 : f32 to vector<16x1024xf32>
    %8 = arith.mulf %7, %6 : vector<16x1024xf32>
    %9 = arith.maximumf %6, %8 : vector<16x1024xf32>
    %10 = arith.truncf %9 : vector<16x1024xf32> to vector<16x1024xbf16>
    %c0_6 = arith.constant 0 : index
    %c0_7 = arith.constant 0 : index
    %11 = vector.load %arg7[%c0_6, %c0_7] : memref<16x1024xbf16, #tpu.memory_space<vmem>>, vector<16x1024xbf16>
    tpu.vector_store %arg7[%c0_6, %c0_7], %10 {strides = array<i32>} : memref<16x1024xbf16, #tpu.memory_space<vmem>>, vector<16x1024xbf16>,
    %c0_8 = arith.constant 0 : index
    %c0_9 = arith.constant 0 : index
    %12 = vector.load %arg7[%c0_8, %c0_9] : memref<16x1024xbf16, #tpu.memory_space<vmem>>, vector<16x1024xbf16>
    %c0_10 = arith.constant 0 : index
    %c0_11 = arith.constant 0 : index
    %13 = vector.load %arg4[%c0_10, %c0_11] : memref<1024x1024xbf16, #tpu.memory_space<vmem>>, vector<1024x1024xbf16>
    %cst_12 = arith.constant dense<0.000000e+00> : vector<16x1024xf32>
    %14 = tpu.matmul %12, %13, %cst_12 {dimension_numbers = #tpu.dot_dimension_numbers<[1], [0], [0], [1], [0, 0, 1, 1], [], []>} : vector<16x1024xbf16>, vector<1024x1024xbf16>, vector<16x1024xf32> -> vector<16x1024xf32>
    %c0_13 = arith.constant 0 : index
    %c0_14 = arith.constant 0 : index
    %15 = vector.load %arg5[%c0_13, %c0_14] : memref<1x1024xf32, #tpu.memory_space<vmem>>, vector<1x1024xf32>
    %16 = vector.broadcast %15 : vector<1x1024xf32> to vector<16x1024xf32>
    %17 = arith.addf %14, %16 : vector<16x1024xf32>
    %cst_15 = arith.constant 2.000000e-01 : f32
    %18 = vector.broadcast %cst_15 : f32 to vector<16x1024xf32>
    %19 = arith.mulf %18, %17 : vector<16x1024xf32>
    %20 = arith.maximumf %17, %19 : vector<16x1024xf32>
    %c0_16 = arith.constant 0 : index
    %c0_17 = arith.constant 0 : index
    %21 = vector.load %arg6[%c0_16, %c0_17] : memref<16x1024xf32, #tpu.memory_space<vmem>>, vector<16x1024xf32>
    tpu.vector_store %arg6[%c0_16, %c0_17], %20 {strides = array<i32>} : memref<16x1024xf32, #tpu.memory_space<vmem>>, vector<16x1024xf32>,
    return
  }
  func.func @transform_0(%arg0: i32) -> (i32, i32) {
    %c0_i32 = arith.constant 0 : i32
    %c0_i32_0 = arith.constant 0 : i32
    return %arg0, %c0_i32 : i32, i32
  }
  func.func @transform_1(%arg0: i32) -> (i32, i32) {
    %c0_i32 = arith.constant 0 : i32
    %c0_i32_0 = arith.constant 0 : i32
    %c0_i32_1 = arith.constant 0 : i32
    return %c0_i32, %c0_i32_0 : i32, i32
  }
  func.func @transform_2(%arg0: i32) -> (i32, i32) {
    %c0_i32 = arith.constant 0 : i32
    %c0_i32_0 = arith.constant 0 : i32
    %c0_i32_1 = arith.constant 0 : i32
    return %c0_i32, %c0_i32_0 : i32, i32
  }
  func.func @transform_3(%arg0: i32) -> (i32, i32) {
    %c0_i32 = arith.constant 0 : i32
    %c0_i32_0 = arith.constant 0 : i32
    %c0_i32_1 = arith.constant 0 : i32
    return %c0_i32, %c0_i32_0 : i32, i32
  }
  func.func @transform_4(%arg0: i32) -> (i32, i32) {
    %c0_i32 = arith.constant 0 : i32
    %c0_i32_0 = arith.constant 0 : i32
    %c0_i32_1 = arith.constant 0 : i32
    return %c0_i32, %c0_i32_0 : i32, i32
  }
  func.func @transform_5(%arg0: i32) -> (i32, i32) {
    %c0_i32 = arith.constant 0 : i32
    %c0_i32_0 = arith.constant 0 : i32
    return %arg0, %c0_i32 : i32, i32
  }
}

</mosaic_0001>

<bundles_post_ra>
// kernel: tpu_custom_call.1
= control target key start
LH: loop header
LB: loop body
LE: loop exit
PB: predicated region body
PF: predicated region fallthrough
CT: control target
= control target key end

     0   :  { %10 = vsyncpa [#allocation4], 0  ;;  %s14102_s0 = inlined_call_operand.hbm [shape: f32[16,1024], index: 0, kind: input, shape index: {}]   ;;  %s14103_s1 = inlined_call_operand.hbm [shape: bf16[1024,1024], index: 1, kind: input, shape index: {}]   ;;  %s14104_s2 = inlined_call_operand.hbm [shape: f32[1,1024], index: 2, kind: input, shape index: {}]   ;;  %s14105_s3 = inlined_call_operand.hbm [shape: bf16[1024,1024], index: 3, kind: input, shape index: {}]   ;;  %s14106_s4 = inlined_call_operand.hbm [shape: f32[1,1024], index: 4, kind: input, shape index: {}]   ;;  %s14107_s5 = inlined_call_operand.hbm [shape: f32[16,1024], index: 5, kind: output, shape index: {}]  }
   0x1   :  { %11 = vsyncpa [#allocation7], 0 }
   0x2   :  { %12 = vsyncpa [#allocation10], 0  ;;  %s31_s20 = sshll.u32 %s14103_s1, 4  ;;  %s32_s20 = int_to_ptr.hbm [resolvable:$true] %s31_s20 }
   0x3   :  { %13 = vsyncpa [#allocation5], 0  ;;  %s13583_s21 = smov [#allocation6]   ;;  %s55_s25 = sshll.u32 %s14105_s3, 4  ;;  %s56_s25 = int_to_ptr.hbm [resolvable:$true] %s55_s25 }
   0x4   :  { %s33_s22 = sshll.u32 %s13583_s21, 4  ;;  %s13584_s26 = smov 512   ;;  %s34_s22 = int_to_ptr.vmem [resolvable:$true] %s33_s22 }
   0x5   :  { %s13585_s27 = smov 32   ;;  %s13586_s28 = smov [#allocation9]  }
   0x6   :  { %39 = dma.hbm_to_vmem [thread:$0]  %s32_s20, 65536, %s34_s22, [#allocation7], %s13584_s26, %s13584_s26, %s13585_s27  }
   0x7   :  { %s57_s29 = sshll.u32 %s13586_s28, 4  ;;  %s18_s7 = sshll.u32 %s14102_s0, 4  ;;  %s58_s29 = int_to_ptr.vmem [resolvable:$true] %s57_s29  ;;  %s19_s7 = int_to_ptr.hbm [resolvable:$true] %s18_s7 }
   0x8   :  { %63 = dma.hbm_to_vmem [thread:$0]  %s56_s25, 65536, %s58_s29, [#allocation10], %s13584_s26, %s13584_s26, %s13585_s27  }
   0x9   :  { %s13587_s1 = smov [#allocation3]   ;;  %s45_s3 = sshll.u32 %s14104_s2, 4  ;;  %s46_s3 = int_to_ptr.hbm [resolvable:$true] %s45_s3 }
   0xa   :  { %s20_s8 = sshll.u32 %s13587_s1, 4  ;;  %s13588_s11 = smov 1024   ;;  %s21_s8 = int_to_ptr.vmem [resolvable:$true] %s20_s8 }
   0xb   :  { %s13589_s12 = smov 64   ;;  %s13590_s13 = smov [#allocation8]  }
   0xc   :  { %26 = dma.hbm_to_vmem [thread:$0]  %s19_s7, 2048, %s21_s8, [#allocation4], %s13588_s11, %s13588_s11, %s13589_s12  }
   0xd   :  { %s47_s14 = sshll.u32 %s13590_s13, 4  ;;  %s69_s16 = sshll.u32 %s14106_s4, 4  ;;  %s48_s14 = int_to_ptr.vmem [resolvable:$true] %s47_s14  ;;  %s70_s16 = int_to_ptr.hbm [resolvable:$true] %s69_s16 }
   0xe   :  { %50 = dma.hbm_to_vmem [thread:$0]  %s46_s3, 128, %s48_s14, [#allocation7]  }
   0xf   :  { %s13591_s17 = smov [#allocation11]  }
  0x10   :  { %s71_s18 = sshll.u32 %s13591_s17, 4  ;;  %s72_s18 = int_to_ptr.vmem [resolvable:$true] %s71_s18 }
  0x11   :  { %74 = dma.hbm_to_vmem [thread:$0]  %s70_s16, 128, %s72_s18, [#allocation10]  }
  0x12   :  { %13575 = dma.done.wait [#allocation4], 2048  }
  0x13   :  { %13576 = vsyncadd [#allocation4], 4294965248 }
  0x14   :  { %13577 = dma.done.wait [#allocation7], 65664  }
  0x15   :  { %13578 = vsyncadd [#allocation7], 4294901632 }
  0x16   :  { %13579 = dma.done.wait [#allocation10], 65664  }
  0x17   :  { %13580 = vsyncadd [#allocation10], 4294901632  ;;  %v8482_v0 = vld [vmem:[#allocation6 + $0x1c0] sm:$0xf]  ;;  %s13592_s2 = smov [#allocation12]   ;;  %s8241_s21 = sshll.u32 %s14107_s5, 4  ;;  %s8242_s21 = int_to_ptr.hbm [resolvable:$true] %s8241_s21 }
  0x18   :  { %v12444_v1 = vld [vmem:[#allocation6 + $0x1dc] sm:$0xf0]  ;;  %s8239_s4 = sshll.u32 %s13592_s2, 4  ;;  %s8240_s4 = int_to_ptr.vmem [resolvable:$true] %s8239_s4 }
  0x19   :  { %v8738_v2 = vld [vmem:[#allocation6 + $0x3c0] sm:$0xf]  ;;  %v8483_v3 = vor.u32 %v12444_v1, %v8482_v0 }
  0x1a   :  { %v12508_v4 = vld [vmem:[#allocation6 + $0x3dc] sm:$0xf0] }
  0x1b   :  { %v8994_v5 = vld [vmem:[#allocation6 + $0x5c0] sm:$0xf]  ;;  %v8739_v7 = vor.u32 %v12508_v4, %v8738_v2  ;;  %3209 = vmatpush.bf16.msra.mxu0 %v8483_v3 }
  0x1c   :  { %v12572_v6 = vld [vmem:[#allocation6 + $0x5dc] sm:$0xf0] }
  0x1d   :  { %v8995_v8 = vor.u32 %v12572_v6, %v8994_v5  ;;  %v9250_v9 = vld [vmem:[#allocation6 + $0x7c0] sm:$0xf]  ;;  %3223 = vmatpush.bf16.msra.mxu1 %v8739_v7 }
  0x1e   :  { %v12636_v10 = vld [vmem:[#allocation6 + $0x7dc] sm:$0xf0] }
  0x1f   :  { %v8450_v11 = vld [vmem:[#allocation6 + $0x180] sm:$0xf]  ;;  %v9251_v12 = vor.u32 %v12636_v10, %v9250_v9  ;;  %3237 = vmatpush.bf16.msra.mxu2 %v8995_v8 }
  0x20   :  { %v12436_v13 = vld [vmem:[#allocation6 + $0x19c] sm:$0xf0] }
  0x21   :  { %v8706_v14 = vld [vmem:[#allocation6 + $0x380] sm:$0xf]  ;;  %v8451_v16 = vor.u32 %v12436_v13, %v8450_v11  ;;  %3251 = vmatpush.bf16.msra.mxu3 %v9251_v12 }
  0x22   :  { %v12500_v15 = vld [vmem:[#allocation6 + $0x39c] sm:$0xf0] }
  0x23   :  { %v8707_v17 = vor.u32 %v12500_v15, %v8706_v14  ;;  %v8962_v18 = vld [vmem:[#allocation6 + $0x580] sm:$0xf]  ;;  %3210 = vmatpush.bf16.msra.mxu0 %v8451_v16 }
  0x24   :  { %v12564_v19 = vld [vmem:[#allocation6 + $0x59c] sm:$0xf0] }
  0x25   :  { %v9218_v20 = vld [vmem:[#allocation6 + $0x780] sm:$0xf]  ;;  %v8963_v21 = vor.u32 %v12564_v19, %v8962_v18  ;;  %3224 = vmatpush.bf16.msra.mxu1 %v8707_v17 }
  0x26   :  { %v12628_v22 = vld [vmem:[#allocation6 + $0x79c] sm:$0xf0] }
  0x27   :  { %v8418_v23 = vld [vmem:[#allocation6 + $0x140] sm:$0xf]  ;;  %v9219_v25 = vor.u32 %v12628_v22, %v9218_v20  ;;  %3238 = vmatpush.bf16.msra.mxu2 %v8963_v21 }
  0x28   :  { %v12428_v24 = vld [vmem:[#allocation6 + $0x15c] sm:$0xf0] }
  0x29   :  { %v8674_v26 = vld [vmem:[#allocation6 + $0x340] sm:$0xf]  ;;  %v8419_v29 = vor.u32 %v12428_v24, %v8418_v23  ;;  %3252 = vmatpush.bf16.msra.mxu3 %v9219_v25 }
  0x2a   :  { %v12492_v27 = vld [vmem:[#allocation6 + $0x35c] sm:$0xf0] }
  0x2b   :  { %v8930_v28 = vld [vmem:[#allocation6 + $0x540] sm:$0xf]  ;;  %v8675_v33 = vor.u32 %v12492_v27, %v8674_v26  ;;  %3211 = vmatpush.bf16.msra.mxu0 %v8419_v29 }
  0x2c   :  { %v12556_v30 = vld [vmem:[#allocation6 + $0x55c] sm:$0xf0] }
  0x2d   :  { %v9186_v31 = vld [vmem:[#allocation6 + $0x740] sm:$0xf]  ;;  %v8931_v34 = vor.u32 %v12556_v30, %v8930_v28  ;;  %3225 = vmatpush.bf16.msra.mxu1 %v8675_v33 }
  0x2e   :  { %v12620_v32 = vld [vmem:[#allocation6 + $0x75c] sm:$0xf0] }
  0x2f   :  { %v8386_v35 = vld [vmem:[#allocation6 + $0x100] sm:$0xf]  ;;  %v9187_v38 = vor.u32 %v12620_v32, %v9186_v31  ;;  %3239 = vmatpush.bf16.msra.mxu2 %v8931_v34 }
  0x30   :  { %v12420_v36 = vld [vmem:[#allocation6 + $0x11c] sm:$0xf0] }
  0x31   :  { %v8642_v37 = vld [vmem:[#allocation6 + $0x300] sm:$0xf]  ;;  %v8387_v44 = vor.u32 %v12420_v36, %v8386_v35  ;;  %3253 = vmatpush.bf16.msra.mxu3 %v9187_v38 }
  0x32   :  { %v12484_v39 = vld [vmem:[#allocation6 + $0x31c] sm:$0xf0] }
  0x33   :  { %v8898_v40 = vld [vmem:[#allocation6 + $0x500] sm:$0xf]  ;;  %v8643_v45 = vor.u32 %v12484_v39, %v8642_v37  ;;  %3212 = vmatpush.bf16.msra.mxu0 %v8387_v44 }
  0x34   :  { %v12548_v41 = vld [vmem:[#allocation6 + $0x51c] sm:$0xf0] }
  0x35   :  { %v9154_v42 = vld [vmem:[#allocation6 + $0x700] sm:$0xf]  ;;  %v8899_v46 = vor.u32 %v12548_v41, %v8898_v40  ;;  %3226 = vmatpush.bf16.msra.mxu1 %v8643_v45 }
  0x36   :  { %v12612_v43 = vld [vmem:[#allocation6 + $0x71c] sm:$0xf0] }
  0x37   :  { %v8354_v47 = vld [vmem:[#allocation6 + $0xc0] sm:$0xf]  ;;  %v9155_v50 = vor.u32 %v12612_v43, %v9154_v42  ;;  %3240 = vmatpush.bf16.msra.mxu2 %v8899_v46 }
  0x38   :  { %v12412_v48 = vld [vmem:[#allocation6 + $0xdc] sm:$0xf0] }
  0x39   :  { %v8610_v49 = vld [vmem:[#allocation6 + $0x2c0] sm:$0xf]  ;;  %v8355_v56 = vor.u32 %v12412_v48, %v8354_v47  ;;  %3254 = vmatpush.bf16.msra.mxu3 %v9155_v50 }
  0x3a   :  { %v12476_v51 = vld [vmem:[#allocation6 + $0x2dc] sm:$0xf0] }
  0x3b   :  { %v8866_v52 = vld [vmem:[#allocation6 + $0x4c0] sm:$0xf]  ;;  %v8611_v57 = vor.u32 %v12476_v51, %v8610_v49  ;;  %3213 = vmatpush.bf16.msra.mxu0 %v8355_v56 }
  0x3c   :  { %v12540_v53 = vld [vmem:[#allocation6 + $0x4dc] sm:$0xf0] }
  0x3d   :  { %v9122_v54 = vld [vmem:[#allocation6 + $0x6c0] sm:$0xf]  ;;  %v8867_v58 = vor.u32 %v12540_v53, %v8866_v52  ;;  %3227 = vmatpush.bf16.msra.mxu1 %v8611_v57 }
  0x3e   :  { %v12604_v55 = vld [vmem:[#allocation6 + $0x6dc] sm:$0xf0] }
  0x3f   :  { %v8322_v59 = vld [vmem:[#allocation6 + $0x80] sm:$0xf]  ;;  %v9123_v62 = vor.u32 %v12604_v55, %v9122_v54  ;;  %3241 = vmatpush.bf16.msra.mxu2 %v8867_v58  ;;  %v97_v54 = vld [vmem:[#allocation3 + $0x10] sm:$0xff] }
  0x40   :  { %v12404_v60 = vld [vmem:[#allocation6 + $0x9c] sm:$0xf0] }
  0x41   :  { %v8578_v61 = vld [vmem:[#allocation6 + $0x280] sm:$0xf]  ;;  %v8323_v4 = vor.u32 %v12404_v60, %v8322_v59  ;;  %3255 = vmatpush.bf16.msra.mxu3 %v9123_v62  ;;  %v105_v59 = vld [vmem:[#allocation3 + $0x50] sm:$0xff] }
  0x42   :  { %v12468_v63 = vld [vmem:[#allocation6 + $0x29c] sm:$0xf0] }
  0x43   :  { %v8834_v0 = vld [vmem:[#allocation6 + $0x480] sm:$0xf]  ;;  %v8579_v5 = vor.u32 %v12468_v63, %v8578_v61  ;;  %3214 = vmatpush.bf16.msra.mxu0 %v8323_v4 }
  0x44   :  { %v12532_v1 = vld [vmem:[#allocation6 + $0x49c] sm:$0xf0] }
  0x45   :  { %v9090_v2 = vld [vmem:[#allocation6 + $0x680] sm:$0xf]  ;;  %v8835_v6 = vor.u32 %v12532_v1, %v8834_v0  ;;  %3228 = vmatpush.bf16.msra.mxu1 %v8579_v5  ;;  %v13643_v1 = vpack.c.bf16 %v105_v59, %v97_v54 }
  0x46   :  { %v12596_v3 = vld [vmem:[#allocation6 + $0x69c] sm:$0xf0] }
  0x47   :  { %v8290_v7 = vld [vmem:[#allocation6 + $0x40] sm:$0xf]  ;;  %v9091_v10 = vor.u32 %v12596_v3, %v9090_v2  ;;  %3242 = vmatpush.bf16.msra.mxu2 %v8835_v6  ;;  %v96_v6 = vld [vmem:[#allocation3 + $0x8] sm:$0xff] }
  0x48   :  { %v12396_v8 = vld [vmem:[#allocation6 + $0x5c] sm:$0xf0] }
  0x49   :  { %v8546_v9 = vld [vmem:[#allocation6 + $0x240] sm:$0xf]  ;;  %v8291_v16 = vor.u32 %v12396_v8, %v8290_v7  ;;  %3256 = vmatpush.bf16.msra.mxu3 %v9091_v10  ;;  %v104_v7 = vld [vmem:[#allocation3 + $0x48] sm:$0xff]  ;;  %v98_v8 = vld [vmem:[#allocation3 + $0x18] sm:$0xff] }
  0x4a   :  { %v12460_v11 = vld [vmem:[#allocation6 + $0x25c] sm:$0xf0]  ;;  %v13647_v10 = vpack.c.bf16 %v104_v7, %v96_v6 }
  0x4b   :  { %v8802_v12 = vld [vmem:[#allocation6 + $0x440] sm:$0xf]  ;;  %v8547_v19 = vor.u32 %v12460_v11, %v8546_v9  ;;  %3215 = vmatpush.bf16.msra.mxu0 %v8291_v16  ;;  %v106_v11 = vld [vmem:[#allocation3 + $0x58] sm:$0xff] }
  0x4c   :  { %v12524_v13 = vld [vmem:[#allocation6 + $0x45c] sm:$0xf0] }
  0x4d   :  { %v9058_v14 = vld [vmem:[#allocation6 + $0x640] sm:$0xf]  ;;  %v8803_v20 = vor.u32 %v12524_v13, %v8802_v12  ;;  %3229 = vmatpush.bf16.msra.mxu1 %v8547_v19 }
  0x4e   :  { %v12588_v15 = vld [vmem:[#allocation6 + $0x65c] sm:$0xf0] }
  0x4f   :  { %v8258_v17 = vld [vmem:[#allocation6] sm:$0xf]  ;;  %v9059_v24 = vor.u32 %v12588_v15, %v9058_v14  ;;  %3243 = vmatpush.bf16.msra.mxu2 %v8803_v20 }
  0x50   :  { %v12388_v18 = vld [vmem:[#allocation6 + $0x1c] sm:$0xf0] }
  0x51   :  { %v8514_v21 = vld [vmem:[#allocation6 + $0x200] sm:$0xf]  ;;  %v8259_v31 = vor.u32 %v12388_v18, %v8258_v17  ;;  %3257 = vmatpush.bf16.msra.mxu3 %v9059_v24  ;;  %v13649_v17 = vpack.c.bf16 %v106_v11, %v98_v8 }
  0x52   :  { %v12452_v22 = vld [vmem:[#allocation6 + $0x21c] sm:$0xf0] }
  0x53   :  { %v8770_v23 = vld [vmem:[#allocation6 + $0x400] sm:$0xf]  ;;  %v8515_v35 = vor.u32 %v12452_v22, %v8514_v21  ;;  %3216 = vmatpush.bf16.msra.mxu0 %v8259_v31 }
  0x54   :  { %v12516_v25 = vld [vmem:[#allocation6 + $0x41c] sm:$0xf0] }
  0x55   :  { %v9026_v26 = vld [vmem:[#allocation6 + $0x600] sm:$0xf]  ;;  %v8771_v36 = vor.u32 %v12516_v25, %v8770_v23  ;;  %3230 = vmatpush.bf16.msra.mxu1 %v8515_v35 }
  0x56   :  { %v12580_v27 = vld [vmem:[#allocation6 + $0x61c] sm:$0xf0] }
  0x57   :  { %v9506_v28 = vld [vmem:[#allocation6 + $0x9c0] sm:$0xf]  ;;  %v9027_v39 = vor.u32 %v12580_v27, %v9026_v26  ;;  %3244 = vmatpush.bf16.msra.mxu2 %v8771_v36 }
  0x58   :  { %v12700_v29 = vld [vmem:[#allocation6 + $0x9dc] sm:$0xf0]  ;;  %3231 = vmatmul.bf16.vlgmr.msra.gmra.mxu1 %v13647_v10 }
  0x59   :  { %v9762_v30 = vld [vmem:[#allocation6 + $0xbc0] sm:$0xf]  ;;  %v9507_v40 = vor.u32 %v12700_v29, %v9506_v28  ;;  %3258 = vmatpush.bf16.msra.mxu3 %v9027_v39 }
  0x5a   :  { %v12764_v32 = vld [vmem:[#allocation6 + $0xbdc] sm:$0xf0]  ;;  %3245 = vmatmul.bf16.vlgmr.msra.gmra.mxu2 %v13643_v1 }
  0x5b   :  { %v10018_v33 = vld [vmem:[#allocation6 + $0xdc0] sm:$0xf]  ;;  %v9763_v43 = vor.u32 %v12764_v32, %v9762_v30  ;;  %3265 = vmatpush.bf16.msrb.mxu0 %v9507_v40 }
  0x5c   :  { %v12828_v34 = vld [vmem:[#allocation6 + $0xddc] sm:$0xf0]  ;;  %3259 = vmatmul.bf16.vlgmr.msra.gmra.mxu3 %v13649_v17 }
  0x5d   :  { %v10274_v37 = vld [vmem:[#allocation6 + $0xfc0] sm:$0xf]  ;;  %v10019_v44 = vor.u32 %v12828_v34, %v10018_v33  ;;  %3279 = vmatpush.bf16.msrb.mxu1 %v9763_v43 }
  0x5e   :  { %v12892_v38 = vld [vmem:[#allocation6 + $0xfdc] sm:$0xf0] }
  0x5f   :  { %v9474_v41 = vld [vmem:[#allocation6 + $0x980] sm:$0xf]  ;;  %v10275_v48 = vor.u32 %v12892_v38, %v10274_v37  ;;  %3293 = vmatpush.bf16.msrb.mxu2 %v10019_v44 }
  0x60   :  { %v12692_v42 = vld [vmem:[#allocation6 + $0x99c] sm:$0xf0] }
  0x61   :  { %v9730_v45 = vld [vmem:[#allocation6 + $0xb80] sm:$0xf]  ;;  %v9475_v55 = vor.u32 %v12692_v42, %v9474_v41  ;;  %3307 = vmatpush.bf16.msrb.mxu3 %v10275_v48 }
  0x62   :  { %v12756_v46 = vld [vmem:[#allocation6 + $0xb9c] sm:$0xf0] }
  0x63   :  { %v9986_v47 = vld [vmem:[#allocation6 + $0xd80] sm:$0xf]  ;;  %v9731_v60 = vor.u32 %v12756_v46, %v9730_v45  ;;  %3266 = vmatpush.bf16.msrb.mxu0 %v9475_v55 }
  0x64   :  { %v12820_v49 = vld [vmem:[#allocation6 + $0xd9c] sm:$0xf0] }
  0x65   :  { %v10242_v50 = vld [vmem:[#allocation6 + $0xf80] sm:$0xf]  ;;  %v9987_v61 = vor.u32 %v12820_v49, %v9986_v47  ;;  %3280 = vmatpush.bf16.msrb.mxu1 %v9731_v60 }
  0x66   :  { %v12884_v51 = vld [vmem:[#allocation6 + $0xf9c] sm:$0xf0] }
  0x67   :  { %v95_v52 = vld [vmem:[#allocation3] sm:$0xff]  ;;  %v10243_v2 = vor.u32 %v12884_v51, %v10242_v50  ;;  %3294 = vmatpush.bf16.msrb.mxu2 %v9987_v61 }
  0x68   :  { %v103_v53 = vld [vmem:[#allocation3 + $0x40] sm:$0xff] }
  0x69   :  { %v9442_v56 = vld [vmem:[#allocation6 + $0x940] sm:$0xf]  ;;  %v13641_v58 = vpack.c.bf16 %v103_v53, %v95_v52  ;;  %3308 = vmatpush.bf16.msrb.mxu3 %v10243_v2 }
  0x6a   :  { %v12684_v57 = vld [vmem:[#allocation6 + $0x95c] sm:$0xf0] }
  0x6b   :  { %v9698_v62 = vld [vmem:[#allocation6 + $0xb40] sm:$0xf]  ;;  %3217 = vmatmul.bf16.vlgmr.msra.gmra.mxu0 %v13641_v58  ;;  %v9443_v9 = vor.u32 %v12684_v57, %v9442_v56 }
  0x6c   :  { %v12748_v63 = vld [vmem:[#allocation6 + $0xb5c] sm:$0xf0] }
  0x6d   :  { %v9954_v0 = vld [vmem:[#allocation6 + $0xd40] sm:$0xf]  ;;  %v9699_v12 = vor.u32 %v12748_v63, %v9698_v62  ;;  %3267 = vmatpush.bf16.msrb.mxu0 %v9443_v9  ;;  %v12440_v9 = vld [vmem:[#allocation6 + $0x1c4] sm:$0xf] }
  0x6e   :  { %v12812_v3 = vld [vmem:[#allocation6 + $0xd5c] sm:$0xf0] }
  0x6f   :  { %v10210_v4 = vld [vmem:[#allocation6 + $0xf40] sm:$0xf]  ;;  %v9955_v13 = vor.u32 %v12812_v3, %v9954_v0  ;;  %3281 = vmatpush.bf16.msrb.mxu1 %v9699_v12  ;;  %v8484_v12 = vld [vmem:[#allocation6 + $0x1e0] sm:$0xf0] }
  0x70   :  { %v12876_v5 = vld [vmem:[#allocation6 + $0xf5c] sm:$0xf0] }
  0x71   :  { %v9410_v14 = vld [vmem:[#allocation6 + $0x900] sm:$0xf]  ;;  %v10211_v18 = vor.u32 %v12876_v5, %v10210_v4  ;;  %3295 = vmatpush.bf16.msrb.mxu2 %v9955_v13  ;;  %v12504_v13 = vld [vmem:[#allocation6 + $0x3c4] sm:$0xf] }
  0x72   :  { %v12676_v15 = vld [vmem:[#allocation6 + $0x91c] sm:$0xf0] }
  0x73   :  { %v9666_v16 = vld [vmem:[#allocation6 + $0xb00] sm:$0xf]  ;;  %v9411_v24 = vor.u32 %v12676_v15, %v9410_v14  ;;  %3309 = vmatpush.bf16.msrb.mxu3 %v10211_v18  ;;  %v8740_v14 = vld [vmem:[#allocation6 + $0x3e0] sm:$0xf0] }
  0x74   :  { %v12740_v19 = vld [vmem:[#allocation6 + $0xb1c] sm:$0xf0]  ;;  %v12568_v15 = vld [vmem:[#allocation6 + $0x5c4] sm:$0xf] }
  0x75   :  { %v9922_v20 = vld [vmem:[#allocation6 + $0xd00] sm:$0xf]  ;;  %v9667_v25 = vor.u32 %v12740_v19, %v9666_v16  ;;  %3268 = vmatpush.bf16.msrb.mxu0 %v9411_v24  ;;  %v8996_v16 = vld [vmem:[#allocation6 + $0x5e0] sm:$0xf0] }
  0x76   :  { %v12804_v21 = vld [vmem:[#allocation6 + $0xd1c] sm:$0xf0]  ;;  %v12632_v18 = vld [vmem:[#allocation6 + $0x7c4] sm:$0xf] }
  0x77   :  { %v10178_v22 = vld [vmem:[#allocation6 + $0xf00] sm:$0xf]  ;;  %v9923_v26 = vor.u32 %v12804_v21, %v9922_v20  ;;  %3282 = vmatpush.bf16.msrb.mxu1 %v9667_v25  ;;  %v9252_v20 = vld [vmem:[#allocation6 + $0x7e0] sm:$0xf0]  ;;  %v101_v25 = vld [vmem:[#allocation3 + $0x30] sm:$0xff] }
  0x78   :  { %v12868_v23 = vld [vmem:[#allocation6 + $0xf1c] sm:$0xf0] }
  0x79   :  { %v9378_v27 = vld [vmem:[#allocation6 + $0x8c0] sm:$0xf]  ;;  %v10179_v30 = vor.u32 %v12868_v23, %v10178_v22  ;;  %3296 = vmatpush.bf16.msrb.mxu2 %v9923_v26  ;;  %v109_v26 = vld [vmem:[#allocation3 + $0x70] sm:$0xff] }
  0x7a   :  { %v12668_v28 = vld [vmem:[#allocation6 + $0x8dc] sm:$0xf0] }
  0x7b   :  { %v9634_v29 = vld [vmem:[#allocation6 + $0xac0] sm:$0xf]  ;;  %v9379_v36 = vor.u32 %v12668_v28, %v9378_v27  ;;  %3310 = vmatpush.bf16.msrb.mxu3 %v10179_v30  ;;  %v100_v27 = vld [vmem:[#allocation3 + $0x28] sm:$0xff] }
  0x7c   :  { %v12732_v31 = vld [vmem:[#allocation6 + $0xadc] sm:$0xf0]  ;;  %v108_v30 = vld [vmem:[#allocation3 + $0x68] sm:$0xff] }
  0x7d   :  { %v9890_v32 = vld [vmem:[#allocation6 + $0xcc0] sm:$0xf]  ;;  %v9635_v37 = vor.u32 %v12732_v31, %v9634_v29  ;;  %3269 = vmatpush.bf16.msrb.mxu0 %v9379_v36  ;;  %v8487_v29 = vor.u32 %v12440_v9, %v8484_v12  ;;  %v102_v31 = vld [vmem:[#allocation3 + $0x38] sm:$0xff]  ;;  %v8452_v36 = vld [vmem:[#allocation6 + $0x1a0] sm:$0xf0] }
  0x7e   :  { %v12796_v33 = vld [vmem:[#allocation6 + $0xcdc] sm:$0xf0]  ;;  %v9156_v9 = vld [vmem:[#allocation6 + $0x720] sm:$0xf0] }
  0x7f   :  { %v10146_v34 = vld [vmem:[#allocation6 + $0xec0] sm:$0xf]  ;;  %v9891_v38 = vor.u32 %v12796_v33, %v9890_v32  ;;  %3283 = vmatpush.bf16.msrb.mxu1 %v9635_v37  ;;  %v110_v32 = vld [vmem:[#allocation3 + $0x78] sm:$0xff]  ;;  %v8743_v33 = vor.u32 %v12504_v13, %v8740_v14  ;;  %v12496_v37 = vld [vmem:[#allocation6 + $0x384] sm:$0xf] }
  0x80   :  { %v12860_v35 = vld [vmem:[#allocation6 + $0xedc] sm:$0xf0]  ;;  %v12408_v14 = vld [vmem:[#allocation6 + $0xc4] sm:$0xf] }
  0x81   :  { %v9346_v39 = vld [vmem:[#allocation6 + $0x880] sm:$0xf]  ;;  %v10147_v42 = vor.u32 %v12860_v35, %v10146_v34  ;;  %3297 = vmatpush.bf16.msrb.mxu2 %v9891_v38  ;;  %v8999_v34 = vor.u32 %v12568_v15, %v8996_v16  ;;  %v12432_v35 = vld [vmem:[#allocation6 + $0x184] sm:$0xf]  ;;  %v9255_v38 = vor.u32 %v12632_v18, %v9252_v20 }
  0x82   :  { %v12660_v40 = vld [vmem:[#allocation6 + $0x89c] sm:$0xf0]  ;;  %v8356_v15 = vld [vmem:[#allocation6 + $0xe0] sm:$0xf0] }
  0x83   :  { %v9602_v41 = vld [vmem:[#allocation6 + $0xa80] sm:$0xf]  ;;  %v9347_v48 = vor.u32 %v12660_v40, %v9346_v39  ;;  %3311 = vmatpush.bf16.msrb.mxu3 %v10147_v42  ;;  %v8708_v40 = vld [vmem:[#allocation6 + $0x3a0] sm:$0xf0] }
  0x84   :  { %v12724_v43 = vld [vmem:[#allocation6 + $0xa9c] sm:$0xf0]  ;;  %v8964_v42 = vld [vmem:[#allocation6 + $0x5a0] sm:$0xf0] }
  0x85   :  { %v9858_v44 = vld [vmem:[#allocation6 + $0xc80] sm:$0xf]  ;;  %v9603_v50 = vor.u32 %v12724_v43, %v9602_v41  ;;  %3270 = vmatpush.bf16.msrb.mxu0 %v9347_v48  ;;  %v12560_v41 = vld [vmem:[#allocation6 + $0x584] sm:$0xf]  ;;  %v13655_v43 = vpack.c.bf16 %v109_v26, %v101_v25  ;;  %v8455_v48 = vor.u32 %v12432_v35, %v8452_v36 }
  0x86   :  { %v12788_v45 = vld [vmem:[#allocation6 + $0xc9c] sm:$0xf0]  ;;  %v12472_v16 = vld [vmem:[#allocation6 + $0x2c4] sm:$0xf] }
  0x87   :  { %v10114_v46 = vld [vmem:[#allocation6 + $0xe80] sm:$0xf]  ;;  %v9859_v51 = vor.u32 %v12788_v45, %v9858_v44  ;;  %3284 = vmatpush.bf16.msrb.mxu1 %v9603_v50  ;;  %v13657_v44 = vpack.c.bf16 %v108_v30, %v100_v27  ;;  %v12624_v45 = vld [vmem:[#allocation6 + $0x784] sm:$0xf]  ;;  %v8967_v50 = vor.u32 %v12560_v41, %v8964_v42 }
  0x88   :  { %v12852_v47 = vld [vmem:[#allocation6 + $0xe9c] sm:$0xf0]  ;;  %v12536_v20 = vld [vmem:[#allocation6 + $0x4c4] sm:$0xf] }
  0x89   :  { %v9314_v49 = vld [vmem:[#allocation6 + $0x840] sm:$0xf]  ;;  %v10115_v55 = vor.u32 %v12852_v47, %v10114_v46  ;;  %3298 = vmatpush.bf16.msrb.mxu2 %v9859_v51  ;;  %v9220_v46 = vld [vmem:[#allocation6 + $0x7a0] sm:$0xf0]  ;;  %v13659_v47 = vpack.c.bf16 %v110_v32, %v102_v31 }
  0x8a   :  { %v12652_v52 = vld [vmem:[#allocation6 + $0x85c] sm:$0xf0]  ;;  %v12424_v51 = vld [vmem:[#allocation6 + $0x144] sm:$0xf] }
  0x8b   :  { %v9570_v53 = vld [vmem:[#allocation6 + $0xa40] sm:$0xf]  ;;  %v9315_v63 = vor.u32 %v12652_v52, %v9314_v49  ;;  %3312 = vmatpush.bf16.msrb.mxu3 %v10115_v55  ;;  %v8711_v49 = vor.u32 %v12496_v37, %v8708_v40  ;;  %v8420_v52 = vld [vmem:[#allocation6 + $0x160] sm:$0xf0] }
  0x8c   :  { %v12716_v54 = vld [vmem:[#allocation6 + $0xa5c] sm:$0xf0]  ;;  %v8676_v55 = vld [vmem:[#allocation6 + $0x360] sm:$0xf0] }
  0x8d   :  { %v9826_v56 = vld [vmem:[#allocation6 + $0xc40] sm:$0xf]  ;;  %v9571_v5 = vor.u32 %v12716_v54, %v9570_v53  ;;  %3271 = vmatpush.bf16.msrb.mxu0 %v9315_v63  ;;  %v12488_v53 = vld [vmem:[#allocation6 + $0x344] sm:$0xf]  ;;  %v9223_v54 = vor.u32 %v12624_v45, %v9220_v46 }
  0x8e   :  { %v12780_v57 = vld [vmem:[#allocation6 + $0xc5c] sm:$0xf0]  ;;  %v12400_v27 = vld [vmem:[#allocation6 + $0x84] sm:$0xf] }
  0x8f   :  { %v10082_v59 = vld [vmem:[#allocation6 + $0xe40] sm:$0xf]  ;;  %v9827_v6 = vor.u32 %v12780_v57, %v9826_v56  ;;  %3285 = vmatpush.bf16.msrb.mxu1 %v9571_v5  ;;  %v12552_v56 = vld [vmem:[#allocation6 + $0x544] sm:$0xf] }
  0x90   :  { %v12844_v60 = vld [vmem:[#allocation6 + $0xe5c] sm:$0xf0]  ;;  %v8932_v57 = vld [vmem:[#allocation6 + $0x560] sm:$0xf0] }
  0x91   :  { %v9282_v61 = vld [vmem:[#allocation6 + $0x800] sm:$0xf]  ;;  %v10083_v11 = vor.u32 %v12844_v60, %v10082_v59  ;;  %3299 = vmatpush.bf16.msrb.mxu2 %v9827_v6  ;;  %v12616_v59 = vld [vmem:[#allocation6 + $0x744] sm:$0xf]  ;;  %v8935_v63 = vor.u32 %v12552_v56, %v8932_v57 }
  0x92   :  { %v12644_v62 = vld [vmem:[#allocation6 + $0x81c] sm:$0xf0]  ;;  %v9188_v60 = vld [vmem:[#allocation6 + $0x760] sm:$0xf0] }
  0x93   :  { %v9538_v0 = vld [vmem:[#allocation6 + $0xa00] sm:$0xf]  ;;  %v9283_v19 = vor.u32 %v12644_v62, %v9282_v61  ;;  %3313 = vmatpush.bf16.msrb.mxu3 %v10083_v11  ;;  %v8423_v61 = vor.u32 %v12424_v51, %v8420_v52  ;;  %v8679_v62 = vor.u32 %v12488_v53, %v8676_v55  ;;  %v8644_v5 = vld [vmem:[#allocation6 + $0x320] sm:$0xf0] }
  0x94   :  { %v12708_v2 = vld [vmem:[#allocation6 + $0xa1c] sm:$0xf0]  ;;  %v12544_v6 = vld [vmem:[#allocation6 + $0x504] sm:$0xf] }
  0x95   :  { %v9794_v3 = vld [vmem:[#allocation6 + $0xc00] sm:$0xf]  ;;  %v9539_v23 = vor.u32 %v12708_v2, %v9538_v0  ;;  %3272 = vmatpush.bf16.msrb.mxu0 %v9283_v19  ;;  %v12416_v0 = vld [vmem:[#allocation6 + $0x104] sm:$0xf] }
  0x96   :  { %v12772_v4 = vld [vmem:[#allocation6 + $0xc1c] sm:$0xf0]  ;;  %v8388_v2 = vld [vmem:[#allocation6 + $0x120] sm:$0xf0] }
  0x97   :  { %v10050_v7 = vld [vmem:[#allocation6 + $0xe00] sm:$0xf]  ;;  %v9795_v24 = vor.u32 %v12772_v4, %v9794_v3  ;;  %3286 = vmatpush.bf16.msrb.mxu1 %v9539_v23  ;;  %v12480_v3 = vld [vmem:[#allocation6 + $0x304] sm:$0xf]  ;;  %v9191_v4 = vor.u32 %v12616_v59, %v9188_v60  ;;  %v8391_v11 = vor.u32 %v12416_v0, %v8388_v2 }
  0x98   :  { %v12836_v8 = vld [vmem:[#allocation6 + $0xe1c] sm:$0xf0]  ;;  %v8647_v12 = vor.u32 %v12480_v3, %v8644_v5  ;;  %v8612_v19 = vld [vmem:[#allocation6 + $0x2e0] sm:$0xf0] }
  0x99   :  { %v99_v21 = vld [vmem:[#allocation3 + $0x20] sm:$0xff]  ;;  %v10051_v28 = vor.u32 %v12836_v8, %v10050_v7  ;;  %3300 = vmatpush.bf16.msrb.mxu2 %v9795_v24  ;;  %3321 = vmatpush.bf16.msra.mxu0 %v8487_v29  ;;  %v8359_v24 = vor.u32 %v12408_v14, %v8356_v15  ;;  %v8615_v25 = vor.u32 %v12472_v16, %v8612_v19 }
  0x9a   :  { %v107_v22 = vld [vmem:[#allocation3 + $0x60] sm:$0xff]  ;;  %3287 = vmatmul.bf16.vlgmr.msrb.gmra.mxu1 %v13657_v44 }
  0x9b   :  { %v13653_v39 = vpack.c.bf16 %v107_v22, %v99_v21  ;;  %3314 = vmatpush.bf16.msrb.mxu3 %v10051_v28  ;;  %3335 = vmatpush.bf16.msra.mxu1 %v8743_v33  ;;  %v8900_v7 = vld [vmem:[#allocation6 + $0x520] sm:$0xf0] }
  0x9c   :  { %3301 = vmatmul.bf16.vlgmr.msrb.gmra.mxu2 %v13655_v43  ;;  %v12608_v8 = vld [vmem:[#allocation6 + $0x704] sm:$0xf]  ;;  %v8903_v13 = vor.u32 %v12544_v6, %v8900_v7 }
  0x9d   :  { %3349 = vmatpush.bf16.msra.mxu2 %v8999_v34  ;;  %3273 = vmatmul.bf16.vlgmr.msrb.gmra.mxu0 %v13653_v39  ;;  %v9159_v18 = vor.u32 %v12608_v8, %v9156_v9  ;;  %v8868_v21 = vld [vmem:[#allocation6 + $0x4e0] sm:$0xf0] }
  0x9e   :  { %3315 = vmatmul.bf16.vlgmr.msrb.gmra.mxu3 %v13659_v47  ;;  %3322 = vmatpush.bf16.msra.mxu0 %v8455_v48  ;;  %v12600_v22 = vld [vmem:[#allocation6 + $0x6c4] sm:$0xf]  ;;  %v8871_v26 = vor.u32 %v12536_v20, %v8868_v21 }
  0x9f   :  { %3363 = vmatpush.bf16.msra.mxu3 %v9255_v38  ;;  %3336 = vmatpush.bf16.msra.mxu1 %v8711_v49  ;;  %v9124_v23 = vld [vmem:[#allocation6 + $0x6e0] sm:$0xf0] }
  0xa0   :  { %v8324_v28 = vld [vmem:[#allocation6 + $0xa0] sm:$0xf0]  ;;  %v9127_v30 = vor.u32 %v12600_v22, %v9124_v23 }
  0xa1   :  { %3350 = vmatpush.bf16.msra.mxu2 %v8967_v50  ;;  %v12464_v29 = vld [vmem:[#allocation6 + $0x284] sm:$0xf]  ;;  %v8327_v36 = vor.u32 %v12400_v27, %v8324_v28 }
  0xa2   :  { %3323 = vmatpush.bf16.msra.mxu0 %v8423_v61  ;;  %v8580_v31 = vld [vmem:[#allocation6 + $0x2a0] sm:$0xf0] }
  0xa3   :  { %3364 = vmatpush.bf16.msra.mxu3 %v9223_v54  ;;  %3337 = vmatpush.bf16.msra.mxu1 %v8679_v62  ;;  %v12528_v32 = vld [vmem:[#allocation6 + $0x484] sm:$0xf]  ;;  %v8583_v37 = vor.u32 %v12464_v29, %v8580_v31 }
  0xa4   :  { %v8836_v33 = vld [vmem:[#allocation6 + $0x4a0] sm:$0xf0] }
  0xa5   :  { %3351 = vmatpush.bf16.msra.mxu2 %v8935_v63  ;;  %v12592_v34 = vld [vmem:[#allocation6 + $0x684] sm:$0xf]  ;;  %v8839_v38 = vor.u32 %v12528_v32, %v8836_v33 }
  0xa6   :  { %3324 = vmatpush.bf16.msra.mxu0 %v8391_v11  ;;  %v9092_v35 = vld [vmem:[#allocation6 + $0x6a0] sm:$0xf0] }
  0xa7   :  { %3365 = vmatpush.bf16.msra.mxu3 %v9191_v4  ;;  %3338 = vmatpush.bf16.msra.mxu1 %v8647_v12  ;;  %v12392_v40 = vld [vmem:[#allocation6 + $0x44] sm:$0xf]  ;;  %v9095_v45 = vor.u32 %v12592_v34, %v9092_v35 }
  0xa8   :  { %v8292_v41 = vld [vmem:[#allocation6 + $0x60] sm:$0xf0] }
  0xa9   :  { %3352 = vmatpush.bf16.msra.mxu2 %v8903_v13  ;;  %v12456_v42 = vld [vmem:[#allocation6 + $0x244] sm:$0xf]  ;;  %v8295_v52 = vor.u32 %v12392_v40, %v8292_v41 }
  0xaa   :  { %3325 = vmatpush.bf16.msra.mxu0 %v8359_v24  ;;  %v8548_v46 = vld [vmem:[#allocation6 + $0x260] sm:$0xf0] }
  0xab   :  { %3366 = vmatpush.bf16.msra.mxu3 %v9159_v18  ;;  %3339 = vmatpush.bf16.msra.mxu1 %v8615_v25  ;;  %v12520_v48 = vld [vmem:[#allocation6 + $0x444] sm:$0xf]  ;;  %v8551_v55 = vor.u32 %v12456_v42, %v8548_v46 }
  0xac   :  { %v8804_v49 = vld [vmem:[#allocation6 + $0x460] sm:$0xf0] }
  0xad   :  { %3353 = vmatpush.bf16.msra.mxu2 %v8871_v26  ;;  %v12584_v50 = vld [vmem:[#allocation6 + $0x644] sm:$0xf]  ;;  %v8807_v56 = vor.u32 %v12520_v48, %v8804_v49 }
  0xae   :  { %v9060_v51 = vld [vmem:[#allocation6 + $0x660] sm:$0xf0]  ;;  %3326 = vmatpush.bf16.msra.mxu0 %v8327_v36 }
  0xaf   :  { %3367 = vmatpush.bf16.msra.mxu3 %v9127_v30  ;;  %v12384_v53 = vld [vmem:[#allocation6 + $0x4] sm:$0xf]  ;;  %3340 = vmatpush.bf16.msra.mxu1 %v8583_v37  ;;  %v9063_v61 = vor.u32 %v12584_v50, %v9060_v51 }
  0xb0   :  { %v8260_v54 = vld [vmem:[#allocation6 + $0x20] sm:$0xf0] }
  0xb1   :  { %3354 = vmatpush.bf16.msra.mxu2 %v8839_v38  ;;  %v12448_v57 = vld [vmem:[#allocation6 + $0x204] sm:$0xf]  ;;  %v8263_v5 = vor.u32 %v12384_v53, %v8260_v54 }
  0xb2   :  { %v8516_v59 = vld [vmem:[#allocation6 + $0x220] sm:$0xf0]  ;;  %3327 = vmatpush.bf16.msra.mxu0 %v8295_v52 }
  0xb3   :  { %v12512_v60 = vld [vmem:[#allocation6 + $0x404] sm:$0xf]  ;;  %3368 = vmatpush.bf16.msra.mxu3 %v9095_v45  ;;  %3341 = vmatpush.bf16.msra.mxu1 %v8551_v55  ;;  %v8519_v9 = vor.u32 %v12448_v57, %v8516_v59 }
  0xb4   :  { %v8772_v62 = vld [vmem:[#allocation6 + $0x420] sm:$0xf0] }
  0xb5   :  { %v12576_v63 = vld [vmem:[#allocation6 + $0x604] sm:$0xf]  ;;  %3355 = vmatpush.bf16.msra.mxu2 %v8807_v56  ;;  %v8775_v11 = vor.u32 %v12512_v60, %v8772_v62 }
  0xb6   :  { %v9028_v0 = vld [vmem:[#allocation6 + $0x620] sm:$0xf0]  ;;  %3328 = vmatpush.bf16.msra.mxu0 %v8263_v5 }
  0xb7   :  { %v12696_v2 = vld [vmem:[#allocation6 + $0x9c4] sm:$0xf]  ;;  %3369 = vmatpush.bf16.msra.mxu3 %v9063_v61  ;;  %v9031_v14 = vor.u32 %v12576_v63, %v9028_v0  ;;  %3342 = vmatpush.bf16.msra.mxu1 %v8519_v9 }
  0xb8   :  { %v9508_v3 = vld [vmem:[#allocation6 + $0x9e0] sm:$0xf0] }
  0xb9   :  { %v12760_v4 = vld [vmem:[#allocation6 + $0xbc4] sm:$0xf]  ;;  %v9511_v15 = vor.u32 %v12696_v2, %v9508_v3  ;;  %3356 = vmatpush.bf16.msra.mxu2 %v8775_v11  ;;  %3329 = vmatmul.bf16.vlgmr.msra.gmra.mxu0 %v13641_v58 }
  0xba   :  { %v9764_v6 = vld [vmem:[#allocation6 + $0xbe0] sm:$0xf0]  ;;  %3343 = vmatmul.bf16.vlgmr.msra.gmra.mxu1 %v13647_v10 }
  0xbb   :  { %v12824_v7 = vld [vmem:[#allocation6 + $0xdc4] sm:$0xf]  ;;  %v9767_v16 = vor.u32 %v12760_v4, %v9764_v6  ;;  %3370 = vmatpush.bf16.msra.mxu3 %v9031_v14  ;;  %3377 = vmatpush.bf16.msrb.mxu0 %v9511_v15 }
  0xbc   :  { %v10020_v8 = vld [vmem:[#allocation6 + $0xde0] sm:$0xf0]  ;;  %3357 = vmatmul.bf16.vlgmr.msra.gmra.mxu2 %v13643_v1 }
  0xbd   :  { %v12888_v12 = vld [vmem:[#allocation6 + $0xfc4] sm:$0xf]  ;;  %v10023_v18 = vor.u32 %v12824_v7, %v10020_v8  ;;  %3391 = vmatpush.bf16.msrb.mxu1 %v9767_v16 }
  0xbe   :  { %v10276_v13 = vld [vmem:[#allocation6 + $0xfe0] sm:$0xf0]  ;;  %3371 = vmatmul.bf16.vlgmr.msra.gmra.mxu3 %v13649_v17 }
  0xbf   :  { %v12688_v19 = vld [vmem:[#allocation6 + $0x984] sm:$0xf]  ;;  %v10279_v22 = vor.u32 %v12888_v12, %v10276_v13  ;;  %3405 = vmatpush.bf16.msrb.mxu2 %v10023_v18 }
  0xc0   :  { %v9476_v20 = vld [vmem:[#allocation6 + $0x9a0] sm:$0xf0] }
  0xc1   :  { %v12752_v21 = vld [vmem:[#allocation6 + $0xb84] sm:$0xf]  ;;  %v9479_v28 = vor.u32 %v12688_v19, %v9476_v20  ;;  %3419 = vmatpush.bf16.msrb.mxu3 %v10279_v22 }
  0xc2   :  { %v9732_v23 = vld [vmem:[#allocation6 + $0xba0] sm:$0xf0] }
  0xc3   :  { %v12816_v24 = vld [vmem:[#allocation6 + $0xd84] sm:$0xf]  ;;  %v9735_v29 = vor.u32 %v12752_v21, %v9732_v23  ;;  %3378 = vmatpush.bf16.msrb.mxu0 %v9479_v28 }
  0xc4   :  { %v9988_v25 = vld [vmem:[#allocation6 + $0xda0] sm:$0xf0] }
  0xc5   :  { %v12880_v26 = vld [vmem:[#allocation6 + $0xf84] sm:$0xf]  ;;  %v9991_v30 = vor.u32 %v12816_v24, %v9988_v25  ;;  %3392 = vmatpush.bf16.msrb.mxu1 %v9735_v29 }
  0xc6   :  { %v10244_v27 = vld [vmem:[#allocation6 + $0xfa0] sm:$0xf0] }
  0xc7   :  { %v12680_v31 = vld [vmem:[#allocation6 + $0x944] sm:$0xf]  ;;  %v10247_v34 = vor.u32 %v12880_v26, %v10244_v27  ;;  %3406 = vmatpush.bf16.msrb.mxu2 %v9991_v30 }
  0xc8   :  { %v9444_v32 = vld [vmem:[#allocation6 + $0x960] sm:$0xf0] }
  0xc9   :  { %v12744_v33 = vld [vmem:[#allocation6 + $0xb44] sm:$0xf]  ;;  %v9447_v41 = vor.u32 %v12680_v31, %v9444_v32  ;;  %3420 = vmatpush.bf16.msrb.mxu3 %v10247_v34 }
  0xca   :  { %v9700_v35 = vld [vmem:[#allocation6 + $0xb60] sm:$0xf0] }
  0xcb   :  { %v12808_v36 = vld [vmem:[#allocation6 + $0xd44] sm:$0xf]  ;;  %v9703_v42 = vor.u32 %v12744_v33, %v9700_v35  ;;  %3379 = vmatpush.bf16.msrb.mxu0 %v9447_v41 }
  0xcc   :  { %v9956_v37 = vld [vmem:[#allocation6 + $0xd60] sm:$0xf0] }
  0xcd   :  { %v12872_v38 = vld [vmem:[#allocation6 + $0xf44] sm:$0xf]  ;;  %v9959_v45 = vor.u32 %v12808_v36, %v9956_v37  ;;  %3393 = vmatpush.bf16.msrb.mxu1 %v9703_v42 }
  0xce   :  { %v10212_v40 = vld [vmem:[#allocation6 + $0xf60] sm:$0xf0] }
  0xcf   :  { %v12672_v46 = vld [vmem:[#allocation6 + $0x904] sm:$0xf]  ;;  %v10215_v50 = vor.u32 %v12872_v38, %v10212_v40  ;;  %3407 = vmatpush.bf16.msrb.mxu2 %v9959_v45 }
  0xd0   :  { %v9412_v48 = vld [vmem:[#allocation6 + $0x920] sm:$0xf0] }
  0xd1   :  { %v12736_v49 = vld [vmem:[#allocation6 + $0xb04] sm:$0xf]  ;;  %v9415_v56 = vor.u32 %v12672_v46, %v9412_v48  ;;  %3421 = vmatpush.bf16.msrb.mxu3 %v10215_v50  ;;  %v8490_v48 = vld [vmem:[#allocation6 + $0x1c8] sm:$0xf] }
  0xd2   :  { %v9668_v51 = vld [vmem:[#allocation6 + $0xb20] sm:$0xf0]  ;;  %v8746_v50 = vld [vmem:[#allocation6 + $0x3c8] sm:$0xf] }
  0xd3   :  { %v12800_v52 = vld [vmem:[#allocation6 + $0xd04] sm:$0xf]  ;;  %v9671_v57 = vor.u32 %v12736_v49, %v9668_v51  ;;  %3380 = vmatpush.bf16.msrb.mxu0 %v9415_v56  ;;  %v12445_v49 = vld [vmem:[#allocation6 + $0x1e4] sm:$0xf0] }
  0xd4   :  { %v9924_v53 = vld [vmem:[#allocation6 + $0xd20] sm:$0xf0] }
  0xd5   :  { %v12864_v54 = vld [vmem:[#allocation6 + $0xf04] sm:$0xf]  ;;  %v9927_v59 = vor.u32 %v12800_v52, %v9924_v53  ;;  %3394 = vmatpush.bf16.msrb.mxu1 %v9671_v57  ;;  %v12509_v52 = vld [vmem:[#allocation6 + $0x3e4] sm:$0xf0] }
  0xd6   :  { %v10180_v55 = vld [vmem:[#allocation6 + $0xf20] sm:$0xf0]  ;;  %v9002_v53 = vld [vmem:[#allocation6 + $0x5c8] sm:$0xf] }
  0xd7   :  { %v12664_v60 = vld [vmem:[#allocation6 + $0x8c4] sm:$0xf]  ;;  %v10183_v63 = vor.u32 %v12864_v54, %v10180_v55  ;;  %3408 = vmatpush.bf16.msrb.mxu2 %v9927_v59  ;;  %v12573_v54 = vld [vmem:[#allocation6 + $0x5e4] sm:$0xf0] }
  0xd8   :  { %v9380_v61 = vld [vmem:[#allocation6 + $0x8e0] sm:$0xf0]  ;;  %v9258_v57 = vld [vmem:[#allocation6 + $0x7c8] sm:$0xf] }
  0xd9   :  { %v12728_v62 = vld [vmem:[#allocation6 + $0xac4] sm:$0xf]  ;;  %v9383_v6 = vor.u32 %v12664_v60, %v9380_v61  ;;  %3422 = vmatpush.bf16.msrb.mxu3 %v10183_v63  ;;  %v12637_v59 = vld [vmem:[#allocation6 + $0x7e4] sm:$0xf0]  ;;  %v8491_v61 = vor.u32 %v12445_v49, %v8490_v48  ;;  %v9003_v63 = vor.u32 %v12573_v54, %v9002_v53 }
  0xda   :  { %v9636_v0 = vld [vmem:[#allocation6 + $0xae0] sm:$0xf0]  ;;  %v8874_v48 = vld [vmem:[#allocation6 + $0x4c8] sm:$0xf] }
  0xdb   :  { %v12792_v2 = vld [vmem:[#allocation6 + $0xcc4] sm:$0xf]  ;;  %v9639_v7 = vor.u32 %v12728_v62, %v9636_v0  ;;  %3381 = vmatpush.bf16.msrb.mxu0 %v9383_v6  ;;  %v8747_v62 = vor.u32 %v12509_v52, %v8746_v50  ;;  %v8458_v0 = vld [vmem:[#allocation6 + $0x188] sm:$0xf] }
  0xdc   :  { %v9892_v3 = vld [vmem:[#allocation6 + $0xce0] sm:$0xf0]  ;;  %v8970_v6 = vld [vmem:[#allocation6 + $0x588] sm:$0xf] }
  0xdd   :  { %v12856_v4 = vld [vmem:[#allocation6 + $0xec4] sm:$0xf]  ;;  %v9895_v8 = vor.u32 %v12792_v2, %v9892_v3  ;;  %3395 = vmatpush.bf16.msrb.mxu1 %v9639_v7  ;;  %v12437_v2 = vld [vmem:[#allocation6 + $0x1a4] sm:$0xf0] }
  0xde   :  { %v10148_v5 = vld [vmem:[#allocation6 + $0xee0] sm:$0xf0]  ;;  %v8714_v3 = vld [vmem:[#allocation6 + $0x388] sm:$0xf] }
  0xdf   :  { %v12656_v9 = vld [vmem:[#allocation6 + $0x884] sm:$0xf]  ;;  %v10151_v13 = vor.u32 %v12856_v4, %v10148_v5  ;;  %3409 = vmatpush.bf16.msrb.mxu2 %v9895_v8  ;;  %v9259_v4 = vor.u32 %v12637_v59, %v9258_v57  ;;  %v12501_v5 = vld [vmem:[#allocation6 + $0x3a4] sm:$0xf0] }
  0xe0   :  { %v9348_v11 = vld [vmem:[#allocation6 + $0x8a0] sm:$0xf0]  ;;  %v12565_v7 = vld [vmem:[#allocation6 + $0x5a4] sm:$0xf0] }
  0xe1   :  { %v12720_v12 = vld [vmem:[#allocation6 + $0xa84] sm:$0xf]  ;;  %v9351_v20 = vor.u32 %v12656_v9, %v9348_v11  ;;  %3423 = vmatpush.bf16.msrb.mxu3 %v10151_v13  ;;  %v9226_v8 = vld [vmem:[#allocation6 + $0x788] sm:$0xf]  ;;  %v8459_v11 = vor.u32 %v12437_v2, %v8458_v0  ;;  %v8971_v13 = vor.u32 %v12565_v7, %v8970_v6 }
  0xe2   :  { %v9604_v14 = vld [vmem:[#allocation6 + $0xaa0] sm:$0xf0]  ;;  %v12629_v9 = vld [vmem:[#allocation6 + $0x7a4] sm:$0xf0] }
  0xe3   :  { %v12784_v15 = vld [vmem:[#allocation6 + $0xc84] sm:$0xf]  ;;  %v9607_v21 = vor.u32 %v12720_v12, %v9604_v14  ;;  %3382 = vmatpush.bf16.msrb.mxu0 %v9351_v20  ;;  %v8715_v12 = vor.u32 %v12501_v5, %v8714_v3  ;;  %v8426_v14 = vld [vmem:[#allocation6 + $0x148] sm:$0xf] }
  0xe4   :  { %v9860_v16 = vld [vmem:[#allocation6 + $0xca0] sm:$0xf0]  ;;  %v8938_v20 = vld [vmem:[#allocation6 + $0x548] sm:$0xf] }
  0xe5   :  { %v12848_v18 = vld [vmem:[#allocation6 + $0xe84] sm:$0xf]  ;;  %v9863_v22 = vor.u32 %v12784_v15, %v9860_v16  ;;  %3396 = vmatpush.bf16.msrb.mxu1 %v9607_v21  ;;  %v12429_v15 = vld [vmem:[#allocation6 + $0x164] sm:$0xf0] }
  0xe6   :  { %v10116_v19 = vld [vmem:[#allocation6 + $0xea0] sm:$0xf0]  ;;  %v8682_v16 = vld [vmem:[#allocation6 + $0x348] sm:$0xf] }
  0xe7   :  { %v12648_v23 = vld [vmem:[#allocation6 + $0x844] sm:$0xf]  ;;  %v10119_v26 = vor.u32 %v12848_v18, %v10116_v19  ;;  %3410 = vmatpush.bf16.msrb.mxu2 %v9863_v22  ;;  %v9227_v18 = vor.u32 %v12629_v9, %v9226_v8  ;;  %v12493_v19 = vld [vmem:[#allocation6 + $0x364] sm:$0xf0] }
  0xe8   :  { %v9316_v24 = vld [vmem:[#allocation6 + $0x860] sm:$0xf0]  ;;  %v12557_v21 = vld [vmem:[#allocation6 + $0x564] sm:$0xf0] }
  0xe9   :  { %v12712_v25 = vld [vmem:[#allocation6 + $0xa44] sm:$0xf]  ;;  %v9319_v32 = vor.u32 %v12648_v23, %v9316_v24  ;;  %3424 = vmatpush.bf16.msrb.mxu3 %v10119_v26  ;;  %v9194_v22 = vld [vmem:[#allocation6 + $0x748] sm:$0xf]  ;;  %v8427_v24 = vor.u32 %v12429_v15, %v8426_v14  ;;  %v8939_v26 = vor.u32 %v12557_v21, %v8938_v20 }
  0xea   :  { %v9572_v27 = vld [vmem:[#allocation6 + $0xa60] sm:$0xf0]  ;;  %v12621_v23 = vld [vmem:[#allocation6 + $0x764] sm:$0xf0] }
  0xeb   :  { %v12776_v28 = vld [vmem:[#allocation6 + $0xc44] sm:$0xf]  ;;  %v9575_v35 = vor.u32 %v12712_v25, %v9572_v27  ;;  %3383 = vmatpush.bf16.msrb.mxu0 %v9319_v32  ;;  %v8683_v25 = vor.u32 %v12493_v19, %v8682_v16  ;;  %v8394_v27 = vld [vmem:[#allocation6 + $0x108] sm:$0xf] }
  0xec   :  { %v9828_v29 = vld [vmem:[#allocation6 + $0xc60] sm:$0xf0]  ;;  %v8906_v32 = vld [vmem:[#allocation6 + $0x508] sm:$0xf] }
  0xed   :  { %v12840_v30 = vld [vmem:[#allocation6 + $0xe44] sm:$0xf]  ;;  %v9831_v36 = vor.u32 %v12776_v28, %v9828_v29  ;;  %3397 = vmatpush.bf16.msrb.mxu1 %v9575_v35  ;;  %v12421_v28 = vld [vmem:[#allocation6 + $0x124] sm:$0xf0] }
  0xee   :  { %v10084_v31 = vld [vmem:[#allocation6 + $0xe60] sm:$0xf0]  ;;  %v8650_v29 = vld [vmem:[#allocation6 + $0x308] sm:$0xf] }
  0xef   :  { %v12640_v33 = vld [vmem:[#allocation6 + $0x804] sm:$0xf]  ;;  %v10087_v41 = vor.u32 %v12840_v30, %v10084_v31  ;;  %3411 = vmatpush.bf16.msrb.mxu2 %v9831_v36  ;;  %v9195_v30 = vor.u32 %v12621_v23, %v9194_v22  ;;  %v12485_v31 = vld [vmem:[#allocation6 + $0x324] sm:$0xf0]  ;;  %v8395_v36 = vor.u32 %v12421_v28, %v8394_v27 }
  0xf0   :  { %v9284_v34 = vld [vmem:[#allocation6 + $0x820] sm:$0xf0]  ;;  %v12613_v35 = vld [vmem:[#allocation6 + $0x724] sm:$0xf0] }
  0xf1   :  { %v12704_v37 = vld [vmem:[#allocation6 + $0xa04] sm:$0xf]  ;;  %v9287_v51 = vor.u32 %v12640_v33, %v9284_v34  ;;  %3425 = vmatpush.bf16.msrb.mxu3 %v10087_v41  ;;  %v12549_v33 = vld [vmem:[#allocation6 + $0x524] sm:$0xf0] }
  0xf2   :  { %v9540_v38 = vld [vmem:[#allocation6 + $0xa20] sm:$0xf0]  ;;  %v9162_v34 = vld [vmem:[#allocation6 + $0x708] sm:$0xf] }
  0xf3   :  { %v12768_v40 = vld [vmem:[#allocation6 + $0xc04] sm:$0xf]  ;;  %v9543_v55 = vor.u32 %v12704_v37, %v9540_v38  ;;  %3384 = vmatpush.bf16.msrb.mxu0 %v9287_v51  ;;  %v8651_v37 = vor.u32 %v12485_v31, %v8650_v29  ;;  %v8907_v38 = vor.u32 %v12549_v33, %v8906_v32  ;;  %v12413_v41 = vld [vmem:[#allocation6 + $0xe4] sm:$0xf0] }
  0xf4   :  { %v9796_v42 = vld [vmem:[#allocation6 + $0xc20] sm:$0xf0]  ;;  %v12541_v49 = vld [vmem:[#allocation6 + $0x4e4] sm:$0xf0] }
  0xf5   :  { %v12832_v45 = vld [vmem:[#allocation6 + $0xe04] sm:$0xf]  ;;  %v9799_v56 = vor.u32 %v12768_v40, %v9796_v42  ;;  %3398 = vmatpush.bf16.msrb.mxu1 %v9543_v55  ;;  %v8362_v40 = vld [vmem:[#allocation6 + $0xc8] sm:$0xf]  ;;  %v8875_v54 = vor.u32 %v12541_v49, %v8874_v48 }
  0xf6   :  { %v10052_v46 = vld [vmem:[#allocation6 + $0xe20] sm:$0xf0]  ;;  %3385 = vmatmul.bf16.vlgmr.msrb.gmra.mxu0 %v13653_v39  ;;  %v8618_v42 = vld [vmem:[#allocation6 + $0x2c8] sm:$0xf]  ;;  %v8363_v52 = vor.u32 %v12413_v41, %v8362_v40 }
  0xf7   :  { %v10055_v60 = vor.u32 %v12832_v45, %v10052_v46  ;;  %3412 = vmatpush.bf16.msrb.mxu2 %v9799_v56  ;;  %3433 = vmatpush.bf16.msra.mxu0 %v8491_v61  ;;  %v9163_v45 = vor.u32 %v12613_v35, %v9162_v34  ;;  %v12477_v46 = vld [vmem:[#allocation6 + $0x2e4] sm:$0xf0] }
  0xf8   :  { %3399 = vmatmul.bf16.vlgmr.msrb.gmra.mxu1 %v13657_v44  ;;  %v9130_v50 = vld [vmem:[#allocation6 + $0x6c8] sm:$0xf]  ;;  %v8619_v53 = vor.u32 %v12477_v46, %v8618_v42 }
  0xf9   :  { %3426 = vmatpush.bf16.msrb.mxu3 %v10055_v60  ;;  %3447 = vmatpush.bf16.msra.mxu1 %v8747_v62  ;;  %v12605_v51 = vld [vmem:[#allocation6 + $0x6e4] sm:$0xf0] }
  0xfa   :  { %3413 = vmatmul.bf16.vlgmr.msrb.gmra.mxu2 %v13655_v43  ;;  %v8330_v55 = vld [vmem:[#allocation6 + $0x88] sm:$0xf]  ;;  %v9131_v59 = vor.u32 %v12605_v51, %v9130_v50 }
  0xfb   :  { %3461 = vmatpush.bf16.msra.mxu2 %v9003_v63  ;;  %3434 = vmatpush.bf16.msra.mxu0 %v8459_v11  ;;  %v12405_v56 = vld [vmem:[#allocation6 + $0xa4] sm:$0xf0] }
  0xfc   :  { %3427 = vmatmul.bf16.vlgmr.msrb.gmra.mxu3 %v13659_v47  ;;  %v8586_v57 = vld [vmem:[#allocation6 + $0x288] sm:$0xf]  ;;  %v8331_v2 = vor.u32 %v12405_v56, %v8330_v55 }
  0xfd   :  { %3475 = vmatpush.bf16.msra.mxu3 %v9259_v4  ;;  %3448 = vmatpush.bf16.msra.mxu1 %v8715_v12  ;;  %v12469_v60 = vld [vmem:[#allocation6 + $0x2a4] sm:$0xf0] }
  0xfe   :  { %v8842_v61 = vld [vmem:[#allocation6 + $0x488] sm:$0xf]  ;;  %v8587_v3 = vor.u32 %v12469_v60, %v8586_v57 }
  0xff   :  { %3462 = vmatpush.bf16.msra.mxu2 %v8971_v13  ;;  %3435 = vmatpush.bf16.msra.mxu0 %v8427_v24  ;;  %v12533_v62 = vld [vmem:[#allocation6 + $0x4a4] sm:$0xf0] }
 0x100   :  { %v9098_v63 = vld [vmem:[#allocation6 + $0x688] sm:$0xf]  ;;  %v8843_v4 = vor.u32 %v12533_v62, %v8842_v61 }
 0x101   :  { %3476 = vmatpush.bf16.msra.mxu3 %v9227_v18  ;;  %3449 = vmatpush.bf16.msra.mxu1 %v8683_v25  ;;  %v12597_v0 = vld [vmem:[#allocation6 + $0x6a4] sm:$0xf0] }
 0x102   :  { %v8298_v5 = vld [vmem:[#allocation6 + $0x48] sm:$0xf]  ;;  %v9099_v8 = vor.u32 %v12597_v0, %v9098_v63 }
 0x103   :  { %3463 = vmatpush.bf16.msra.mxu2 %v8939_v26  ;;  %3436 = vmatpush.bf16.msra.mxu0 %v8395_v36  ;;  %v12397_v6 = vld [vmem:[#allocation6 + $0x64] sm:$0xf0] }
 0x104   :  { %v8554_v7 = vld [vmem:[#allocation6 + $0x248] sm:$0xf]  ;;  %v8299_v15 = vor.u32 %v12397_v6, %v8298_v5 }
 0x105   :  { %3477 = vmatpush.bf16.msra.mxu3 %v9195_v30  ;;  %3450 = vmatpush.bf16.msra.mxu1 %v8651_v37  ;;  %v12461_v9 = vld [vmem:[#allocation6 + $0x264] sm:$0xf0] }
 0x106   :  { %v8810_v11 = vld [vmem:[#allocation6 + $0x448] sm:$0xf]  ;;  %v8555_v19 = vor.u32 %v12461_v9, %v8554_v7 }
 0x107   :  { %3464 = vmatpush.bf16.msra.mxu2 %v8907_v38  ;;  %3437 = vmatpush.bf16.msra.mxu0 %v8363_v52  ;;  %v12525_v12 = vld [vmem:[#allocation6 + $0x464] sm:$0xf0] }
 0x108   :  { %v9066_v13 = vld [vmem:[#allocation6 + $0x648] sm:$0xf]  ;;  %v8811_v20 = vor.u32 %v12525_v12, %v8810_v11 }
 0x109   :  { %3478 = vmatpush.bf16.msra.mxu3 %v9163_v45  ;;  %3451 = vmatpush.bf16.msra.mxu1 %v8619_v53  ;;  %v12589_v14 = vld [vmem:[#allocation6 + $0x664] sm:$0xf0] }
 0x10a   :  { %v8266_v16 = vld [vmem:[#allocation6 + $0x8] sm:$0xf]  ;;  %v9067_v24 = vor.u32 %v12589_v14, %v9066_v13 }
 0x10b   :  { %3465 = vmatpush.bf16.msra.mxu2 %v8875_v54  ;;  %3438 = vmatpush.bf16.msra.mxu0 %v8331_v2  ;;  %v12389_v18 = vld [vmem:[#allocation6 + $0x24] sm:$0xf0] }
 0x10c   :  { %v8522_v21 = vld [vmem:[#allocation6 + $0x208] sm:$0xf]  ;;  %v8267_v31 = vor.u32 %v12389_v18, %v8266_v16 }
 0x10d   :  { %3479 = vmatpush.bf16.msra.mxu3 %v9131_v59  ;;  %3452 = vmatpush.bf16.msra.mxu1 %v8587_v3  ;;  %v12453_v22 = vld [vmem:[#allocation6 + $0x224] sm:$0xf0] }
 0x10e   :  { %v8778_v23 = vld [vmem:[#allocation6 + $0x408] sm:$0xf]  ;;  %v8523_v35 = vor.u32 %v12453_v22, %v8522_v21 }
 0x10f   :  { %3466 = vmatpush.bf16.msra.mxu2 %v8843_v4  ;;  %v12517_v25 = vld [vmem:[#allocation6 + $0x424] sm:$0xf0]  ;;  %3439 = vmatpush.bf16.msra.mxu0 %v8299_v15 }
 0x110   :  { %v9034_v26 = vld [vmem:[#allocation6 + $0x608] sm:$0xf]  ;;  %v8779_v36 = vor.u32 %v12517_v25, %v8778_v23 }
 0x111   :  { %3480 = vmatpush.bf16.msra.mxu3 %v9099_v8  ;;  %v12581_v27 = vld [vmem:[#allocation6 + $0x624] sm:$0xf0]  ;;  %3453 = vmatpush.bf16.msra.mxu1 %v8555_v19 }
 0x112   :  { %v9514_v28 = vld [vmem:[#allocation6 + $0x9c8] sm:$0xf]  ;;  %v9035_v40 = vor.u32 %v12581_v27, %v9034_v26 }
 0x113   :  { %v12701_v29 = vld [vmem:[#allocation6 + $0x9e4] sm:$0xf0]  ;;  %3467 = vmatpush.bf16.msra.mxu2 %v8811_v20  ;;  %3440 = vmatpush.bf16.msra.mxu0 %v8267_v31 }
 0x114   :  { %v9770_v30 = vld [vmem:[#allocation6 + $0xbc8] sm:$0xf]  ;;  %v9515_v41 = vor.u32 %v12701_v29, %v9514_v28 }
 0x115   :  { %v12765_v32 = vld [vmem:[#allocation6 + $0xbe4] sm:$0xf0]  ;;  %3481 = vmatpush.bf16.msra.mxu3 %v9067_v24  ;;  %3454 = vmatpush.bf16.msra.mxu1 %v8523_v35 }
 0x116   :  { %v10026_v33 = vld [vmem:[#allocation6 + $0xdc8] sm:$0xf]  ;;  %v9771_v42 = vor.u32 %v12765_v32, %v9770_v30  ;;  %3441 = vmatmul.bf16.vlgmr.msra.gmra.mxu0 %v13641_v58 }
 0x117   :  { %v12829_v34 = vld [vmem:[#allocation6 + $0xde4] sm:$0xf0]  ;;  %3468 = vmatpush.bf16.msra.mxu2 %v8779_v36  ;;  %3489 = vmatpush.bf16.msrb.mxu0 %v9515_v41 }
 0x118   :  { %v10282_v37 = vld [vmem:[#allocation6 + $0xfc8] sm:$0xf]  ;;  %v10027_v45 = vor.u32 %v12829_v34, %v10026_v33  ;;  %3455 = vmatmul.bf16.vlgmr.msra.gmra.mxu1 %v13647_v10 }
 0x119   :  { %v12893_v38 = vld [vmem:[#allocation6 + $0xfe4] sm:$0xf0]  ;;  %3482 = vmatpush.bf16.msra.mxu3 %v9035_v40  ;;  %3503 = vmatpush.bf16.msrb.mxu1 %v9771_v42 }
 0x11a   :  { %v9482_v46 = vld [vmem:[#allocation6 + $0x988] sm:$0xf]  ;;  %v10283_v50 = vor.u32 %v12893_v38, %v10282_v37  ;;  %3469 = vmatmul.bf16.vlgmr.msra.gmra.mxu2 %v13643_v1 }
 0x11b   :  { %v12693_v48 = vld [vmem:[#allocation6 + $0x9a4] sm:$0xf0]  ;;  %3517 = vmatpush.bf16.msrb.mxu2 %v10027_v45 }
 0x11c   :  { %v9738_v49 = vld [vmem:[#allocation6 + $0xb88] sm:$0xf]  ;;  %v9483_v56 = vor.u32 %v12693_v48, %v9482_v46  ;;  %3483 = vmatmul.bf16.vlgmr.msra.gmra.mxu3 %v13649_v17 }
 0x11d   :  { %v12757_v51 = vld [vmem:[#allocation6 + $0xba4] sm:$0xf0]  ;;  %3531 = vmatpush.bf16.msrb.mxu3 %v10283_v50 }
 0x11e   :  { %v9994_v52 = vld [vmem:[#allocation6 + $0xd88] sm:$0xf]  ;;  %v9739_v57 = vor.u32 %v12757_v51, %v9738_v49  ;;  %3490 = vmatpush.bf16.msrb.mxu0 %v9483_v56 }
 0x11f   :  { %v12821_v53 = vld [vmem:[#allocation6 + $0xda4] sm:$0xf0] }
 0x120   :  { %v10250_v54 = vld [vmem:[#allocation6 + $0xf88] sm:$0xf]  ;;  %v9995_v59 = vor.u32 %v12821_v53, %v9994_v52  ;;  %3504 = vmatpush.bf16.msrb.mxu1 %v9739_v57 }
 0x121   :  { %v12885_v55 = vld [vmem:[#allocation6 + $0xfa4] sm:$0xf0] }
 0x122   :  { %v9450_v60 = vld [vmem:[#allocation6 + $0x948] sm:$0xf]  ;;  %v10251_v63 = vor.u32 %v12885_v55, %v10250_v54  ;;  %3518 = vmatpush.bf16.msrb.mxu2 %v9995_v59 }
 0x123   :  { %v12685_v61 = vld [vmem:[#allocation6 + $0x964] sm:$0xf0] }
 0x124   :  { %v9706_v62 = vld [vmem:[#allocation6 + $0xb48] sm:$0xf]  ;;  %v9451_v6 = vor.u32 %v12685_v61, %v9450_v60  ;;  %3532 = vmatpush.bf16.msrb.mxu3 %v10251_v63 }
 0x125   :  { %v12749_v0 = vld [vmem:[#allocation6 + $0xb64] sm:$0xf0] }
 0x126   :  { %v9962_v2 = vld [vmem:[#allocation6 + $0xd48] sm:$0xf]  ;;  %v9707_v7 = vor.u32 %v12749_v0, %v9706_v62  ;;  %3491 = vmatpush.bf16.msrb.mxu0 %v9451_v6 }
 0x127   :  { %v12813_v3 = vld [vmem:[#allocation6 + $0xd64] sm:$0xf0] }
 0x128   :  { %v10218_v4 = vld [vmem:[#allocation6 + $0xf48] sm:$0xf]  ;;  %v9963_v8 = vor.u32 %v12813_v3, %v9962_v2  ;;  %3505 = vmatpush.bf16.msrb.mxu1 %v9707_v7 }
 0x129   :  { %v12877_v5 = vld [vmem:[#allocation6 + $0xf64] sm:$0xf0] }
 0x12a   :  { %v9418_v9 = vld [vmem:[#allocation6 + $0x908] sm:$0xf]  ;;  %v10219_v13 = vor.u32 %v12877_v5, %v10218_v4  ;;  %3519 = vmatpush.bf16.msrb.mxu2 %v9963_v8 }
 0x12b   :  { %v12677_v11 = vld [vmem:[#allocation6 + $0x924] sm:$0xf0] }
 0x12c   :  { %v9674_v12 = vld [vmem:[#allocation6 + $0xb08] sm:$0xf]  ;;  %v9419_v20 = vor.u32 %v12677_v11, %v9418_v9  ;;  %3533 = vmatpush.bf16.msrb.mxu3 %v10219_v13  ;;  %v12441_v11 = vld [vmem:[#allocation6 + $0x1cc] sm:$0xf] }
 0x12d   :  { %v12741_v14 = vld [vmem:[#allocation6 + $0xb24] sm:$0xf0]  ;;  %v12505_v13 = vld [vmem:[#allocation6 + $0x3cc] sm:$0xf] }
 0x12e   :  { %v9930_v15 = vld [vmem:[#allocation6 + $0xd08] sm:$0xf]  ;;  %v9675_v21 = vor.u32 %v12741_v14, %v9674_v12  ;;  %3492 = vmatpush.bf16.msrb.mxu0 %v9419_v20  ;;  %v8492_v12 = vld [vmem:[#allocation6 + $0x1e8] sm:$0xf0] }
 0x12f   :  { %v12805_v16 = vld [vmem:[#allocation6 + $0xd24] sm:$0xf0] }
 0x130   :  { %v10186_v18 = vld [vmem:[#allocation6 + $0xf08] sm:$0xf]  ;;  %v9931_v22 = vor.u32 %v12805_v16, %v9930_v15  ;;  %3506 = vmatpush.bf16.msrb.mxu1 %v9675_v21  ;;  %v8748_v15 = vld [vmem:[#allocation6 + $0x3e8] sm:$0xf0] }
 0x131   :  { %v12869_v19 = vld [vmem:[#allocation6 + $0xf24] sm:$0xf0]  ;;  %v12569_v16 = vld [vmem:[#allocation6 + $0x5cc] sm:$0xf] }
 0x132   :  { %v9386_v23 = vld [vmem:[#allocation6 + $0x8c8] sm:$0xf]  ;;  %v10187_v26 = vor.u32 %v12869_v19, %v10186_v18  ;;  %3520 = vmatpush.bf16.msrb.mxu2 %v9931_v22  ;;  %v9004_v18 = vld [vmem:[#allocation6 + $0x5e8] sm:$0xf0] }
 0x133   :  { %v12669_v24 = vld [vmem:[#allocation6 + $0x8e4] sm:$0xf0]  ;;  %v12633_v21 = vld [vmem:[#allocation6 + $0x7cc] sm:$0xf] }
 0x134   :  { %v9642_v25 = vld [vmem:[#allocation6 + $0xac8] sm:$0xf]  ;;  %v9387_v32 = vor.u32 %v12669_v24, %v9386_v23  ;;  %3534 = vmatpush.bf16.msrb.mxu3 %v10187_v26  ;;  %v9260_v22 = vld [vmem:[#allocation6 + $0x7e8] sm:$0xf0]  ;;  %v8495_v24 = vor.u32 %v12441_v11, %v8492_v12  ;;  %v9007_v26 = vor.u32 %v12569_v16, %v9004_v18 }
 0x135   :  { %v12733_v27 = vld [vmem:[#allocation6 + $0xae4] sm:$0xf0]  ;;  %v8620_v12 = vld [vmem:[#allocation6 + $0x2e8] sm:$0xf0] }
 0x136   :  { %v9898_v28 = vld [vmem:[#allocation6 + $0xcc8] sm:$0xf]  ;;  %v9643_v33 = vor.u32 %v12733_v27, %v9642_v25  ;;  %3493 = vmatpush.bf16.msrb.mxu0 %v9387_v32  ;;  %v8751_v25 = vor.u32 %v12505_v13, %v8748_v15  ;;  %v12433_v27 = vld [vmem:[#allocation6 + $0x18c] sm:$0xf] }
 0x137   :  { %v12797_v29 = vld [vmem:[#allocation6 + $0xce4] sm:$0xf0]  ;;  %v12561_v32 = vld [vmem:[#allocation6 + $0x58c] sm:$0xf] }
 0x138   :  { %v10154_v30 = vld [vmem:[#allocation6 + $0xec8] sm:$0xf]  ;;  %v9899_v34 = vor.u32 %v12797_v29, %v9898_v28  ;;  %3507 = vmatpush.bf16.msrb.mxu1 %v9643_v33  ;;  %v8460_v28 = vld [vmem:[#allocation6 + $0x1a8] sm:$0xf0] }
 0x139   :  { %v12861_v31 = vld [vmem:[#allocation6 + $0xee4] sm:$0xf0]  ;;  %v12497_v29 = vld [vmem:[#allocation6 + $0x38c] sm:$0xf] }
 0x13a   :  { %v9354_v35 = vld [vmem:[#allocation6 + $0x888] sm:$0xf]  ;;  %v10155_v38 = vor.u32 %v12861_v31, %v10154_v30  ;;  %3521 = vmatpush.bf16.msrb.mxu2 %v9899_v34  ;;  %v9263_v30 = vor.u32 %v12633_v21, %v9260_v22  ;;  %v8716_v31 = vld [vmem:[#allocation6 + $0x3a8] sm:$0xf0] }
 0x13b   :  { %v12661_v36 = vld [vmem:[#allocation6 + $0x8a4] sm:$0xf0]  ;;  %v8972_v33 = vld [vmem:[#allocation6 + $0x5a8] sm:$0xf0] }
 0x13c   :  { %v9610_v37 = vld [vmem:[#allocation6 + $0xa88] sm:$0xf]  ;;  %v9355_v48 = vor.u32 %v12661_v36, %v9354_v35  ;;  %3535 = vmatpush.bf16.msrb.mxu3 %v10155_v38  ;;  %v12625_v34 = vld [vmem:[#allocation6 + $0x78c] sm:$0xf]  ;;  %v8463_v36 = vor.u32 %v12433_v27, %v8460_v28  ;;  %v8975_v38 = vor.u32 %v12561_v32, %v8972_v33  ;;  %v13687_v32 = vpop.f32.mrf.mxu3 }
 0x13d   :  { %v12725_v40 = vld [vmem:[#allocation6 + $0xaa4] sm:$0xf0]  ;;  %v9228_v35 = vld [vmem:[#allocation6 + $0x7a8] sm:$0xf0] }
 0x13e   :  { %v9866_v41 = vld [vmem:[#allocation6 + $0xc88] sm:$0xf]  ;;  %v9611_v49 = vor.u32 %v12725_v40, %v9610_v37  ;;  %3494 = vmatpush.bf16.msrb.mxu0 %v9355_v48  ;;  %v8719_v37 = vor.u32 %v12497_v29, %v8716_v31  ;;  %v12425_v40 = vld [vmem:[#allocation6 + $0x14c] sm:$0xf] }
 0x13f   :  { %v12789_v42 = vld [vmem:[#allocation6 + $0xca4] sm:$0xf0]  ;;  %v12553_v48 = vld [vmem:[#allocation6 + $0x54c] sm:$0xf] }
 0x140   :  { %v10122_v45 = vld [vmem:[#allocation6 + $0xe88] sm:$0xf]  ;;  %v9867_v50 = vor.u32 %v12789_v42, %v9866_v41  ;;  %3508 = vmatpush.bf16.msrb.mxu1 %v9611_v49  ;;  %v8428_v41 = vld [vmem:[#allocation6 + $0x168] sm:$0xf0] }
 0x141   :  { %v12853_v46 = vld [vmem:[#allocation6 + $0xea4] sm:$0xf0]  ;;  %v12489_v42 = vld [vmem:[#allocation6 + $0x34c] sm:$0xf] }
 0x142   :  { %v9322_v51 = vld [vmem:[#allocation6 + $0x848] sm:$0xf]  ;;  %v10123_v54 = vor.u32 %v12853_v46, %v10122_v45  ;;  %3522 = vmatpush.bf16.msrb.mxu2 %v9867_v50  ;;  %v9231_v45 = vor.u32 %v12625_v34, %v9228_v35  ;;  %v8684_v46 = vld [vmem:[#allocation6 + $0x368] sm:$0xf0] }
 0x143   :  { %v12653_v52 = vld [vmem:[#allocation6 + $0x864] sm:$0xf0]  ;;  %v8940_v49 = vld [vmem:[#allocation6 + $0x568] sm:$0xf0] }
 0x144   :  { %v9578_v53 = vld [vmem:[#allocation6 + $0xa48] sm:$0xf]  ;;  %v9323_v61 = vor.u32 %v12653_v52, %v9322_v51  ;;  %3536 = vmatpush.bf16.msrb.mxu3 %v10123_v54  ;;  %v12617_v50 = vld [vmem:[#allocation6 + $0x74c] sm:$0xf]  ;;  %v8431_v52 = vor.u32 %v12425_v40, %v8428_v41  ;;  %v8943_v54 = vor.u32 %v12553_v48, %v8940_v49 }
 0x145   :  { %v12717_v55 = vld [vmem:[#allocation6 + $0xa64] sm:$0xf0]  ;;  %v9196_v51 = vld [vmem:[#allocation6 + $0x768] sm:$0xf0] }
 0x146   :  { %v9834_v56 = vld [vmem:[#allocation6 + $0xc48] sm:$0xf]  ;;  %v9579_v0 = vor.u32 %v12717_v55, %v9578_v53  ;;  %3495 = vmatpush.bf16.msrb.mxu0 %v9323_v61  ;;  %v8687_v53 = vor.u32 %v12489_v42, %v8684_v46  ;;  %v12417_v55 = vld [vmem:[#allocation6 + $0x10c] sm:$0xf] }
 0x147   :  { %v12781_v57 = vld [vmem:[#allocation6 + $0xc64] sm:$0xf0]  ;;  %v12545_v61 = vld [vmem:[#allocation6 + $0x50c] sm:$0xf] }
 0x148   :  { %v10090_v59 = vld [vmem:[#allocation6 + $0xe48] sm:$0xf]  ;;  %v9835_v2 = vor.u32 %v12781_v57, %v9834_v56  ;;  %3509 = vmatpush.bf16.msrb.mxu1 %v9579_v0  ;;  %v8396_v56 = vld [vmem:[#allocation6 + $0x128] sm:$0xf0] }
 0x149   :  { %v12845_v60 = vld [vmem:[#allocation6 + $0xe64] sm:$0xf0]  ;;  %v12481_v57 = vld [vmem:[#allocation6 + $0x30c] sm:$0xf] }
 0x14a   :  { %v9290_v62 = vld [vmem:[#allocation6 + $0x808] sm:$0xf]  ;;  %v10091_v6 = vor.u32 %v12845_v60, %v10090_v59  ;;  %3523 = vmatpush.bf16.msrb.mxu2 %v9835_v2  ;;  %v9199_v59 = vor.u32 %v12617_v50, %v9196_v51  ;;  %v8652_v60 = vld [vmem:[#allocation6 + $0x328] sm:$0xf0]  ;;  %v8399_v2 = vor.u32 %v12417_v55, %v8396_v56 }
 0x14b   :  { %v12645_v63 = vld [vmem:[#allocation6 + $0x824] sm:$0xf0]  ;;  %v9164_v0 = vld [vmem:[#allocation6 + $0x728] sm:$0xf0] }
 0x14c   :  { %v9546_v3 = vld [vmem:[#allocation6 + $0xa08] sm:$0xf]  ;;  %v9291_v14 = vor.u32 %v12645_v63, %v9290_v62  ;;  %3537 = vmatpush.bf16.msrb.mxu3 %v10091_v6  ;;  %v8908_v62 = vld [vmem:[#allocation6 + $0x528] sm:$0xf0] }
 0x14d   :  { %v12709_v4 = vld [vmem:[#allocation6 + $0xa24] sm:$0xf0]  ;;  %v12609_v63 = vld [vmem:[#allocation6 + $0x70c] sm:$0xf] }
 0x14e   :  { %v9802_v5 = vld [vmem:[#allocation6 + $0xc08] sm:$0xf]  ;;  %v9547_v19 = vor.u32 %v12709_v4, %v9546_v3  ;;  %3496 = vmatpush.bf16.msrb.mxu0 %v9291_v14  ;;  %v13681_v3 = vpop.f32.mrf.mxu0  ;;  %v8655_v4 = vor.u32 %v12481_v57, %v8652_v60  ;;  %v12409_v6 = vld [vmem:[#allocation6 + $0xcc] sm:$0xf]  ;;  %v9167_v11 = vor.u32 %v12609_v63, %v9164_v0 }
 0x14f   :  { %v12773_v7 = vld [vmem:[#allocation6 + $0xc24] sm:$0xf0]  ;;  %v12537_v13 = vld [vmem:[#allocation6 + $0x4cc] sm:$0xf] }
 0x150   :  { %v10058_v8 = vld [vmem:[#allocation6 + $0xe08] sm:$0xf]  ;;  %v9803_v20 = vor.u32 %v12773_v7, %v9802_v5  ;;  %3510 = vmatpush.bf16.msrb.mxu1 %v9547_v19  ;;  %v8911_v5 = vor.u32 %v12545_v61, %v8908_v62  ;;  %v8364_v7 = vld [vmem:[#allocation6 + $0xe8] sm:$0xf0] }
 0x151   :  { %v12837_v9 = vld [vmem:[#allocation6 + $0xe24] sm:$0xf0]  ;;  %3497 = vmatmul.bf16.vlgmr.msrb.gmra.mxu0 %v13653_v39  ;;  %v8876_v14 = vld [vmem:[#allocation6 + $0x4e8] sm:$0xf0]  ;;  %v8367_v18 = vor.u32 %v12409_v6, %v8364_v7 }
 0x152   :  { %v10059_v23 = vor.u32 %v12837_v9, %v10058_v8  ;;  %3524 = vmatpush.bf16.msrb.mxu2 %v9803_v20  ;;  %3545 = vmatpush.bf16.msra.mxu0 %v8495_v24  ;;  %v12473_v8 = vld [vmem:[#allocation6 + $0x2cc] sm:$0xf]  ;;  %v13683_v9 = vpop.f32.mrf.mxu1  ;;  %v8879_v20 = vor.u32 %v12537_v13, %v8876_v14 }
 0x153   :  { %3511 = vmatmul.bf16.vlgmr.msrb.gmra.mxu1 %v13657_v44  ;;  %v12601_v15 = vld [vmem:[#allocation6 + $0x6cc] sm:$0xf]  ;;  %v8623_v19 = vor.u32 %v12473_v8, %v8620_v12 }
 0x154   :  { %3538 = vmatpush.bf16.msrb.mxu3 %v10059_v23  ;;  %3559 = vmatpush.bf16.msra.mxu1 %v8751_v25  ;;  %v9132_v16 = vld [vmem:[#allocation6 + $0x6e8] sm:$0xf0] }
 0x155   :  { %3525 = vmatmul.bf16.vlgmr.msrb.gmra.mxu2 %v13655_v43  ;;  %v12401_v21 = vld [vmem:[#allocation6 + $0x8c] sm:$0xf]  ;;  %v9135_v24 = vor.u32 %v12601_v15, %v9132_v16 }
 0x156   :  { %3573 = vmatpush.bf16.msra.mxu2 %v9007_v26  ;;  %3546 = vmatpush.bf16.msra.mxu0 %v8463_v36  ;;  %v8332_v22 = vld [vmem:[#allocation6 + $0xa8] sm:$0xf0] }
 0x157   :  { %3539 = vmatmul.bf16.vlgmr.msrb.gmra.mxu3 %v13659_v47  ;;  %v12465_v23 = vld [vmem:[#allocation6 + $0x28c] sm:$0xf]  ;;  %v8335_v31 = vor.u32 %v12401_v21, %v8332_v22 }
 0x158   :  { %3587 = vmatpush.bf16.msra.mxu3 %v9263_v30  ;;  %3560 = vmatpush.bf16.msra.mxu1 %v8719_v37  ;;  %v8588_v25 = vld [vmem:[#allocation6 + $0x2a8] sm:$0xf0]  ;;  %v13685_v30 = vpop.f32.mrf.mxu2 }
 0x159   :  { %v12529_v26 = vld [vmem:[#allocation6 + $0x48c] sm:$0xf]  ;;  %v8591_v33 = vor.u32 %v12465_v23, %v8588_v25 }
 0x15a   :  { %3574 = vmatpush.bf16.msra.mxu2 %v8975_v38  ;;  %3547 = vmatpush.bf16.msra.mxu0 %v8431_v52  ;;  %v8844_v27 = vld [vmem:[#allocation6 + $0x4a8] sm:$0xf0]  ;;  %v13691_v49 = vpop.f32.mrf.mxu1 }
 0x15b   :  { %v12593_v28 = vld [vmem:[#allocation6 + $0x68c] sm:$0xf]  ;;  %v8847_v34 = vor.u32 %v12529_v26, %v8844_v27 }
 0x15c   :  { %3588 = vmatpush.bf16.msra.mxu3 %v9231_v45  ;;  %3561 = vmatpush.bf16.msra.mxu1 %v8687_v53  ;;  %v9100_v29 = vld [vmem:[#allocation6 + $0x6a8] sm:$0xf0]  ;;  %v13689_v45 = vpop.f32.mrf.mxu0 }
 0x15d   :  { %v12393_v35 = vld [vmem:[#allocation6 + $0x4c] sm:$0xf]  ;;  %v9103_v38 = vor.u32 %v12593_v28, %v9100_v29 }
 0x15e   :  { %3575 = vmatpush.bf16.msra.mxu2 %v8943_v54  ;;  %3548 = vmatpush.bf16.msra.mxu0 %v8399_v2  ;;  %v8300_v36 = vld [vmem:[#allocation6 + $0x68] sm:$0xf0] }
 0x15f   :  { %v12457_v37 = vld [vmem:[#allocation6 + $0x24c] sm:$0xf]  ;;  %v8303_v50 = vor.u32 %v12393_v35, %v8300_v36 }
 0x160   :  { %3589 = vmatpush.bf16.msra.mxu3 %v9199_v59  ;;  %3562 = vmatpush.bf16.msra.mxu1 %v8655_v4  ;;  %v8556_v40 = vld [vmem:[#allocation6 + $0x268] sm:$0xf0]  ;;  %v13693_v14 = vpop.f32.mrf.mxu2 }
 0x161   :  { %v12521_v41 = vld [vmem:[#allocation6 + $0x44c] sm:$0xf]  ;;  %v8559_v53 = vor.u32 %v12457_v37, %v8556_v40 }
 0x162   :  { %3576 = vmatpush.bf16.msra.mxu2 %v8911_v5  ;;  %3549 = vmatpush.bf16.msra.mxu0 %v8367_v18  ;;  %v8812_v42 = vld [vmem:[#allocation6 + $0x468] sm:$0xf0]  ;;  %v13695_v18 = vpop.f32.mrf.mxu3 }
 0x163   :  { %v12585_v46 = vld [vmem:[#allocation6 + $0x64c] sm:$0xf]  ;;  %v8815_v54 = vor.u32 %v12521_v41, %v8812_v42 }
 0x164   :  { %3590 = vmatpush.bf16.msra.mxu3 %v9167_v11  ;;  %3563 = vmatpush.bf16.msra.mxu1 %v8623_v19  ;;  %v9068_v48 = vld [vmem:[#allocation6 + $0x668] sm:$0xf0]  ;;  %v13697_v28 = vpop.f32.mrf.mxu0 }
 0x165   :  { %v12385_v51 = vld [vmem:[#allocation6 + $0xc] sm:$0xf]  ;;  %v9071_v59 = vor.u32 %v12585_v46, %v9068_v48 }
 0x166   :  { %3577 = vmatpush.bf16.msra.mxu2 %v8879_v20  ;;  %3550 = vmatpush.bf16.msra.mxu0 %v8335_v31  ;;  %v8268_v52 = vld [vmem:[#allocation6 + $0x28] sm:$0xf0] }
 0x167   :  { %v12449_v55 = vld [vmem:[#allocation6 + $0x20c] sm:$0xf]  ;;  %v8271_v4 = vor.u32 %v12385_v51, %v8268_v52  ;;  %v13704_v52 = vld [vmem:[#allocation8] sm:$0xff] }
 0x168   :  { %3591 = vmatpush.bf16.msra.mxu3 %v9135_v24  ;;  %3564 = vmatpush.bf16.msra.mxu1 %v8591_v33  ;;  %v8524_v56 = vld [vmem:[#allocation6 + $0x228] sm:$0xf0]  ;;  %v13699_v33 = vpop.f32.mrf.mxu1 }
 0x169   :  { %v12513_v57 = vld [vmem:[#allocation6 + $0x40c] sm:$0xf]  ;;  %v8527_v8 = vor.u32 %v12449_v55, %v8524_v56 }
 0x16a   :  { %3578 = vmatpush.bf16.msra.mxu2 %v8847_v34  ;;  %v8780_v60 = vld [vmem:[#allocation6 + $0x428] sm:$0xf0]  ;;  %3551 = vmatpush.bf16.msra.mxu0 %v8303_v50 }
 0x16b   :  { %v12577_v61 = vld [vmem:[#allocation6 + $0x60c] sm:$0xf]  ;;  %v8783_v11 = vor.u32 %v12513_v57, %v8780_v60  ;;  %v13707_v60 = vpop.f32.mrf.mxu2 }
 0x16c   :  { %3592 = vmatpush.bf16.msra.mxu3 %v9103_v38  ;;  %v9036_v62 = vld [vmem:[#allocation6 + $0x628] sm:$0xf0]  ;;  %3565 = vmatpush.bf16.msra.mxu1 %v8559_v53 }
 0x16d   :  { %v12697_v63 = vld [vmem:[#allocation6 + $0x9cc] sm:$0xf]  ;;  %v9039_v15 = vor.u32 %v12577_v61, %v9036_v62 }
 0x16e   :  { %v9516_v0 = vld [vmem:[#allocation6 + $0x9e8] sm:$0xf0]  ;;  %3579 = vmatpush.bf16.msra.mxu2 %v8815_v54  ;;  %3552 = vmatpush.bf16.msra.mxu0 %v8271_v4 }
 0x16f   :  { %v12761_v2 = vld [vmem:[#allocation6 + $0xbcc] sm:$0xf]  ;;  %v9519_v16 = vor.u32 %v12697_v63, %v9516_v0 }
 0x170   :  { %v9772_v5 = vld [vmem:[#allocation6 + $0xbe8] sm:$0xf0]  ;;  %3593 = vmatpush.bf16.msra.mxu3 %v9071_v59  ;;  %3566 = vmatpush.bf16.msra.mxu1 %v8527_v8  ;;  %v13712_v8 = vpop.f32.mrf.mxu0 }
 0x171   :  { %v12825_v6 = vld [vmem:[#allocation6 + $0xdcc] sm:$0xf]  ;;  %v9775_v19 = vor.u32 %v12761_v2, %v9772_v5  ;;  %3553 = vmatmul.bf16.vlgmr.msra.gmra.mxu0 %v13641_v58  ;;  %v13709_v2 = vpop.f32.mrf.mxu3 }
 0x172   :  { %v10028_v7 = vld [vmem:[#allocation6 + $0xde8] sm:$0xf0]  ;;  %3580 = vmatpush.bf16.msra.mxu2 %v8783_v11  ;;  %3601 = vmatpush.bf16.msrb.mxu0 %v9519_v16 }
 0x173   :  { %v12889_v12 = vld [vmem:[#allocation6 + $0xfcc] sm:$0xf]  ;;  %v10031_v20 = vor.u32 %v12825_v6, %v10028_v7  ;;  %3567 = vmatmul.bf16.vlgmr.msra.gmra.mxu1 %v13647_v10  ;;  %v633_v6 = vperm.slane %v13704_v52, 0 }
 0x174   :  { %v10284_v13 = vld [vmem:[#allocation6 + $0xfe8] sm:$0xf0]  ;;  %3594 = vmatpush.bf16.msra.mxu3 %v9039_v15  ;;  %3615 = vmatpush.bf16.msrb.mxu1 %v9775_v19  ;;  %v13714_v19 = vpop.f32.mrf.mxu1 }
 0x175   :  { %v12689_v21 = vld [vmem:[#allocation6 + $0x98c] sm:$0xf]  ;;  %v10287_v24 = vor.u32 %v12889_v12, %v10284_v13  ;;  %3581 = vmatmul.bf16.vlgmr.msra.gmra.mxu2 %v13643_v1 }
 0x176   :  { %v9484_v22 = vld [vmem:[#allocation6 + $0x9a8] sm:$0xf0]  ;;  %3629 = vmatpush.bf16.msrb.mxu2 %v10031_v20 }
 0x177   :  { %v12753_v23 = vld [vmem:[#allocation6 + $0xb8c] sm:$0xf]  ;;  %v9487_v34 = vor.u32 %v12689_v21, %v9484_v22  ;;  %3595 = vmatmul.bf16.vlgmr.msra.gmra.mxu3 %v13649_v17 }
 0x178   :  { %v9740_v25 = vld [vmem:[#allocation6 + $0xba8] sm:$0xf0]  ;;  %3643 = vmatpush.bf16.msrb.mxu3 %v10287_v24 }
 0x179   :  { %v12817_v26 = vld [vmem:[#allocation6 + $0xd8c] sm:$0xf]  ;;  %v9743_v35 = vor.u32 %v12753_v23, %v9740_v25  ;;  %3602 = vmatpush.bf16.msrb.mxu0 %v9487_v34 }
 0x17a   :  { %v9996_v27 = vld [vmem:[#allocation6 + $0xda8] sm:$0xf0] }
 0x17b   :  { %v12881_v29 = vld [vmem:[#allocation6 + $0xf8c] sm:$0xf]  ;;  %v9999_v36 = vor.u32 %v12817_v26, %v9996_v27  ;;  %3616 = vmatpush.bf16.msrb.mxu1 %v9743_v35 }
 0x17c   :  { %v10252_v31 = vld [vmem:[#allocation6 + $0xfa8] sm:$0xf0] }
 0x17d   :  { %v12681_v37 = vld [vmem:[#allocation6 + $0x94c] sm:$0xf]  ;;  %v10255_v41 = vor.u32 %v12881_v29, %v10252_v31  ;;  %3630 = vmatpush.bf16.msrb.mxu2 %v9999_v36  ;;  %v3219_v36 = vadd.f32 %v13681_v3, %v633_v6  ;;  %v3330_v3 = vpop.f32.mrf.mxu0 }
 0x17e   :  { %v9452_v38 = vld [vmem:[#allocation6 + $0x968] sm:$0xf0] }
 0x17f   :  { %v12745_v40 = vld [vmem:[#allocation6 + $0xb4c] sm:$0xf]  ;;  %v9455_v53 = vor.u32 %v12681_v37, %v9452_v38  ;;  %3644 = vmatpush.bf16.msrb.mxu3 %v10255_v41 }
 0x180   :  { %v9708_v42 = vld [vmem:[#allocation6 + $0xb68] sm:$0xf0] }
 0x181   :  { %v12809_v46 = vld [vmem:[#allocation6 + $0xd4c] sm:$0xf]  ;;  %v9711_v54 = vor.u32 %v12745_v40, %v9708_v42  ;;  %3603 = vmatpush.bf16.msrb.mxu0 %v9455_v53  ;;  %v13720_v53 = vpop.f32.mrf.mxu3 }
 0x182   :  { %v9964_v48 = vld [vmem:[#allocation6 + $0xd68] sm:$0xf0] }
 0x183   :  { %v12873_v50 = vld [vmem:[#allocation6 + $0xf4c] sm:$0xf]  ;;  %v9967_v55 = vor.u32 %v12809_v46, %v9964_v48  ;;  %3617 = vmatpush.bf16.msrb.mxu1 %v9711_v54  ;;  %v13717_v48 = vpop.f32.mrf.mxu2 }
 0x184   :  { %v10220_v51 = vld [vmem:[#allocation6 + $0xf68] sm:$0xf0] }
 0x185   :  { %v12673_v56 = vld [vmem:[#allocation6 + $0x90c] sm:$0xf]  ;;  %v10223_v61 = vor.u32 %v12873_v50, %v10220_v51  ;;  %3631 = vmatpush.bf16.msrb.mxu2 %v9967_v55  ;;  %v634_v51 = vperm.slane %v13704_v52, 1  ;;  %v9202_v52 = vld [vmem:[#allocation6 + $0x750] sm:$0xf] }
 0x186   :  { %v9420_v57 = vld [vmem:[#allocation6 + $0x928] sm:$0xf0] }
 0x187   :  { %v12737_v59 = vld [vmem:[#allocation6 + $0xb0c] sm:$0xf]  ;;  %v9423_v7 = vor.u32 %v12673_v56, %v9420_v57  ;;  %3645 = vmatpush.bf16.msrb.mxu3 %v10223_v61  ;;  %v3233_v61 = vadd.f32 %v13683_v9, %v3219_v36 }
 0x188   :  { %v9676_v62 = vld [vmem:[#allocation6 + $0xb28] sm:$0xf0] }
 0x189   :  { %v12801_v63 = vld [vmem:[#allocation6 + $0xd0c] sm:$0xf]  ;;  %v9679_v11 = vor.u32 %v12737_v59, %v9676_v62  ;;  %3604 = vmatpush.bf16.msrb.mxu0 %v9423_v7 }
 0x18a   :  { %v9932_v0 = vld [vmem:[#allocation6 + $0xd28] sm:$0xf0] }
 0x18b   :  { %v12865_v4 = vld [vmem:[#allocation6 + $0xf0c] sm:$0xf]  ;;  %v9935_v12 = vor.u32 %v12801_v63, %v9932_v0  ;;  %3618 = vmatpush.bf16.msrb.mxu1 %v9679_v11 }
 0x18c   :  { %v10188_v5 = vld [vmem:[#allocation6 + $0xf28] sm:$0xf0] }
 0x18d   :  { %v12665_v13 = vld [vmem:[#allocation6 + $0x8cc] sm:$0xf]  ;;  %v10191_v20 = vor.u32 %v12865_v4, %v10188_v5  ;;  %3632 = vmatpush.bf16.msrb.mxu2 %v9935_v12  ;;  %v3344_v5 = vpop.f32.mrf.mxu1  ;;  %v3221_v12 = vadd.f32 %v13689_v45, %v633_v6 }
 0x18e   :  { %v9388_v15 = vld [vmem:[#allocation6 + $0x8e8] sm:$0xf0] }
 0x18f   :  { %v12729_v16 = vld [vmem:[#allocation6 + $0xacc] sm:$0xf]  ;;  %v9391_v26 = vor.u32 %v12665_v13, %v9388_v15  ;;  %3646 = vmatpush.bf16.msrb.mxu3 %v10191_v20 }
 0x190   :  { %v9644_v21 = vld [vmem:[#allocation6 + $0xae8] sm:$0xf0] }
 0x191   :  { %v12793_v22 = vld [vmem:[#allocation6 + $0xccc] sm:$0xf]  ;;  %v9647_v27 = vor.u32 %v12729_v16, %v9644_v21  ;;  %3605 = vmatpush.bf16.msrb.mxu0 %v9391_v26 }
 0x192   :  { %v9900_v23 = vld [vmem:[#allocation6 + $0xce8] sm:$0xf0] }
 0x193   :  { %v12857_v24 = vld [vmem:[#allocation6 + $0xecc] sm:$0xf]  ;;  %v9903_v29 = vor.u32 %v12793_v22, %v9900_v23  ;;  %3619 = vmatpush.bf16.msrb.mxu1 %v9647_v27 }
 0x194   :  { %v10156_v25 = vld [vmem:[#allocation6 + $0xee8] sm:$0xf0] }
 0x195   :  { %v12657_v31 = vld [vmem:[#allocation6 + $0x88c] sm:$0xf]  ;;  %v10159_v37 = vor.u32 %v12857_v24, %v10156_v25  ;;  %3633 = vmatpush.bf16.msrb.mxu2 %v9903_v29  ;;  %v3247_v24 = vadd.f32 %v13685_v30, %v3233_v61  ;;  %v3331_v25 = vadd.f32 %v3330_v3, %v634_v51  ;;  %v8498_v29 = vld [vmem:[#allocation6 + $0x1d0] sm:$0xf]  ;;  %v3332_v61 = vpop.f32.mrf.mxu0 }
 0x196   :  { %v9356_v34 = vld [vmem:[#allocation6 + $0x8a8] sm:$0xf0] }
 0x197   :  { %v12721_v35 = vld [vmem:[#allocation6 + $0xa8c] sm:$0xf]  ;;  %v9359_v50 = vor.u32 %v12657_v31, %v9356_v34  ;;  %3647 = vmatpush.bf16.msrb.mxu3 %v10159_v37  ;;  %v12446_v31 = vld [vmem:[#allocation6 + $0x1ec] sm:$0xf0]  ;;  %v3345_v3 = vadd.f32 %v3344_v5, %v3331_v25 }
 0x198   :  { %v9612_v38 = vld [vmem:[#allocation6 + $0xaa8] sm:$0xf0]  ;;  %v8754_v34 = vld [vmem:[#allocation6 + $0x3d0] sm:$0xf] }
 0x199   :  { %v12785_v40 = vld [vmem:[#allocation6 + $0xc8c] sm:$0xf]  ;;  %v9615_v54 = vor.u32 %v12721_v35, %v9612_v38  ;;  %3606 = vmatpush.bf16.msrb.mxu0 %v9359_v50  ;;  %v3235_v35 = vadd.f32 %v13691_v49, %v3221_v12  ;;  %v12510_v37 = vld [vmem:[#allocation6 + $0x3ec] sm:$0xf0] }
 0x19a   :  { %v9868_v41 = vld [vmem:[#allocation6 + $0xca8] sm:$0xf0]  ;;  %v9010_v38 = vld [vmem:[#allocation6 + $0x5d0] sm:$0xf]  ;;  %v8755_v49 = vor.u32 %v12510_v37, %v8754_v34 }
 0x19b   :  { %v12849_v42 = vld [vmem:[#allocation6 + $0xe8c] sm:$0xf]  ;;  %v9871_v55 = vor.u32 %v12785_v40, %v9868_v41  ;;  %3620 = vmatpush.bf16.msrb.mxu1 %v9615_v54  ;;  %v12574_v40 = vld [vmem:[#allocation6 + $0x5ec] sm:$0xf0]  ;;  %v3358_v41 = vpop.f32.mrf.mxu2  ;;  %v3372_v54 = vpop.f32.mrf.mxu3 }
 0x19c   :  { %v10124_v46 = vld [vmem:[#allocation6 + $0xea8] sm:$0xf0]  ;;  %v12638_v50 = vld [vmem:[#allocation6 + $0x7ec] sm:$0xf0] }
 0x19d   :  { %v12649_v56 = vld [vmem:[#allocation6 + $0x84c] sm:$0xf]  ;;  %v10127_v62 = vor.u32 %v12849_v42, %v10124_v46  ;;  %3634 = vmatpush.bf16.msrb.mxu2 %v9871_v55  ;;  %v9266_v46 = vld [vmem:[#allocation6 + $0x7d0] sm:$0xf]  ;;  %v3261_v55 = vadd.f32 %v13687_v32, %v3247_v24 }
 0x19e   :  { %v9324_v57 = vld [vmem:[#allocation6 + $0x868] sm:$0xf0]  ;;  %v8978_v12 = vld [vmem:[#allocation6 + $0x590] sm:$0xf] }
 0x19f   :  { %v12713_v59 = vld [vmem:[#allocation6 + $0xa4c] sm:$0xf]  ;;  %v9327_v13 = vor.u32 %v12649_v56, %v9324_v57  ;;  %3648 = vmatpush.bf16.msrb.mxu3 %v10127_v62  ;;  %v8499_v57 = vor.u32 %v12446_v31, %v8498_v29  ;;  %v8466_v62 = vld [vmem:[#allocation6 + $0x190] sm:$0xf] }
 0x1a0   :  { %v9580_v63 = vld [vmem:[#allocation6 + $0xa68] sm:$0xf0]  ;;  %v9234_v32 = vld [vmem:[#allocation6 + $0x790] sm:$0xf] }
 0x1a1   :  { %v12777_v0 = vld [vmem:[#allocation6 + $0xc4c] sm:$0xf]  ;;  %v9583_v20 = vor.u32 %v12713_v59, %v9580_v63  ;;  %3607 = vmatpush.bf16.msrb.mxu0 %v9327_v13  ;;  %v9011_v59 = vor.u32 %v12574_v40, %v9010_v38  ;;  %v12438_v63 = vld [vmem:[#allocation6 + $0x1ac] sm:$0xf0] }
 0x1a2   :  { %v9836_v4 = vld [vmem:[#allocation6 + $0xc68] sm:$0xf0]  ;;  %v12566_v13 = vld [vmem:[#allocation6 + $0x5ac] sm:$0xf0] }
 0x1a3   :  { %v12841_v7 = vld [vmem:[#allocation6 + $0xe4c] sm:$0xf]  ;;  %v9839_v21 = vor.u32 %v12777_v0, %v9836_v4  ;;  %3621 = vmatpush.bf16.msrb.mxu1 %v9583_v20  ;;  %v8722_v0 = vld [vmem:[#allocation6 + $0x390] sm:$0xf]  ;;  %v3249_v4 = vadd.f32 %v13693_v14, %v3235_v35  ;;  %v3359_v20 = vadd.f32 %v3358_v41, %v3345_v3  ;;  %v3333_v14 = vadd.f32 %v3332_v61, %v634_v51  ;;  %v3360_v34 = vpop.f32.mrf.mxu2  ;;  %v3374_v38 = vpop.f32.mrf.mxu3 }
 0x1a4   :  { %v10092_v11 = vld [vmem:[#allocation6 + $0xe68] sm:$0xf0]  ;;  %v12630_v5 = vld [vmem:[#allocation6 + $0x7ac] sm:$0xf0] }
 0x1a5   :  { %v12641_v15 = vld [vmem:[#allocation6 + $0x80c] sm:$0xf]  ;;  %v10095_v26 = vor.u32 %v12841_v7, %v10092_v11  ;;  %3635 = vmatpush.bf16.msrb.mxu2 %v9839_v21  ;;  %v9267_v7 = vor.u32 %v12638_v50, %v9266_v46  ;;  %v12502_v11 = vld [vmem:[#allocation6 + $0x3ac] sm:$0xf0]  ;;  %v8467_v21 = vor.u32 %v12438_v63, %v8466_v62  ;;  %v3373_v31 = vadd.f32 %v3372_v54, %v3359_v20 }
 0x1a6   :  { %v9292_v16 = vld [vmem:[#allocation6 + $0x828] sm:$0xf0]  ;;  %v12430_v24 = vld [vmem:[#allocation6 + $0x16c] sm:$0xf0] }
 0x1a7   :  { %v12705_v22 = vld [vmem:[#allocation6 + $0xa0c] sm:$0xf]  ;;  %v9295_v36 = vor.u32 %v12641_v15, %v9292_v16  ;;  %3649 = vmatpush.bf16.msrb.mxu3 %v10095_v26  ;;  %v3346_v15 = vpop.f32.mrf.mxu1  ;;  %v3275_v16 = vadd.f32 %v13697_v28, %v3261_v55  ;;  %v8690_v25 = vld [vmem:[#allocation6 + $0x350] sm:$0xf]  ;;  %v3263_v26 = vadd.f32 %v13695_v18, %v3249_v4  ;;  %v9235_v28 = vor.u32 %v12630_v5, %v9234_v32  ;;  %v3386_v55 = vpop.f32.mrf.mxu0 }
 0x1a8   :  { %v9548_v9 = vld [vmem:[#allocation6 + $0xa28] sm:$0xf0]  ;;  %v12622_v51 = vld [vmem:[#allocation6 + $0x76c] sm:$0xf0]  ;;  %v3347_v35 = vadd.f32 %v3346_v15, %v3333_v14 }
 0x1a9   :  { %v12769_v23 = vld [vmem:[#allocation6 + $0xc0c] sm:$0xf]  ;;  %v9551_v30 = vor.u32 %v12705_v22, %v9548_v9  ;;  %3608 = vmatpush.bf16.msrb.mxu0 %v9295_v36  ;;  %v8723_v22 = vor.u32 %v12502_v11, %v8722_v0  ;;  %v8979_v9 = vor.u32 %v12566_v13, %v8978_v12  ;;  %v3289_v29 = vadd.f32 %v13699_v33, %v3275_v16  ;;  %v8402_v40 = vld [vmem:[#allocation6 + $0x110] sm:$0xf] }
 0x1aa   :  { %v9804_v27 = vld [vmem:[#allocation6 + $0xc28] sm:$0xf0]  ;;  %v12422_v41 = vld [vmem:[#allocation6 + $0x12c] sm:$0xf0]  ;;  %v9203_v46 = vor.u32 %v12622_v51, %v9202_v52  ;;  %v3361_v62 = vadd.f32 %v3360_v34, %v3347_v35 }
 0x1ab   :  { %v12833_v45 = vld [vmem:[#allocation6 + $0xe0c] sm:$0xf]  ;;  %v9807_v42 = vor.u32 %v12769_v23, %v9804_v27  ;;  %3622 = vmatpush.bf16.msrb.mxu1 %v9551_v30  ;;  %v8434_v23 = vld [vmem:[#allocation6 + $0x150] sm:$0xf]  ;;  %v3428_v51 = vpop.f32.mrf.mxu3 }
 0x1ac   :  { %v10060_v6 = vld [vmem:[#allocation6 + $0xe28] sm:$0xf0]  ;;  %3609 = vmatmul.bf16.vlgmr.msrb.gmra.mxu0 %v13653_v39  ;;  %v12494_v27 = vld [vmem:[#allocation6 + $0x36c] sm:$0xf0]  ;;  %v8435_v18 = vor.u32 %v12430_v24, %v8434_v23 }
 0x1ad   :  { %v10063_v56 = vor.u32 %v12833_v45, %v10060_v6  ;;  %3636 = vmatpush.bf16.msrb.mxu2 %v9807_v42  ;;  %3657 = vmatpush.bf16.msra.mxu0 %v8499_v57  ;;  %v8946_v45 = vld [vmem:[#allocation6 + $0x550] sm:$0xf]  ;;  %v8691_v36 = vor.u32 %v12494_v27, %v8690_v25  ;;  %v3277_v42 = vadd.f32 %v13712_v8, %v3263_v26  ;;  %v3414_v27 = vpop.f32.mrf.mxu2 }
 0x1ae   :  { %v12558_v6 = vld [vmem:[#allocation6 + $0x56c] sm:$0xf0]  ;;  %3623 = vmatmul.bf16.vlgmr.msrb.gmra.mxu1 %v13657_v44  ;;  %v3303_v57 = vadd.f32 %v13707_v60, %v3289_v29 }
 0x1af   :  { %3650 = vmatpush.bf16.msrb.mxu3 %v10063_v56  ;;  %3671 = vmatpush.bf16.msra.mxu1 %v8755_v49  ;;  %v8947_v37 = vor.u32 %v12558_v6, %v8946_v45  ;;  %v8658_v30 = vld [vmem:[#allocation6 + $0x310] sm:$0xf]  ;;  %v3387_v49 = vadd.f32 %v3386_v55, %v3373_v31  ;;  %v3400_v61 = vpop.f32.mrf.mxu1  ;;  %v3291_v11 = vadd.f32 %v13714_v19, %v3277_v42  ;;  %v3388_v52 = vpop.f32.mrf.mxu0 }
 0x1b0   :  { %3637 = vmatmul.bf16.vlgmr.msrb.gmra.mxu2 %v13655_v43  ;;  %v12486_v33 = vld [vmem:[#allocation6 + $0x32c] sm:$0xf0]  ;;  %v13743_v20 = vadd.f32 %v13709_v2, %v3303_v57 }
 0x1b1   :  { %3685 = vmatpush.bf16.msra.mxu2 %v9011_v59  ;;  %3658 = vmatpush.bf16.msra.mxu0 %v8467_v21  ;;  %v8914_v50 = vld [vmem:[#allocation6 + $0x510] sm:$0xf]  ;;  %v8403_v59 = vor.u32 %v12422_v41, %v8402_v40  ;;  %v8659_v63 = vor.u32 %v12486_v33, %v8658_v30  ;;  %v3401_v60 = vadd.f32 %v3400_v61, %v3387_v49 }
 0x1b2   :  { %3651 = vmatmul.bf16.vlgmr.msrb.gmra.mxu3 %v13659_v47  ;;  %v12550_v54 = vld [vmem:[#allocation6 + $0x52c] sm:$0xf0]  ;;  %v3305_v21 = vadd.f32 %v13717_v48, %v3291_v11  ;;  %v4105_v31 = vmul.f32 0.2, %v13743_v20 }
 0x1b3   :  { %3699 = vmatpush.bf16.msra.mxu3 %v9267_v7  ;;  %3672 = vmatpush.bf16.msra.mxu1 %v8723_v22  ;;  %v9170_v3 = vld [vmem:[#allocation6 + $0x710] sm:$0xf]  ;;  %v8915_v0 = vor.u32 %v12550_v54, %v8914_v50  ;;  %v3415_v2 = vadd.f32 %v3414_v27, %v3401_v60 }
 0x1b4   :  { %v12614_v56 = vld [vmem:[#allocation6 + $0x72c] sm:$0xf0] }
 0x1b5   :  { %3686 = vmatpush.bf16.msra.mxu2 %v8979_v9  ;;  %3659 = vmatpush.bf16.msra.mxu0 %v8435_v18  ;;  %v8370_v8 = vld [vmem:[#allocation6 + $0xd0] sm:$0xf]  ;;  %v9171_v12 = vor.u32 %v12614_v56, %v9170_v3  ;;  %v3375_v9 = vadd.f32 %v3374_v38, %v3361_v62  ;;  %v13748_v18 = vadd.f32 %v13720_v53, %v3305_v21 }
 0x1b6   :  { %v12414_v4 = vld [vmem:[#allocation6 + $0xec] sm:$0xf0]  ;;  %v3429_v38 = vadd.f32 %v3428_v51, %v3415_v2  ;;  %v4121_v56 = vmax.f32 %v13743_v20, %v4105_v31  ;;  %v3430_v20 = vpop.f32.mrf.mxu3 }
 0x1b7   :  { %3700 = vmatpush.bf16.msra.mxu3 %v9235_v28  ;;  %3673 = vmatpush.bf16.msra.mxu1 %v8691_v36  ;;  %v8626_v7 = vld [vmem:[#allocation6 + $0x2d0] sm:$0xf]  ;;  %v8371_v14 = vor.u32 %v12414_v4, %v8370_v8  ;;  %v3402_v33 = vpop.f32.mrf.mxu1  ;;  %v13752_v57 = vmul.f32 0.2, %v13748_v18 }
 0x1b8   :  { %v12478_v13 = vld [vmem:[#allocation6 + $0x2ec] sm:$0xf0]  ;;  %v4106_v55 = vmul.f32 0.2, %v3429_v38 }
 0x1b9   :  { %3687 = vmatpush.bf16.msra.mxu2 %v8947_v37  ;;  %v8882_v15 = vld [vmem:[#allocation6 + $0x4d0] sm:$0xf]  ;;  %3660 = vmatpush.bf16.msra.mxu0 %v8403_v59  ;;  %v8627_v19 = vor.u32 %v12478_v13, %v8626_v7  ;;  %v3389_v37 = vadd.f32 %v3388_v52, %v3375_v9  ;;  %v3416_v13 = vpop.f32.mrf.mxu2 }
 0x1ba   :  { %v12542_v32 = vld [vmem:[#allocation6 + $0x4ec] sm:$0xf0] }
 0x1bb   :  { %3701 = vmatpush.bf16.msra.mxu3 %v9203_v46  ;;  %v9138_v5 = vld [vmem:[#allocation6 + $0x6d0] sm:$0xf]  ;;  %3674 = vmatpush.bf16.msra.mxu1 %v8659_v63  ;;  %v8883_v23 = vor.u32 %v12542_v32, %v8882_v15  ;;  %v4122_v63 = vmax.f32 %v3429_v38, %v4106_v55 }
 0x1bc   :  { %v12606_v16 = vld [vmem:[#allocation6 + $0x6ec] sm:$0xf0] }
 0x1bd   :  { %v8338_v22 = vld [vmem:[#allocation6 + $0x90] sm:$0xf]  ;;  %3688 = vmatpush.bf16.msra.mxu2 %v8915_v0  ;;  %v9139_v28 = vor.u32 %v12606_v16, %v9138_v5  ;;  %3661 = vmatpush.bf16.msra.mxu0 %v8371_v14  ;;  %v3403_v0 = vadd.f32 %v3402_v33, %v3389_v37  ;;  %v4137_v5 = vpack.c.bf16 %v4122_v63, %v4121_v56 }
 0x1be   :  { %v12406_v24 = vld [vmem:[#allocation6 + $0xac] sm:$0xf0] }
 0x1bf   :  { %v8594_v25 = vld [vmem:[#allocation6 + $0x290] sm:$0xf]  ;;  %3702 = vmatpush.bf16.msra.mxu3 %v9171_v12  ;;  %v8339_v34 = vor.u32 %v12406_v24, %v8338_v22  ;;  %3675 = vmatpush.bf16.msra.mxu1 %v8627_v19  ;;  %v3417_v16 = vadd.f32 %v3416_v13, %v3403_v0  ;;  %4145 = vst [vmem:[#allocation2] sm:$0xff] %v4137_v5 }
 0x1c0   :  { %v12470_v26 = vld [vmem:[#allocation6 + $0x2ac] sm:$0xf0] }
 0x1c1   :  { %v8850_v45 = vld [vmem:[#allocation6 + $0x490] sm:$0xf]  ;;  %v8595_v35 = vor.u32 %v12470_v26, %v8594_v25  ;;  %3689 = vmatpush.bf16.msra.mxu2 %v8883_v23  ;;  %3662 = vmatpush.bf16.msra.mxu0 %v8339_v34  ;;  %v3431_v25 = vadd.f32 %v3430_v20, %v3417_v16 }
 0x1c2   :  { %v12534_v6 = vld [vmem:[#allocation6 + $0x4ac] sm:$0xf0] }
 0x1c3   :  { %v9106_v48 = vld [vmem:[#allocation6 + $0x690] sm:$0xf]  ;;  %v8851_v40 = vor.u32 %v12534_v6, %v8850_v45  ;;  %3703 = vmatpush.bf16.msra.mxu3 %v9139_v28  ;;  %3676 = vmatpush.bf16.msra.mxu1 %v8595_v35  ;;  %v4114_v51 = vmul.f32 0.2, %v3431_v25 }
 0x1c4   :  { %v12598_v29 = vld [vmem:[#allocation6 + $0x6ac] sm:$0xf0] }
 0x1c5   :  { %v8306_v36 = vld [vmem:[#allocation6 + $0x50] sm:$0xf]  ;;  %v9107_v46 = vor.u32 %v12598_v29, %v9106_v48  ;;  %3690 = vmatpush.bf16.msra.mxu2 %v8851_v40  ;;  %v4129_v40 = vmax.f32 %v13748_v18, %v13752_v57 }
 0x1c6   :  { %v12398_v41 = vld [vmem:[#allocation6 + $0x6c] sm:$0xf0] }
 0x1c7   :  { %v8562_v30 = vld [vmem:[#allocation6 + $0x250] sm:$0xf]  ;;  %v8307_v49 = vor.u32 %v12398_v41, %v8306_v36  ;;  %3704 = vmatpush.bf16.msra.mxu3 %v9107_v46  ;;  %v4130_v41 = vmax.f32 %v3431_v25, %v4114_v51 }
 0x1c8   :  { %v12462_v42 = vld [vmem:[#allocation6 + $0x26c] sm:$0xf0] }
 0x1c9   :  { %v8818_v50 = vld [vmem:[#allocation6 + $0x450] sm:$0xf]  ;;  %v8563_v59 = vor.u32 %v12462_v42, %v8562_v30  ;;  %3663 = vmatpush.bf16.msra.mxu0 %v8307_v49  ;;  %v4141_v33 = vpack.c.bf16 %v4130_v41, %v4129_v40 }
 0x1ca   :  { %v12526_v54 = vld [vmem:[#allocation6 + $0x46c] sm:$0xf0] }
 0x1cb   :  { %v9074_v53 = vld [vmem:[#allocation6 + $0x650] sm:$0xf]  ;;  %v8819_v8 = vor.u32 %v12526_v54, %v8818_v50  ;;  %3677 = vmatpush.bf16.msra.mxu1 %v8563_v59  ;;  %4149 = vst [vmem:[#allocation2 + $0x20] sm:$0xff] %v4141_v33 }
 0x1cc   :  { %v12590_v3 = vld [vmem:[#allocation6 + $0x66c] sm:$0xf0] }
 0x1cd   :  { %v8274_v61 = vld [vmem:[#allocation6 + $0x10] sm:$0xf]  ;;  %v9075_v12 = vor.u32 %v12590_v3, %v9074_v53  ;;  %3691 = vmatpush.bf16.msra.mxu2 %v8819_v8 }
 0x1ce   :  { %v12390_v62 = vld [vmem:[#allocation6 + $0x2c] sm:$0xf0] }
 0x1cf   :  { %v8530_v4 = vld [vmem:[#allocation6 + $0x210] sm:$0xf]  ;;  %v8275_v9 = vor.u32 %v12390_v62, %v8274_v61  ;;  %3705 = vmatpush.bf16.msra.mxu3 %v9075_v12 }
 0x1d0   :  { %v12454_v7 = vld [vmem:[#allocation6 + $0x22c] sm:$0xf0] }
 0x1d1   :  { %v8786_v11 = vld [vmem:[#allocation6 + $0x410] sm:$0xf]  ;;  %v8531_v26 = vor.u32 %v12454_v7, %v8530_v4  ;;  %3664 = vmatpush.bf16.msra.mxu0 %v8275_v9 }
 0x1d2   :  { %v12518_v15 = vld [vmem:[#allocation6 + $0x42c] sm:$0xf0] }
 0x1d3   :  { %v9042_v32 = vld [vmem:[#allocation6 + $0x610] sm:$0xf]  ;;  %v8787_v28 = vor.u32 %v12518_v15, %v8786_v11  ;;  %3678 = vmatpush.bf16.msra.mxu1 %v8531_v26 }
 0x1d4   :  { %v12582_v60 = vld [vmem:[#allocation6 + $0x62c] sm:$0xf0]  ;;  %3665 = vmatmul.bf16.vlgmr.msra.gmra.mxu0 %v13641_v58 }
 0x1d5   :  { %v9522_v21 = vld [vmem:[#allocation6 + $0x9d0] sm:$0xf]  ;;  %v9043_v6 = vor.u32 %v12582_v60, %v9042_v32  ;;  %3692 = vmatpush.bf16.msra.mxu2 %v8787_v28 }
 0x1d6   :  { %v12702_v14 = vld [vmem:[#allocation6 + $0x9ec] sm:$0xf0]  ;;  %3679 = vmatmul.bf16.vlgmr.msra.gmra.mxu1 %v13647_v10 }
 0x1d7   :  { %v9778_v22 = vld [vmem:[#allocation6 + $0xbd0] sm:$0xf]  ;;  %v9523_v2 = vor.u32 %v12702_v14, %v9522_v21  ;;  %3706 = vmatpush.bf16.msra.mxu3 %v9043_v6 }
 0x1d8   :  { %v12766_v19 = vld [vmem:[#allocation6 + $0xbec] sm:$0xf0]  ;;  %3693 = vmatmul.bf16.vlgmr.msra.gmra.mxu2 %v13643_v1 }
 0x1d9   :  { %v10034_v23 = vld [vmem:[#allocation6 + $0xdd0] sm:$0xf]  ;;  %v9779_v48 = vor.u32 %v12766_v19, %v9778_v22  ;;  %3713 = vmatpush.bf16.msrb.mxu0 %v9523_v2 }
 0x1da   :  { %v12830_v24 = vld [vmem:[#allocation6 + $0xdec] sm:$0xf0]  ;;  %3707 = vmatmul.bf16.vlgmr.msra.gmra.mxu3 %v13649_v17 }
 0x1db   :  { %v10290_v27 = vld [vmem:[#allocation6 + $0xfd0] sm:$0xf]  ;;  %v10035_v29 = vor.u32 %v12830_v24, %v10034_v23  ;;  %3727 = vmatpush.bf16.msrb.mxu1 %v9779_v48 }
 0x1dc   :  { %v12894_v45 = vld [vmem:[#allocation6 + $0xfec] sm:$0xf0] }
 0x1dd   :  { %v9490_v52 = vld [vmem:[#allocation6 + $0x990] sm:$0xf]  ;;  %v10291_v35 = vor.u32 %v12894_v45, %v10290_v27  ;;  %3741 = vmatpush.bf16.msrb.mxu2 %v10035_v29 }
 0x1de   :  { %v12694_v31 = vld [vmem:[#allocation6 + $0x9ac] sm:$0xf0] }
 0x1df   :  { %v9746_v34 = vld [vmem:[#allocation6 + $0xb90] sm:$0xf]  ;;  %v9491_v46 = vor.u32 %v12694_v31, %v9490_v52  ;;  %3755 = vmatpush.bf16.msrb.mxu3 %v10291_v35 }
 0x1e0   :  { %v12758_v36 = vld [vmem:[#allocation6 + $0xbac] sm:$0xf0] }
 0x1e1   :  { %v10002_v37 = vld [vmem:[#allocation6 + $0xd90] sm:$0xf]  ;;  %v9747_v50 = vor.u32 %v12758_v36, %v9746_v34  ;;  %3714 = vmatpush.bf16.msrb.mxu0 %v9491_v46 }
 0x1e2   :  { %v12822_v38 = vld [vmem:[#allocation6 + $0xdac] sm:$0xf0] }
 0x1e3   :  { %v10258_v30 = vld [vmem:[#allocation6 + $0xf90] sm:$0xf]  ;;  %v10003_v54 = vor.u32 %v12822_v38, %v10002_v37  ;;  %3728 = vmatpush.bf16.msrb.mxu1 %v9747_v50 }
 0x1e4   :  { %v12886_v42 = vld [vmem:[#allocation6 + $0xfac] sm:$0xf0] }
 0x1e5   :  { %v9458_v55 = vld [vmem:[#allocation6 + $0x950] sm:$0xf]  ;;  %v10259_v56 = vor.u32 %v12886_v42, %v10258_v30  ;;  %3742 = vmatpush.bf16.msrb.mxu2 %v10003_v54 }
 0x1e6   :  { %v12686_v53 = vld [vmem:[#allocation6 + $0x96c] sm:$0xf0] }
 0x1e7   :  { %v9714_v3 = vld [vmem:[#allocation6 + $0xb50] sm:$0xf]  ;;  %v9459_v62 = vor.u32 %v12686_v53, %v9458_v55  ;;  %3756 = vmatpush.bf16.msrb.mxu3 %v10259_v56 }
 0x1e8   :  { %v12750_v49 = vld [vmem:[#allocation6 + $0xb6c] sm:$0xf0] }
 0x1e9   :  { %v9970_v18 = vld [vmem:[#allocation6 + $0xd50] sm:$0xf]  ;;  %v9715_v63 = vor.u32 %v12750_v49, %v9714_v3  ;;  %3715 = vmatpush.bf16.msrb.mxu0 %v9459_v62 }
 0x1ea   :  { %v12814_v57 = vld [vmem:[#allocation6 + $0xd6c] sm:$0xf0] }
 0x1eb   :  { %v10226_v59 = vld [vmem:[#allocation6 + $0xf50] sm:$0xf]  ;;  %v9971_v0 = vor.u32 %v12814_v57, %v9970_v18  ;;  %3729 = vmatpush.bf16.msrb.mxu1 %v9715_v63 }
 0x1ec   :  { %v12878_v61 = vld [vmem:[#allocation6 + $0xf6c] sm:$0xf0] }
 0x1ed   :  { %v9426_v8 = vld [vmem:[#allocation6 + $0x910] sm:$0xf]  ;;  %v10227_v11 = vor.u32 %v12878_v61, %v10226_v59  ;;  %3743 = vmatpush.bf16.msrb.mxu2 %v9971_v0 }
 0x1ee   :  { %v12678_v4 = vld [vmem:[#allocation6 + $0x92c] sm:$0xf0] }
 0x1ef   :  { %v9682_v7 = vld [vmem:[#allocation6 + $0xb10] sm:$0xf]  ;;  %v9427_v5 = vor.u32 %v12678_v4, %v9426_v8  ;;  %3757 = vmatpush.bf16.msrb.mxu3 %v10227_v11  ;;  %v12442_v4 = vld [vmem:[#allocation6 + $0x1d4] sm:$0xf] }
 0x1f0   :  { %v12742_v12 = vld [vmem:[#allocation6 + $0xb2c] sm:$0xf0]  ;;  %v12506_v11 = vld [vmem:[#allocation6 + $0x3d4] sm:$0xf] }
 0x1f1   :  { %v9938_v13 = vld [vmem:[#allocation6 + $0xd10] sm:$0xf]  ;;  %v9683_v16 = vor.u32 %v12742_v12, %v9682_v7  ;;  %3716 = vmatpush.bf16.msrb.mxu0 %v9427_v5  ;;  %v8500_v7 = vld [vmem:[#allocation6 + $0x1f0] sm:$0xf0] }
 0x1f2   :  { %v12806_v15 = vld [vmem:[#allocation6 + $0xd2c] sm:$0xf0] }
 0x1f3   :  { %v10194_v32 = vld [vmem:[#allocation6 + $0xf10] sm:$0xf]  ;;  %v9939_v20 = vor.u32 %v12806_v15, %v9938_v13  ;;  %3730 = vmatpush.bf16.msrb.mxu1 %v9683_v16  ;;  %v8756_v13 = vld [vmem:[#allocation6 + $0x3f0] sm:$0xf0] }
 0x1f4   :  { %v12870_v60 = vld [vmem:[#allocation6 + $0xf2c] sm:$0xf0]  ;;  %v12570_v15 = vld [vmem:[#allocation6 + $0x5d4] sm:$0xf] }
 0x1f5   :  { %v9394_v21 = vld [vmem:[#allocation6 + $0x8d0] sm:$0xf]  ;;  %v10195_v9 = vor.u32 %v12870_v60, %v10194_v32  ;;  %3744 = vmatpush.bf16.msrb.mxu2 %v9939_v20  ;;  %v9012_v32 = vld [vmem:[#allocation6 + $0x5f0] sm:$0xf0] }
 0x1f6   :  { %v12670_v14 = vld [vmem:[#allocation6 + $0x8ec] sm:$0xf0]  ;;  %v12634_v16 = vld [vmem:[#allocation6 + $0x7d4] sm:$0xf] }
 0x1f7   :  { %v9650_v22 = vld [vmem:[#allocation6 + $0xad0] sm:$0xf]  ;;  %v9395_v28 = vor.u32 %v12670_v14, %v9394_v21  ;;  %3758 = vmatpush.bf16.msrb.mxu3 %v10195_v9  ;;  %v9268_v20 = vld [vmem:[#allocation6 + $0x7f0] sm:$0xf0]  ;;  %v8503_v14 = vor.u32 %v12442_v4, %v8500_v7  ;;  %v9015_v9 = vor.u32 %v12570_v15, %v9012_v32 }
 0x1f8   :  { %v12734_v19 = vld [vmem:[#allocation6 + $0xaec] sm:$0xf0]  ;;  %v8628_v7 = vld [vmem:[#allocation6 + $0x2f0] sm:$0xf0] }
 0x1f9   :  { %v9906_v23 = vld [vmem:[#allocation6 + $0xcd0] sm:$0xf]  ;;  %v9651_v27 = vor.u32 %v12734_v19, %v9650_v22  ;;  %3717 = vmatpush.bf16.msrb.mxu0 %v9395_v28  ;;  %v8759_v22 = vor.u32 %v12506_v11, %v8756_v13  ;;  %v12434_v19 = vld [vmem:[#allocation6 + $0x194] sm:$0xf] }
 0x1fa   :  { %v12798_v24 = vld [vmem:[#allocation6 + $0xcec] sm:$0xf0]  ;;  %v12562_v28 = vld [vmem:[#allocation6 + $0x594] sm:$0xf] }
 0x1fb   :  { %v10162_v25 = vld [vmem:[#allocation6 + $0xed0] sm:$0xf]  ;;  %v9907_v45 = vor.u32 %v12798_v24, %v9906_v23  ;;  %3731 = vmatpush.bf16.msrb.mxu1 %v9651_v27  ;;  %v8468_v23 = vld [vmem:[#allocation6 + $0x1b0] sm:$0xf0] }
 0x1fc   :  { %v12862_v26 = vld [vmem:[#allocation6 + $0xeec] sm:$0xf0]  ;;  %v12498_v24 = vld [vmem:[#allocation6 + $0x394] sm:$0xf] }
 0x1fd   :  { %v9362_v6 = vld [vmem:[#allocation6 + $0x890] sm:$0xf]  ;;  %v10163_v51 = vor.u32 %v12862_v26, %v10162_v25  ;;  %3745 = vmatpush.bf16.msrb.mxu2 %v9907_v45  ;;  %v9271_v25 = vor.u32 %v12634_v16, %v9268_v20  ;;  %v8724_v26 = vld [vmem:[#allocation6 + $0x3b0] sm:$0xf0] }
 0x1fe   :  { %v12662_v2 = vld [vmem:[#allocation6 + $0x8ac] sm:$0xf0]  ;;  %v8980_v27 = vld [vmem:[#allocation6 + $0x5b0] sm:$0xf0] }
 0x1ff   :  { %v9618_v52 = vld [vmem:[#allocation6 + $0xa90] sm:$0xf]  ;;  %v9363_v36 = vor.u32 %v12662_v2, %v9362_v6  ;;  %3759 = vmatpush.bf16.msrb.mxu3 %v10163_v51  ;;  %v12626_v45 = vld [vmem:[#allocation6 + $0x794] sm:$0xf]  ;;  %v8471_v2 = vor.u32 %v12434_v19, %v8468_v23  ;;  %v8983_v51 = vor.u32 %v12562_v28, %v8980_v27  ;;  %v13770_v28 = vpop.f32.mrf.mxu3 }
 0x200   :  { %v12726_v48 = vld [vmem:[#allocation6 + $0xaac] sm:$0xf0]  ;;  %v9236_v6 = vld [vmem:[#allocation6 + $0x7b0] sm:$0xf0] }
 0x201   :  { %v9874_v29 = vld [vmem:[#allocation6 + $0xc90] sm:$0xf]  ;;  %v9619_v37 = vor.u32 %v12726_v48, %v9618_v52  ;;  %3718 = vmatpush.bf16.msrb.mxu0 %v9363_v36  ;;  %v8727_v52 = vor.u32 %v12498_v24, %v8724_v26  ;;  %v12426_v48 = vld [vmem:[#allocation6 + $0x154] sm:$0xf] }
 0x202   :  { %v12790_v31 = vld [vmem:[#allocation6 + $0xcac] sm:$0xf0]  ;;  %v12554_v36 = vld [vmem:[#allocation6 + $0x554] sm:$0xf] }
 0x203   :  { %v10130_v34 = vld [vmem:[#allocation6 + $0xe90] sm:$0xf]  ;;  %v9875_v38 = vor.u32 %v12790_v31, %v9874_v29  ;;  %3732 = vmatpush.bf16.msrb.mxu1 %v9619_v37  ;;  %v8436_v29 = vld [vmem:[#allocation6 + $0x170] sm:$0xf0] }
 0x204   :  { %v12854_v35 = vld [vmem:[#allocation6 + $0xeac] sm:$0xf0]  ;;  %v12490_v31 = vld [vmem:[#allocation6 + $0x354] sm:$0xf] }
 0x205   :  { %v9330_v40 = vld [vmem:[#allocation6 + $0x850] sm:$0xf]  ;;  %v10131_v42 = vor.u32 %v12854_v35, %v10130_v34  ;;  %3746 = vmatpush.bf16.msrb.mxu2 %v9875_v38  ;;  %v9239_v34 = vor.u32 %v12626_v45, %v9236_v6  ;;  %v8692_v35 = vld [vmem:[#allocation6 + $0x370] sm:$0xf0] }
 0x206   :  { %v12654_v41 = vld [vmem:[#allocation6 + $0x86c] sm:$0xf0]  ;;  %v8948_v37 = vld [vmem:[#allocation6 + $0x570] sm:$0xf0] }
 0x207   :  { %v9586_v30 = vld [vmem:[#allocation6 + $0xa50] sm:$0xf]  ;;  %v9331_v53 = vor.u32 %v12654_v41, %v9330_v40  ;;  %3760 = vmatpush.bf16.msrb.mxu3 %v10131_v42  ;;  %v12618_v38 = vld [vmem:[#allocation6 + $0x754] sm:$0xf]  ;;  %v8439_v41 = vor.u32 %v12426_v48, %v8436_v29  ;;  %v8951_v42 = vor.u32 %v12554_v36, %v8948_v37 }
 0x208   :  { %v12718_v46 = vld [vmem:[#allocation6 + $0xa6c] sm:$0xf0]  ;;  %v9204_v40 = vld [vmem:[#allocation6 + $0x770] sm:$0xf0] }
 0x209   :  { %v9842_v33 = vld [vmem:[#allocation6 + $0xc50] sm:$0xf]  ;;  %v9587_v49 = vor.u32 %v12718_v46, %v9586_v30  ;;  %3719 = vmatpush.bf16.msrb.mxu0 %v9331_v53  ;;  %v8695_v30 = vor.u32 %v12490_v31, %v8692_v35  ;;  %v12418_v46 = vld [vmem:[#allocation6 + $0x114] sm:$0xf] }
 0x20a   :  { %v12782_v50 = vld [vmem:[#allocation6 + $0xc6c] sm:$0xf0]  ;;  %v12546_v53 = vld [vmem:[#allocation6 + $0x514] sm:$0xf] }
 0x20b   :  { %v10098_v54 = vld [vmem:[#allocation6 + $0xe50] sm:$0xf]  ;;  %v9843_v18 = vor.u32 %v12782_v50, %v9842_v33  ;;  %3733 = vmatpush.bf16.msrb.mxu1 %v9587_v49  ;;  %v8404_v33 = vld [vmem:[#allocation6 + $0x130] sm:$0xf0] }
 0x20c   :  { %v12846_v55 = vld [vmem:[#allocation6 + $0xe6c] sm:$0xf0]  ;;  %v12482_v50 = vld [vmem:[#allocation6 + $0x314] sm:$0xf] }
 0x20d   :  { %v9298_v3 = vld [vmem:[#allocation6 + $0x810] sm:$0xf]  ;;  %v10099_v62 = vor.u32 %v12846_v55, %v10098_v54  ;;  %3747 = vmatpush.bf16.msrb.mxu2 %v9843_v18  ;;  %v9207_v54 = vor.u32 %v12618_v38, %v9204_v40  ;;  %v8660_v55 = vld [vmem:[#allocation6 + $0x330] sm:$0xf0]  ;;  %v8407_v18 = vor.u32 %v12418_v46, %v8404_v33 }
 0x20e   :  { %v12646_v56 = vld [vmem:[#allocation6 + $0x82c] sm:$0xf0]  ;;  %v9172_v49 = vld [vmem:[#allocation6 + $0x730] sm:$0xf0] }
 0x20f   :  { %v9554_v57 = vld [vmem:[#allocation6 + $0xa10] sm:$0xf]  ;;  %v9299_v12 = vor.u32 %v12646_v56, %v9298_v3  ;;  %3761 = vmatpush.bf16.msrb.mxu3 %v10099_v62  ;;  %v8916_v3 = vld [vmem:[#allocation6 + $0x530] sm:$0xf0] }
 0x210   :  { %v12710_v59 = vld [vmem:[#allocation6 + $0xa2c] sm:$0xf0]  ;;  %v12610_v56 = vld [vmem:[#allocation6 + $0x714] sm:$0xf] }
 0x211   :  { %v9810_v61 = vld [vmem:[#allocation6 + $0xc10] sm:$0xf]  ;;  %v9555_v60 = vor.u32 %v12710_v59, %v9554_v57  ;;  %3720 = vmatpush.bf16.msrb.mxu0 %v9299_v12  ;;  %v13764_v57 = vpop.f32.mrf.mxu0  ;;  %v8663_v59 = vor.u32 %v12482_v50, %v8660_v55  ;;  %v12410_v62 = vld [vmem:[#allocation6 + $0xd4] sm:$0xf]  ;;  %v9175_v4 = vor.u32 %v12610_v56, %v9172_v49 }
 0x212   :  { %v12774_v63 = vld [vmem:[#allocation6 + $0xc2c] sm:$0xf0]  ;;  %v12538_v11 = vld [vmem:[#allocation6 + $0x4d4] sm:$0xf] }
 0x213   :  { %v10066_v0 = vld [vmem:[#allocation6 + $0xe10] sm:$0xf]  ;;  %v9811_v5 = vor.u32 %v12774_v63, %v9810_v61  ;;  %3734 = vmatpush.bf16.msrb.mxu1 %v9555_v60  ;;  %v8919_v61 = vor.u32 %v12546_v53, %v8916_v3  ;;  %v8372_v63 = vld [vmem:[#allocation6 + $0xf0] sm:$0xf0] }
 0x214   :  { %v12838_v8 = vld [vmem:[#allocation6 + $0xe2c] sm:$0xf0]  ;;  %3721 = vmatmul.bf16.vlgmr.msrb.gmra.mxu0 %v13653_v39  ;;  %v8884_v12 = vld [vmem:[#allocation6 + $0x4f0] sm:$0xf0]  ;;  %v8375_v32 = vor.u32 %v12410_v62, %v8372_v63 }
 0x215   :  { %v10067_v21 = vor.u32 %v12838_v8, %v10066_v0  ;;  %3748 = vmatpush.bf16.msrb.mxu2 %v9811_v5  ;;  %3769 = vmatpush.bf16.msra.mxu0 %v8503_v14  ;;  %v12474_v0 = vld [vmem:[#allocation6 + $0x2d4] sm:$0xf]  ;;  %v13766_v8 = vpop.f32.mrf.mxu1  ;;  %v8887_v5 = vor.u32 %v12538_v11, %v8884_v12 }
 0x216   :  { %3735 = vmatmul.bf16.vlgmr.msrb.gmra.mxu1 %v13657_v44  ;;  %v12602_v13 = vld [vmem:[#allocation6 + $0x6d4] sm:$0xf]  ;;  %v8631_v60 = vor.u32 %v12474_v0, %v8628_v7 }
 0x217   :  { %3762 = vmatpush.bf16.msrb.mxu3 %v10067_v21  ;;  %3783 = vmatpush.bf16.msra.mxu1 %v8759_v22  ;;  %v9140_v15 = vld [vmem:[#allocation6 + $0x6f0] sm:$0xf0] }
 0x218   :  { %3749 = vmatmul.bf16.vlgmr.msrb.gmra.mxu2 %v13655_v43  ;;  %v12402_v16 = vld [vmem:[#allocation6 + $0x94] sm:$0xf]  ;;  %v9143_v14 = vor.u32 %v12602_v13, %v9140_v15 }
 0x219   :  { %3797 = vmatpush.bf16.msra.mxu2 %v9015_v9  ;;  %3770 = vmatpush.bf16.msra.mxu0 %v8471_v2  ;;  %v8340_v20 = vld [vmem:[#allocation6 + $0xb0] sm:$0xf0] }
 0x21a   :  { %3763 = vmatmul.bf16.vlgmr.msrb.gmra.mxu3 %v13659_v47  ;;  %v12466_v21 = vld [vmem:[#allocation6 + $0x294] sm:$0xf]  ;;  %v8343_v26 = vor.u32 %v12402_v16, %v8340_v20 }
 0x21b   :  { %3811 = vmatpush.bf16.msra.mxu3 %v9271_v25  ;;  %3784 = vmatpush.bf16.msra.mxu1 %v8727_v52  ;;  %v8596_v22 = vld [vmem:[#allocation6 + $0x2b0] sm:$0xf0]  ;;  %v13768_v25 = vpop.f32.mrf.mxu2 }
 0x21c   :  { %v12530_v9 = vld [vmem:[#allocation6 + $0x494] sm:$0xf]  ;;  %v8599_v27 = vor.u32 %v12466_v21, %v8596_v22 }
 0x21d   :  { %3798 = vmatpush.bf16.msra.mxu2 %v8983_v51  ;;  %3771 = vmatpush.bf16.msra.mxu0 %v8439_v41  ;;  %v8852_v19 = vld [vmem:[#allocation6 + $0x4b0] sm:$0xf0]  ;;  %v13774_v37 = vpop.f32.mrf.mxu1 }
 0x21e   :  { %v12594_v23 = vld [vmem:[#allocation6 + $0x694] sm:$0xf]  ;;  %v8855_v45 = vor.u32 %v12530_v9, %v8852_v19 }
 0x21f   :  { %3812 = vmatpush.bf16.msra.mxu3 %v9239_v34  ;;  %3785 = vmatpush.bf16.msra.mxu1 %v8695_v30  ;;  %v9108_v24 = vld [vmem:[#allocation6 + $0x6b0] sm:$0xf0]  ;;  %v13772_v34 = vpop.f32.mrf.mxu0 }
 0x220   :  { %v12394_v6 = vld [vmem:[#allocation6 + $0x54] sm:$0xf]  ;;  %v9111_v51 = vor.u32 %v12594_v23, %v9108_v24 }
 0x221   :  { %3799 = vmatpush.bf16.msra.mxu2 %v8951_v42  ;;  %3772 = vmatpush.bf16.msra.mxu0 %v8407_v18  ;;  %v8308_v2 = vld [vmem:[#allocation6 + $0x70] sm:$0xf0] }
 0x222   :  { %v12458_v52 = vld [vmem:[#allocation6 + $0x254] sm:$0xf]  ;;  %v8311_v38 = vor.u32 %v12394_v6, %v8308_v2 }
 0x223   :  { %3813 = vmatpush.bf16.msra.mxu3 %v9207_v54  ;;  %3786 = vmatpush.bf16.msra.mxu1 %v8663_v59  ;;  %v8564_v48 = vld [vmem:[#allocation6 + $0x270] sm:$0xf0]  ;;  %v13776_v12 = vpop.f32.mrf.mxu2 }
 0x224   :  { %v12522_v29 = vld [vmem:[#allocation6 + $0x454] sm:$0xf]  ;;  %v8567_v30 = vor.u32 %v12458_v52, %v8564_v48 }
 0x225   :  { %3800 = vmatpush.bf16.msra.mxu2 %v8919_v61  ;;  %3773 = vmatpush.bf16.msra.mxu0 %v8375_v32  ;;  %v8820_v31 = vld [vmem:[#allocation6 + $0x470] sm:$0xf0]  ;;  %v13778_v32 = vpop.f32.mrf.mxu3 }
 0x226   :  { %v12586_v35 = vld [vmem:[#allocation6 + $0x654] sm:$0xf]  ;;  %v8823_v42 = vor.u32 %v12522_v29, %v8820_v31 }
 0x227   :  { %3814 = vmatpush.bf16.msra.mxu3 %v9175_v4  ;;  %3787 = vmatpush.bf16.msra.mxu1 %v8631_v60  ;;  %v9076_v36 = vld [vmem:[#allocation6 + $0x670] sm:$0xf0]  ;;  %v13780_v23 = vpop.f32.mrf.mxu0 }
 0x228   :  { %v12386_v40 = vld [vmem:[#allocation6 + $0x14] sm:$0xf]  ;;  %v9079_v54 = vor.u32 %v12586_v35, %v9076_v36 }
 0x229   :  { %3801 = vmatpush.bf16.msra.mxu2 %v8887_v5  ;;  %3774 = vmatpush.bf16.msra.mxu0 %v8343_v26  ;;  %v8276_v41 = vld [vmem:[#allocation6 + $0x30] sm:$0xf0] }
 0x22a   :  { %v12450_v46 = vld [vmem:[#allocation6 + $0x214] sm:$0xf]  ;;  %v8279_v59 = vor.u32 %v12386_v40, %v8276_v41 }
 0x22b   :  { %3815 = vmatpush.bf16.msra.mxu3 %v9143_v14  ;;  %3788 = vmatpush.bf16.msra.mxu1 %v8599_v27  ;;  %v8532_v33 = vld [vmem:[#allocation6 + $0x230] sm:$0xf0]  ;;  %v13782_v27 = vpop.f32.mrf.mxu1 }
 0x22c   :  { %v12514_v50 = vld [vmem:[#allocation6 + $0x414] sm:$0xf]  ;;  %v8535_v0 = vor.u32 %v12450_v46, %v8532_v33 }
 0x22d   :  { %3802 = vmatpush.bf16.msra.mxu2 %v8855_v45  ;;  %v8788_v55 = vld [vmem:[#allocation6 + $0x430] sm:$0xf0]  ;;  %3775 = vmatpush.bf16.msra.mxu0 %v8311_v38 }
 0x22e   :  { %v12578_v53 = vld [vmem:[#allocation6 + $0x614] sm:$0xf]  ;;  %v8791_v4 = vor.u32 %v12514_v50, %v8788_v55 }
 0x22f   :  { %3816 = vmatpush.bf16.msra.mxu3 %v9111_v51  ;;  %v9044_v3 = vld [vmem:[#allocation6 + $0x630] sm:$0xf0]  ;;  %3789 = vmatpush.bf16.msra.mxu1 %v8567_v30 }
 0x230   :  { %v12698_v56 = vld [vmem:[#allocation6 + $0x9d4] sm:$0xf]  ;;  %v9047_v13 = vor.u32 %v12578_v53, %v9044_v3 }
 0x231   :  { %v9524_v49 = vld [vmem:[#allocation6 + $0x9f0] sm:$0xf0]  ;;  %3803 = vmatpush.bf16.msra.mxu2 %v8823_v42  ;;  %3776 = vmatpush.bf16.msra.mxu0 %v8279_v59 }
 0x232   :  { %v12762_v18 = vld [vmem:[#allocation6 + $0xbd4] sm:$0xf]  ;;  %v9527_v15 = vor.u32 %v12698_v56, %v9524_v49  ;;  %v13790_v49 = vpop.f32.mrf.mxu3 }
 0x233   :  { %v9780_v61 = vld [vmem:[#allocation6 + $0xbf0] sm:$0xf0]  ;;  %3817 = vmatpush.bf16.msra.mxu3 %v9079_v54  ;;  %3790 = vmatpush.bf16.msra.mxu1 %v8535_v0  ;;  %v13788_v54 = vpop.f32.mrf.mxu2  ;;  %v13795_v0 = vpop.f32.mrf.mxu0 }
 0x234   :  { %v12826_v62 = vld [vmem:[#allocation6 + $0xdd4] sm:$0xf]  ;;  %v9783_v60 = vor.u32 %v12762_v18, %v9780_v61  ;;  %3777 = vmatmul.bf16.vlgmr.msra.gmra.mxu0 %v13641_v58  ;;  %v13792_v61 = vld [vmem:[#allocation8] sm:$0xff] }
 0x235   :  { %v10036_v63 = vld [vmem:[#allocation6 + $0xdf0] sm:$0xf0]  ;;  %3804 = vmatpush.bf16.msra.mxu2 %v8791_v4  ;;  %3825 = vmatpush.bf16.msrb.mxu0 %v9527_v15 }
 0x236   :  { %v12890_v7 = vld [vmem:[#allocation6 + $0xfd4] sm:$0xf]  ;;  %v10039_v5 = vor.u32 %v12826_v62, %v10036_v63  ;;  %3791 = vmatmul.bf16.vlgmr.msra.gmra.mxu1 %v13647_v10  ;;  %v635_v62 = vperm.slane %v13792_v61, 2 }
 0x237   :  { %v10292_v11 = vld [vmem:[#allocation6 + $0xff0] sm:$0xf0]  ;;  %3818 = vmatpush.bf16.msra.mxu3 %v9047_v13  ;;  %3839 = vmatpush.bf16.msrb.mxu1 %v9783_v60  ;;  %v13797_v60 = vpop.f32.mrf.mxu1 }
 0x238   :  { %v12690_v16 = vld [vmem:[#allocation6 + $0x994] sm:$0xf]  ;;  %v10295_v14 = vor.u32 %v12890_v7, %v10292_v11  ;;  %3805 = vmatmul.bf16.vlgmr.msra.gmra.mxu2 %v13643_v1 }
 0x239   :  { %v9492_v20 = vld [vmem:[#allocation6 + $0x9b0] sm:$0xf0]  ;;  %3853 = vmatpush.bf16.msrb.mxu2 %v10039_v5 }
 0x23a   :  { %v12754_v21 = vld [vmem:[#allocation6 + $0xb94] sm:$0xf]  ;;  %v9495_v45 = vor.u32 %v12690_v16, %v9492_v20  ;;  %3819 = vmatmul.bf16.vlgmr.msra.gmra.mxu3 %v13649_v17 }
 0x23b   :  { %v9748_v22 = vld [vmem:[#allocation6 + $0xbb0] sm:$0xf0]  ;;  %3867 = vmatpush.bf16.msrb.mxu3 %v10295_v14 }
 0x23c   :  { %v12818_v9 = vld [vmem:[#allocation6 + $0xd94] sm:$0xf]  ;;  %v9751_v6 = vor.u32 %v12754_v21, %v9748_v22  ;;  %3826 = vmatpush.bf16.msrb.mxu0 %v9495_v45 }
 0x23d   :  { %v10004_v19 = vld [vmem:[#allocation6 + $0xdb0] sm:$0xf0] }
 0x23e   :  { %v12882_v24 = vld [vmem:[#allocation6 + $0xf94] sm:$0xf]  ;;  %v10007_v2 = vor.u32 %v12818_v9, %v10004_v19  ;;  %3840 = vmatpush.bf16.msrb.mxu1 %v9751_v6 }
 0x23f   :  { %v10260_v26 = vld [vmem:[#allocation6 + $0xfb0] sm:$0xf0] }
 0x240   :  { %v12682_v52 = vld [vmem:[#allocation6 + $0x954] sm:$0xf]  ;;  %v10263_v29 = vor.u32 %v12882_v24, %v10260_v26  ;;  %3854 = vmatpush.bf16.msrb.mxu2 %v10007_v2  ;;  %v3443_v2 = vadd.f32 %v13764_v57, %v635_v62  ;;  %v3554_v57 = vpop.f32.mrf.mxu0 }
 0x241   :  { %v9460_v51 = vld [vmem:[#allocation6 + $0x970] sm:$0xf0] }
 0x242   :  { %v12746_v48 = vld [vmem:[#allocation6 + $0xb54] sm:$0xf]  ;;  %v9463_v41 = vor.u32 %v12682_v52, %v9460_v51  ;;  %3868 = vmatpush.bf16.msrb.mxu3 %v10263_v29 }
 0x243   :  { %v9716_v31 = vld [vmem:[#allocation6 + $0xb70] sm:$0xf0] }
 0x244   :  { %v12810_v35 = vld [vmem:[#allocation6 + $0xd54] sm:$0xf]  ;;  %v9719_v30 = vor.u32 %v12746_v48, %v9716_v31  ;;  %3827 = vmatpush.bf16.msrb.mxu0 %v9463_v41  ;;  %v13803_v41 = vpop.f32.mrf.mxu3 }
 0x245   :  { %v9972_v36 = vld [vmem:[#allocation6 + $0xd70] sm:$0xf0] }
 0x246   :  { %v12874_v38 = vld [vmem:[#allocation6 + $0xf54] sm:$0xf]  ;;  %v9975_v42 = vor.u32 %v12810_v35, %v9972_v36  ;;  %3841 = vmatpush.bf16.msrb.mxu1 %v9719_v30  ;;  %v13800_v36 = vpop.f32.mrf.mxu2 }
 0x247   :  { %v10228_v40 = vld [vmem:[#allocation6 + $0xf70] sm:$0xf0] }
 0x248   :  { %v12674_v46 = vld [vmem:[#allocation6 + $0x914] sm:$0xf]  ;;  %v10231_v55 = vor.u32 %v12874_v38, %v10228_v40  ;;  %3855 = vmatpush.bf16.msrb.mxu2 %v9975_v42  ;;  %v636_v40 = vperm.slane %v13792_v61, 3  ;;  %v9210_v61 = vld [vmem:[#allocation6 + $0x758] sm:$0xf] }
 0x249   :  { %v9428_v33 = vld [vmem:[#allocation6 + $0x930] sm:$0xf0] }
 0x24a   :  { %v12738_v50 = vld [vmem:[#allocation6 + $0xb14] sm:$0xf]  ;;  %v9431_v63 = vor.u32 %v12674_v46, %v9428_v33  ;;  %3869 = vmatpush.bf16.msrb.mxu3 %v10231_v55  ;;  %v3457_v55 = vadd.f32 %v13766_v8, %v3443_v2 }
 0x24b   :  { %v9684_v53 = vld [vmem:[#allocation6 + $0xb30] sm:$0xf0] }
 0x24c   :  { %v12802_v3 = vld [vmem:[#allocation6 + $0xd14] sm:$0xf]  ;;  %v9687_v4 = vor.u32 %v12738_v50, %v9684_v53  ;;  %3828 = vmatpush.bf16.msrb.mxu0 %v9431_v63 }
 0x24d   :  { %v9940_v56 = vld [vmem:[#allocation6 + $0xd30] sm:$0xf0] }
 0x24e   :  { %v12866_v18 = vld [vmem:[#allocation6 + $0xf14] sm:$0xf]  ;;  %v9943_v7 = vor.u32 %v12802_v3, %v9940_v56  ;;  %3842 = vmatpush.bf16.msrb.mxu1 %v9687_v4 }
 0x24f   :  { %v10196_v59 = vld [vmem:[#allocation6 + $0xf30] sm:$0xf0] }
 0x250   :  { %v12666_v11 = vld [vmem:[#allocation6 + $0x8d4] sm:$0xf]  ;;  %v10199_v5 = vor.u32 %v12866_v18, %v10196_v59  ;;  %3856 = vmatpush.bf16.msrb.mxu2 %v9943_v7  ;;  %v3568_v59 = vpop.f32.mrf.mxu1  ;;  %v3445_v7 = vadd.f32 %v13772_v34, %v635_v62 }
 0x251   :  { %v9396_v13 = vld [vmem:[#allocation6 + $0x8f0] sm:$0xf0] }
 0x252   :  { %v12730_v15 = vld [vmem:[#allocation6 + $0xad4] sm:$0xf]  ;;  %v9399_v9 = vor.u32 %v12666_v11, %v9396_v13  ;;  %3870 = vmatpush.bf16.msrb.mxu3 %v10199_v5 }
 0x253   :  { %v9652_v16 = vld [vmem:[#allocation6 + $0xaf0] sm:$0xf0] }
 0x254   :  { %v12794_v20 = vld [vmem:[#allocation6 + $0xcd4] sm:$0xf]  ;;  %v9655_v19 = vor.u32 %v12730_v15, %v9652_v16  ;;  %3829 = vmatpush.bf16.msrb.mxu0 %v9399_v9 }
 0x255   :  { %v9908_v21 = vld [vmem:[#allocation6 + $0xcf0] sm:$0xf0] }
 0x256   :  { %v12858_v14 = vld [vmem:[#allocation6 + $0xed4] sm:$0xf]  ;;  %v9911_v24 = vor.u32 %v12794_v20, %v9908_v21  ;;  %3843 = vmatpush.bf16.msrb.mxu1 %v9655_v19 }
 0x257   :  { %v10164_v22 = vld [vmem:[#allocation6 + $0xef0] sm:$0xf0] }
 0x258   :  { %v12658_v26 = vld [vmem:[#allocation6 + $0x894] sm:$0xf]  ;;  %v10167_v52 = vor.u32 %v12858_v14, %v10164_v22  ;;  %3857 = vmatpush.bf16.msrb.mxu2 %v9911_v24  ;;  %v3471_v14 = vadd.f32 %v13768_v25, %v3457_v55  ;;  %v3555_v22 = vadd.f32 %v3554_v57, %v636_v40  ;;  %v8506_v24 = vld [vmem:[#allocation6 + $0x1d8] sm:$0xf]  ;;  %v3556_v55 = vpop.f32.mrf.mxu0 }
 0x259   :  { %v9364_v45 = vld [vmem:[#allocation6 + $0x8b0] sm:$0xf0] }
 0x25a   :  { %v12722_v6 = vld [vmem:[#allocation6 + $0xa94] sm:$0xf]  ;;  %v9367_v38 = vor.u32 %v12658_v26, %v9364_v45  ;;  %3871 = vmatpush.bf16.msrb.mxu3 %v10167_v52  ;;  %v12447_v26 = vld [vmem:[#allocation6 + $0x1f4] sm:$0xf0]  ;;  %v3569_v57 = vadd.f32 %v3568_v59, %v3555_v22 }
 0x25b   :  { %v9620_v51 = vld [vmem:[#allocation6 + $0xab0] sm:$0xf0]  ;;  %v8762_v45 = vld [vmem:[#allocation6 + $0x3d8] sm:$0xf] }
 0x25c   :  { %v12786_v48 = vld [vmem:[#allocation6 + $0xc94] sm:$0xf]  ;;  %v9623_v30 = vor.u32 %v12722_v6, %v9620_v51  ;;  %3830 = vmatpush.bf16.msrb.mxu0 %v9367_v38  ;;  %v3459_v6 = vadd.f32 %v13774_v37, %v3445_v7  ;;  %v12511_v52 = vld [vmem:[#allocation6 + $0x3f4] sm:$0xf0] }
 0x25d   :  { %v9876_v29 = vld [vmem:[#allocation6 + $0xcb0] sm:$0xf0]  ;;  %v9018_v51 = vld [vmem:[#allocation6 + $0x5d8] sm:$0xf]  ;;  %v8763_v37 = vor.u32 %v12511_v52, %v8762_v45 }
 0x25e   :  { %v12850_v31 = vld [vmem:[#allocation6 + $0xe94] sm:$0xf]  ;;  %v9879_v42 = vor.u32 %v12786_v48, %v9876_v29  ;;  %3844 = vmatpush.bf16.msrb.mxu1 %v9623_v30  ;;  %v12575_v48 = vld [vmem:[#allocation6 + $0x5f4] sm:$0xf0]  ;;  %v3582_v29 = vpop.f32.mrf.mxu2  ;;  %v3596_v30 = vpop.f32.mrf.mxu3 }
 0x25f   :  { %v10132_v35 = vld [vmem:[#allocation6 + $0xeb0] sm:$0xf0]  ;;  %v12639_v38 = vld [vmem:[#allocation6 + $0x7f4] sm:$0xf0] }
 0x260   :  { %v12650_v46 = vld [vmem:[#allocation6 + $0x854] sm:$0xf]  ;;  %v10135_v53 = vor.u32 %v12850_v31, %v10132_v35  ;;  %3858 = vmatpush.bf16.msrb.mxu2 %v9879_v42  ;;  %v9274_v35 = vld [vmem:[#allocation6 + $0x7d8] sm:$0xf]  ;;  %v3485_v42 = vadd.f32 %v13770_v28, %v3471_v14 }
 0x261   :  { %v9332_v33 = vld [vmem:[#allocation6 + $0x870] sm:$0xf0]  ;;  %v8986_v7 = vld [vmem:[#allocation6 + $0x598] sm:$0xf] }
 0x262   :  { %v12714_v50 = vld [vmem:[#allocation6 + $0xa54] sm:$0xf]  ;;  %v9335_v11 = vor.u32 %v12650_v46, %v9332_v33  ;;  %3872 = vmatpush.bf16.msrb.mxu3 %v10135_v53  ;;  %v8507_v33 = vor.u32 %v12447_v26, %v8506_v24  ;;  %v8474_v53 = vld [vmem:[#allocation6 + $0x198] sm:$0xf] }
 0x263   :  { %v9588_v3 = vld [vmem:[#allocation6 + $0xa70] sm:$0xf0]  ;;  %v9242_v28 = vld [vmem:[#allocation6 + $0x798] sm:$0xf] }
 0x264   :  { %v12778_v56 = vld [vmem:[#allocation6 + $0xc54] sm:$0xf]  ;;  %v9591_v5 = vor.u32 %v12714_v50, %v9588_v3  ;;  %3831 = vmatpush.bf16.msrb.mxu0 %v9335_v11  ;;  %v9019_v50 = vor.u32 %v12575_v48, %v9018_v51  ;;  %v12439_v3 = vld [vmem:[#allocation6 + $0x1b4] sm:$0xf0] }
 0x265   :  { %v9844_v18 = vld [vmem:[#allocation6 + $0xc70] sm:$0xf0]  ;;  %v12567_v11 = vld [vmem:[#allocation6 + $0x5b4] sm:$0xf0] }
 0x266   :  { %v12842_v63 = vld [vmem:[#allocation6 + $0xe54] sm:$0xf]  ;;  %v9847_v16 = vor.u32 %v12778_v56, %v9844_v18  ;;  %3845 = vmatpush.bf16.msrb.mxu1 %v9591_v5  ;;  %v8730_v56 = vld [vmem:[#allocation6 + $0x398] sm:$0xf]  ;;  %v3473_v18 = vadd.f32 %v13776_v12, %v3459_v6  ;;  %v3583_v5 = vadd.f32 %v3582_v29, %v3569_v57  ;;  %v3557_v12 = vadd.f32 %v3556_v55, %v636_v40  ;;  %v3584_v45 = vpop.f32.mrf.mxu2  ;;  %v3598_v51 = vpop.f32.mrf.mxu3 }
 0x267   :  { %v10100_v4 = vld [vmem:[#allocation6 + $0xe70] sm:$0xf0]  ;;  %v12631_v59 = vld [vmem:[#allocation6 + $0x7b4] sm:$0xf0] }
 0x268   :  { %v12642_v13 = vld [vmem:[#allocation6 + $0x814] sm:$0xf]  ;;  %v10103_v9 = vor.u32 %v12842_v63, %v10100_v4  ;;  %3859 = vmatpush.bf16.msrb.mxu2 %v9847_v16  ;;  %v9275_v63 = vor.u32 %v12639_v38, %v9274_v35  ;;  %v12503_v4 = vld [vmem:[#allocation6 + $0x3b4] sm:$0xf0]  ;;  %v8475_v16 = vor.u32 %v12439_v3, %v8474_v53  ;;  %v3597_v26 = vadd.f32 %v3596_v30, %v3583_v5 }
 0x269   :  { %v9300_v15 = vld [vmem:[#allocation6 + $0x830] sm:$0xf0]  ;;  %v12431_v14 = vld [vmem:[#allocation6 + $0x174] sm:$0xf0] }
 0x26a   :  { %v12706_v20 = vld [vmem:[#allocation6 + $0xa14] sm:$0xf]  ;;  %v9303_v2 = vor.u32 %v12642_v13, %v9300_v15  ;;  %3873 = vmatpush.bf16.msrb.mxu3 %v10103_v9  ;;  %v3570_v13 = vpop.f32.mrf.mxu1  ;;  %v3499_v15 = vadd.f32 %v13780_v23, %v3485_v42  ;;  %v8698_v22 = vld [vmem:[#allocation6 + $0x358] sm:$0xf]  ;;  %v3487_v9 = vadd.f32 %v13778_v32, %v3473_v18  ;;  %v9243_v23 = vor.u32 %v12631_v59, %v9242_v28  ;;  %v3610_v42 = vpop.f32.mrf.mxu0 }
 0x26b   :  { %v9556_v8 = vld [vmem:[#allocation6 + $0xa30] sm:$0xf0]  ;;  %v12623_v40 = vld [vmem:[#allocation6 + $0x774] sm:$0xf0]  ;;  %v3571_v6 = vadd.f32 %v3570_v13, %v3557_v12 }
 0x26c   :  { %v12770_v21 = vld [vmem:[#allocation6 + $0xc14] sm:$0xf]  ;;  %v9559_v25 = vor.u32 %v12706_v20, %v9556_v8  ;;  %3832 = vmatpush.bf16.msrb.mxu0 %v9303_v2  ;;  %v8731_v20 = vor.u32 %v12503_v4, %v8730_v56  ;;  %v8987_v8 = vor.u32 %v12567_v11, %v8986_v7  ;;  %v3513_v24 = vadd.f32 %v13782_v27, %v3499_v15  ;;  %v8410_v48 = vld [vmem:[#allocation6 + $0x118] sm:$0xf] }
 0x26d   :  { %v9812_v19 = vld [vmem:[#allocation6 + $0xc30] sm:$0xf0]  ;;  %v12423_v29 = vld [vmem:[#allocation6 + $0x134] sm:$0xf0]  ;;  %v9211_v35 = vor.u32 %v12623_v40, %v9210_v61  ;;  %v3585_v53 = vadd.f32 %v3584_v45, %v3571_v6 }
 0x26e   :  { %v12834_v34 = vld [vmem:[#allocation6 + $0xe14] sm:$0xf]  ;;  %v9815_v31 = vor.u32 %v12770_v21, %v9812_v19  ;;  %3846 = vmatpush.bf16.msrb.mxu1 %v9559_v25  ;;  %v8442_v21 = vld [vmem:[#allocation6 + $0x158] sm:$0xf]  ;;  %v3652_v40 = vpop.f32.mrf.mxu3 }
 0x26f   :  { %v10068_v62 = vld [vmem:[#allocation6 + $0xe30] sm:$0xf0]  ;;  %3833 = vmatmul.bf16.vlgmr.msrb.gmra.mxu0 %v13653_v39  ;;  %v12495_v19 = vld [vmem:[#allocation6 + $0x374] sm:$0xf0]  ;;  %v8443_v32 = vor.u32 %v12431_v14, %v8442_v21 }
 0x270   :  { %v10071_v46 = vor.u32 %v12834_v34, %v10068_v62  ;;  %3860 = vmatpush.bf16.msrb.mxu2 %v9815_v31  ;;  %3881 = vmatpush.bf16.msra.mxu0 %v8507_v33  ;;  %v8954_v34 = vld [vmem:[#allocation6 + $0x558] sm:$0xf]  ;;  %v8699_v2 = vor.u32 %v12495_v19, %v8698_v22  ;;  %v3501_v31 = vadd.f32 %v13795_v0, %v3487_v9  ;;  %v3638_v19 = vpop.f32.mrf.mxu2 }
 0x271   :  { %v12559_v62 = vld [vmem:[#allocation6 + $0x574] sm:$0xf0]  ;;  %3847 = vmatmul.bf16.vlgmr.msrb.gmra.mxu1 %v13657_v44  ;;  %v3527_v33 = vadd.f32 %v13788_v54, %v3513_v24 }
 0x272   :  { %3874 = vmatpush.bf16.msrb.mxu3 %v10071_v46  ;;  %3895 = vmatpush.bf16.msra.mxu1 %v8763_v37  ;;  %v8955_v52 = vor.u32 %v12559_v62, %v8954_v34  ;;  %v8666_v25 = vld [vmem:[#allocation6 + $0x318] sm:$0xf]  ;;  %v3611_v37 = vadd.f32 %v3610_v42, %v3597_v26  ;;  %v3624_v55 = vpop.f32.mrf.mxu1  ;;  %v3515_v4 = vadd.f32 %v13797_v60, %v3501_v31  ;;  %v3612_v61 = vpop.f32.mrf.mxu0 }
 0x273   :  { %3861 = vmatmul.bf16.vlgmr.msrb.gmra.mxu2 %v13655_v43  ;;  %v12487_v27 = vld [vmem:[#allocation6 + $0x334] sm:$0xf0]  ;;  %v13826_v5 = vadd.f32 %v13790_v49, %v3527_v33 }
 0x274   :  { %3909 = vmatpush.bf16.msra.mxu2 %v9019_v50  ;;  %3882 = vmatpush.bf16.msra.mxu0 %v8475_v16  ;;  %v8922_v38 = vld [vmem:[#allocation6 + $0x518] sm:$0xf]  ;;  %v8411_v50 = vor.u32 %v12423_v29, %v8410_v48  ;;  %v8667_v3 = vor.u32 %v12487_v27, %v8666_v25  ;;  %v3625_v54 = vadd.f32 %v3624_v55, %v3611_v37 }
 0x275   :  { %3875 = vmatmul.bf16.vlgmr.msrb.gmra.mxu3 %v13659_v47  ;;  %v12551_v30 = vld [vmem:[#allocation6 + $0x534] sm:$0xf0]  ;;  %v3529_v16 = vadd.f32 %v13800_v36, %v3515_v4  ;;  %v4107_v26 = vmul.f32 0.2, %v13826_v5 }
 0x276   :  { %3923 = vmatpush.bf16.msra.mxu3 %v9275_v63  ;;  %3896 = vmatpush.bf16.msra.mxu1 %v8731_v20  ;;  %v9178_v57 = vld [vmem:[#allocation6 + $0x718] sm:$0xf]  ;;  %v8923_v56 = vor.u32 %v12551_v30, %v8922_v38  ;;  %v3639_v49 = vadd.f32 %v3638_v19, %v3625_v54 }
 0x277   :  { %v12615_v46 = vld [vmem:[#allocation6 + $0x734] sm:$0xf0] }
 0x278   :  { %3910 = vmatpush.bf16.msra.mxu2 %v8987_v8  ;;  %3883 = vmatpush.bf16.msra.mxu0 %v8443_v32  ;;  %v8378_v0 = vld [vmem:[#allocation6 + $0xd8] sm:$0xf]  ;;  %v9179_v7 = vor.u32 %v12615_v46, %v9178_v57  ;;  %v3599_v8 = vadd.f32 %v3598_v51, %v3585_v53  ;;  %v13831_v32 = vadd.f32 %v13803_v41, %v3529_v16 }
 0x279   :  { %v12415_v18 = vld [vmem:[#allocation6 + $0xf4] sm:$0xf0]  ;;  %v3653_v51 = vadd.f32 %v3652_v40, %v3639_v49  ;;  %v4123_v46 = vmax.f32 %v13826_v5, %v4107_v26  ;;  %v3654_v5 = vpop.f32.mrf.mxu3 }
 0x27a   :  { %3924 = vmatpush.bf16.msra.mxu3 %v9243_v23  ;;  %3897 = vmatpush.bf16.msra.mxu1 %v8699_v2  ;;  %v8634_v63 = vld [vmem:[#allocation6 + $0x2d8] sm:$0xf]  ;;  %v8379_v12 = vor.u32 %v12415_v18, %v8378_v0  ;;  %v3626_v27 = vpop.f32.mrf.mxu1  ;;  %v13835_v33 = vmul.f32 0.2, %v13831_v32 }
 0x27b   :  { %v12479_v11 = vld [vmem:[#allocation6 + $0x2f4] sm:$0xf0]  ;;  %v4108_v42 = vmul.f32 0.2, %v3653_v51 }
 0x27c   :  { %3911 = vmatpush.bf16.msra.mxu2 %v8955_v52  ;;  %v8890_v13 = vld [vmem:[#allocation6 + $0x4d8] sm:$0xf]  ;;  %3884 = vmatpush.bf16.msra.mxu0 %v8411_v50  ;;  %v8635_v60 = vor.u32 %v12479_v11, %v8634_v63  ;;  %v3613_v52 = vadd.f32 %v3612_v61, %v3599_v8  ;;  %v3640_v11 = vpop.f32.mrf.mxu2 }
 0x27d   :  { %v12543_v28 = vld [vmem:[#allocation6 + $0x4f4] sm:$0xf0] }
 0x27e   :  { %3925 = vmatpush.bf16.msra.mxu3 %v9211_v35  ;;  %v9146_v59 = vld [vmem:[#allocation6 + $0x6d8] sm:$0xf]  ;;  %3898 = vmatpush.bf16.msra.mxu1 %v8667_v3  ;;  %v8891_v21 = vor.u32 %v12543_v28, %v8890_v13  ;;  %v4124_v3 = vmax.f32 %v3653_v51, %v4108_v42 }
 0x27f   :  { %v12607_v15 = vld [vmem:[#allocation6 + $0x6f4] sm:$0xf0] }
 0x280   :  { %v8346_v20 = vld [vmem:[#allocation6 + $0x98] sm:$0xf]  ;;  %3912 = vmatpush.bf16.msra.mxu2 %v8923_v56  ;;  %v9147_v23 = vor.u32 %v12607_v15, %v9146_v59  ;;  %3885 = vmatpush.bf16.msra.mxu0 %v8379_v12  ;;  %v3627_v56 = vadd.f32 %v3626_v27, %v3613_v52  ;;  %v4138_v59 = vpack.c.bf16 %v4124_v3, %v4123_v46 }
 0x281   :  { %v12407_v14 = vld [vmem:[#allocation6 + $0xb4] sm:$0xf0] }
 0x282   :  { %v8602_v22 = vld [vmem:[#allocation6 + $0x298] sm:$0xf]  ;;  %3926 = vmatpush.bf16.msra.mxu3 %v9179_v7  ;;  %v8347_v45 = vor.u32 %v12407_v14, %v8346_v20  ;;  %3899 = vmatpush.bf16.msra.mxu1 %v8635_v60  ;;  %v3641_v15 = vadd.f32 %v3640_v11, %v3627_v56  ;;  %4146 = vst [vmem:[#allocation2 + $0x8] sm:$0xff] %v4138_v59 }
 0x283   :  { %v12471_v9 = vld [vmem:[#allocation6 + $0x2b4] sm:$0xf0] }
 0x284   :  { %v8858_v34 = vld [vmem:[#allocation6 + $0x498] sm:$0xf]  ;;  %v8603_v6 = vor.u32 %v12471_v9, %v8602_v22  ;;  %3913 = vmatpush.bf16.msra.mxu2 %v8891_v21  ;;  %3886 = vmatpush.bf16.msra.mxu0 %v8347_v45  ;;  %v3655_v22 = vadd.f32 %v3654_v5, %v3641_v15 }
 0x285   :  { %v12535_v62 = vld [vmem:[#allocation6 + $0x4b4] sm:$0xf0] }
 0x286   :  { %v9114_v36 = vld [vmem:[#allocation6 + $0x698] sm:$0xf]  ;;  %v8859_v48 = vor.u32 %v12535_v62, %v8858_v34  ;;  %3927 = vmatpush.bf16.msra.mxu3 %v9147_v23  ;;  %3900 = vmatpush.bf16.msra.mxu1 %v8603_v6  ;;  %v4116_v40 = vmul.f32 0.2, %v3655_v22 }
 0x287   :  { %v12599_v24 = vld [vmem:[#allocation6 + $0x6b4] sm:$0xf0] }
 0x288   :  { %v8314_v2 = vld [vmem:[#allocation6 + $0x58] sm:$0xf]  ;;  %v9115_v35 = vor.u32 %v12599_v24, %v9114_v36  ;;  %3914 = vmatpush.bf16.msra.mxu2 %v8859_v48  ;;  %v4131_v48 = vmax.f32 %v13831_v32, %v13835_v33 }
 0x289   :  { %v12399_v29 = vld [vmem:[#allocation6 + $0x74] sm:$0xf0] }
 0x28a   :  { %v8570_v25 = vld [vmem:[#allocation6 + $0x258] sm:$0xf]  ;;  %v8315_v37 = vor.u32 %v12399_v29, %v8314_v2  ;;  %3928 = vmatpush.bf16.msra.mxu3 %v9115_v35  ;;  %v4132_v29 = vmax.f32 %v3655_v22, %v4116_v40 }
 0x28b   :  { %v12463_v31 = vld [vmem:[#allocation6 + $0x274] sm:$0xf0] }
 0x28c   :  { %v8826_v38 = vld [vmem:[#allocation6 + $0x458] sm:$0xf]  ;;  %v8571_v50 = vor.u32 %v12463_v31, %v8570_v25  ;;  %3887 = vmatpush.bf16.msra.mxu0 %v8315_v37  ;;  %v4142_v27 = vpack.c.bf16 %v4132_v29, %v4131_v48 }
 0x28d   :  { %v12527_v30 = vld [vmem:[#allocation6 + $0x474] sm:$0xf0] }
 0x28e   :  { %v9082_v41 = vld [vmem:[#allocation6 + $0x658] sm:$0xf]  ;;  %v8827_v0 = vor.u32 %v12527_v30, %v8826_v38  ;;  %3901 = vmatpush.bf16.msra.mxu1 %v8571_v50  ;;  %4150 = vst [vmem:[#allocation2 + $0x28] sm:$0xff] %v4142_v27 }
 0x28f   :  { %v12591_v57 = vld [vmem:[#allocation6 + $0x674] sm:$0xf0] }
 0x290   :  { %v8282_v55 = vld [vmem:[#allocation6 + $0x18] sm:$0xf]  ;;  %v9083_v7 = vor.u32 %v12591_v57, %v9082_v41  ;;  %3915 = vmatpush.bf16.msra.mxu2 %v8827_v0 }
 0x291   :  { %v12391_v53 = vld [vmem:[#allocation6 + $0x34] sm:$0xf0] }
 0x292   :  { %v8538_v18 = vld [vmem:[#allocation6 + $0x218] sm:$0xf]  ;;  %v8283_v8 = vor.u32 %v12391_v53, %v8282_v55  ;;  %3929 = vmatpush.bf16.msra.mxu3 %v9083_v7 }
 0x293   :  { %v12455_v63 = vld [vmem:[#allocation6 + $0x234] sm:$0xf0] }
 0x294   :  { %v8794_v4 = vld [vmem:[#allocation6 + $0x418] sm:$0xf]  ;;  %v8539_v9 = vor.u32 %v12455_v63, %v8538_v18  ;;  %3888 = vmatpush.bf16.msra.mxu0 %v8283_v8 }
 0x295   :  { %v12519_v13 = vld [vmem:[#allocation6 + $0x434] sm:$0xf0] }
 0x296   :  { %v9050_v28 = vld [vmem:[#allocation6 + $0x618] sm:$0xf]  ;;  %v8795_v23 = vor.u32 %v12519_v13, %v8794_v4  ;;  %3902 = vmatpush.bf16.msra.mxu1 %v8539_v9 }
 0x297   :  { %v12583_v54 = vld [vmem:[#allocation6 + $0x634] sm:$0xf0]  ;;  %3889 = vmatmul.bf16.vlgmr.msra.gmra.mxu0 %v13641_v58 }
 0x298   :  { %v9530_v16 = vld [vmem:[#allocation6 + $0x9d8] sm:$0xf]  ;;  %v9051_v62 = vor.u32 %v12583_v54, %v9050_v28  ;;  %3916 = vmatpush.bf16.msra.mxu2 %v8795_v23 }
 0x299   :  { %v12703_v12 = vld [vmem:[#allocation6 + $0x9f4] sm:$0xf0]  ;;  %3903 = vmatmul.bf16.vlgmr.msra.gmra.mxu1 %v13647_v10 }
 0x29a   :  { %v9786_v20 = vld [vmem:[#allocation6 + $0xbd8] sm:$0xf]  ;;  %v9531_v49 = vor.u32 %v12703_v12, %v9530_v16  ;;  %3930 = vmatpush.bf16.msra.mxu3 %v9051_v62 }
 0x29b   :  { %v12767_v60 = vld [vmem:[#allocation6 + $0xbf4] sm:$0xf0]  ;;  %3917 = vmatmul.bf16.vlgmr.msra.gmra.mxu2 %v13643_v1 }
 0x29c   :  { %v10042_v21 = vld [vmem:[#allocation6 + $0xdd8] sm:$0xf]  ;;  %v9787_v36 = vor.u32 %v12767_v60, %v9786_v20  ;;  %3937 = vmatpush.bf16.msrb.mxu0 %v9531_v49 }
 0x29d   :  { %v12831_v14 = vld [vmem:[#allocation6 + $0xdf4] sm:$0xf0]  ;;  %3931 = vmatmul.bf16.vlgmr.msra.gmra.mxu3 %v13649_v17 }
 0x29e   :  { %v10298_v19 = vld [vmem:[#allocation6 + $0xfd8] sm:$0xf]  ;;  %v10043_v24 = vor.u32 %v12831_v14, %v10042_v21  ;;  %3951 = vmatpush.bf16.msrb.mxu1 %v9787_v36 }
 0x29f   :  { %v12895_v34 = vld [vmem:[#allocation6 + $0xff4] sm:$0xf0] }
 0x2a0   :  { %v9498_v61 = vld [vmem:[#allocation6 + $0x998] sm:$0xf]  ;;  %v10299_v6 = vor.u32 %v12895_v34, %v10298_v19  ;;  %3965 = vmatpush.bf16.msrb.mxu2 %v10043_v24 }
 0x2a1   :  { %v12695_v26 = vld [vmem:[#allocation6 + $0x9b4] sm:$0xf0] }
 0x2a2   :  { %v9754_v45 = vld [vmem:[#allocation6 + $0xb98] sm:$0xf]  ;;  %v9499_v35 = vor.u32 %v12695_v26, %v9498_v61  ;;  %3979 = vmatpush.bf16.msrb.mxu3 %v10299_v6 }
 0x2a3   :  { %v12759_v2 = vld [vmem:[#allocation6 + $0xbb4] sm:$0xf0] }
 0x2a4   :  { %v10010_v52 = vld [vmem:[#allocation6 + $0xd98] sm:$0xf]  ;;  %v9755_v38 = vor.u32 %v12759_v2, %v9754_v45  ;;  %3938 = vmatpush.bf16.msrb.mxu0 %v9499_v35 }
 0x2a5   :  { %v12823_v51 = vld [vmem:[#allocation6 + $0xdb4] sm:$0xf0] }
 0x2a6   :  { %v10266_v25 = vld [vmem:[#allocation6 + $0xf98] sm:$0xf]  ;;  %v10011_v30 = vor.u32 %v12823_v51, %v10010_v52  ;;  %3952 = vmatpush.bf16.msrb.mxu1 %v9755_v38 }
 0x2a7   :  { %v12887_v31 = vld [vmem:[#allocation6 + $0xfb4] sm:$0xf0] }
 0x2a8   :  { %v9466_v42 = vld [vmem:[#allocation6 + $0x958] sm:$0xf]  ;;  %v10267_v46 = vor.u32 %v12887_v31, %v10266_v25  ;;  %3966 = vmatpush.bf16.msrb.mxu2 %v10011_v30 }
 0x2a9   :  { %v12687_v41 = vld [vmem:[#allocation6 + $0x974] sm:$0xf0] }
 0x2aa   :  { %v9722_v57 = vld [vmem:[#allocation6 + $0xb58] sm:$0xf]  ;;  %v9467_v53 = vor.u32 %v12687_v41, %v9466_v42  ;;  %3980 = vmatpush.bf16.msrb.mxu3 %v10267_v46 }
 0x2ab   :  { %v12751_v37 = vld [vmem:[#allocation6 + $0xb74] sm:$0xf0] }
 0x2ac   :  { %v9978_v32 = vld [vmem:[#allocation6 + $0xd58] sm:$0xf]  ;;  %v9723_v3 = vor.u32 %v12751_v37, %v9722_v57  ;;  %3939 = vmatpush.bf16.msrb.mxu0 %v9467_v53 }
 0x2ad   :  { %v12815_v33 = vld [vmem:[#allocation6 + $0xd74] sm:$0xf0] }
 0x2ae   :  { %v10234_v50 = vld [vmem:[#allocation6 + $0xf58] sm:$0xf]  ;;  %v9979_v56 = vor.u32 %v12815_v33, %v9978_v32  ;;  %3953 = vmatpush.bf16.msrb.mxu1 %v9723_v3 }
 0x2af   :  { %v12879_v55 = vld [vmem:[#allocation6 + $0xf74] sm:$0xf0] }
 0x2b0   :  { %v9434_v0 = vld [vmem:[#allocation6 + $0x918] sm:$0xf]  ;;  %v10235_v4 = vor.u32 %v12879_v55, %v10234_v50  ;;  %3967 = vmatpush.bf16.msrb.mxu2 %v9979_v56 }
 0x2b1   :  { %v12679_v18 = vld [vmem:[#allocation6 + $0x934] sm:$0xf0] }
 0x2b2   :  { %v9690_v63 = vld [vmem:[#allocation6 + $0xb18] sm:$0xf]  ;;  %v9435_v59 = vor.u32 %v12679_v18, %v9434_v0  ;;  %3981 = vmatpush.bf16.msrb.mxu3 %v10235_v4  ;;  %v12443_v18 = vld [vmem:[#allocation6 + $0x1dc] sm:$0xf] }
 0x2b3   :  { %v12743_v7 = vld [vmem:[#allocation6 + $0xb34] sm:$0xf0]  ;;  %v12507_v4 = vld [vmem:[#allocation6 + $0x3dc] sm:$0xf] }
 0x2b4   :  { %v9946_v11 = vld [vmem:[#allocation6 + $0xd18] sm:$0xf]  ;;  %v9691_v15 = vor.u32 %v12743_v7, %v9690_v63  ;;  %3940 = vmatpush.bf16.msrb.mxu0 %v9435_v59  ;;  %v8508_v63 = vld [vmem:[#allocation6 + $0x1f8] sm:$0xf0] }
 0x2b5   :  { %v12807_v13 = vld [vmem:[#allocation6 + $0xd34] sm:$0xf0] }
 0x2b6   :  { %v10202_v28 = vld [vmem:[#allocation6 + $0xf18] sm:$0xf]  ;;  %v9947_v5 = vor.u32 %v12807_v13, %v9946_v11  ;;  %3954 = vmatpush.bf16.msrb.mxu1 %v9691_v15  ;;  %v8764_v11 = vld [vmem:[#allocation6 + $0x3f8] sm:$0xf0] }
 0x2b7   :  { %v12871_v54 = vld [vmem:[#allocation6 + $0xf34] sm:$0xf0]  ;;  %v12571_v13 = vld [vmem:[#allocation6 + $0x5dc] sm:$0xf] }
 0x2b8   :  { %v9402_v16 = vld [vmem:[#allocation6 + $0x8d8] sm:$0xf]  ;;  %v10203_v8 = vor.u32 %v12871_v54, %v10202_v28  ;;  %3968 = vmatpush.bf16.msrb.mxu2 %v9947_v5  ;;  %v9020_v28 = vld [vmem:[#allocation6 + $0x5f8] sm:$0xf0] }
 0x2b9   :  { %v12671_v12 = vld [vmem:[#allocation6 + $0x8f4] sm:$0xf0]  ;;  %v12635_v15 = vld [vmem:[#allocation6 + $0x7dc] sm:$0xf] }
 0x2ba   :  { %v9658_v20 = vld [vmem:[#allocation6 + $0xad8] sm:$0xf]  ;;  %v9403_v23 = vor.u32 %v12671_v12, %v9402_v16  ;;  %3982 = vmatpush.bf16.msrb.mxu3 %v10203_v8  ;;  %v9276_v5 = vld [vmem:[#allocation6 + $0x7f8] sm:$0xf0]  ;;  %v8511_v12 = vor.u32 %v12443_v18, %v8508_v63  ;;  %v9023_v8 = vor.u32 %v12571_v13, %v9020_v28 }
 0x2bb   :  { %v12735_v60 = vld [vmem:[#allocation6 + $0xaf4] sm:$0xf0]  ;;  %v8636_v63 = vld [vmem:[#allocation6 + $0x2f8] sm:$0xf0] }
 0x2bc   :  { %v9914_v21 = vld [vmem:[#allocation6 + $0xcd8] sm:$0xf]  ;;  %v9659_v19 = vor.u32 %v12735_v60, %v9658_v20  ;;  %3941 = vmatpush.bf16.msrb.mxu0 %v9403_v23  ;;  %v8767_v20 = vor.u32 %v12507_v4, %v8764_v11  ;;  %v12435_v60 = vld [vmem:[#allocation6 + $0x19c] sm:$0xf] }
 0x2bd   :  { %v12799_v14 = vld [vmem:[#allocation6 + $0xcf4] sm:$0xf0]  ;;  %v12563_v23 = vld [vmem:[#allocation6 + $0x59c] sm:$0xf] }
 0x2be   :  { %v10170_v22 = vld [vmem:[#allocation6 + $0xed8] sm:$0xf]  ;;  %v9915_v34 = vor.u32 %v12799_v14, %v9914_v21  ;;  %3955 = vmatpush.bf16.msrb.mxu1 %v9659_v19  ;;  %v8476_v21 = vld [vmem:[#allocation6 + $0x1b8] sm:$0xf0] }
 0x2bf   :  { %v12863_v9 = vld [vmem:[#allocation6 + $0xef4] sm:$0xf0]  ;;  %v12499_v14 = vld [vmem:[#allocation6 + $0x39c] sm:$0xf] }
 0x2c0   :  { %v9370_v62 = vld [vmem:[#allocation6 + $0x898] sm:$0xf]  ;;  %v10171_v40 = vor.u32 %v12863_v9, %v10170_v22  ;;  %3969 = vmatpush.bf16.msrb.mxu2 %v9915_v34  ;;  %v9279_v22 = vor.u32 %v12635_v15, %v9276_v5  ;;  %v8732_v9 = vld [vmem:[#allocation6 + $0x3b8] sm:$0xf0] }
 0x2c1   :  { %v12663_v49 = vld [vmem:[#allocation6 + $0x8b4] sm:$0xf0]  ;;  %v8988_v19 = vld [vmem:[#allocation6 + $0x5b8] sm:$0xf0] }
 0x2c2   :  { %v9626_v61 = vld [vmem:[#allocation6 + $0xa98] sm:$0xf]  ;;  %v9371_v2 = vor.u32 %v12663_v49, %v9370_v62  ;;  %3983 = vmatpush.bf16.msrb.mxu3 %v10171_v40  ;;  %v12627_v34 = vld [vmem:[#allocation6 + $0x79c] sm:$0xf]  ;;  %v8479_v49 = vor.u32 %v12435_v60, %v8476_v21  ;;  %v8991_v40 = vor.u32 %v12563_v23, %v8988_v19  ;;  %v13853_v23 = vpop.f32.mrf.mxu3 }
 0x2c3   :  { %v12727_v36 = vld [vmem:[#allocation6 + $0xab4] sm:$0xf0]  ;;  %v9244_v62 = vld [vmem:[#allocation6 + $0x7b8] sm:$0xf0] }
 0x2c4   :  { %v9882_v24 = vld [vmem:[#allocation6 + $0xc98] sm:$0xf]  ;;  %v9627_v52 = vor.u32 %v12727_v36, %v9626_v61  ;;  %3942 = vmatpush.bf16.msrb.mxu0 %v9371_v2  ;;  %v8735_v61 = vor.u32 %v12499_v14, %v8732_v9  ;;  %v12427_v36 = vld [vmem:[#allocation6 + $0x15c] sm:$0xf] }
 0x2c5   :  { %v12791_v26 = vld [vmem:[#allocation6 + $0xcb4] sm:$0xf0]  ;;  %v12555_v2 = vld [vmem:[#allocation6 + $0x55c] sm:$0xf] }
 0x2c6   :  { %v10138_v45 = vld [vmem:[#allocation6 + $0xe98] sm:$0xf]  ;;  %v9883_v51 = vor.u32 %v12791_v26, %v9882_v24  ;;  %3956 = vmatpush.bf16.msrb.mxu1 %v9627_v52  ;;  %v8444_v24 = vld [vmem:[#allocation6 + $0x178] sm:$0xf0] }
 0x2c7   :  { %v12855_v6 = vld [vmem:[#allocation6 + $0xeb4] sm:$0xf0]  ;;  %v12491_v26 = vld [vmem:[#allocation6 + $0x35c] sm:$0xf] }
 0x2c8   :  { %v9338_v48 = vld [vmem:[#allocation6 + $0x858] sm:$0xf]  ;;  %v10139_v31 = vor.u32 %v12855_v6, %v10138_v45  ;;  %3970 = vmatpush.bf16.msrb.mxu2 %v9883_v51  ;;  %v9247_v45 = vor.u32 %v12627_v34, %v9244_v62  ;;  %v8700_v6 = vld [vmem:[#allocation6 + $0x378] sm:$0xf0] }
 0x2c9   :  { %v12655_v29 = vld [vmem:[#allocation6 + $0x874] sm:$0xf0]  ;;  %v8956_v52 = vld [vmem:[#allocation6 + $0x578] sm:$0xf0] }
 0x2ca   :  { %v9594_v25 = vld [vmem:[#allocation6 + $0xa58] sm:$0xf]  ;;  %v9339_v41 = vor.u32 %v12655_v29, %v9338_v48  ;;  %3984 = vmatpush.bf16.msrb.mxu3 %v10139_v31  ;;  %v12619_v51 = vld [vmem:[#allocation6 + $0x75c] sm:$0xf]  ;;  %v8447_v29 = vor.u32 %v12427_v36, %v8444_v24  ;;  %v8959_v31 = vor.u32 %v12555_v2, %v8956_v52 }
 0x2cb   :  { %v12719_v35 = vld [vmem:[#allocation6 + $0xa74] sm:$0xf0]  ;;  %v9212_v48 = vld [vmem:[#allocation6 + $0x778] sm:$0xf0] }
 0x2cc   :  { %v9850_v27 = vld [vmem:[#allocation6 + $0xc58] sm:$0xf]  ;;  %v9595_v37 = vor.u32 %v12719_v35, %v9594_v25  ;;  %3943 = vmatpush.bf16.msrb.mxu0 %v9339_v41  ;;  %v8703_v25 = vor.u32 %v12491_v26, %v8700_v6  ;;  %v12419_v35 = vld [vmem:[#allocation6 + $0x11c] sm:$0xf] }
 0x2cd   :  { %v12783_v38 = vld [vmem:[#allocation6 + $0xc74] sm:$0xf0]  ;;  %v12547_v41 = vld [vmem:[#allocation6 + $0x51c] sm:$0xf] }
 0x2ce   :  { %v10106_v30 = vld [vmem:[#allocation6 + $0xe58] sm:$0xf]  ;;  %v9851_v32 = vor.u32 %v12783_v38, %v9850_v27  ;;  %3957 = vmatpush.bf16.msrb.mxu1 %v9595_v37  ;;  %v8412_v27 = vld [vmem:[#allocation6 + $0x138] sm:$0xf0] }
 0x2cf   :  { %v12847_v42 = vld [vmem:[#allocation6 + $0xe74] sm:$0xf0]  ;;  %v12483_v38 = vld [vmem:[#allocation6 + $0x31c] sm:$0xf] }
 0x2d0   :  { %v9306_v57 = vld [vmem:[#allocation6 + $0x818] sm:$0xf]  ;;  %v10107_v53 = vor.u32 %v12847_v42, %v10106_v30  ;;  %3971 = vmatpush.bf16.msrb.mxu2 %v9851_v32  ;;  %v9215_v30 = vor.u32 %v12619_v51, %v9212_v48  ;;  %v8668_v42 = vld [vmem:[#allocation6 + $0x338] sm:$0xf0]  ;;  %v8415_v32 = vor.u32 %v12419_v35, %v8412_v27 }
 0x2d1   :  { %v12647_v46 = vld [vmem:[#allocation6 + $0x834] sm:$0xf0]  ;;  %v9180_v37 = vld [vmem:[#allocation6 + $0x738] sm:$0xf0] }
 0x2d2   :  { %v9562_v33 = vld [vmem:[#allocation6 + $0xa18] sm:$0xf]  ;;  %v9307_v7 = vor.u32 %v12647_v46, %v9306_v57  ;;  %3985 = vmatpush.bf16.msrb.mxu3 %v10107_v53  ;;  %v8924_v57 = vld [vmem:[#allocation6 + $0x538] sm:$0xf0] }
 0x2d3   :  { %v12711_v50 = vld [vmem:[#allocation6 + $0xa34] sm:$0xf0]  ;;  %v12611_v46 = vld [vmem:[#allocation6 + $0x71c] sm:$0xf] }
 0x2d4   :  { %v9818_v55 = vld [vmem:[#allocation6 + $0xc18] sm:$0xf]  ;;  %v9563_v54 = vor.u32 %v12711_v50, %v9562_v33  ;;  %3944 = vmatpush.bf16.msrb.mxu0 %v9307_v7  ;;  %v13847_v33 = vpop.f32.mrf.mxu0  ;;  %v8671_v50 = vor.u32 %v12483_v38, %v8668_v42  ;;  %v12411_v53 = vld [vmem:[#allocation6 + $0xdc] sm:$0xf]  ;;  %v9183_v18 = vor.u32 %v12611_v46, %v9180_v37 }
 0x2d5   :  { %v12775_v3 = vld [vmem:[#allocation6 + $0xc34] sm:$0xf0]  ;;  %v12539_v4 = vld [vmem:[#allocation6 + $0x4dc] sm:$0xf] }
 0x2d6   :  { %v10074_v56 = vld [vmem:[#allocation6 + $0xe18] sm:$0xf]  ;;  %v9819_v59 = vor.u32 %v12775_v3, %v9818_v55  ;;  %3958 = vmatpush.bf16.msrb.mxu1 %v9563_v54  ;;  %v8927_v55 = vor.u32 %v12547_v41, %v8924_v57  ;;  %v8380_v3 = vld [vmem:[#allocation6 + $0xf8] sm:$0xf0] }
 0x2d7   :  { %v12839_v0 = vld [vmem:[#allocation6 + $0xe34] sm:$0xf0]  ;;  %3945 = vmatmul.bf16.vlgmr.msrb.gmra.mxu0 %v13653_v39  ;;  %v8892_v7 = vld [vmem:[#allocation6 + $0x4f8] sm:$0xf0]  ;;  %v8383_v28 = vor.u32 %v12411_v53, %v8380_v3 }
 0x2d8   :  { %v10075_v16 = vor.u32 %v12839_v0, %v10074_v56  ;;  %3972 = vmatpush.bf16.msrb.mxu2 %v9819_v59  ;;  %3993 = vmatpush.bf16.msra.mxu0 %v8511_v12  ;;  %v12475_v56 = vld [vmem:[#allocation6 + $0x2dc] sm:$0xf]  ;;  %v13849_v0 = vpop.f32.mrf.mxu1  ;;  %v8895_v59 = vor.u32 %v12539_v4, %v8892_v7 }
 0x2d9   :  { %3959 = vmatmul.bf16.vlgmr.msrb.gmra.mxu1 %v13657_v44  ;;  %v12603_v11 = vld [vmem:[#allocation6 + $0x6dc] sm:$0xf]  ;;  %v8639_v54 = vor.u32 %v12475_v56, %v8636_v63 }
 0x2da   :  { %3986 = vmatpush.bf16.msrb.mxu3 %v10075_v16  ;;  %4007 = vmatpush.bf16.msra.mxu1 %v8767_v20  ;;  %v9148_v13 = vld [vmem:[#allocation6 + $0x6f8] sm:$0xf0] }
 0x2db   :  { %3973 = vmatmul.bf16.vlgmr.msrb.gmra.mxu2 %v13655_v43  ;;  %v12403_v15 = vld [vmem:[#allocation6 + $0x9c] sm:$0xf]  ;;  %v9151_v12 = vor.u32 %v12603_v11, %v9148_v13 }
 0x2dc   :  { %4021 = vmatpush.bf16.msra.mxu2 %v9023_v8  ;;  %3994 = vmatpush.bf16.msra.mxu0 %v8479_v49  ;;  %v8348_v5 = vld [vmem:[#allocation6 + $0xb8] sm:$0xf0] }
 0x2dd   :  { %3987 = vmatmul.bf16.vlgmr.msrb.gmra.mxu3 %v13659_v47  ;;  %v12467_v16 = vld [vmem:[#allocation6 + $0x29c] sm:$0xf]  ;;  %v8351_v9 = vor.u32 %v12403_v15, %v8348_v5 }
 0x2de   :  { %4035 = vmatpush.bf16.msra.mxu3 %v9279_v22  ;;  %4008 = vmatpush.bf16.msra.mxu1 %v8735_v61  ;;  %v8604_v20 = vld [vmem:[#allocation6 + $0x2b8] sm:$0xf0]  ;;  %v13851_v22 = vpop.f32.mrf.mxu2 }
 0x2df   :  { %v12531_v8 = vld [vmem:[#allocation6 + $0x49c] sm:$0xf]  ;;  %v8607_v19 = vor.u32 %v12467_v16, %v8604_v20 }
 0x2e0   :  { %4022 = vmatpush.bf16.msra.mxu2 %v8991_v40  ;;  %3995 = vmatpush.bf16.msra.mxu0 %v8447_v29  ;;  %v8860_v60 = vld [vmem:[#allocation6 + $0x4b8] sm:$0xf0]  ;;  %v13857_v52 = vpop.f32.mrf.mxu1 }
 0x2e1   :  { %v12595_v21 = vld [vmem:[#allocation6 + $0x69c] sm:$0xf]  ;;  %v8863_v34 = vor.u32 %v12531_v8, %v8860_v60 }
 0x2e2   :  { %4036 = vmatpush.bf16.msra.mxu3 %v9247_v45  ;;  %4009 = vmatpush.bf16.msra.mxu1 %v8703_v25  ;;  %v9116_v14 = vld [vmem:[#allocation6 + $0x6b8] sm:$0xf0]  ;;  %v13855_v45 = vpop.f32.mrf.mxu0 }
 0x2e3   :  { %v12395_v62 = vld [vmem:[#allocation6 + $0x5c] sm:$0xf]  ;;  %v9119_v40 = vor.u32 %v12595_v21, %v9116_v14 }
 0x2e4   :  { %4023 = vmatpush.bf16.msra.mxu2 %v8959_v31  ;;  %3996 = vmatpush.bf16.msra.mxu0 %v8415_v32  ;;  %v8316_v49 = vld [vmem:[#allocation6 + $0x78] sm:$0xf0] }
 0x2e5   :  { %v12459_v61 = vld [vmem:[#allocation6 + $0x25c] sm:$0xf]  ;;  %v8319_v51 = vor.u32 %v12395_v62, %v8316_v49 }
 0x2e6   :  { %4037 = vmatpush.bf16.msra.mxu3 %v9215_v30  ;;  %4010 = vmatpush.bf16.msra.mxu1 %v8671_v50  ;;  %v8572_v36 = vld [vmem:[#allocation6 + $0x278] sm:$0xf0]  ;;  %v13859_v7 = vpop.f32.mrf.mxu2 }
 0x2e7   :  { %v12523_v24 = vld [vmem:[#allocation6 + $0x45c] sm:$0xf]  ;;  %v8575_v25 = vor.u32 %v12459_v61, %v8572_v36 }
 0x2e8   :  { %4024 = vmatpush.bf16.msra.mxu2 %v8927_v55  ;;  %3997 = vmatpush.bf16.msra.mxu0 %v8383_v28  ;;  %v8828_v26 = vld [vmem:[#allocation6 + $0x478] sm:$0xf0]  ;;  %v13861_v28 = vpop.f32.mrf.mxu3 }
 0x2e9   :  { %v12587_v6 = vld [vmem:[#allocation6 + $0x65c] sm:$0xf]  ;;  %v8831_v31 = vor.u32 %v12523_v24, %v8828_v26 }
 0x2ea   :  { %4038 = vmatpush.bf16.msra.mxu3 %v9183_v18  ;;  %4011 = vmatpush.bf16.msra.mxu1 %v8639_v54  ;;  %v9084_v2 = vld [vmem:[#allocation6 + $0x678] sm:$0xf0]  ;;  %v13863_v21 = vpop.f32.mrf.mxu0 }
 0x2eb   :  { %v12387_v48 = vld [vmem:[#allocation6 + $0x1c] sm:$0xf]  ;;  %v9087_v30 = vor.u32 %v12587_v6, %v9084_v2 }
 0x2ec   :  { %4025 = vmatpush.bf16.msra.mxu2 %v8895_v59  ;;  %3998 = vmatpush.bf16.msra.mxu0 %v8351_v9  ;;  %v8284_v29 = vld [vmem:[#allocation6 + $0x38] sm:$0xf0] }
 0x2ed   :  { %v12451_v35 = vld [vmem:[#allocation6 + $0x21c] sm:$0xf]  ;;  %v8287_v50 = vor.u32 %v12387_v48, %v8284_v29 }
 0x2ee   :  { %4039 = vmatpush.bf16.msra.mxu3 %v9151_v12  ;;  %4012 = vmatpush.bf16.msra.mxu1 %v8607_v19  ;;  %v8540_v27 = vld [vmem:[#allocation6 + $0x238] sm:$0xf0]  ;;  %v13865_v19 = vpop.f32.mrf.mxu1 }
 0x2ef   :  { %v12515_v38 = vld [vmem:[#allocation6 + $0x41c] sm:$0xf]  ;;  %v8543_v56 = vor.u32 %v12451_v35, %v8540_v27 }
 0x2f0   :  { %4026 = vmatpush.bf16.msra.mxu2 %v8863_v34  ;;  %v8796_v42 = vld [vmem:[#allocation6 + $0x438] sm:$0xf0]  ;;  %3999 = vmatpush.bf16.msra.mxu0 %v8319_v51 }
 0x2f1   :  { %v12579_v41 = vld [vmem:[#allocation6 + $0x61c] sm:$0xf]  ;;  %v8799_v18 = vor.u32 %v12515_v38, %v8796_v42  ;;  %v13871_v38 = vpop.f32.mrf.mxu2 }
 0x2f2   :  { %4040 = vmatpush.bf16.msra.mxu3 %v9119_v40  ;;  %v9052_v57 = vld [vmem:[#allocation6 + $0x638] sm:$0xf0]  ;;  %4013 = vmatpush.bf16.msra.mxu1 %v8575_v25 }
 0x2f3   :  { %v12699_v46 = vld [vmem:[#allocation6 + $0x9dc] sm:$0xf]  ;;  %v9055_v11 = vor.u32 %v12579_v41, %v9052_v57  ;;  %v13873_v57 = vpop.f32.mrf.mxu3 }
 0x2f4   :  { %v9532_v37 = vld [vmem:[#allocation6 + $0x9f8] sm:$0xf0]  ;;  %4027 = vmatpush.bf16.msra.mxu2 %v8831_v31  ;;  %4000 = vmatpush.bf16.msra.mxu0 %v8287_v50  ;;  %v13878_v50 = vpop.f32.mrf.mxu0 }
 0x2f5   :  { %v12763_v32 = vld [vmem:[#allocation6 + $0xbdc] sm:$0xf]  ;;  %v9535_v13 = vor.u32 %v12699_v46, %v9532_v37  ;;  %v13875_v37 = vld [vmem:[#allocation8] sm:$0xff] }
 0x2f6   :  { %v9788_v55 = vld [vmem:[#allocation6 + $0xbf8] sm:$0xf0]  ;;  %4041 = vmatpush.bf16.msra.mxu3 %v9087_v30  ;;  %4014 = vmatpush.bf16.msra.mxu1 %v8543_v56 }
 0x2f7   :  { %v12827_v53 = vld [vmem:[#allocation6 + $0xddc] sm:$0xf]  ;;  %v9791_v54 = vor.u32 %v12763_v32, %v9788_v55  ;;  %4001 = vmatmul.bf16.vlgmr.msra.gmra.mxu0 %v13641_v58 }
 0x2f8   :  { %v10044_v3 = vld [vmem:[#allocation6 + $0xdf8] sm:$0xf0]  ;;  %4028 = vmatpush.bf16.msra.mxu2 %v8799_v18  ;;  %4049 = vmatpush.bf16.msrb.mxu0 %v9535_v13 }
 0x2f9   :  { %v12891_v63 = vld [vmem:[#allocation6 + $0xfdc] sm:$0xf]  ;;  %v10047_v59 = vor.u32 %v12827_v53, %v10044_v3  ;;  %4015 = vmatmul.bf16.vlgmr.msra.gmra.mxu1 %v13647_v10  ;;  %v637_v10 = vperm.slane %v13875_v37, 4 }
 0x2fa   :  { %v10300_v4 = vld [vmem:[#allocation6 + $0xff8] sm:$0xf0]  ;;  %4042 = vmatpush.bf16.msra.mxu3 %v9055_v11  ;;  %4063 = vmatpush.bf16.msrb.mxu1 %v9791_v54 }
 0x2fb   :  { %v12691_v15 = vld [vmem:[#allocation6 + $0x99c] sm:$0xf]  ;;  %v10303_v12 = vor.u32 %v12891_v63, %v10300_v4  ;;  %4029 = vmatmul.bf16.vlgmr.msra.gmra.mxu2 %v13643_v1  ;;  %v13880_v63 = vpop.f32.mrf.mxu1 }
 0x2fc   :  { %v9500_v5 = vld [vmem:[#allocation6 + $0x9b8] sm:$0xf0]  ;;  %4077 = vmatpush.bf16.msrb.mxu2 %v10047_v59 }
 0x2fd   :  { %v12755_v16 = vld [vmem:[#allocation6 + $0xb9c] sm:$0xf]  ;;  %v9503_v34 = vor.u32 %v12691_v15, %v9500_v5  ;;  %4043 = vmatmul.bf16.vlgmr.msra.gmra.mxu3 %v13649_v17 }
 0x2fe   :  { %v9756_v20 = vld [vmem:[#allocation6 + $0xbb8] sm:$0xf0]  ;;  %4091 = vmatpush.bf16.msrb.mxu3 %v10303_v12 }
 0x2ff   :  { %v12819_v8 = vld [vmem:[#allocation6 + $0xd9c] sm:$0xf]  ;;  %v9759_v62 = vor.u32 %v12755_v16, %v9756_v20  ;;  %4050 = vmatpush.bf16.msrb.mxu0 %v9503_v34 }
 0x300   :  { %v10012_v60 = vld [vmem:[#allocation6 + $0xdb8] sm:$0xf0] }
 0x301   :  { %v12883_v14 = vld [vmem:[#allocation6 + $0xf9c] sm:$0xf]  ;;  %v10015_v49 = vor.u32 %v12819_v8, %v10012_v60  ;;  %4064 = vmatpush.bf16.msrb.mxu1 %v9759_v62 }
 0x302   :  { %v10268_v9 = vld [vmem:[#allocation6 + $0xfb8] sm:$0xf0] }
 0x303   :  { %v12683_v61 = vld [vmem:[#allocation6 + $0x95c] sm:$0xf]  ;;  %v10271_v24 = vor.u32 %v12883_v14, %v10268_v9  ;;  %4078 = vmatpush.bf16.msrb.mxu2 %v10015_v49  ;;  %v3667_v14 = vadd.f32 %v13847_v33, %v637_v10  ;;  %v3778_v33 = vpop.f32.mrf.mxu0 }
 0x304   :  { %v9468_v40 = vld [vmem:[#allocation6 + $0x978] sm:$0xf0] }
 0x305   :  { %v12747_v36 = vld [vmem:[#allocation6 + $0xb5c] sm:$0xf]  ;;  %v9471_v29 = vor.u32 %v12683_v61, %v9468_v40  ;;  %4092 = vmatpush.bf16.msrb.mxu3 %v10271_v24 }
 0x306   :  { %v9724_v26 = vld [vmem:[#allocation6 + $0xb78] sm:$0xf0] }
 0x307   :  { %v12811_v6 = vld [vmem:[#allocation6 + $0xd5c] sm:$0xf]  ;;  %v9727_v25 = vor.u32 %v12747_v36, %v9724_v26  ;;  %4051 = vmatpush.bf16.msrb.mxu0 %v9471_v29  ;;  %v13885_v36 = vpop.f32.mrf.mxu2  ;;  %v638_v26 = vperm.slane %v13875_v37, 5  ;;  %v11266_v37 = vld [vmem:[#allocation9 + $0x740] sm:$0xf] }
 0x308   :  { %v9980_v2 = vld [vmem:[#allocation6 + $0xd78] sm:$0xf0] }
 0x309   :  { %v12875_v51 = vld [vmem:[#allocation6 + $0xf5c] sm:$0xf]  ;;  %v9983_v31 = vor.u32 %v12811_v6, %v9980_v2  ;;  %4065 = vmatpush.bf16.msrb.mxu1 %v9727_v25  ;;  %v13888_v6 = vpop.f32.mrf.mxu3 }
 0x30a   :  { %v10236_v48 = vld [vmem:[#allocation6 + $0xf78] sm:$0xf0] }
 0x30b   :  { %v12675_v35 = vld [vmem:[#allocation6 + $0x91c] sm:$0xf]  ;;  %v10239_v30 = vor.u32 %v12875_v51, %v10236_v48  ;;  %4079 = vmatpush.bf16.msrb.mxu2 %v9983_v31  ;;  %v3681_v31 = vadd.f32 %v13849_v0, %v3667_v14 }
 0x30c   :  { %v9436_v27 = vld [vmem:[#allocation6 + $0x938] sm:$0xf0] }
 0x30d   :  { %v12739_v1 = vld [vmem:[#allocation6 + $0xb1c] sm:$0xf]  ;;  %v9439_v32 = vor.u32 %v12675_v35, %v9436_v27  ;;  %4093 = vmatpush.bf16.msrb.mxu3 %v10239_v30  ;;  %v3695_v0 = vadd.f32 %v13851_v22, %v3681_v31  ;;  %v13092_v22 = vld [vmem:[#allocation9 + $0x5dc] sm:$0xf0] }
 0x30e   :  { %v9692_v42 = vld [vmem:[#allocation6 + $0xb38] sm:$0xf0] }
 0x30f   :  { %v12803_v41 = vld [vmem:[#allocation6 + $0xd1c] sm:$0xf]  ;;  %v9695_v55 = vor.u32 %v12739_v1, %v9692_v42  ;;  %4052 = vmatpush.bf16.msrb.mxu0 %v9439_v32  ;;  %v3792_v42 = vpop.f32.mrf.mxu1  ;;  %v3806_v14 = vpop.f32.mrf.mxu2 }
 0x310   :  { %v9948_v58 = vld [vmem:[#allocation6 + $0xd38] sm:$0xf0] }
 0x311   :  { %v12867_v17 = vld [vmem:[#allocation6 + $0xf1c] sm:$0xf]  ;;  %v9951_v53 = vor.u32 %v12803_v41, %v9948_v58  ;;  %4066 = vmatpush.bf16.msrb.mxu1 %v9695_v55 }
 0x312   :  { %v10204_v46 = vld [vmem:[#allocation6 + $0xf38] sm:$0xf0] }
 0x313   :  { %v12667_v3 = vld [vmem:[#allocation6 + $0x8dc] sm:$0xf]  ;;  %v10207_v4 = vor.u32 %v12867_v17, %v10204_v46  ;;  %4080 = vmatpush.bf16.msrb.mxu2 %v9951_v53 }
 0x314   :  { %v9404_v56 = vld [vmem:[#allocation6 + $0x8f8] sm:$0xf0] }
 0x315   :  { %v12731_v18 = vld [vmem:[#allocation6 + $0xadc] sm:$0xf]  ;;  %v9407_v5 = vor.u32 %v12667_v3, %v9404_v56  ;;  %4094 = vmatpush.bf16.msrb.mxu3 %v10207_v4  ;;  %v3779_v4 = vadd.f32 %v3778_v33, %v638_v26  ;;  %v3780_v33 = vpop.f32.mrf.mxu0 }
 0x316   :  { %v9660_v11 = vld [vmem:[#allocation6 + $0xaf8] sm:$0xf0] }
 0x317   :  { %v12795_v13 = vld [vmem:[#allocation6 + $0xcdc] sm:$0xf]  ;;  %v9663_v16 = vor.u32 %v12731_v18, %v9660_v11  ;;  %4053 = vmatpush.bf16.msrb.mxu0 %v9407_v5  ;;  %v12964_v5 = vld [vmem:[#allocation9 + $0x1dc] sm:$0xf0] }
 0x318   :  { %v9916_v54 = vld [vmem:[#allocation6 + $0xcf8] sm:$0xf0] }
 0x319   :  { %v12859_v59 = vld [vmem:[#allocation6 + $0xedc] sm:$0xf]  ;;  %v9919_v12 = vor.u32 %v12795_v13, %v9916_v54  ;;  %4067 = vmatpush.bf16.msrb.mxu1 %v9663_v16  ;;  %v10818_v16 = vld [vmem:[#allocation9 + $0x3c0] sm:$0xf] }
 0x31a   :  { %v10172_v15 = vld [vmem:[#allocation6 + $0xef8] sm:$0xf0] }
 0x31b   :  { %v12659_v20 = vld [vmem:[#allocation6 + $0x89c] sm:$0xf]  ;;  %v10175_v9 = vor.u32 %v12859_v59, %v10172_v15  ;;  %4081 = vmatpush.bf16.msrb.mxu2 %v9919_v12  ;;  %v10562_v15 = vld [vmem:[#allocation9 + $0x1c0] sm:$0xf]  ;;  %v3669_v12 = vadd.f32 %v13855_v45, %v637_v10 }
 0x31c   :  { %v9372_v8 = vld [vmem:[#allocation6 + $0x8b8] sm:$0xf0] }
 0x31d   :  { %v12723_v60 = vld [vmem:[#allocation6 + $0xa9c] sm:$0xf]  ;;  %v9375_v24 = vor.u32 %v12659_v20, %v9372_v8  ;;  %4095 = vmatpush.bf16.msrb.mxu3 %v10175_v9  ;;  %v13028_v8 = vld [vmem:[#allocation9 + $0x3dc] sm:$0xf0]  ;;  %v3683_v31 = vadd.f32 %v13857_v52, %v3669_v12  ;;  %v3781_v52 = vadd.f32 %v3780_v33, %v638_v26 }
 0x31e   :  { %v9628_v34 = vld [vmem:[#allocation6 + $0xab8] sm:$0xf0]  ;;  %v10819_v45 = vor.u32 %v13028_v8, %v10818_v16  ;;  %v13140_v26 = vld [vmem:[#allocation9 + $0x75c] sm:$0xf0] }
 0x31f   :  { %v12787_v62 = vld [vmem:[#allocation6 + $0xc9c] sm:$0xf]  ;;  %v9631_v2 = vor.u32 %v12723_v60, %v9628_v34  ;;  %4054 = vmatpush.bf16.msrb.mxu0 %v9375_v24  ;;  %v11074_v60 = vld [vmem:[#allocation9 + $0x5c0] sm:$0xf]  ;;  %v3793_v24 = vadd.f32 %v3792_v42, %v3779_v4  ;;  %v11267_v8 = vor.u32 %v13140_v26, %v11266_v37 }
 0x320   :  { %v9884_v49 = vld [vmem:[#allocation6 + $0xcb8] sm:$0xf0]  ;;  %v11075_v10 = vor.u32 %v13092_v22, %v11074_v60  ;;  %v13148_v42 = vld [vmem:[#allocation9 + $0x79c] sm:$0xf0]  ;;  %v3834_v22 = vpop.f32.mrf.mxu0 }
 0x321   :  { %v12851_v61 = vld [vmem:[#allocation6 + $0xe9c] sm:$0xf]  ;;  %v9887_v51 = vor.u32 %v12787_v62, %v9884_v49  ;;  %4068 = vmatpush.bf16.msrb.mxu1 %v9631_v2  ;;  %v11330_v62 = vld [vmem:[#allocation9 + $0x7c0] sm:$0xf] }
 0x322   :  { %v10140_v40 = vld [vmem:[#allocation6 + $0xeb8] sm:$0xf0]  ;;  %v13156_v49 = vld [vmem:[#allocation9 + $0x7dc] sm:$0xf0] }
 0x323   :  { %v12651_v48 = vld [vmem:[#allocation6 + $0x85c] sm:$0xf]  ;;  %v10143_v35 = vor.u32 %v12851_v61, %v10140_v40  ;;  %4082 = vmatpush.bf16.msrb.mxu2 %v9887_v51  ;;  %v3820_v61 = vpop.f32.mrf.mxu3  ;;  %v3709_v40 = vadd.f32 %v13853_v23, %v3695_v0  ;;  %v10563_v51 = vor.u32 %v12964_v5, %v10562_v15  ;;  %v11298_v23 = vld [vmem:[#allocation9 + $0x780] sm:$0xf] }
 0x324   :  { %v9340_v29 = vld [vmem:[#allocation6 + $0x878] sm:$0xf0]  ;;  %v13012_v0 = vld [vmem:[#allocation9 + $0x35c] sm:$0xf0] }
 0x325   :  { %v12715_v25 = vld [vmem:[#allocation6 + $0xa5c] sm:$0xf]  ;;  %v9343_v17 = vor.u32 %v12651_v48, %v9340_v29  ;;  %4096 = vmatpush.bf16.msrb.mxu3 %v10143_v35  ;;  %v10530_v48 = vld [vmem:[#allocation9 + $0x180] sm:$0xf]  ;;  %v11331_v35 = vor.u32 %v13156_v49, %v11330_v62 }
 0x326   :  { %v9596_v27 = vld [vmem:[#allocation6 + $0xa78] sm:$0xf0]  ;;  %v12956_v29 = vld [vmem:[#allocation9 + $0x19c] sm:$0xf0] }
 0x327   :  { %v12779_v1 = vld [vmem:[#allocation6 + $0xc5c] sm:$0xf]  ;;  %v9599_v55 = vor.u32 %v12715_v25, %v9596_v27  ;;  %4055 = vmatpush.bf16.msrb.mxu0 %v9343_v17  ;;  %v10786_v25 = vld [vmem:[#allocation9 + $0x380] sm:$0xf]  ;;  %v3807_v17 = vadd.f32 %v3806_v14, %v3793_v24 }
 0x328   :  { %v9852_v30 = vld [vmem:[#allocation6 + $0xc78] sm:$0xf0]  ;;  %v13020_v27 = vld [vmem:[#allocation9 + $0x39c] sm:$0xf0] }
 0x329   :  { %v12843_v41 = vld [vmem:[#allocation6 + $0xe5c] sm:$0xf]  ;;  %v9855_v53 = vor.u32 %v12779_v1, %v9852_v30  ;;  %4069 = vmatpush.bf16.msrb.mxu1 %v9599_v55  ;;  %v11042_v1 = vld [vmem:[#allocation9 + $0x580] sm:$0xf] }
 0x32a   :  { %v10108_v58 = vld [vmem:[#allocation6 + $0xe78] sm:$0xf0]  ;;  %v13084_v30 = vld [vmem:[#allocation9 + $0x59c] sm:$0xf0] }
 0x32b   :  { %v12643_v46 = vld [vmem:[#allocation6 + $0x81c] sm:$0xf]  ;;  %v10111_v11 = vor.u32 %v12843_v41, %v10108_v58  ;;  %4083 = vmatpush.bf16.msrb.mxu2 %v9855_v53  ;;  %v3794_v41 = vpop.f32.mrf.mxu1  ;;  %v3723_v58 = vadd.f32 %v13863_v21, %v3709_v40  ;;  %v11043_v55 = vor.u32 %v13084_v30, %v11042_v1  ;;  %v10498_v53 = vld [vmem:[#allocation9 + $0x140] sm:$0xf]  ;;  %v11299_v21 = vor.u32 %v13148_v42, %v11298_v23  ;;  %v3822_v16 = vpop.f32.mrf.mxu3 }
 0x32c   :  { %v9308_v32 = vld [vmem:[#allocation6 + $0x838] sm:$0xf0]  ;;  %v11010_v4 = vld [vmem:[#allocation9 + $0x540] sm:$0xf] }
 0x32d   :  { %v12707_v3 = vld [vmem:[#allocation6 + $0xa1c] sm:$0xf]  ;;  %v9311_v20 = vor.u32 %v12643_v46, %v9308_v32  ;;  %4097 = vmatpush.bf16.msrb.mxu3 %v10111_v11  ;;  %v10531_v46 = vor.u32 %v12956_v29, %v10530_v48  ;;  %v10787_v32 = vor.u32 %v13020_v27, %v10786_v25  ;;  %v13076_v11 = vld [vmem:[#allocation9 + $0x55c] sm:$0xf0] }
 0x32e   :  { %v9564_v56 = vld [vmem:[#allocation6 + $0xa38] sm:$0xf0]  ;;  %v11011_v5 = vor.u32 %v13076_v11, %v11010_v4  ;;  %v10466_v12 = vld [vmem:[#allocation9 + $0x100] sm:$0xf] }
 0x32f   :  { %v12771_v18 = vld [vmem:[#allocation6 + $0xc1c] sm:$0xf]  ;;  %v9567_v9 = vor.u32 %v12707_v3, %v9564_v56  ;;  %4056 = vmatpush.bf16.msrb.mxu0 %v9311_v20  ;;  %v12948_v3 = vld [vmem:[#allocation9 + $0x15c] sm:$0xf0] }
 0x330   :  { %v9820_v13 = vld [vmem:[#allocation6 + $0xc38] sm:$0xf0]  ;;  %v10754_v56 = vld [vmem:[#allocation9 + $0x340] sm:$0xf] }
 0x331   :  { %v12835_v54 = vld [vmem:[#allocation6 + $0xe1c] sm:$0xf]  ;;  %v9823_v34 = vor.u32 %v12771_v18, %v9820_v13  ;;  %4070 = vmatpush.bf16.msrb.mxu1 %v9567_v9  ;;  %v3697_v18 = vadd.f32 %v13859_v7, %v3683_v31  ;;  %v3737_v13 = vadd.f32 %v13865_v19, %v3723_v58  ;;  %v10499_v7 = vor.u32 %v12948_v3, %v10498_v53  ;;  %v10722_v20 = vld [vmem:[#allocation9 + $0x300] sm:$0xf]  ;;  %v3836_v3 = vpop.f32.mrf.mxu0 }
 0x332   :  { %v10076_v59 = vld [vmem:[#allocation6 + $0xe38] sm:$0xf0]  ;;  %4057 = vmatmul.bf16.vlgmr.msrb.gmra.mxu0 %v13653_v39  ;;  %v3795_v39 = vadd.f32 %v3794_v41, %v3781_v52  ;;  %v10755_v15 = vor.u32 %v13012_v0, %v10754_v56  ;;  %v13004_v19 = vld [vmem:[#allocation9 + $0x31c] sm:$0xf0] }
 0x333   :  { %v10079_v2 = vor.u32 %v12835_v54, %v10076_v59  ;;  %4084 = vmatpush.bf16.msrb.mxu2 %v9823_v34  ;;  %7291 = vmatpush.bf16.msra.mxu0 %v10563_v51  ;;  %v3821_v54 = vadd.f32 %v3820_v61, %v3807_v17  ;;  %v3808_v59 = vpop.f32.mrf.mxu2  ;;  %v10978_v60 = vld [vmem:[#allocation9 + $0x500] sm:$0xf]  ;;  %v3751_v34 = vadd.f32 %v13871_v38, %v3737_v13  ;;  %v3848_v61 = vpop.f32.mrf.mxu1 }
 0x334   :  { %4071 = vmatmul.bf16.vlgmr.msrb.gmra.mxu1 %v13657_v44  ;;  %v12940_v44 = vld [vmem:[#allocation9 + $0x11c] sm:$0xf0]  ;;  %v3809_v40 = vadd.f32 %v3808_v59, %v3795_v39  ;;  %v10723_v24 = vor.u32 %v13004_v19, %v10722_v20  ;;  %v3876_v56 = vpop.f32.mrf.mxu3 }
 0x335   :  { %4098 = vmatpush.bf16.msrb.mxu3 %v10079_v2  ;;  %7305 = vmatpush.bf16.msra.mxu1 %v10819_v45  ;;  %v11234_v14 = vld [vmem:[#allocation9 + $0x700] sm:$0xf]  ;;  %v3835_v62 = vadd.f32 %v3834_v22, %v3821_v54  ;;  %v10467_v49 = vor.u32 %v12940_v44, %v10466_v12  ;;  %v13912_v27 = vadd.f32 %v13873_v57, %v3751_v34 }
 0x336   :  { %4085 = vmatmul.bf16.vlgmr.msrb.gmra.mxu2 %v13655_v43  ;;  %v3711_v43 = vadd.f32 %v13861_v28, %v3697_v18  ;;  %v13132_v9 = vld [vmem:[#allocation9 + $0x71c] sm:$0xf0]  ;;  %v3823_v41 = vadd.f32 %v3822_v16, %v3809_v40 }
 0x337   :  { %7319 = vmatpush.bf16.msra.mxu2 %v11075_v10  ;;  %7292 = vmatpush.bf16.msra.mxu0 %v10531_v46  ;;  %v10434_v28 = vld [vmem:[#allocation9 + $0xc0] sm:$0xf]  ;;  %v11235_v33 = vor.u32 %v13132_v9, %v11234_v14  ;;  %v3849_v38 = vadd.f32 %v3848_v61, %v3835_v62  ;;  %v4109_v0 = vmul.f32 0.2, %v13912_v27 }
 0x338   :  { %4099 = vmatmul.bf16.vlgmr.msrb.gmra.mxu3 %v13659_v47  ;;  %v13068_v47 = vld [vmem:[#allocation9 + $0x51c] sm:$0xf0]  ;;  %v3725_v10 = vadd.f32 %v13878_v50, %v3711_v43 }
 0x339   :  { %7333 = vmatpush.bf16.msra.mxu3 %v11331_v35  ;;  %7306 = vmatpush.bf16.msra.mxu1 %v10787_v32  ;;  %v10979_v2 = vor.u32 %v13068_v47, %v10978_v60  ;;  %v12932_v51 = vld [vmem:[#allocation9 + $0xdc] sm:$0xf0]  ;;  %v4125_v43 = vmax.f32 %v13912_v27, %v4109_v0 }
 0x33a   :  { %v10690_v45 = vld [vmem:[#allocation9 + $0x2c0] sm:$0xf]  ;;  %v10435_v1 = vor.u32 %v12932_v51, %v10434_v28  ;;  %v3739_v46 = vadd.f32 %v13880_v63, %v3725_v10  ;;  %v3837_v63 = vadd.f32 %v3836_v3, %v3823_v41 }
 0x33b   :  { %7320 = vmatpush.bf16.msra.mxu2 %v11043_v55  ;;  %7293 = vmatpush.bf16.msra.mxu0 %v10499_v7  ;;  %v12996_v48 = vld [vmem:[#allocation9 + $0x2dc] sm:$0xf0]  ;;  %v3862_v32 = vpop.f32.mrf.mxu2 }
 0x33c   :  { %v10946_v29 = vld [vmem:[#allocation9 + $0x4c0] sm:$0xf]  ;;  %v10691_v23 = vor.u32 %v12996_v48, %v10690_v45  ;;  %v3863_v57 = vadd.f32 %v3862_v32, %v3849_v38  ;;  %v3753_v4 = vadd.f32 %v13885_v36, %v3739_v46  ;;  %v3878_v45 = vpop.f32.mrf.mxu3 }
 0x33d   :  { %7334 = vmatpush.bf16.msra.mxu3 %v11299_v21  ;;  %7307 = vmatpush.bf16.msra.mxu1 %v10755_v15  ;;  %v13060_v25 = vld [vmem:[#allocation9 + $0x4dc] sm:$0xf0] }
 0x33e   :  { %v11202_v31 = vld [vmem:[#allocation9 + $0x6c0] sm:$0xf]  ;;  %v10947_v42 = vor.u32 %v13060_v25, %v10946_v29  ;;  %v3877_v13 = vadd.f32 %v3876_v56, %v3863_v57 }
 0x33f   :  { %7321 = vmatpush.bf16.msra.mxu2 %v11011_v5  ;;  %v13124_v35 = vld [vmem:[#allocation9 + $0x6dc] sm:$0xf0]  ;;  %7294 = vmatpush.bf16.msra.mxu0 %v10467_v49  ;;  %v3850_v5 = vpop.f32.mrf.mxu1 }
 0x340   :  { %v10402_v30 = vld [vmem:[#allocation9 + $0x80] sm:$0xf]  ;;  %v11203_v52 = vor.u32 %v13124_v35, %v11202_v31  ;;  %v4110_v44 = vmul.f32 0.2, %v3877_v13  ;;  %v3851_v14 = vadd.f32 %v3850_v5, %v3837_v63 }
 0x341   :  { %7335 = vmatpush.bf16.msra.mxu3 %v11267_v8  ;;  %7308 = vmatpush.bf16.msra.mxu1 %v10723_v24  ;;  %v12924_v50 = vld [vmem:[#allocation9 + $0x9c] sm:$0xf0]  ;;  %v13919_v8 = vadd.f32 %v13888_v6, %v3753_v4 }
 0x342   :  { %v10658_v58 = vld [vmem:[#allocation9 + $0x280] sm:$0xf]  ;;  %v10403_v11 = vor.u32 %v12924_v50, %v10402_v30  ;;  %v4126_v22 = vmax.f32 %v3877_v13, %v4110_v44  ;;  %v10308_v50 = vld [vmem:[#allocation2 + $0x20] sm:$0xf0] }
 0x343   :  { %7322 = vmatpush.bf16.msra.mxu2 %v10979_v2  ;;  %v12988_v17 = vld [vmem:[#allocation9 + $0x29c] sm:$0xf0]  ;;  %7295 = vmatpush.bf16.msra.mxu0 %v10435_v1  ;;  %v3864_v40 = vpop.f32.mrf.mxu2  ;;  %v4117_v29 = vmul.f32 0.2, %v13919_v8 }
 0x344   :  { %v10914_v55 = vld [vmem:[#allocation9 + $0x480] sm:$0xf]  ;;  %v10659_v37 = vor.u32 %v12988_v17, %v10658_v58  ;;  %v4139_v6 = vpack.c.bf16 %v4126_v22, %v4125_v43  ;;  %v3865_v51 = vadd.f32 %v3864_v40, %v3851_v14 }
 0x345   :  { %7336 = vmatpush.bf16.msra.mxu3 %v11235_v33  ;;  %v13052_v53 = vld [vmem:[#allocation9 + $0x49c] sm:$0xf0]  ;;  %7309 = vmatpush.bf16.msra.mxu1 %v10691_v23  ;;  %v10306_v23 = vld [vmem:[#allocation2] sm:$0xf]  ;;  %v4133_v3 = vmax.f32 %v13919_v8, %v4117_v29 }
 0x346   :  { %v11170_v18 = vld [vmem:[#allocation9 + $0x680] sm:$0xf]  ;;  %v10915_v54 = vor.u32 %v13052_v53, %v10914_v55  ;;  %4147 = vst [vmem:[#allocation2 + $0x10] sm:$0xff] %v4139_v6  ;;  %v3879_v35 = vadd.f32 %v3878_v45, %v3865_v51  ;;  %v10316_v55 = vld [vmem:[#allocation2 + $0x28] sm:$0xf0] }
 0x347   :  { %v13116_v21 = vld [vmem:[#allocation9 + $0x69c] sm:$0xf0]  ;;  %7323 = vmatpush.bf16.msra.mxu2 %v10947_v42  ;;  %7296 = vmatpush.bf16.msra.mxu0 %v10403_v11  ;;  %v12900_v42 = vld [vmem:[#allocation2 + $0x1c] sm:$0xf0] }
 0x348   :  { %v10370_v26 = vld [vmem:[#allocation9 + $0x40] sm:$0xf]  ;;  %v11171_v15 = vor.u32 %v13116_v21, %v11170_v18  ;;  %v4118_v17 = vmul.f32 0.2, %v3879_v35  ;;  %v13923_v18 = vor.u32 %v12900_v42, %v10306_v23  ;;  %v12896_v21 = vld [vmem:[#allocation2 + $0x4] sm:$0xf] }
 0x349   :  { %v12916_v7 = vld [vmem:[#allocation9 + $0x5c] sm:$0xf0]  ;;  %7337 = vmatpush.bf16.msra.mxu3 %v11203_v52  ;;  %7310 = vmatpush.bf16.msra.mxu1 %v10659_v37  ;;  %v13925_v4 = vor.u32 %v12896_v21, %v10308_v50  ;;  %v12897_v37 = vld [vmem:[#allocation2 + $0xc] sm:$0xf] }
 0x34a   :  { %v10626_v59 = vld [vmem:[#allocation9 + $0x240] sm:$0xf]  ;;  %v10371_v19 = vor.u32 %v12916_v7, %v10370_v26  ;;  %v4134_v56 = vmax.f32 %v3879_v35, %v4118_v17  ;;  %v13930_v13 = vor.u32 %v12897_v37, %v10316_v55  ;;  %v13024_v35 = vld [vmem:[#allocation9 + $0x3c4] sm:$0xf] }
 0x34b   :  { %v12980_v39 = vld [vmem:[#allocation9 + $0x25c] sm:$0xf0]  ;;  %7324 = vmatpush.bf16.msra.mxu2 %v10915_v54  ;;  %v12952_v50 = vld [vmem:[#allocation9 + $0x184] sm:$0xf] }
 0x34c   :  { %v10882_v16 = vld [vmem:[#allocation9 + $0x440] sm:$0xf]  ;;  %v10627_v60 = vor.u32 %v12980_v39, %v10626_v59  ;;  %7297 = vmatpush.bf16.msra.mxu0 %v10371_v19  ;;  %v4143_v63 = vpack.c.bf16 %v4134_v56, %v4133_v3  ;;  %v12944_v21 = vld [vmem:[#allocation9 + $0x144] sm:$0xf] }
 0x34d   :  { %v13044_v12 = vld [vmem:[#allocation9 + $0x45c] sm:$0xf0]  ;;  %7338 = vmatpush.bf16.msra.mxu3 %v11171_v15  ;;  %v13008_v37 = vld [vmem:[#allocation9 + $0x344] sm:$0xf] }
 0x34e   :  { %v11138_v20 = vld [vmem:[#allocation9 + $0x640] sm:$0xf]  ;;  %v10883_v9 = vor.u32 %v13044_v12, %v10882_v16  ;;  %7311 = vmatpush.bf16.msra.mxu1 %v10627_v60  ;;  %4151 = vst [vmem:[#allocation2 + $0x30] sm:$0xff] %v4143_v63 }
 0x34f   :  { %v13108_v36 = vld [vmem:[#allocation9 + $0x65c] sm:$0xf0] }
 0x350   :  { %v10338_v47 = vld [vmem:[#allocation9] sm:$0xf]  ;;  %v11139_v61 = vor.u32 %v13108_v36, %v11138_v20  ;;  %7325 = vmatpush.bf16.msra.mxu2 %v10883_v9 }
 0x351   :  { %v12908_v34 = vld [vmem:[#allocation9 + $0x1c] sm:$0xf0] }
 0x352   :  { %v10594_v62 = vld [vmem:[#allocation9 + $0x200] sm:$0xf]  ;;  %v10339_v25 = vor.u32 %v12908_v34, %v10338_v47  ;;  %7339 = vmatpush.bf16.msra.mxu3 %v11139_v61 }
 0x353   :  { %v12972_v49 = vld [vmem:[#allocation9 + $0x21c] sm:$0xf0] }
 0x354   :  { %v10850_v24 = vld [vmem:[#allocation9 + $0x400] sm:$0xf]  ;;  %v10595_v27 = vor.u32 %v12972_v49, %v10594_v62  ;;  %7298 = vmatpush.bf16.msra.mxu0 %v10339_v25 }
 0x355   :  { %v13036_v2 = vld [vmem:[#allocation9 + $0x41c] sm:$0xf0]  ;;  %v12902_v42 = vld [vmem:[#allocation2 + $0x2c] sm:$0xf0]  ;;  %v10324_v17 = vld [vmem:[#allocation2 + $0x30] sm:$0xf0] }
 0x356   :  { %v11106_v28 = vld [vmem:[#allocation9 + $0x600] sm:$0xf]  ;;  %v10851_v1 = vor.u32 %v13036_v2, %v10850_v24  ;;  %7312 = vmatpush.bf16.msra.mxu1 %v10595_v27  ;;  %v10820_v27 = vld [vmem:[#allocation9 + $0x3e0] sm:$0xf0] }
 0x357   :  { %v13100_v10 = vld [vmem:[#allocation9 + $0x61c] sm:$0xf0]  ;;  %7299 = vmatmul.bf16.vlgmr.msra.gmra.mxu0 %v13923_v18  ;;  %v10823_v23 = vor.u32 %v13024_v35, %v10820_v27  ;;  %v13945_v35 = vpop.f32.mrf.mxu2  ;;  %v12904_v27 = vld [vmem:[#allocation9 + $0x4] sm:$0xf] }
 0x358   :  { %v11586_v33 = vld [vmem:[#allocation9 + $0x9c0] sm:$0xf]  ;;  %v11107_v30 = vor.u32 %v13100_v10, %v11106_v28  ;;  %7326 = vmatpush.bf16.msra.mxu2 %v10851_v1 }
 0x359   :  { %v13220_v48 = vld [vmem:[#allocation9 + $0x9dc] sm:$0xf0]  ;;  %7313 = vmatmul.bf16.vlgmr.msra.gmra.mxu1 %v13925_v4 }
 0x35a   :  { %v11842_v38 = vld [vmem:[#allocation9 + $0xbc0] sm:$0xf]  ;;  %v11587_v41 = vor.u32 %v13220_v48, %v11586_v33  ;;  %7340 = vmatpush.bf16.msra.mxu3 %v11107_v30 }
 0x35b   :  { %v13284_v31 = vld [vmem:[#allocation9 + $0xbdc] sm:$0xf0] }
 0x35c   :  { %v12901_v58 = vld [vmem:[#allocation2 + $0x24] sm:$0xf0]  ;;  %v11843_v46 = vor.u32 %v13284_v31, %v11842_v38  ;;  %7347 = vmatpush.bf16.msrb.mxu0 %v11587_v41  ;;  %v12960_v38 = vld [vmem:[#allocation9 + $0x1c4] sm:$0xf] }
 0x35d   :  { %v11554_v52 = vld [vmem:[#allocation9 + $0x980] sm:$0xf]  ;;  %7341 = vmatmul.bf16.vlgmr.msra.gmra.mxu3 %v13930_v13  ;;  %v10564_v31 = vld [vmem:[#allocation9 + $0x1e0] sm:$0xf0] }
 0x35e   :  { %v13212_v32 = vld [vmem:[#allocation9 + $0x99c] sm:$0xf0]  ;;  %7361 = vmatpush.bf16.msrb.mxu1 %v11843_v46  ;;  %v10567_v41 = vor.u32 %v12960_v38, %v10564_v31  ;;  %v13016_v46 = vld [vmem:[#allocation9 + $0x384] sm:$0xf] }
 0x35f   :  { %v11810_v53 = vld [vmem:[#allocation9 + $0xb80] sm:$0xf]  ;;  %v11555_v26 = vor.u32 %v13212_v32, %v11554_v52  ;;  %v10788_v52 = vld [vmem:[#allocation9 + $0x3a0] sm:$0xf0]  ;;  %v10322_v32 = vld [vmem:[#allocation2 + $0x10] sm:$0xf] }
 0x360   :  { %v13276_v57 = vld [vmem:[#allocation9 + $0xb9c] sm:$0xf0]  ;;  %v13935_v55 = vor.u32 %v12902_v42, %v10322_v32  ;;  %v10791_v56 = vor.u32 %v13016_v46, %v10788_v52  ;;  %v10628_v38 = vld [vmem:[#allocation9 + $0x260] sm:$0xf0] }
 0x361   :  { %v10314_v0 = vld [vmem:[#allocation2 + $0x8] sm:$0xf]  ;;  %v11811_v54 = vor.u32 %v13276_v57, %v11810_v53  ;;  %7348 = vmatpush.bf16.msrb.mxu0 %v11555_v26  ;;  %v12898_v53 = vld [vmem:[#allocation2 + $0x14] sm:$0xf]  ;;  %v10756_v26 = vld [vmem:[#allocation9 + $0x360] sm:$0xf0] }
 0x362   :  { %v13927_v11 = vor.u32 %v12901_v58, %v10314_v0  ;;  %v11522_v7 = vld [vmem:[#allocation9 + $0x940] sm:$0xf]  ;;  %v10532_v58 = vld [vmem:[#allocation9 + $0x1a0] sm:$0xf0]  ;;  %v13937_v3 = vor.u32 %v12898_v53, %v10324_v17 }
 0x363   :  { %v13204_v59 = vld [vmem:[#allocation9 + $0x95c] sm:$0xf0]  ;;  %7362 = vmatpush.bf16.msrb.mxu1 %v11811_v54  ;;  %v10535_v57 = vor.u32 %v12952_v50, %v10532_v58  ;;  %v10500_v0 = vld [vmem:[#allocation9 + $0x160] sm:$0xf0]  ;;  %v10759_v54 = vor.u32 %v13008_v37, %v10756_v26 }
 0x364   :  { %7327 = vmatmul.bf16.vlgmr.msra.gmra.mxu2 %v13927_v11  ;;  %v11778_v39 = vld [vmem:[#allocation9 + $0xb40] sm:$0xf]  ;;  %v11523_v5 = vor.u32 %v13204_v59, %v11522_v7  ;;  %v10503_v63 = vor.u32 %v12944_v21, %v10500_v0  ;;  %v12936_v7 = vld [vmem:[#allocation9 + $0x104] sm:$0xf] }
 0x365   :  { %v13268_v15 = vld [vmem:[#allocation9 + $0xb5c] sm:$0xf0]  ;;  %v10468_v59 = vld [vmem:[#allocation9 + $0x120] sm:$0xf0] }
 0x366   :  { %v11779_v16 = vor.u32 %v13268_v15, %v11778_v39  ;;  %v11490_v12 = vld [vmem:[#allocation9 + $0x900] sm:$0xf]  ;;  %7349 = vmatpush.bf16.msrb.mxu0 %v11523_v5  ;;  %v13000_v39 = vld [vmem:[#allocation9 + $0x304] sm:$0xf]  ;;  %v10471_v5 = vor.u32 %v12936_v7, %v10468_v59 }
 0x367   :  { %v13196_v44 = vld [vmem:[#allocation9 + $0x91c] sm:$0xf0]  ;;  %v10724_v15 = vld [vmem:[#allocation9 + $0x320] sm:$0xf0] }
 0x368   :  { %v11746_v20 = vld [vmem:[#allocation9 + $0xb00] sm:$0xf]  ;;  %v11491_v43 = vor.u32 %v13196_v44, %v11490_v12  ;;  %7363 = vmatpush.bf16.msrb.mxu1 %v11779_v16  ;;  %v10727_v16 = vor.u32 %v13000_v39, %v10724_v15  ;;  %v12928_v12 = vld [vmem:[#allocation9 + $0xc4] sm:$0xf] }
 0x369   :  { %v13260_v36 = vld [vmem:[#allocation9 + $0xb1c] sm:$0xf0]  ;;  %v10436_v44 = vld [vmem:[#allocation9 + $0xe0] sm:$0xf0] }
 0x36a   :  { %v11747_v8 = vor.u32 %v13260_v36, %v11746_v20  ;;  %v11458_v19 = vld [vmem:[#allocation9 + $0x8c0] sm:$0xf]  ;;  %7350 = vmatpush.bf16.msrb.mxu0 %v11491_v43  ;;  %v12992_v20 = vld [vmem:[#allocation9 + $0x2c4] sm:$0xf]  ;;  %v13941_v43 = vpop.f32.mrf.mxu0 }
 0x36b   :  { %v13188_v60 = vld [vmem:[#allocation9 + $0x8dc] sm:$0xf0]  ;;  %v10692_v36 = vld [vmem:[#allocation9 + $0x2e0] sm:$0xf0] }
 0x36c   :  { %v11714_v47 = vld [vmem:[#allocation9 + $0xac0] sm:$0xf]  ;;  %v11459_v14 = vor.u32 %v13188_v60, %v11458_v19  ;;  %7364 = vmatpush.bf16.msrb.mxu1 %v11747_v8  ;;  %v10439_v8 = vor.u32 %v12928_v12, %v10436_v44  ;;  %v12968_v58 = vld [vmem:[#allocation9 + $0x204] sm:$0xf] }
 0x36d   :  { %v13252_v22 = vld [vmem:[#allocation9 + $0xadc] sm:$0xf0]  ;;  %v10596_v53 = vld [vmem:[#allocation9 + $0x220] sm:$0xf0] }
 0x36e   :  { %v11715_v9 = vor.u32 %v13252_v22, %v11714_v47  ;;  %v11426_v34 = vld [vmem:[#allocation9 + $0x880] sm:$0xf]  ;;  %7351 = vmatpush.bf16.msrb.mxu0 %v11459_v14  ;;  %v10695_v22 = vor.u32 %v12992_v20, %v10692_v36  ;;  %v12920_v14 = vld [vmem:[#allocation9 + $0x84] sm:$0xf]  ;;  %v10599_v39 = vor.u32 %v12968_v58, %v10596_v53 }
 0x36f   :  { %v13180_v62 = vld [vmem:[#allocation9 + $0x89c] sm:$0xf0]  ;;  %v13280_v0 = vld [vmem:[#allocation9 + $0xbc4] sm:$0xf] }
 0x370   :  { %v11682_v49 = vld [vmem:[#allocation9 + $0xa80] sm:$0xf]  ;;  %v11427_v40 = vor.u32 %v13180_v62, %v11426_v34  ;;  %7365 = vmatpush.bf16.msrb.mxu1 %v11715_v9  ;;  %v10404_v9 = vld [vmem:[#allocation9 + $0xa0] sm:$0xf0] }
 0x371   :  { %v13244_v61 = vld [vmem:[#allocation9 + $0xa9c] sm:$0xf0]  ;;  %v11844_v37 = vld [vmem:[#allocation9 + $0xbe0] sm:$0xf0] }
 0x372   :  { %v11683_v24 = vor.u32 %v13244_v61, %v11682_v49  ;;  %v11394_v2 = vld [vmem:[#allocation9 + $0x840] sm:$0xf]  ;;  %7352 = vmatpush.bf16.msrb.mxu0 %v11427_v40  ;;  %v12984_v49 = vld [vmem:[#allocation9 + $0x284] sm:$0xf]  ;;  %v13949_v32 = vpop.f32.mrf.mxu0  ;;  %v11847_v12 = vor.u32 %v13280_v0, %v11844_v37 }
 0x373   :  { %v13172_v28 = vld [vmem:[#allocation9 + $0x85c] sm:$0xf0]  ;;  %v10660_v61 = vld [vmem:[#allocation9 + $0x2a0] sm:$0xf0] }
 0x374   :  { %v11650_v6 = vld [vmem:[#allocation9 + $0xa40] sm:$0xf]  ;;  %v11395_v45 = vor.u32 %v13172_v28, %v11394_v2  ;;  %7366 = vmatpush.bf16.msrb.mxu1 %v11683_v24  ;;  %v13943_v24 = vpop.f32.mrf.mxu1  ;;  %v10407_v2 = vor.u32 %v12920_v14, %v10404_v9  ;;  %v13208_v44 = vld [vmem:[#allocation9 + $0x984] sm:$0xf] }
 0x375   :  { %v13236_v51 = vld [vmem:[#allocation9 + $0xa5c] sm:$0xf0]  ;;  %v11556_v20 = vld [vmem:[#allocation9 + $0x9a0] sm:$0xf0] }
 0x376   :  { %v11651_v10 = vor.u32 %v13236_v51, %v11650_v6  ;;  %v11362_v33 = vld [vmem:[#allocation9 + $0x800] sm:$0xf]  ;;  %7353 = vmatpush.bf16.msrb.mxu0 %v11395_v45  ;;  %v10663_v45 = vor.u32 %v12984_v49, %v10660_v61  ;;  %v11559_v14 = vor.u32 %v13208_v44, %v11556_v20  ;;  %v13200_v9 = vld [vmem:[#allocation9 + $0x944] sm:$0xf] }
 0x377   :  { %v13164_v48 = vld [vmem:[#allocation9 + $0x81c] sm:$0xf0]  ;;  %v13184_v53 = vld [vmem:[#allocation9 + $0x8c4] sm:$0xf] }
 0x378   :  { %v11618_v29 = vld [vmem:[#allocation9 + $0xa00] sm:$0xf]  ;;  %v11363_v1 = vor.u32 %v13164_v48, %v11362_v33  ;;  %7367 = vmatpush.bf16.msrb.mxu1 %v11651_v10  ;;  %v12912_v10 = vld [vmem:[#allocation9 + $0x44] sm:$0xf] }
 0x379   :  { %v13228_v25 = vld [vmem:[#allocation9 + $0xa1c] sm:$0xf0]  ;;  %v10372_v33 = vld [vmem:[#allocation9 + $0x60] sm:$0xf0] }
 0x37a   :  { %v11619_v30 = vor.u32 %v13228_v25, %v11618_v29  ;;  %7354 = vmatpush.bf16.msrb.mxu0 %v11363_v1  ;;  %v12098_v19 = vld [vmem:[#allocation9 + $0xdc0] sm:$0xf]  ;;  %v12976_v25 = vld [vmem:[#allocation9 + $0x244] sm:$0xf]  ;;  %v13947_v1 = vpop.f32.mrf.mxu3 }
 0x37b   :  { %v13348_v60 = vld [vmem:[#allocation9 + $0xddc] sm:$0xf0]  ;;  %v10631_v50 = vor.u32 %v12976_v25, %v10628_v38  ;;  %v11460_v0 = vld [vmem:[#allocation9 + $0x8e0] sm:$0xf0] }
 0x37c   :  { %7368 = vmatpush.bf16.msrb.mxu1 %v11619_v30  ;;  %v12354_v47 = vld [vmem:[#allocation9 + $0xfc0] sm:$0xf]  ;;  %v12099_v34 = vor.u32 %v13348_v60, %v12098_v19  ;;  %v10375_v30 = vor.u32 %v12912_v10, %v10372_v33  ;;  %v13951_v59 = vpop.f32.mrf.mxu1  ;;  %v11812_v19 = vld [vmem:[#allocation9 + $0xba0] sm:$0xf0] }
 0x37d   :  { %7355 = vmatmul.bf16.vlgmr.msrb.gmra.mxu0 %v13935_v55  ;;  %v13412_v62 = vld [vmem:[#allocation9 + $0xfdc] sm:$0xf0]  ;;  %v13248_v37 = vld [vmem:[#allocation9 + $0xac4] sm:$0xf] }
 0x37e   :  { %7403 = vmatpush.bf16.msra.mxu0 %v10567_v41  ;;  %v12355_v40 = vor.u32 %v13412_v62, %v12354_v47  ;;  %7375 = vmatpush.bf16.msrb.mxu2 %v12099_v34  ;;  %v12066_v28 = vld [vmem:[#allocation9 + $0xd80] sm:$0xf]  ;;  %v10340_v41 = vld [vmem:[#allocation9 + $0x20] sm:$0xf0] }
 0x37f   :  { %7369 = vmatmul.bf16.vlgmr.msrb.gmra.mxu1 %v13937_v3  ;;  %v13340_v6 = vld [vmem:[#allocation9 + $0xd9c] sm:$0xf0]  ;;  %v10343_v26 = vor.u32 %v12904_v27, %v10340_v41  ;;  %v11492_v41 = vld [vmem:[#allocation9 + $0x920] sm:$0xf0] }
 0x380   :  { %7417 = vmatpush.bf16.msra.mxu1 %v10823_v23  ;;  %7389 = vmatpush.bf16.msrb.mxu3 %v12355_v40  ;;  %v12322_v51 = vld [vmem:[#allocation9 + $0xf80] sm:$0xf]  ;;  %v12067_v48 = vor.u32 %v13340_v6, %v12066_v28  ;;  %v13264_v28 = vld [vmem:[#allocation9 + $0xb44] sm:$0xf] }
 0x381   :  { %v13404_v29 = vld [vmem:[#allocation9 + $0xf9c] sm:$0xf0]  ;;  %v11780_v6 = vld [vmem:[#allocation9 + $0xb60] sm:$0xf0] }
 0x382   :  { %7404 = vmatpush.bf16.msra.mxu0 %v10535_v57  ;;  %v12323_v31 = vor.u32 %v13404_v29, %v12322_v51  ;;  %7376 = vmatpush.bf16.msrb.mxu2 %v12067_v48  ;;  %v12034_v23 = vld [vmem:[#allocation9 + $0xd40] sm:$0xf]  ;;  %v13216_v57 = vld [vmem:[#allocation9 + $0x9c4] sm:$0xf]  ;;  %v13955_v61 = vpop.f32.mrf.mxu3  ;;  %v13958_v48 = vpop.f32.mrf.mxu0  ;;  %v11783_v27 = vor.u32 %v13264_v28, %v11780_v6 }
 0x383   :  { %v13332_v42 = vld [vmem:[#allocation9 + $0xd5c] sm:$0xf0] }
 0x384   :  { %7418 = vmatpush.bf16.msra.mxu1 %v10791_v56  ;;  %7390 = vmatpush.bf16.msrb.mxu3 %v12323_v31  ;;  %v12035_v17 = vor.u32 %v13332_v42, %v12034_v23  ;;  %v12290_v46 = vld [vmem:[#allocation9 + $0xf40] sm:$0xf]  ;;  %v11588_v56 = vld [vmem:[#allocation9 + $0x9e0] sm:$0xf0]  ;;  %v13961_v23 = vpop.f32.mrf.mxu1 }
 0x385   :  { %v13396_v52 = vld [vmem:[#allocation9 + $0xf5c] sm:$0xf0]  ;;  %v11591_v15 = vor.u32 %v13216_v57, %v11588_v56  ;;  %v13256_v42 = vld [vmem:[#allocation9 + $0xb04] sm:$0xf] }
 0x386   :  { %7405 = vmatpush.bf16.msra.mxu0 %v10503_v63  ;;  %v12291_v21 = vor.u32 %v13396_v52, %v12290_v46  ;;  %7377 = vmatpush.bf16.msrb.mxu2 %v12035_v17  ;;  %v12002_v63 = vld [vmem:[#allocation9 + $0xd00] sm:$0xf] }
 0x387   :  { %v12258_v7 = vld [vmem:[#allocation9 + $0xf00] sm:$0xf] }
 0x388   :  { %7419 = vmatpush.bf16.msra.mxu1 %v10759_v54  ;;  %7391 = vmatpush.bf16.msrb.mxu3 %v12291_v21  ;;  %v13324_v54 = vld [vmem:[#allocation9 + $0xd1c] sm:$0xf0] }
 0x389   :  { %v11970_v60 = vld [vmem:[#allocation9 + $0xcc0] sm:$0xf] }
 0x38a   :  { %7406 = vmatpush.bf16.msra.mxu0 %v10471_v5  ;;  %v12003_v5 = vor.u32 %v13324_v54, %v12002_v63  ;;  %v13316_v47 = vld [vmem:[#allocation9 + $0xcdc] sm:$0xf0] }
 0x38b   :  { %v11971_v34 = vor.u32 %v13316_v47, %v11970_v60  ;;  %v12226_v62 = vld [vmem:[#allocation9 + $0xec0] sm:$0xf]  ;;  %v13088_v47 = vld [vmem:[#allocation9 + $0x5c4] sm:$0xf] }
 0x38c   :  { %7420 = vmatpush.bf16.msra.mxu1 %v10727_v16  ;;  %v13388_v16 = vld [vmem:[#allocation9 + $0xf1c] sm:$0xf0]  ;;  %7378 = vmatpush.bf16.msrb.mxu2 %v12003_v5  ;;  %v13965_v5 = vld [vmem:[#allocation8] sm:$0xff] }
 0x38d   :  { %v12259_v36 = vor.u32 %v13388_v16, %v12258_v7  ;;  %v13380_v49 = vld [vmem:[#allocation9 + $0xedc] sm:$0xf0]  ;;  %v639_v16 = vperm.slane %v13965_v5, 6 }
 0x38e   :  { %7407 = vmatpush.bf16.msra.mxu0 %v10439_v8  ;;  %v13272_v8 = vld [vmem:[#allocation9 + $0xb84] sm:$0xf]  ;;  %v12227_v51 = vor.u32 %v13380_v49, %v12226_v62  ;;  %v13308_v10 = vld [vmem:[#allocation9 + $0xc9c] sm:$0xf0] }
 0x38f   :  { %7392 = vmatpush.bf16.msrb.mxu3 %v12259_v36  ;;  %v11815_v40 = vor.u32 %v13272_v8, %v11812_v19  ;;  %v12194_v33 = vld [vmem:[#allocation9 + $0xe80] sm:$0xf]  ;;  %v11463_v36 = vor.u32 %v13184_v53, %v11460_v0  ;;  %v13176_v8 = vld [vmem:[#allocation9 + $0x884] sm:$0xf] }
 0x390   :  { %7421 = vmatpush.bf16.msra.mxu1 %v10695_v22  ;;  %v13953_v22 = vpop.f32.mrf.mxu2  ;;  %7379 = vmatpush.bf16.msrb.mxu2 %v11971_v34  ;;  %v13372_v25 = vld [vmem:[#allocation9 + $0xe9c] sm:$0xf0]  ;;  %v11428_v19 = vld [vmem:[#allocation9 + $0x8a0] sm:$0xf0] }
 0x391   :  { %v12195_v31 = vor.u32 %v13372_v25, %v12194_v33  ;;  %v11906_v58 = vld [vmem:[#allocation9 + $0xc40] sm:$0xf]  ;;  %v11076_v34 = vld [vmem:[#allocation9 + $0x5e0] sm:$0xf0] }
 0x392   :  { %7408 = vmatpush.bf16.msra.mxu0 %v10407_v2  ;;  %v11524_v2 = vld [vmem:[#allocation9 + $0x960] sm:$0xf0]  ;;  %v13300_v17 = vld [vmem:[#allocation9 + $0xc5c] sm:$0xf0]  ;;  %v11079_v28 = vor.u32 %v13088_v47, %v11076_v34 }
 0x393   :  { %7393 = vmatpush.bf16.msrb.mxu3 %v12227_v51  ;;  %v11527_v38 = vor.u32 %v13200_v9, %v11524_v2  ;;  %v12162_v46 = vld [vmem:[#allocation9 + $0xe40] sm:$0xf]  ;;  %v11907_v57 = vor.u32 %v13300_v17, %v11906_v58  ;;  %v13152_v62 = vld [vmem:[#allocation9 + $0x7c4] sm:$0xf]  ;;  %v3891_v51 = vadd.f32 %v13941_v43, %v639_v16 }
 0x394   :  { %7422 = vmatpush.bf16.msra.mxu1 %v10663_v45  ;;  %v11938_v45 = vld [vmem:[#allocation9 + $0xc80] sm:$0xf]  ;;  %v11332_v49 = vld [vmem:[#allocation9 + $0x7e0] sm:$0xf0] }
 0x395   :  { %v11939_v29 = vor.u32 %v13308_v10, %v11938_v45  ;;  %v13364_v56 = vld [vmem:[#allocation9 + $0xe5c] sm:$0xf0]  ;;  %v11684_v2 = vld [vmem:[#allocation9 + $0xaa0] sm:$0xf0]  ;;  %v11335_v6 = vor.u32 %v13152_v62, %v11332_v49  ;;  %v13975_v45 = vpop.f32.mrf.mxu1  ;;  %v11431_v10 = vor.u32 %v13176_v8, %v11428_v19  ;;  %v3905_v43 = vadd.f32 %v13943_v24, %v3891_v51  ;;  %v10570_v24 = vld [vmem:[#allocation9 + $0x1c8] sm:$0xf] }
 0x396   :  { %7409 = vmatpush.bf16.msra.mxu0 %v10375_v30  ;;  %v13192_v30 = vld [vmem:[#allocation9 + $0x904] sm:$0xf]  ;;  %v12163_v63 = vor.u32 %v13364_v56, %v12162_v46  ;;  %v11874_v7 = vld [vmem:[#allocation9 + $0xc00] sm:$0xf]  ;;  %v10826_v8 = vld [vmem:[#allocation9 + $0x3c8] sm:$0xf] }
 0x397   :  { %7380 = vmatpush.bf16.msrb.mxu2 %v11939_v29  ;;  %7394 = vmatpush.bf16.msrb.mxu3 %v12195_v31  ;;  %v11495_v52 = vor.u32 %v13192_v30, %v11492_v41  ;;  %v13356_v20 = vld [vmem:[#allocation9 + $0xe1c] sm:$0xf0]  ;;  %v13168_v33 = vld [vmem:[#allocation9 + $0x844] sm:$0xf]  ;;  %v13029_v19 = vld [vmem:[#allocation9 + $0x3e4] sm:$0xf0] }
 0x398   :  { %7423 = vmatpush.bf16.msra.mxu1 %v10631_v50  ;;  %v11748_v50 = vld [vmem:[#allocation9 + $0xb20] sm:$0xf0]  ;;  %v13963_v54 = vpop.f32.mrf.mxu2  ;;  %v10827_v51 = vor.u32 %v13029_v19, %v10826_v8  ;;  %v10474_v19 = vld [vmem:[#allocation9 + $0x108] sm:$0xf] }
 0x399   :  { %v11751_v21 = vor.u32 %v13256_v42, %v11748_v50  ;;  %v13080_v29 = vld [vmem:[#allocation9 + $0x584] sm:$0xf] }
 0x39a   :  { %7410 = vmatpush.bf16.msra.mxu0 %v10343_v26  ;;  %v11716_v26 = vld [vmem:[#allocation9 + $0xae0] sm:$0xf0] }
 0x39b   :  { %7381 = vmatpush.bf16.msrb.mxu2 %v11907_v57  ;;  %7395 = vmatpush.bf16.msrb.mxu3 %v12163_v63  ;;  %v11719_v9 = vor.u32 %v13248_v37, %v11716_v26  ;;  %v11044_v25 = vld [vmem:[#allocation9 + $0x5a0] sm:$0xf0] }
 0x39c   :  { %7424 = vmatpush.bf16.msra.mxu1 %v10599_v39  ;;  %v13292_v39 = vld [vmem:[#allocation9 + $0xc1c] sm:$0xf0]  ;;  %v11396_v31 = vld [vmem:[#allocation9 + $0x860] sm:$0xf0] }
 0x39d   :  { %7411 = vmatmul.bf16.vlgmr.msra.gmra.mxu0 %v13923_v18  ;;  %v11875_v44 = vor.u32 %v13292_v39, %v11874_v7  ;;  %v13144_v30 = vld [vmem:[#allocation9 + $0x784] sm:$0xf]  ;;  %v4016_v47 = vpop.f32.mrf.mxu1 }
 0x39e   :  { %7459 = vmatpush.bf16.msrb.mxu0 %v11591_v15  ;;  %v12130_v15 = vld [vmem:[#allocation9 + $0xe00] sm:$0xf]  ;;  %v11300_v41 = vld [vmem:[#allocation9 + $0x7a0] sm:$0xf0] }
 0x39f   :  { %7425 = vmatmul.bf16.vlgmr.msra.gmra.mxu1 %v13925_v4  ;;  %v12131_v60 = vor.u32 %v13356_v20, %v12130_v15  ;;  %7382 = vmatpush.bf16.msrb.mxu2 %v11875_v44  ;;  %v13232_v42 = vld [vmem:[#allocation9 + $0xa44] sm:$0xf]  ;;  %v11303_v58 = vor.u32 %v13144_v30, %v11300_v41  ;;  %v12965_v44 = vld [vmem:[#allocation9 + $0x1e4] sm:$0xf0] }
 0x3a0   :  { %7473 = vmatpush.bf16.msrb.mxu1 %v11847_v12  ;;  %v13968_v12 = vpop.f32.mrf.mxu3  ;;  %v11652_v50 = vld [vmem:[#allocation9 + $0xa60] sm:$0xf0]  ;;  %v13978_v46 = vpop.f32.mrf.mxu2 }
 0x3a1   :  { %7396 = vmatpush.bf16.msrb.mxu3 %v12131_v60  ;;  %v13160_v17 = vld [vmem:[#allocation9 + $0x804] sm:$0xf]  ;;  %v11655_v37 = vor.u32 %v13232_v42, %v11652_v50  ;;  %v3919_v60 = vadd.f32 %v13945_v35, %v3905_v43  ;;  %v3893_v35 = vadd.f32 %v13949_v32, %v639_v16  ;;  %v10506_v16 = vld [vmem:[#allocation9 + $0x148] sm:$0xf] }
 0x3a2   :  { %7460 = vmatpush.bf16.msrb.mxu0 %v11559_v14  ;;  %v13970_v14 = vpop.f32.mrf.mxu0  ;;  %v11364_v53 = vld [vmem:[#allocation9 + $0x820] sm:$0xf0] }
 0x3a3   :  { %7431 = vmatpush.bf16.msra.mxu2 %v11079_v28  ;;  %v13072_v57 = vld [vmem:[#allocation9 + $0x544] sm:$0xf] }
 0x3a4   :  { %7474 = vmatpush.bf16.msrb.mxu1 %v11815_v40  ;;  %v13240_v40 = vld [vmem:[#allocation9 + $0xa84] sm:$0xf] }
 0x3a5   :  { %7445 = vmatpush.bf16.msra.mxu3 %v11335_v6  ;;  %v11012_v56 = vld [vmem:[#allocation9 + $0x560] sm:$0xf0]  ;;  %v4018_v8 = vpop.f32.mrf.mxu1 }
 0x3a6   :  { %7461 = vmatpush.bf16.msrb.mxu0 %v11527_v38  ;;  %v11687_v38 = vor.u32 %v13240_v40, %v11684_v2  ;;  %v13224_v26 = vld [vmem:[#allocation9 + $0xa04] sm:$0xf]  ;;  %v11015_v63 = vor.u32 %v13072_v57, %v11012_v56  ;;  %v10571_v40 = vor.u32 %v12965_v44, %v10570_v24 }
 0x3a7   :  { %v13136_v7 = vld [vmem:[#allocation9 + $0x744] sm:$0xf] }
 0x3a8   :  { %7475 = vmatpush.bf16.msrb.mxu1 %v11783_v27  ;;  %v11047_v27 = vor.u32 %v13080_v29, %v11044_v25  ;;  %v11268_v39 = vld [vmem:[#allocation9 + $0x760] sm:$0xf0]  ;;  %v4030_v30 = vpop.f32.mrf.mxu2 }
 0x3a9   :  { %7446 = vmatpush.bf16.msra.mxu3 %v11303_v58  ;;  %v11620_v15 = vld [vmem:[#allocation9 + $0xa20] sm:$0xf0]  ;;  %v11271_v20 = vor.u32 %v13136_v7, %v11268_v39 }
 0x3aa   :  { %7462 = vmatpush.bf16.msrb.mxu0 %v11495_v52  ;;  %v11399_v52 = vor.u32 %v13168_v33, %v11396_v31  ;;  %7432 = vmatpush.bf16.msra.mxu2 %v11047_v27  ;;  %v4002_v0 = vpop.f32.mrf.mxu0  ;;  %v13064_v34 = vld [vmem:[#allocation9 + $0x504] sm:$0xf]  ;;  %v11623_v49 = vor.u32 %v13224_v26, %v11620_v15  ;;  %v12957_v33 = vld [vmem:[#allocation9 + $0x1a4] sm:$0xf0]  ;;  %v3933_v27 = vadd.f32 %v13947_v1, %v3919_v60 }
 0x3ab   :  { %v10980_v62 = vld [vmem:[#allocation9 + $0x520] sm:$0xf0]  ;;  %v13021_v31 = vld [vmem:[#allocation9 + $0x3a4] sm:$0xf0]  ;;  %v3907_v1 = vadd.f32 %v13951_v59, %v3893_v35 }
 0x3ac   :  { %7476 = vmatpush.bf16.msrb.mxu1 %v11751_v21  ;;  %v13980_v21 = vpop.f32.mrf.mxu3  ;;  %v10983_v2 = vor.u32 %v13064_v34, %v10980_v62  ;;  %v13128_v28 = vld [vmem:[#allocation9 + $0x704] sm:$0xf]  ;;  %v13013_v26 = vld [vmem:[#allocation9 + $0x364] sm:$0xf0] }
 0x3ad   :  { %7447 = vmatpush.bf16.msra.mxu3 %v11271_v20  ;;  %v11236_v6 = vld [vmem:[#allocation9 + $0x720] sm:$0xf0]  ;;  %v12941_v60 = vld [vmem:[#allocation9 + $0x124] sm:$0xf0] }
 0x3ae   :  { %7463 = vmatpush.bf16.msrb.mxu0 %v11463_v36  ;;  %v640_v36 = vperm.slane %v13965_v5, 7  ;;  %7433 = vmatpush.bf16.msra.mxu2 %v11015_v63  ;;  %v11239_v29 = vor.u32 %v13128_v28, %v11236_v6  ;;  %v13056_v41 = vld [vmem:[#allocation9 + $0x4c4] sm:$0xf]  ;;  %v3947_v63 = vadd.f32 %v13958_v48, %v3933_v27  ;;  %v10730_v62 = vld [vmem:[#allocation9 + $0x308] sm:$0xf]  ;;  %v10475_v6 = vor.u32 %v12941_v60, %v10474_v19 }
 0x3af   :  { %v10948_v42 = vld [vmem:[#allocation9 + $0x4e0] sm:$0xf0]  ;;  %v12997_v5 = vld [vmem:[#allocation9 + $0x2e4] sm:$0xf0] }
 0x3b0   :  { %7477 = vmatpush.bf16.msrb.mxu1 %v11719_v9  ;;  %v11367_v9 = vor.u32 %v13160_v17, %v11364_v53  ;;  %v4003_v25 = vadd.f32 %v4002_v0, %v640_v36  ;;  %v13120_v50 = vld [vmem:[#allocation9 + $0x6c4] sm:$0xf]  ;;  %v10951_v43 = vor.u32 %v13056_v41, %v10948_v42  ;;  %v12949_v53 = vld [vmem:[#allocation9 + $0x164] sm:$0xf0]  ;;  %v4032_v35 = vpop.f32.mrf.mxu2 }
 0x3b1   :  { %7448 = vmatpush.bf16.msra.mxu3 %v11239_v29  ;;  %v13048_v7 = vld [vmem:[#allocation9 + $0x484] sm:$0xf]  ;;  %v10507_v24 = vor.u32 %v12949_v53, %v10506_v16 }
 0x3b2   :  { %7464 = vmatpush.bf16.msrb.mxu0 %v11431_v10  ;;  %v10538_v10 = vld [vmem:[#allocation9 + $0x188] sm:$0xf]  ;;  %7434 = vmatpush.bf16.msra.mxu2 %v10983_v2  ;;  %v4017_v56 = vadd.f32 %v4016_v47, %v4003_v25  ;;  %v4004_v0 = vpop.f32.mrf.mxu0  ;;  %v10916_v39 = vld [vmem:[#allocation9 + $0x4a0] sm:$0xf0] }
 0x3b3   :  { %v10539_v17 = vor.u32 %v12957_v33, %v10538_v10  ;;  %v13112_v15 = vld [vmem:[#allocation9 + $0x684] sm:$0xf]  ;;  %v10919_v44 = vor.u32 %v13048_v7, %v10916_v39  ;;  %v4005_v34 = vadd.f32 %v4004_v0, %v640_v36  ;;  %v12933_v25 = vld [vmem:[#allocation9 + $0xe4] sm:$0xf0] }
 0x3b4   :  { %7478 = vmatpush.bf16.msrb.mxu1 %v11687_v38  ;;  %v10794_v38 = vld [vmem:[#allocation9 + $0x388] sm:$0xf]  ;;  %v4044_v58 = vpop.f32.mrf.mxu3  ;;  %v11172_v20 = vld [vmem:[#allocation9 + $0x6a0] sm:$0xf0]  ;;  %v4031_v48 = vadd.f32 %v4030_v30, %v4017_v56 }
 0x3b5   :  { %v10795_v32 = vor.u32 %v13021_v31, %v10794_v38  ;;  %v11175_v47 = vor.u32 %v13112_v15, %v11172_v20  ;;  %v13040_v2 = vld [vmem:[#allocation9 + $0x444] sm:$0xf]  ;;  %v10698_v38 = vld [vmem:[#allocation9 + $0x2c8] sm:$0xf]  ;;  %v4019_v27 = vadd.f32 %v4018_v8, %v4005_v34 }
 0x3b6   :  { %7465 = vmatpush.bf16.msrb.mxu0 %v11399_v52  ;;  %v11204_v52 = vld [vmem:[#allocation9 + $0x6e0] sm:$0xf0]  ;;  %7435 = vmatpush.bf16.msra.mxu2 %v10951_v43  ;;  %v10410_v56 = vld [vmem:[#allocation9 + $0x88] sm:$0xf] }
 0x3b7   :  { %v11207_v57 = vor.u32 %v13120_v50, %v11204_v52  ;;  %v10884_v28 = vld [vmem:[#allocation9 + $0x460] sm:$0xf0]  ;;  %v12917_v20 = vld [vmem:[#allocation9 + $0x64] sm:$0xf0] }
 0x3b8   :  { %7479 = vmatpush.bf16.msrb.mxu1 %v11655_v37  ;;  %v10762_v37 = vld [vmem:[#allocation9 + $0x348] sm:$0xf]  ;;  %v10887_v10 = vor.u32 %v13040_v2, %v10884_v28  ;;  %v13104_v33 = vld [vmem:[#allocation9 + $0x644] sm:$0xf] }
 0x3b9   :  { %v10763_v59 = vor.u32 %v13013_v26, %v10762_v37  ;;  %7449 = vmatpush.bf16.msra.mxu3 %v11207_v57  ;;  %v11140_v29 = vld [vmem:[#allocation9 + $0x660] sm:$0xf0]  ;;  %v4072_v57 = vpop.f32.mrf.mxu1  ;;  %v4033_v37 = vadd.f32 %v4032_v35, %v4019_v27  ;;  %v10666_v26 = vld [vmem:[#allocation9 + $0x288] sm:$0xf]  ;;  %v4086_v15 = vpop.f32.mrf.mxu2 }
 0x3ba   :  { %7466 = vmatpush.bf16.msrb.mxu0 %v11367_v9  ;;  %v3921_v9 = vadd.f32 %v13953_v22, %v3907_v1  ;;  %7436 = vmatpush.bf16.msra.mxu2 %v10919_v44  ;;  %v11143_v36 = vor.u32 %v13104_v33, %v11140_v29  ;;  %v4058_v41 = vpop.f32.mrf.mxu0  ;;  %v13032_v42 = vld [vmem:[#allocation9 + $0x404] sm:$0xf]  ;;  %v10699_v1 = vor.u32 %v12997_v5, %v10698_v38  ;;  %v10378_v44 = vld [vmem:[#allocation9 + $0x48] sm:$0xf] }
 0x3bb   :  { %v10852_v50 = vld [vmem:[#allocation9 + $0x420] sm:$0xf0]  ;;  %v12909_v28 = vld [vmem:[#allocation9 + $0x24] sm:$0xf0] }
 0x3bc   :  { %7480 = vmatpush.bf16.msrb.mxu1 %v11623_v49  ;;  %v13005_v49 = vld [vmem:[#allocation9 + $0x324] sm:$0xf0]  ;;  %v3935_v31 = vadd.f32 %v13955_v61, %v3921_v9  ;;  %v4046_v30 = vpop.f32.mrf.mxu3  ;;  %v10855_v52 = vor.u32 %v13032_v42, %v10852_v50 }
 0x3bd   :  { %7467 = vmatmul.bf16.vlgmr.msrb.gmra.mxu0 %v13935_v55  ;;  %v10731_v22 = vor.u32 %v13005_v49, %v10730_v62  ;;  %7450 = vmatpush.bf16.msra.mxu3 %v11175_v47  ;;  %v12925_v61 = vld [vmem:[#allocation9 + $0xa4] sm:$0xf0]  ;;  %v10379_v49 = vor.u32 %v12917_v20, %v10378_v44 }
 0x3be   :  { %7515 = vmatpush.bf16.msra.mxu0 %v10571_v40  ;;  %v3961_v40 = vadd.f32 %v13961_v23, %v3947_v63  ;;  %v4045_v23 = vadd.f32 %v4044_v58, %v4031_v48  ;;  %7437 = vmatpush.bf16.msra.mxu2 %v10887_v10  ;;  %v3949_v0 = vadd.f32 %v13970_v14, %v3935_v31  ;;  %v12989_v63 = vld [vmem:[#allocation9 + $0x2a4] sm:$0xf0] }
 0x3bf   :  { %7481 = vmatmul.bf16.vlgmr.msrb.gmra.mxu1 %v13937_v3  ;;  %v10411_v39 = vor.u32 %v12925_v61, %v10410_v56  ;;  %v10634_v47 = vld [vmem:[#allocation9 + $0x248] sm:$0xf] }
 0x3c0   :  { %7529 = vmatpush.bf16.msra.mxu1 %v10827_v51  ;;  %v10442_v51 = vld [vmem:[#allocation9 + $0xc8] sm:$0xf]  ;;  %v3975_v43 = vadd.f32 %v13963_v54, %v3961_v40  ;;  %v4059_v16 = vadd.f32 %v4058_v41, %v4045_v23  ;;  %v3963_v8 = vadd.f32 %v13975_v45, %v3949_v0 }
 0x3c1   :  { %v10443_v53 = vor.u32 %v12933_v25, %v10442_v51  ;;  %7451 = vmatpush.bf16.msra.mxu3 %v11143_v36  ;;  %v12981_v9 = vld [vmem:[#allocation9 + $0x264] sm:$0xf0]  ;;  %v4074_v35 = vpop.f32.mrf.mxu1  ;;  %v4088_v31 = vpop.f32.mrf.mxu2 }
 0x3c2   :  { %7516 = vmatpush.bf16.msra.mxu0 %v10539_v17  ;;  %v13096_v17 = vld [vmem:[#allocation9 + $0x604] sm:$0xf]  ;;  %v3989_v54 = vadd.f32 %v13968_v12, %v3975_v43  ;;  %7438 = vmatpush.bf16.msra.mxu2 %v10855_v52  ;;  %v4073_v7 = vadd.f32 %v4072_v57, %v4059_v16  ;;  %v4060_v60 = vpop.f32.mrf.mxu0  ;;  %v3977_v12 = vadd.f32 %v13978_v46, %v3963_v8  ;;  %v10346_v40 = vld [vmem:[#allocation9 + $0x8] sm:$0xf] }
 0x3c3   :  { %v10635_v2 = vor.u32 %v12981_v9, %v10634_v47  ;;  %v12973_v51 = vld [vmem:[#allocation9 + $0x224] sm:$0xf0]  ;;  %v10347_v36 = vor.u32 %v12909_v28, %v10346_v40  ;;  %v13344_v47 = vld [vmem:[#allocation9 + $0xdc4] sm:$0xf] }
 0x3c4   :  { %7530 = vmatpush.bf16.msra.mxu1 %v10795_v32  ;;  %v11108_v32 = vld [vmem:[#allocation9 + $0x620] sm:$0xf0]  ;;  %v4087_v19 = vadd.f32 %v4086_v15, %v4073_v7  ;;  %v4100_v14 = vpop.f32.mrf.mxu3  ;;  %v4111_v48 = vmul.f32 0.2, %v3989_v54  ;;  %v11594_v10 = vld [vmem:[#allocation9 + $0x9c8] sm:$0xf]  ;;  %v3991_v38 = vadd.f32 %v13980_v21, %v3977_v12 }
 0x3c5   :  { %v11111_v58 = vor.u32 %v13096_v17, %v11108_v32  ;;  %v13221_v33 = vld [vmem:[#allocation9 + $0x9e4] sm:$0xf0]  ;;  %v12100_v9 = vld [vmem:[#allocation9 + $0xde0] sm:$0xf0] }
 0x3c6   :  { %7517 = vmatpush.bf16.msra.mxu0 %v10507_v24  ;;  %v10667_v24 = vor.u32 %v12989_v63, %v10666_v26  ;;  %v4101_v34 = vadd.f32 %v4100_v14, %v4087_v19  ;;  %v4127_v29 = vmax.f32 %v3989_v54, %v4111_v48  ;;  %v13285_v25 = vld [vmem:[#allocation9 + $0xbe4] sm:$0xf0]  ;;  %v11595_v27 = vor.u32 %v13221_v33, %v11594_v10  ;;  %v13408_v48 = vld [vmem:[#allocation9 + $0xfc4] sm:$0xf] }
 0x3c7   :  { %7452 = vmatpush.bf16.msra.mxu3 %v11111_v58  ;;  %v11562_v50 = vld [vmem:[#allocation9 + $0x988] sm:$0xf]  ;;  %v4119_v16 = vmul.f32 0.2, %v3991_v38  ;;  %v12103_v33 = vor.u32 %v13344_v47, %v12100_v9  ;;  %v13312_v47 = vld [vmem:[#allocation9 + $0xcc4] sm:$0xf] }
 0x3c8   :  { %7531 = vmatpush.bf16.msra.mxu1 %v10763_v59  ;;  %v4047_v59 = vadd.f32 %v4046_v30, %v4033_v37  ;;  %v4112_v45 = vmul.f32 0.2, %v4101_v34  ;;  %v13213_v17 = vld [vmem:[#allocation9 + $0x9a4] sm:$0xf0]  ;;  %v11972_v9 = vld [vmem:[#allocation9 + $0xce0] sm:$0xf0] }
 0x3c9   :  { %v11818_v52 = vld [vmem:[#allocation9 + $0xb88] sm:$0xf]  ;;  %v11563_v21 = vor.u32 %v13213_v17, %v11562_v50  ;;  %v4135_v37 = vmax.f32 %v3991_v38, %v4119_v16  ;;  %v12068_v38 = vld [vmem:[#allocation9 + $0xda0] sm:$0xf0] }
 0x3ca   :  { %7518 = vmatpush.bf16.msra.mxu0 %v10475_v6  ;;  %v4061_v62 = vadd.f32 %v4060_v60, %v4047_v59  ;;  %v10602_v6 = vld [vmem:[#allocation9 + $0x208] sm:$0xf]  ;;  %v4128_v46 = vmax.f32 %v4101_v34, %v4112_v45  ;;  %v12356_v34 = vld [vmem:[#allocation9 + $0xfe0] sm:$0xf0] }
 0x3cb   :  { %v10603_v23 = vor.u32 %v12973_v51, %v10602_v6  ;;  %v13277_v32 = vld [vmem:[#allocation9 + $0xba4] sm:$0xf0]  ;;  %v13328_v17 = vld [vmem:[#allocation9 + $0xd44] sm:$0xf] }
 0x3cc   :  { %7532 = vmatpush.bf16.msra.mxu1 %v10731_v22  ;;  %v11850_v22 = vld [vmem:[#allocation9 + $0xbc8] sm:$0xf]  ;;  %v4075_v5 = vadd.f32 %v4074_v35, %v4061_v62  ;;  %v4140_v30 = vpack.c.bf16 %v4128_v46, %v4127_v29  ;;  %v4102_v43 = vpop.f32.mrf.mxu3  ;;  %v12292_v16 = vld [vmem:[#allocation9 + $0xf60] sm:$0xf0] }
 0x3cd   :  { %v11851_v42 = vor.u32 %v13285_v25, %v11850_v22  ;;  %v11530_v56 = vld [vmem:[#allocation9 + $0x948] sm:$0xf]  ;;  %v12359_v22 = vor.u32 %v13408_v48, %v12356_v34  ;;  %v13336_v25 = vld [vmem:[#allocation9 + $0xd84] sm:$0xf]  ;;  %v13017_v34 = vld [vmem:[#allocation9 + $0x38c] sm:$0xf] }
 0x3ce   :  { %7519 = vmatpush.bf16.msra.mxu0 %v10443_v53  ;;  %v4089_v41 = vadd.f32 %v4088_v31, %v4075_v5  ;;  %4148 = vst [vmem:[#allocation2 + $0x18] sm:$0xff] %v4140_v30  ;;  %v13205_v61 = vld [vmem:[#allocation9 + $0x964] sm:$0xf0]  ;;  %v13400_v5 = vld [vmem:[#allocation9 + $0xf84] sm:$0xf]  ;;  %v12071_v30 = vor.u32 %v13336_v25, %v12068_v38 }
 0x3cf   :  { %v11786_v58 = vld [vmem:[#allocation9 + $0xb48] sm:$0xf]  ;;  %v11531_v63 = vor.u32 %v13205_v61, %v11530_v56  ;;  %v13376_v48 = vld [vmem:[#allocation9 + $0xec4] sm:$0xf]  ;;  %v13009_v25 = vld [vmem:[#allocation9 + $0x34c] sm:$0xf] }
 0x3d0   :  { %7533 = vmatpush.bf16.msra.mxu1 %v10699_v1  ;;  %v4103_v53 = vadd.f32 %v4102_v43, %v4089_v41  ;;  %v11819_v1 = vor.u32 %v13277_v32, %v11818_v52  ;;  %v13269_v0 = vld [vmem:[#allocation9 + $0xb64] sm:$0xf0]  ;;  %v12036_v43 = vld [vmem:[#allocation9 + $0xd60] sm:$0xf0]  ;;  %v10764_v38 = vld [vmem:[#allocation9 + $0x368] sm:$0xf0] }
 0x3d1   :  { %v11787_v7 = vor.u32 %v13269_v0, %v11786_v58  ;;  %v13197_v15 = vld [vmem:[#allocation9 + $0x924] sm:$0xf0]  ;;  %v13392_v32 = vld [vmem:[#allocation9 + $0xf44] sm:$0xf]  ;;  %v12039_v61 = vor.u32 %v13328_v17, %v12036_v43  ;;  %v12961_v0 = vld [vmem:[#allocation9 + $0x1cc] sm:$0xf] }
 0x3d2   :  { %7520 = vmatpush.bf16.msra.mxu0 %v10411_v39  ;;  %v4120_v57 = vmul.f32 0.2, %v4103_v53  ;;  %v11498_v39 = vld [vmem:[#allocation9 + $0x908] sm:$0xf]  ;;  %v13320_v58 = vld [vmem:[#allocation9 + $0xd04] sm:$0xf] }
 0x3d3   :  { %v13261_v44 = vld [vmem:[#allocation9 + $0xb24] sm:$0xf0]  ;;  %v11499_v20 = vor.u32 %v13197_v15, %v11498_v39  ;;  %v13384_v15 = vld [vmem:[#allocation9 + $0xf04] sm:$0xf]  ;;  %v13001_v17 = vld [vmem:[#allocation9 + $0x30c] sm:$0xf] }
 0x3d4   :  { %7534 = vmatpush.bf16.msra.mxu1 %v10667_v24  ;;  %v4136_v26 = vmax.f32 %v4103_v53, %v4120_v57  ;;  %v11754_v24 = vld [vmem:[#allocation9 + $0xb08] sm:$0xf]  ;;  %v10732_v43 = vld [vmem:[#allocation9 + $0x328] sm:$0xf0] }
 0x3d5   :  { %v11755_v8 = vor.u32 %v13261_v44, %v11754_v24  ;;  %v11466_v59 = vld [vmem:[#allocation9 + $0x8c8] sm:$0xf]  ;;  %v12899_v45 = vld [vmem:[#allocation2 + $0x1c] sm:$0xf]  ;;  %v12260_v24 = vld [vmem:[#allocation9 + $0xf20] sm:$0xf0] }
 0x3d6   :  { %7521 = vmatpush.bf16.msra.mxu0 %v10379_v49  ;;  %v4144_v54 = vpack.c.bf16 %v4136_v26, %v4135_v37  ;;  %v13189_v19 = vld [vmem:[#allocation9 + $0x8e4] sm:$0xf0]  ;;  %v10572_v37 = vld [vmem:[#allocation9 + $0x1e8] sm:$0xf0]  ;;  %v12295_v26 = vor.u32 %v13392_v32, %v12292_v16  ;;  %v13288_v16 = vld [vmem:[#allocation9 + $0xc04] sm:$0xf] }
 0x3d7   :  { %v11722_v14 = vld [vmem:[#allocation9 + $0xac8] sm:$0xf]  ;;  %v11467_v12 = vor.u32 %v13189_v19, %v11466_v59  ;;  %v12953_v19 = vld [vmem:[#allocation9 + $0x18c] sm:$0xf] }
 0x3d8   :  { %7535 = vmatpush.bf16.msra.mxu1 %v10635_v2  ;;  %4152 = vst [vmem:[#allocation2 + $0x38] sm:$0xff] %v4144_v54  ;;  %v13253_v60 = vld [vmem:[#allocation9 + $0xae4] sm:$0xf0]  ;;  %v10330_v2 = vld [vmem:[#allocation2 + $0x18] sm:$0xf] }
 0x3d9   :  { %v11434_v62 = vld [vmem:[#allocation9 + $0x888] sm:$0xf]  ;;  %v11723_v40 = vor.u32 %v13253_v60, %v11722_v14  ;;  %v13025_v54 = vld [vmem:[#allocation9 + $0x3cc] sm:$0xf]  ;;  %v12263_v60 = vor.u32 %v13384_v15, %v12260_v24 }
 0x3da   :  { %7522 = vmatpush.bf16.msra.mxu0 %v10347_v36  ;;  %v13181_v49 = vld [vmem:[#allocation9 + $0x8a4] sm:$0xf0]  ;;  %v12324_v36 = vld [vmem:[#allocation9 + $0xfa0] sm:$0xf0]  ;;  %v10540_v14 = vld [vmem:[#allocation9 + $0x1a8] sm:$0xf0] }
 0x3db   :  { %v11690_v28 = vld [vmem:[#allocation9 + $0xa88] sm:$0xf]  ;;  %v11435_v46 = vor.u32 %v13181_v49, %v11434_v62  ;;  %v12327_v50 = vor.u32 %v13400_v5, %v12324_v36  ;;  %v10796_v62 = vld [vmem:[#allocation9 + $0x3a8] sm:$0xf0]  ;;  %v10543_v49 = vor.u32 %v12953_v19, %v10540_v14 }
 0x3dc   :  { %7536 = vmatpush.bf16.msra.mxu1 %v10603_v23  ;;  %v13245_v6 = vld [vmem:[#allocation9 + $0xaa4] sm:$0xf0]  ;;  %v12937_v36 = vld [vmem:[#allocation9 + $0x10c] sm:$0xf] }
 0x3dd   :  { %7523 = vmatmul.bf16.vlgmr.msra.gmra.mxu0 %v13923_v18  ;;  %v11691_v31 = vor.u32 %v13245_v6, %v11690_v28  ;;  %v11402_v23 = vld [vmem:[#allocation9 + $0x848] sm:$0xf]  ;;  %v10508_v28 = vld [vmem:[#allocation9 + $0x168] sm:$0xf0] }
 0x3de   :  { %7571 = vmatpush.bf16.msrb.mxu0 %v11595_v27  ;;  %v13173_v27 = vld [vmem:[#allocation9 + $0x864] sm:$0xf0]  ;;  %v12921_v24 = vld [vmem:[#allocation9 + $0x8c] sm:$0xf] }
 0x3df   :  { %7537 = vmatmul.bf16.vlgmr.msra.gmra.mxu1 %v13925_v4  ;;  %v12903_v51 = vld [vmem:[#allocation2 + $0x34] sm:$0xf0]  ;;  %v10332_v10 = vld [vmem:[#allocation2 + $0x38] sm:$0xf0]  ;;  %v11658_v41 = vld [vmem:[#allocation9 + $0xa48] sm:$0xf]  ;;  %v11403_v52 = vor.u32 %v13173_v27, %v11402_v23  ;;  %v10767_v27 = vor.u32 %v13009_v25, %v10764_v38 }
 0x3e0   :  { %7585 = vmatpush.bf16.msrb.mxu1 %v11851_v42  ;;  %v14007_v29 = vor.u32 %v12903_v51, %v10330_v2  ;;  %v14009_v35 = vor.u32 %v12899_v45, %v10332_v10  ;;  %v13237_v42 = vld [vmem:[#allocation9 + $0xa64] sm:$0xf0]  ;;  %v12945_v2 = vld [vmem:[#allocation9 + $0x14c] sm:$0xf]  ;;  %v10799_v51 = vor.u32 %v13017_v34, %v10796_v62  ;;  %v13304_v45 = vld [vmem:[#allocation9 + $0xc84] sm:$0xf] }
 0x3e1   :  { %v11370_v53 = vld [vmem:[#allocation9 + $0x808] sm:$0xf]  ;;  %v11940_v10 = vld [vmem:[#allocation9 + $0xca0] sm:$0xf0]  ;;  %v12985_v14 = vld [vmem:[#allocation9 + $0x28c] sm:$0xf] }
 0x3e2   :  { %7572 = vmatpush.bf16.msrb.mxu0 %v11563_v21  ;;  %7383 = vmatmul.bf16.vlgmr.msrb.gmra.mxu2 %v14007_v29  ;;  %v11659_v21 = vor.u32 %v13237_v42, %v11658_v41  ;;  %v13165_v57 = vld [vmem:[#allocation9 + $0x824] sm:$0xf0]  ;;  %v11943_v5 = vor.u32 %v13304_v45, %v11940_v10  ;;  %v11908_v41 = vld [vmem:[#allocation9 + $0xc60] sm:$0xf0]  ;;  %v12913_v62 = vld [vmem:[#allocation9 + $0x4c] sm:$0xf] }
 0x3e3   :  { %7397 = vmatmul.bf16.vlgmr.msrb.gmra.mxu3 %v14009_v35  ;;  %7487 = vmatpush.bf16.msrb.mxu2 %v12103_v33  ;;  %v13229_v56 = vld [vmem:[#allocation9 + $0xa24] sm:$0xf0]  ;;  %v11371_v39 = vor.u32 %v13165_v57, %v11370_v53  ;;  %v13368_v33 = vld [vmem:[#allocation9 + $0xe84] sm:$0xf]  ;;  %v12929_v53 = vld [vmem:[#allocation9 + $0xcc] sm:$0xf] }
 0x3e4   :  { %7586 = vmatpush.bf16.msrb.mxu1 %v11819_v1  ;;  %7501 = vmatpush.bf16.msrb.mxu3 %v12359_v22  ;;  %v11626_v1 = vld [vmem:[#allocation9 + $0xa08] sm:$0xf]  ;;  %v12196_v22 = vld [vmem:[#allocation9 + $0xea0] sm:$0xf0]  ;;  %v12905_v38 = vld [vmem:[#allocation9 + $0xc] sm:$0xf] }
 0x3e5   :  { %v11627_v44 = vor.u32 %v13229_v56, %v11626_v1  ;;  %v12199_v23 = vor.u32 %v13368_v33, %v12196_v22  ;;  %v13360_v42 = vld [vmem:[#allocation9 + $0xe44] sm:$0xf]  ;;  %v10735_v1 = vor.u32 %v13001_v17, %v10732_v43  ;;  %v13149_v34 = vld [vmem:[#allocation9 + $0x7a4] sm:$0xf0] }
 0x3e6   :  { %7573 = vmatpush.bf16.msrb.mxu0 %v11531_v63  ;;  %v12004_v63 = vld [vmem:[#allocation9 + $0xd20] sm:$0xf0]  ;;  %v11018_v45 = vld [vmem:[#allocation9 + $0x548] sm:$0xf] }
 0x3e7   :  { %7488 = vmatpush.bf16.msrb.mxu2 %v12071_v30  ;;  %v13296_v30 = vld [vmem:[#allocation9 + $0xc44] sm:$0xf]  ;;  %v13077_v33 = vld [vmem:[#allocation9 + $0x564] sm:$0xf0] }
 0x3e8   :  { %7587 = vmatpush.bf16.msrb.mxu1 %v11787_v7  ;;  %7502 = vmatpush.bf16.msrb.mxu3 %v12327_v50  ;;  %v10828_v7 = vld [vmem:[#allocation9 + $0x3e8] sm:$0xf0]  ;;  %v12164_v50 = vld [vmem:[#allocation9 + $0xe60] sm:$0xf0]  ;;  %v11911_v32 = vor.u32 %v13296_v30, %v11908_v41  ;;  %v11274_v22 = vld [vmem:[#allocation9 + $0x748] sm:$0xf] }
 0x3e9   :  { %v10831_v59 = vor.u32 %v13025_v54, %v10828_v7  ;;  %v12167_v57 = vor.u32 %v13360_v42, %v12164_v50  ;;  %v11876_v56 = vld [vmem:[#allocation9 + $0xc20] sm:$0xf0]  ;;  %v13093_v54 = vld [vmem:[#allocation9 + $0x5e4] sm:$0xf0]  ;;  %v12969_v30 = vld [vmem:[#allocation9 + $0x20c] sm:$0xf] }
 0x3ea   :  { %7574 = vmatpush.bf16.msrb.mxu0 %v11499_v20  ;;  %v10575_v20 = vor.u32 %v12961_v0, %v10572_v37  ;;  %v12993_v0 = vld [vmem:[#allocation9 + $0x2cc] sm:$0xf]  ;;  %v11338_v7 = vld [vmem:[#allocation9 + $0x7c8] sm:$0xf]  ;;  %v11879_v15 = vor.u32 %v13288_v16, %v11876_v56 }
 0x3eb   :  { %7489 = vmatpush.bf16.msrb.mxu2 %v12039_v61  ;;  %v13352_v61 = vld [vmem:[#allocation9 + $0xe04] sm:$0xf]  ;;  %v10700_v37 = vld [vmem:[#allocation9 + $0x2e8] sm:$0xf0]  ;;  %v13141_v25 = vld [vmem:[#allocation9 + $0x764] sm:$0xf0] }
 0x3ec   :  { %7588 = vmatpush.bf16.msrb.mxu1 %v11755_v8  ;;  %v12007_v8 = vor.u32 %v13320_v58, %v12004_v63  ;;  %7503 = vmatpush.bf16.msrb.mxu3 %v12295_v26  ;;  %v12132_v58 = vld [vmem:[#allocation9 + $0xe20] sm:$0xf0]  ;;  %v11082_v26 = vld [vmem:[#allocation9 + $0x5c8] sm:$0xf]  ;;  %v10604_v41 = vld [vmem:[#allocation9 + $0x228] sm:$0xf0] }
 0x3ed   :  { %v10986_v42 = vld [vmem:[#allocation9 + $0x508] sm:$0xf]  ;;  %v13281_v16 = vld [vmem:[#allocation9 + $0xbcc] sm:$0xf] }
 0x3ee   :  { %7575 = vmatpush.bf16.msrb.mxu0 %v11467_v12  ;;  %v12228_v12 = vld [vmem:[#allocation9 + $0xee0] sm:$0xf0]  ;;  %v13069_v17 = vld [vmem:[#allocation9 + $0x524] sm:$0xf0] }
 0x3ef   :  { %7490 = vmatpush.bf16.msrb.mxu2 %v12007_v8  ;;  %v12231_v6 = vor.u32 %v13376_v48, %v12228_v12  ;;  %v10703_v8 = vor.u32 %v12993_v0, %v10700_v37  ;;  %v13085_v48 = vld [vmem:[#allocation9 + $0x5a4] sm:$0xf0]  ;;  %v10987_v56 = vor.u32 %v13069_v17, %v10986_v42 }
 0x3f0   :  { %7589 = vmatpush.bf16.msrb.mxu1 %v11723_v40  ;;  %v11975_v40 = vor.u32 %v13312_v47, %v11972_v9  ;;  %7504 = vmatpush.bf16.msrb.mxu3 %v12263_v60  ;;  %v10668_v60 = vld [vmem:[#allocation9 + $0x2a8] sm:$0xf0]  ;;  %v11050_v47 = vld [vmem:[#allocation9 + $0x588] sm:$0xf] }
 0x3f1   :  { %v11306_v12 = vld [vmem:[#allocation9 + $0x788] sm:$0xf] }
 0x3f2   :  { %7576 = vmatpush.bf16.msrb.mxu0 %v11435_v46  ;;  %7439 = vmatmul.bf16.vlgmr.msra.gmra.mxu2 %v13927_v11  ;;  %v10511_v46 = vor.u32 %v12945_v2, %v10508_v28  ;;  %v11051_v2 = vor.u32 %v13085_v48, %v11050_v47  ;;  %v11307_v28 = vor.u32 %v13149_v34, %v11306_v12  ;;  %v11242_v43 = vld [vmem:[#allocation9 + $0x708] sm:$0xf]  ;;  %v11788_v48 = vld [vmem:[#allocation9 + $0xb68] sm:$0xf0] }
 0x3f3   :  { %7453 = vmatmul.bf16.vlgmr.msra.gmra.mxu3 %v13930_v13  ;;  %7491 = vmatpush.bf16.msrb.mxu2 %v11975_v40  ;;  %v10671_v40 = vor.u32 %v12985_v14, %v10668_v60  ;;  %v13061_v37 = vld [vmem:[#allocation9 + $0x4e4] sm:$0xf0]  ;;  %v13193_v12 = vld [vmem:[#allocation9 + $0x90c] sm:$0xf] }
 0x3f4   :  { %7590 = vmatpush.bf16.msrb.mxu1 %v11691_v31  ;;  %v10476_v31 = vld [vmem:[#allocation9 + $0x128] sm:$0xf0]  ;;  %7505 = vmatpush.bf16.msrb.mxu3 %v12231_v6  ;;  %v11178_v14 = vld [vmem:[#allocation9 + $0x688] sm:$0xf] }
 0x3f5   :  { %v12977_v6 = vld [vmem:[#allocation9 + $0x24c] sm:$0xf]  ;;  %v13117_v60 = vld [vmem:[#allocation9 + $0x6a4] sm:$0xf0] }
 0x3f6   :  { %7577 = vmatpush.bf16.msrb.mxu0 %v11403_v52  ;;  %v10479_v52 = vor.u32 %v12937_v36, %v10476_v31  ;;  %v13217_v36 = vld [vmem:[#allocation9 + $0x9cc] sm:$0xf]  ;;  %v13349_v17 = vld [vmem:[#allocation9 + $0xde4] sm:$0xf0] }
 0x3f7   :  { %7492 = vmatpush.bf16.msrb.mxu2 %v11943_v5  ;;  %v11596_v31 = vld [vmem:[#allocation9 + $0x9e8] sm:$0xf0] }
 0x3f8   :  { %7591 = vmatpush.bf16.msrb.mxu1 %v11659_v21  ;;  %v10444_v21 = vld [vmem:[#allocation9 + $0xe8] sm:$0xf0]  ;;  %7506 = vmatpush.bf16.msrb.mxu3 %v12199_v23  ;;  %v11019_v23 = vor.u32 %v13077_v33, %v11018_v45 }
 0x3f9   :  { %v10447_v63 = vor.u32 %v12929_v53, %v10444_v21  ;;  %v11852_v53 = vld [vmem:[#allocation9 + $0xbe8] sm:$0xf0]  ;;  %v10607_v21 = vor.u32 %v12969_v30, %v10604_v41 }
 0x3fa   :  { %7578 = vmatpush.bf16.msrb.mxu0 %v11371_v39  ;;  %v13157_v39 = vld [vmem:[#allocation9 + $0x7e4] sm:$0xf0]  ;;  %v11855_v0 = vor.u32 %v13281_v16, %v11852_v53  ;;  %v11500_v34 = vld [vmem:[#allocation9 + $0x928] sm:$0xf0] }
 0x3fb   :  { %7493 = vmatpush.bf16.msrb.mxu2 %v11911_v32  ;;  %v11339_v19 = vor.u32 %v13157_v39, %v11338_v7  ;;  %v11599_v32 = vor.u32 %v13217_v36, %v11596_v31  ;;  %v13273_v7 = vld [vmem:[#allocation9 + $0xb8c] sm:$0xf]  ;;  %v11503_v45 = vor.u32 %v13193_v12, %v11500_v34  ;;  %v13037_v36 = vld [vmem:[#allocation9 + $0x424] sm:$0xf0]  ;;  %v10578_v12 = vld [vmem:[#allocation9 + $0x1d0] sm:$0xf] }
 0x3fc   :  { %7592 = vmatpush.bf16.msrb.mxu1 %v11627_v44  ;;  %v10412_v44 = vld [vmem:[#allocation9 + $0xa8] sm:$0xf0]  ;;  %7507 = vmatpush.bf16.msrb.mxu3 %v12167_v57  ;;  %v11114_v31 = vld [vmem:[#allocation9 + $0x608] sm:$0xf]  ;;  %v12966_v34 = vld [vmem:[#allocation9 + $0x1ec] sm:$0xf0] }
 0x3fd   :  { %7579 = vmatmul.bf16.vlgmr.msrb.gmra.mxu0 %v13935_v55  ;;  %v10415_v9 = vor.u32 %v12921_v24, %v10412_v44  ;;  %v13209_v57 = vld [vmem:[#allocation9 + $0x98c] sm:$0xf] }
 0x3fe   :  { %7627 = vmatpush.bf16.msra.mxu0 %v10575_v20  ;;  %v12135_v20 = vor.u32 %v13352_v61, %v12132_v58  ;;  %v10954_v58 = vld [vmem:[#allocation9 + $0x4c8] sm:$0xf]  ;;  %v11820_v39 = vld [vmem:[#allocation9 + $0xba8] sm:$0xf0] }
 0x3ff   :  { %7593 = vmatmul.bf16.vlgmr.msrb.gmra.mxu1 %v13937_v3  ;;  %7494 = vmatpush.bf16.msrb.mxu2 %v11879_v15  ;;  %v13201_v15 = vld [vmem:[#allocation9 + $0x94c] sm:$0xf]  ;;  %v10955_v44 = vor.u32 %v13061_v37, %v10954_v58  ;;  %v12074_v37 = vld [vmem:[#allocation9 + $0xd88] sm:$0xf] }
 0x400   :  { %7641 = vmatpush.bf16.msra.mxu1 %v10831_v59  ;;  %v11083_v59 = vor.u32 %v13093_v54, %v11082_v26  ;;  %7508 = vmatpush.bf16.msrb.mxu3 %v12135_v20  ;;  %v11210_v26 = vld [vmem:[#allocation9 + $0x6c8] sm:$0xf]  ;;  %v11532_v24 = vld [vmem:[#allocation9 + $0x968] sm:$0xf0] }
 0x401   :  { %v11535_v47 = vor.u32 %v13201_v15, %v11532_v24  ;;  %v11756_v33 = vld [vmem:[#allocation9 + $0xb28] sm:$0xf0] }
 0x402   :  { %7628 = vmatpush.bf16.msra.mxu0 %v10543_v49  ;;  %v10380_v49 = vld [vmem:[#allocation9 + $0x68] sm:$0xf0]  ;;  %7495 = vmatmul.bf16.vlgmr.msrb.gmra.mxu2 %v14007_v29 }
 0x403   :  { %7543 = vmatpush.bf16.msra.mxu2 %v11083_v59  ;;  %v10383_v10 = vor.u32 %v12913_v62, %v10380_v49  ;;  %7509 = vmatmul.bf16.vlgmr.msrb.gmra.mxu3 %v14009_v35  ;;  %v11823_v59 = vor.u32 %v13273_v7, %v11820_v39  ;;  %v11179_v49 = vor.u32 %v13117_v60, %v11178_v14  ;;  %v13249_v30 = vld [vmem:[#allocation9 + $0xacc] sm:$0xf]  ;;  %v13333_v14 = vld [vmem:[#allocation9 + $0xd64] sm:$0xf0] }
 0x404   :  { %7642 = vmatpush.bf16.msra.mxu1 %v10799_v51  ;;  %7557 = vmatpush.bf16.msra.mxu3 %v11339_v19  ;;  %v10636_v51 = vld [vmem:[#allocation9 + $0x268] sm:$0xf0]  ;;  %v13053_v19 = vld [vmem:[#allocation9 + $0x4a4] sm:$0xf0] }
 0x405   :  { %v10639_v5 = vor.u32 %v12977_v6, %v10636_v51  ;;  %v11146_v6 = vld [vmem:[#allocation9 + $0x648] sm:$0xf]  ;;  %v11724_v41 = vld [vmem:[#allocation9 + $0xae8] sm:$0xf0] }
 0x406   :  { %7629 = vmatpush.bf16.msra.mxu0 %v10511_v46  ;;  %v10348_v46 = vld [vmem:[#allocation9 + $0x28] sm:$0xf0]  ;;  %v13109_v51 = vld [vmem:[#allocation9 + $0x664] sm:$0xf0] }
 0x407   :  { %7544 = vmatpush.bf16.msra.mxu2 %v11051_v2  ;;  %v10351_v50 = vor.u32 %v12905_v38, %v10348_v46  ;;  %v11147_v46 = vor.u32 %v13109_v51, %v11146_v6  ;;  %v11436_v16 = vld [vmem:[#allocation9 + $0x8a8] sm:$0xf0]  ;;  %v12298_v60 = vld [vmem:[#allocation9 + $0xf48] sm:$0xf] }
 0x408   :  { %7643 = vmatpush.bf16.msra.mxu1 %v10767_v27  ;;  %7558 = vmatpush.bf16.msra.mxu3 %v11307_v28  ;;  %v11275_v27 = vor.u32 %v13141_v25, %v11274_v22  ;;  %v13045_v28 = vld [vmem:[#allocation9 + $0x464] sm:$0xf0]  ;;  %v13185_v22 = vld [vmem:[#allocation9 + $0x8cc] sm:$0xf] }
 0x409   :  { %v11468_v25 = vld [vmem:[#allocation9 + $0x8e8] sm:$0xf0]  ;;  %v12010_v51 = vld [vmem:[#allocation9 + $0xd08] sm:$0xf] }
 0x40a   :  { %7630 = vmatpush.bf16.msra.mxu0 %v10479_v52  ;;  %v13133_v52 = vld [vmem:[#allocation9 + $0x724] sm:$0xf0]  ;;  %v11471_v42 = vor.u32 %v13185_v22, %v11468_v25  ;;  %v13169_v7 = vld [vmem:[#allocation9 + $0x84c] sm:$0xf]  ;;  %v10579_v22 = vor.u32 %v12966_v34, %v10578_v12  ;;  %v10834_v25 = vld [vmem:[#allocation9 + $0x3d0] sm:$0xf] }
 0x40b   :  { %7545 = vmatpush.bf16.msra.mxu2 %v11019_v23  ;;  %v11243_v61 = vor.u32 %v13133_v52, %v11242_v43  ;;  %v12362_v43 = vld [vmem:[#allocation9 + $0xfc8] sm:$0xf]  ;;  %v11404_v39 = vld [vmem:[#allocation9 + $0x868] sm:$0xf0] }
 0x40c   :  { %7644 = vmatpush.bf16.msra.mxu1 %v10735_v1  ;;  %v11564_v1 = vld [vmem:[#allocation9 + $0x9a8] sm:$0xf0]  ;;  %7559 = vmatpush.bf16.msra.mxu3 %v11275_v27  ;;  %v13101_v27 = vld [vmem:[#allocation9 + $0x624] sm:$0xf0] }
 0x40d   :  { %v11567_v54 = vor.u32 %v13209_v57, %v11564_v1  ;;  %v13413_v52 = vld [vmem:[#allocation9 + $0xfe4] sm:$0xf0]  ;;  %v11727_v57 = vor.u32 %v13249_v30, %v11724_v41 }
 0x40e   :  { %7631 = vmatpush.bf16.msra.mxu0 %v10447_v63  ;;  %v13125_v63 = vld [vmem:[#allocation9 + $0x6e4] sm:$0xf0]  ;;  %v12363_v58 = vor.u32 %v13413_v52, %v12362_v43  ;;  %v13022_v43 = vld [vmem:[#allocation9 + $0x3ac] sm:$0xf0] }
 0x40f   :  { %7546 = vmatpush.bf16.msra.mxu2 %v10987_v56  ;;  %v11211_v20 = vor.u32 %v13125_v63, %v11210_v26  ;;  %v13241_v56 = vld [vmem:[#allocation9 + $0xa8c] sm:$0xf]  ;;  %v13341_v26 = vld [vmem:[#allocation9 + $0xda4] sm:$0xf0] }
 0x410   :  { %7645 = vmatpush.bf16.msra.mxu1 %v10703_v8  ;;  %7560 = vmatpush.bf16.msra.mxu3 %v11243_v61  ;;  %v10922_v8 = vld [vmem:[#allocation9 + $0x488] sm:$0xf]  ;;  %v11692_v61 = vld [vmem:[#allocation9 + $0xaa8] sm:$0xf0]  ;;  %v12075_v24 = vor.u32 %v13341_v26, %v12074_v37  ;;  %v13014_v37 = vld [vmem:[#allocation9 + $0x36c] sm:$0xf0] }
 0x411   :  { %v10923_v62 = vor.u32 %v13053_v19, %v10922_v8  ;;  %v12330_v63 = vld [vmem:[#allocation9 + $0xf88] sm:$0xf]  ;;  %v11695_v15 = vor.u32 %v13241_v56, %v11692_v61 }
 0x412   :  { %7632 = vmatpush.bf16.msra.mxu0 %v10415_v9  ;;  %v13265_v9 = vld [vmem:[#allocation9 + $0xb4c] sm:$0xf]  ;;  %v12042_v19 = vld [vmem:[#allocation9 + $0xd48] sm:$0xf] }
 0x413   :  { %7547 = vmatpush.bf16.msra.mxu2 %v10955_v44  ;;  %v11791_v2 = vor.u32 %v13265_v9, %v11788_v48  ;;  %v13233_v44 = vld [vmem:[#allocation9 + $0xa4c] sm:$0xf]  ;;  %v11978_v30 = vld [vmem:[#allocation9 + $0xcc8] sm:$0xf] }
 0x414   :  { %7646 = vmatpush.bf16.msra.mxu1 %v10671_v40  ;;  %7561 = vmatpush.bf16.msra.mxu3 %v11211_v20  ;;  %v10890_v40 = vld [vmem:[#allocation9 + $0x448] sm:$0xf]  ;;  %v11660_v20 = vld [vmem:[#allocation9 + $0xa68] sm:$0xf0] }
 0x415   :  { %v10891_v38 = vor.u32 %v13045_v28, %v10890_v40  ;;  %v13161_v9 = vld [vmem:[#allocation9 + $0x80c] sm:$0xf]  ;;  %v13317_v41 = vld [vmem:[#allocation9 + $0xce4] sm:$0xf0] }
 0x416   :  { %7633 = vmatpush.bf16.msra.mxu0 %v10383_v10  ;;  %v13257_v10 = vld [vmem:[#allocation9 + $0xb0c] sm:$0xf]  ;;  %v13309_v56 = vld [vmem:[#allocation9 + $0xca4] sm:$0xf0] }
 0x417   :  { %7548 = vmatpush.bf16.msra.mxu2 %v10923_v62  ;;  %v11759_v23 = vor.u32 %v13257_v10, %v11756_v33  ;;  %v11372_v48 = vld [vmem:[#allocation9 + $0x828] sm:$0xf0]  ;;  %v11663_v62 = vor.u32 %v13233_v44, %v11660_v20  ;;  %v12266_v10 = vld [vmem:[#allocation9 + $0xf08] sm:$0xf] }
 0x418   :  { %7647 = vmatpush.bf16.msra.mxu1 %v10639_v5  ;;  %7562 = vmatpush.bf16.msra.mxu3 %v11179_v49  ;;  %v10858_v5 = vld [vmem:[#allocation9 + $0x408] sm:$0xf]  ;;  %v12043_v49 = vor.u32 %v13333_v14, %v12042_v19  ;;  %v13225_v40 = vld [vmem:[#allocation9 + $0xa0c] sm:$0xf]  ;;  %v11375_v6 = vor.u32 %v13161_v9, %v11372_v48  ;;  %v13006_v19 = vld [vmem:[#allocation9 + $0x32c] sm:$0xf0] }
 0x419   :  { %v10859_v53 = vor.u32 %v13037_v36, %v10858_v5  ;;  %v13389_v33 = vld [vmem:[#allocation9 + $0xf24] sm:$0xf0]  ;;  %v10546_v36 = vld [vmem:[#allocation9 + $0x190] sm:$0xf] }
 0x41a   :  { %7634 = vmatpush.bf16.msra.mxu0 %v10351_v50  ;;  %v12106_v50 = vld [vmem:[#allocation9 + $0xdc8] sm:$0xf]  ;;  %v10450_v9 = vld [vmem:[#allocation9 + $0xd0] sm:$0xf] }
 0x41b   :  { %7549 = vmatpush.bf16.msra.mxu2 %v10891_v38  ;;  %v12107_v1 = vor.u32 %v13349_v17, %v12106_v50  ;;  %v13030_v38 = vld [vmem:[#allocation9 + $0x3ec] sm:$0xf0]  ;;  %v13381_v50 = vld [vmem:[#allocation9 + $0xee4] sm:$0xf0] }
 0x41c   :  { %7648 = vmatpush.bf16.msra.mxu1 %v10607_v21  ;;  %7563 = vmatpush.bf16.msra.mxu3 %v11147_v46  ;;  %v11115_v21 = vor.u32 %v13101_v27, %v11114_v31  ;;  %v12958_v31 = vld [vmem:[#allocation9 + $0x1ac] sm:$0xf0]  ;;  %v10835_v27 = vor.u32 %v13030_v38, %v10834_v25  ;;  %v12202_v61 = vld [vmem:[#allocation9 + $0xe88] sm:$0xf] }
 0x41d   :  { %7635 = vmatmul.bf16.vlgmr.msra.gmra.mxu0 %v13923_v18  ;;  %v10802_v17 = vld [vmem:[#allocation9 + $0x390] sm:$0xf]  ;;  %v10547_v52 = vor.u32 %v12958_v31, %v10546_v36  ;;  %v13301_v44 = vld [vmem:[#allocation9 + $0xc64] sm:$0xf0] }
 0x41e   :  { %7683 = vmatpush.bf16.msrb.mxu0 %v11599_v32  ;;  %v13177_v32 = vld [vmem:[#allocation9 + $0x88c] sm:$0xf]  ;;  %v12170_v20 = vld [vmem:[#allocation9 + $0xe48] sm:$0xf]  ;;  %v12934_v48 = vld [vmem:[#allocation9 + $0xec] sm:$0xf0] }
 0x41f   :  { %7649 = vmatmul.bf16.vlgmr.msra.gmra.mxu1 %v13925_v4  ;;  %7550 = vmatpush.bf16.msra.mxu2 %v10859_v53  ;;  %v12950_v53 = vld [vmem:[#allocation9 + $0x16c] sm:$0xf0] }
 0x420   :  { %7697 = vmatpush.bf16.msrb.mxu1 %v11855_v0  ;;  %v11439_v0 = vor.u32 %v13177_v32, %v11436_v16  ;;  %7564 = vmatpush.bf16.msra.mxu3 %v11115_v21  ;;  %v11979_v32 = vor.u32 %v13317_v41, %v11978_v30  ;;  %v10514_v16 = vld [vmem:[#allocation9 + $0x150] sm:$0xf]  ;;  %v13081_v30 = vld [vmem:[#allocation9 + $0x58c] sm:$0xf] }
 0x421   :  { %v10515_v26 = vor.u32 %v12950_v53, %v10514_v16  ;;  %v10418_v25 = vld [vmem:[#allocation9 + $0x90] sm:$0xf] }
 0x422   :  { %7684 = vmatpush.bf16.msrb.mxu0 %v11567_v54  ;;  %v13405_v54 = vld [vmem:[#allocation9 + $0xfa4] sm:$0xf0]  ;;  %7551 = vmatmul.bf16.vlgmr.msra.gmra.mxu2 %v13927_v11  ;;  %v12926_v38 = vld [vmem:[#allocation9 + $0xac] sm:$0xf0] }
 0x423   :  { %7599 = vmatpush.bf16.msrb.mxu2 %v12107_v1  ;;  %v12331_v8 = vor.u32 %v13405_v54, %v12330_v63  ;;  %7565 = vmatmul.bf16.vlgmr.msra.gmra.mxu3 %v13930_v13  ;;  %v11946_v1 = vld [vmem:[#allocation9 + $0xc88] sm:$0xf]  ;;  %v10482_v54 = vld [vmem:[#allocation9 + $0x110] sm:$0xf]  ;;  %v10419_v41 = vor.u32 %v12926_v38, %v10418_v25 }
 0x424   :  { %7698 = vmatpush.bf16.msrb.mxu1 %v11823_v59  ;;  %7613 = vmatpush.bf16.msrb.mxu3 %v12363_v58  ;;  %v11407_v59 = vor.u32 %v13169_v7, %v11404_v39  ;;  %v13373_v58 = vld [vmem:[#allocation9 + $0xea4] sm:$0xf0]  ;;  %v11947_v63 = vor.u32 %v13309_v56, %v11946_v1  ;;  %v12942_v7 = vld [vmem:[#allocation9 + $0x12c] sm:$0xf0]  ;;  %v13073_v1 = vld [vmem:[#allocation9 + $0x54c] sm:$0xf] }
 0x425   :  { %v12203_v39 = vor.u32 %v13373_v58, %v12202_v61  ;;  %v10483_v14 = vor.u32 %v12942_v7, %v10482_v54  ;;  %v11020_v61 = vld [vmem:[#allocation9 + $0x568] sm:$0xf0]  ;;  %v11602_v54 = vld [vmem:[#allocation9 + $0x9d0] sm:$0xf] }
 0x426   :  { %7685 = vmatpush.bf16.msrb.mxu0 %v11535_v47  ;;  %v13397_v47 = vld [vmem:[#allocation9 + $0xf64] sm:$0xf0]  ;;  %v13137_v58 = vld [vmem:[#allocation9 + $0x74c] sm:$0xf]  ;;  %v13222_v7 = vld [vmem:[#allocation9 + $0x9ec] sm:$0xf0] }
 0x427   :  { %7600 = vmatpush.bf16.msrb.mxu2 %v12075_v24  ;;  %v12299_v28 = vor.u32 %v13397_v47, %v12298_v60  ;;  %v11914_v24 = vld [vmem:[#allocation9 + $0xc48] sm:$0xf]  ;;  %v11538_v25 = vld [vmem:[#allocation9 + $0x950] sm:$0xf] }
 0x428   :  { %7699 = vmatpush.bf16.msrb.mxu1 %v11791_v2  ;;  %v11628_v2 = vld [vmem:[#allocation9 + $0xa28] sm:$0xf0]  ;;  %7614 = vmatpush.bf16.msrb.mxu3 %v12331_v8  ;;  %v13365_v8 = vld [vmem:[#allocation9 + $0xe64] sm:$0xf0]  ;;  %v11915_v60 = vor.u32 %v13301_v44, %v11914_v24  ;;  %v10610_v24 = vld [vmem:[#allocation9 + $0x210] sm:$0xf] }
 0x429   :  { %v11631_v46 = vor.u32 %v13225_v40, %v11628_v2  ;;  %v11882_v47 = vld [vmem:[#allocation9 + $0xc08] sm:$0xf]  ;;  %v12171_v12 = vor.u32 %v13365_v8, %v12170_v20  ;;  %v10706_v2 = vld [vmem:[#allocation9 + $0x2d0] sm:$0xf]  ;;  %v13065_v20 = vld [vmem:[#allocation9 + $0x50c] sm:$0xf] }
 0x42a   :  { %7686 = vmatpush.bf16.msrb.mxu0 %v11503_v45  ;;  %v13325_v45 = vld [vmem:[#allocation9 + $0xd24] sm:$0xf0]  ;;  %v12974_v44 = vld [vmem:[#allocation9 + $0x22c] sm:$0xf0] }
 0x42b   :  { %7601 = vmatpush.bf16.msrb.mxu2 %v12043_v49  ;;  %v12011_v5 = vor.u32 %v13325_v45, %v12010_v51  ;;  %v12138_v49 = vld [vmem:[#allocation9 + $0xe08] sm:$0xf]  ;;  %v10451_v51 = vor.u32 %v12934_v48, %v10450_v9  ;;  %v11084_v45 = vld [vmem:[#allocation9 + $0x5e8] sm:$0xf0]  ;;  %v13286_v9 = vld [vmem:[#allocation9 + $0xbec] sm:$0xf0]  ;;  %v10611_v48 = vor.u32 %v12974_v44, %v10610_v24 }
 0x42c   :  { %7700 = vmatpush.bf16.msrb.mxu1 %v11759_v23  ;;  %7615 = vmatpush.bf16.msrb.mxu3 %v12299_v28  ;;  %v12267_v23 = vor.u32 %v13389_v33, %v12266_v10  ;;  %v13357_v40 = vld [vmem:[#allocation9 + $0xe24] sm:$0xf0]  ;;  %v12998_v28 = vld [vmem:[#allocation9 + $0x2ec] sm:$0xf0]  ;;  %v13153_v10 = vld [vmem:[#allocation9 + $0x7cc] sm:$0xf] }
 0x42d   :  { %v11340_v33 = vld [vmem:[#allocation9 + $0x7e8] sm:$0xf0]  ;;  %v13206_v38 = vld [vmem:[#allocation9 + $0x96c] sm:$0xf0] }
 0x42e   :  { %7687 = vmatpush.bf16.msrb.mxu0 %v11471_v42  ;;  %v12234_v42 = vld [vmem:[#allocation9 + $0xec8] sm:$0xf]  ;;  %v11343_v31 = vor.u32 %v13153_v10, %v11340_v33  ;;  %v11826_v10 = vld [vmem:[#allocation9 + $0xb90] sm:$0xf]  ;;  %v10860_v24 = vld [vmem:[#allocation9 + $0x428] sm:$0xf0] }
 0x42f   :  { %7602 = vmatpush.bf16.msrb.mxu2 %v12011_v5  ;;  %v12235_v21 = vor.u32 %v13381_v50, %v12234_v42  ;;  %v10707_v5 = vor.u32 %v12998_v28, %v10706_v2  ;;  %v11052_v42 = vld [vmem:[#allocation9 + $0x5a8] sm:$0xf0]  ;;  %v13278_v33 = vld [vmem:[#allocation9 + $0xbac] sm:$0xf0] }
 0x430   :  { %7701 = vmatpush.bf16.msrb.mxu1 %v11727_v57  ;;  %7616 = vmatpush.bf16.msrb.mxu3 %v12267_v23  ;;  %v10803_v57 = vor.u32 %v13022_v43, %v10802_v17  ;;  %v10674_v23 = vld [vmem:[#allocation9 + $0x290] sm:$0xf]  ;;  %v13145_v50 = vld [vmem:[#allocation9 + $0x78c] sm:$0xf]  ;;  %v11055_v16 = vor.u32 %v13081_v30, %v11052_v42 }
 0x431   :  { %v11308_v17 = vld [vmem:[#allocation9 + $0x7a8] sm:$0xf0]  ;;  %v10386_v43 = vld [vmem:[#allocation9 + $0x50] sm:$0xf] }
 0x432   :  { %7688 = vmatpush.bf16.msrb.mxu0 %v11439_v0  ;;  %v10770_v0 = vld [vmem:[#allocation9 + $0x350] sm:$0xf]  ;;  %v11311_v53 = vor.u32 %v13145_v50, %v11308_v17  ;;  %v10956_v28 = vld [vmem:[#allocation9 + $0x4e8] sm:$0xf0]  ;;  %v14031_v17 = vpop.f32.mrf.mxu1 }
 0x433   :  { %7603 = vmatpush.bf16.msrb.mxu2 %v11979_v32  ;;  %v11180_v30 = vld [vmem:[#allocation9 + $0x6a8] sm:$0xf0]  ;;  %v11794_v42 = vld [vmem:[#allocation9 + $0xb50] sm:$0xf] }
 0x434   :  { %7702 = vmatpush.bf16.msrb.mxu1 %v11695_v15  ;;  %7617 = vmatpush.bf16.msrb.mxu3 %v12235_v21  ;;  %v10771_v15 = vor.u32 %v13014_v37, %v10770_v0  ;;  %v10642_v21 = vld [vmem:[#allocation9 + $0x250] sm:$0xf]  ;;  %v11276_v0 = vld [vmem:[#allocation9 + $0x768] sm:$0xf0] }
 0x435   :  { %v10354_v37 = vld [vmem:[#allocation9 + $0x10] sm:$0xf]  ;;  %v13097_v44 = vld [vmem:[#allocation9 + $0x60c] sm:$0xf] }
 0x436   :  { %7689 = vmatpush.bf16.msrb.mxu0 %v11407_v59  ;;  %v10738_v59 = vld [vmem:[#allocation9 + $0x310] sm:$0xf] }
 0x437   :  { %7604 = vmatpush.bf16.msrb.mxu2 %v11947_v63  ;;  %v10739_v34 = vor.u32 %v13006_v19, %v10738_v59  ;;  %v10988_v59 = vld [vmem:[#allocation9 + $0x528] sm:$0xf0]  ;;  %v13270_v50 = vld [vmem:[#allocation9 + $0xb6c] sm:$0xf0] }
 0x438   :  { %7703 = vmatpush.bf16.msrb.mxu1 %v11663_v62  ;;  %7618 = vmatpush.bf16.msrb.mxu3 %v12203_v39  ;;  %v13293_v62 = vld [vmem:[#allocation9 + $0xc24] sm:$0xf0]  ;;  %v11023_v39 = vor.u32 %v13073_v1, %v11020_v61  ;;  %v13129_v19 = vld [vmem:[#allocation9 + $0x70c] sm:$0xf] }
 0x439   :  { %v10892_v1 = vld [vmem:[#allocation9 + $0x468] sm:$0xf0] }
 0x43a   :  { %7690 = vmatpush.bf16.msrb.mxu0 %v11375_v6  ;;  %v13089_v6 = vld [vmem:[#allocation9 + $0x5cc] sm:$0xf] }
 0x43b   :  { %7605 = vmatpush.bf16.msrb.mxu2 %v11915_v60  ;;  %v11087_v36 = vor.u32 %v13089_v6, %v11084_v45  ;;  %v11603_v60 = vor.u32 %v13222_v7, %v11602_v54  ;;  %v13121_v6 = vld [vmem:[#allocation9 + $0x6cc] sm:$0xf]  ;;  %v13190_v54 = vld [vmem:[#allocation9 + $0x8ec] sm:$0xf0] }
 0x43c   :  { %7704 = vmatpush.bf16.msrb.mxu1 %v11631_v46  ;;  %7619 = vmatpush.bf16.msrb.mxu3 %v12171_v12  ;;  %v12139_v46 = vor.u32 %v13357_v40, %v12138_v49  ;;  %v11570_v12 = vld [vmem:[#allocation9 + $0x990] sm:$0xf]  ;;  %v13057_v40 = vld [vmem:[#allocation9 + $0x4cc] sm:$0xf] }
 0x43d   :  { %7691 = vmatmul.bf16.vlgmr.msrb.gmra.mxu0 %v13935_v55  ;;  %v11148_v61 = vld [vmem:[#allocation9 + $0x668] sm:$0xf0] }
 0x43e   :  { %7739 = vmatpush.bf16.msra.mxu0 %v10579_v22  ;;  %v11883_v22 = vor.u32 %v13293_v62, %v11882_v47  ;;  %v11858_v47 = vld [vmem:[#allocation9 + $0xbd0] sm:$0xf]  ;;  %v10991_v62 = vor.u32 %v13065_v20, %v10988_v59  ;;  %v11116_v59 = vld [vmem:[#allocation9 + $0x628] sm:$0xf0] }
 0x43f   :  { %7705 = vmatmul.bf16.vlgmr.msrb.gmra.mxu1 %v13937_v3  ;;  %v11859_v2 = vor.u32 %v13286_v9, %v11858_v47  ;;  %v13345_v47 = vld [vmem:[#allocation9 + $0xdcc] sm:$0xf] }
 0x440   :  { %7753 = vmatpush.bf16.msra.mxu1 %v10835_v27  ;;  %v12990_v27 = vld [vmem:[#allocation9 + $0x2ac] sm:$0xf0]  ;;  %7606 = vmatpush.bf16.msrb.mxu2 %v11883_v22  ;;  %v14027_v22 = vpop.f32.mrf.mxu0  ;;  %v12108_v9 = vld [vmem:[#allocation9 + $0xde8] sm:$0xf0] }
 0x441   :  { %7620 = vmatpush.bf16.msrb.mxu3 %v12139_v46  ;;  %v10675_v32 = vor.u32 %v12990_v27, %v10674_v23  ;;  %v10959_v46 = vor.u32 %v13057_v40, %v10956_v28  ;;  %v10924_v23 = vld [vmem:[#allocation9 + $0x4a8] sm:$0xf0] }
 0x442   :  { %7740 = vmatpush.bf16.msra.mxu0 %v10547_v52  ;;  %v12918_v52 = vld [vmem:[#allocation9 + $0x6c] sm:$0xf0]  ;;  %v13113_v27 = vld [vmem:[#allocation9 + $0x68c] sm:$0xf] }
 0x443   :  { %7607 = vmatmul.bf16.vlgmr.msrb.gmra.mxu2 %v14007_v29  ;;  %v10387_v56 = vor.u32 %v12918_v52, %v10386_v43  ;;  %v11506_v43 = vld [vmem:[#allocation9 + $0x910] sm:$0xf] }
 0x444   :  { %7754 = vmatpush.bf16.msra.mxu1 %v10803_v57  ;;  %7655 = vmatpush.bf16.msra.mxu2 %v11087_v36  ;;  %v12982_v57 = vld [vmem:[#allocation9 + $0x26c] sm:$0xf0]  ;;  %v13049_v36 = vld [vmem:[#allocation9 + $0x48c] sm:$0xf] }
 0x445   :  { %7669 = vmatpush.bf16.msra.mxu3 %v11343_v31  ;;  %v10643_v63 = vor.u32 %v12982_v57, %v10642_v21  ;;  %v11827_v31 = vor.u32 %v13278_v33, %v11826_v10  ;;  %v13198_v52 = vld [vmem:[#allocation9 + $0x92c] sm:$0xf0]  ;;  %v13041_v21 = vld [vmem:[#allocation9 + $0x44c] sm:$0xf]  ;;  %v11795_v57 = vor.u32 %v13270_v50, %v11794_v42  ;;  %v12111_v10 = vor.u32 %v13345_v47, %v12108_v9 }
 0x446   :  { %7741 = vmatpush.bf16.msra.mxu0 %v10515_v26  ;;  %7621 = vmatmul.bf16.vlgmr.msrb.gmra.mxu3 %v14009_v35  ;;  %v12910_v26 = vld [vmem:[#allocation9 + $0x2c] sm:$0xf0]  ;;  %v10895_v7 = vor.u32 %v13041_v21, %v10892_v1  ;;  %v12044_v1 = vld [vmem:[#allocation9 + $0xd68] sm:$0xf0] }
 0x447   :  { %v10355_v8 = vor.u32 %v12910_v26, %v10354_v37  ;;  %v13262_v37 = vld [vmem:[#allocation9 + $0xb2c] sm:$0xf0]  ;;  %v12268_v9 = vld [vmem:[#allocation9 + $0xf28] sm:$0xf0] }
 0x448   :  { %7755 = vmatpush.bf16.msra.mxu1 %v10771_v15  ;;  %7656 = vmatpush.bf16.msra.mxu2 %v11055_v16  ;;  %v11279_v15 = vor.u32 %v13137_v58, %v11276_v0  ;;  %v10927_v16 = vor.u32 %v13049_v36, %v10924_v23  ;;  %v11507_v58 = vor.u32 %v13198_v52, %v11506_v43  ;;  %v11762_v0 = vld [vmem:[#allocation9 + $0xb10] sm:$0xf]  ;;  %v7302_v20 = vpop.f32.mrf.mxu0  ;;  %v12076_v36 = vld [vmem:[#allocation9 + $0xda8] sm:$0xf0] }
 0x449   :  { %7670 = vmatpush.bf16.msra.mxu3 %v11311_v53  ;;  %v11183_v53 = vor.u32 %v13113_v27, %v11180_v30  ;;  %v11698_v33 = vld [vmem:[#allocation9 + $0xa90] sm:$0xf]  ;;  %v12332_v23 = vld [vmem:[#allocation9 + $0xfa8] sm:$0xf0] }
 0x44a   :  { %7742 = vmatpush.bf16.msra.mxu0 %v10483_v14  ;;  %v11244_v14 = vld [vmem:[#allocation9 + $0x728] sm:$0xf0]  ;;  %v11410_v27 = vld [vmem:[#allocation9 + $0x850] sm:$0xf] }
 0x44b   :  { %v11247_v49 = vor.u32 %v13129_v19, %v11244_v14  ;;  %v11730_v19 = vld [vmem:[#allocation9 + $0xad0] sm:$0xf] }
 0x44c   :  { %7756 = vmatpush.bf16.msra.mxu1 %v10739_v34  ;;  %v13214_v34 = vld [vmem:[#allocation9 + $0x9ac] sm:$0xf0]  ;;  %7657 = vmatpush.bf16.msra.mxu2 %v11023_v39 }
 0x44d   :  { %7671 = vmatpush.bf16.msra.mxu3 %v11279_v15  ;;  %v11571_v45 = vor.u32 %v13214_v34, %v11570_v12  ;;  %v13033_v15 = vld [vmem:[#allocation9 + $0x40c] sm:$0xf]  ;;  %v13254_v14 = vld [vmem:[#allocation9 + $0xaec] sm:$0xf0]  ;;  %v7328_v12 = vpop.f32.mrf.mxu2 }
 0x44e   :  { %7743 = vmatpush.bf16.msra.mxu0 %v10451_v51  ;;  %v11212_v51 = vld [vmem:[#allocation9 + $0x6e8] sm:$0xf0]  ;;  %v10863_v28 = vor.u32 %v13033_v15, %v10860_v24  ;;  %v11666_v43 = vld [vmem:[#allocation9 + $0xa50] sm:$0xf] }
 0x44f   :  { %v12364_v34 = vld [vmem:[#allocation9 + $0xfe8] sm:$0xf0]  ;;  %v13238_v52 = vld [vmem:[#allocation9 + $0xa6c] sm:$0xf0] }
 0x450   :  { %7757 = vmatpush.bf16.msra.mxu1 %v10707_v5  ;;  %7658 = vmatpush.bf16.msra.mxu2 %v10991_v62  ;;  %v11215_v5 = vor.u32 %v13121_v6, %v11212_v51  ;;  %v11442_v62 = vld [vmem:[#allocation9 + $0x890] sm:$0xf]  ;;  %v11119_v6 = vor.u32 %v13097_v44, %v11116_v59  ;;  %v7316_v51 = vpop.f32.mrf.mxu1 }
 0x451   :  { %7672 = vmatpush.bf16.msra.mxu3 %v11247_v49  ;;  %v13182_v49 = vld [vmem:[#allocation9 + $0x8ac] sm:$0xf0] }
 0x452   :  { %7744 = vmatpush.bf16.msra.mxu0 %v10419_v41  ;;  %v11539_v41 = vor.u32 %v13206_v38, %v11538_v25  ;;  %v13246_v25 = vld [vmem:[#allocation9 + $0xaac] sm:$0xf0] }
 0x453   :  { %v11699_v42 = vor.u32 %v13246_v25, %v11698_v33  ;;  %v11634_v24 = vld [vmem:[#allocation9 + $0xa10] sm:$0xf]  ;;  %v13313_v33 = vld [vmem:[#allocation9 + $0xccc] sm:$0xf] }
 0x454   :  { %7758 = vmatpush.bf16.msra.mxu1 %v10675_v32  ;;  %v14033_v32 = vld [vmem:[#allocation11] sm:$0xff]  ;;  %7659 = vmatpush.bf16.msra.mxu2 %v10959_v46  ;;  %v11443_v46 = vor.u32 %v13182_v49, %v11442_v62  ;;  %v13230_v44 = vld [vmem:[#allocation9 + $0xa2c] sm:$0xf0]  ;;  %v11980_v25 = vld [vmem:[#allocation9 + $0xce8] sm:$0xf0] }
 0x455   :  { %7673 = vmatpush.bf16.msra.mxu3 %v11215_v5  ;;  %v4675_v26 = vperm.slane %v14033_v32, 0  ;;  %v13337_v5 = vld [vmem:[#allocation9 + $0xd8c] sm:$0xf] }
 0x456   :  { %7745 = vmatpush.bf16.msra.mxu0 %v10387_v56  ;;  %v13105_v56 = vld [vmem:[#allocation9 + $0x64c] sm:$0xf]  ;;  %v12079_v50 = vor.u32 %v13337_v5, %v12076_v36  ;;  %v13018_v5 = vld [vmem:[#allocation9 + $0x394] sm:$0xf] }
 0x457   :  { %v11151_v39 = vor.u32 %v13105_v56, %v11148_v61  ;;  %v7301_v40 = vadd.f32 %v14027_v22, %v4675_v26  ;;  %v13174_v22 = vld [vmem:[#allocation9 + $0x86c] sm:$0xf0]  ;;  %v13393_v56 = vld [vmem:[#allocation9 + $0xf4c] sm:$0xf]  ;;  %v10804_v36 = vld [vmem:[#allocation9 + $0x3b0] sm:$0xf0] }
 0x458   :  { %7759 = vmatpush.bf16.msra.mxu1 %v10643_v63  ;;  %v11474_v63 = vld [vmem:[#allocation9 + $0x8d0] sm:$0xf]  ;;  %7660 = vmatpush.bf16.msra.mxu2 %v10927_v16  ;;  %v11411_v21 = vor.u32 %v13174_v22, %v11410_v27  ;;  %v12300_v61 = vld [vmem:[#allocation9 + $0xf68] sm:$0xf0] }
 0x459   :  { %7674 = vmatpush.bf16.msra.mxu3 %v11183_v53  ;;  %v7315_v30 = vadd.f32 %v14031_v17, %v7301_v40  ;;  %v7303_v17 = vadd.f32 %v7302_v20, %v4675_v26  ;;  %v12303_v26 = vor.u32 %v13393_v56, %v12300_v61  ;;  %v11635_v40 = vor.u32 %v13230_v44, %v11634_v24  ;;  %v12204_v56 = vld [vmem:[#allocation9 + $0xea8] sm:$0xf0]  ;;  %v10772_v61 = vld [vmem:[#allocation9 + $0x370] sm:$0xf0] }
 0x45a   :  { %7746 = vmatpush.bf16.msra.mxu0 %v10355_v8  ;;  %v11763_v8 = vor.u32 %v13262_v37, %v11762_v0  ;;  %v13166_v0 = vld [vmem:[#allocation9 + $0x82c] sm:$0xf0]  ;;  %v12962_v37 = vld [vmem:[#allocation9 + $0x1d4] sm:$0xf] }
 0x45b   :  { %v7329_v16 = vadd.f32 %v7328_v12, %v7315_v30  ;;  %v7317_v47 = vadd.f32 %v7316_v51, %v7303_v17  ;;  %v13026_v12 = vld [vmem:[#allocation9 + $0x3d4] sm:$0xf]  ;;  %v11983_v30 = vor.u32 %v13313_v33, %v11980_v25  ;;  %v13353_v33 = vld [vmem:[#allocation9 + $0xe0c] sm:$0xf] }
 0x45c   :  { %7760 = vmatpush.bf16.msra.mxu1 %v10611_v48  ;;  %v13409_v48 = vld [vmem:[#allocation9 + $0xfcc] sm:$0xf]  ;;  %7661 = vmatpush.bf16.msra.mxu2 %v10895_v7  ;;  %v7370_v7 = vpop.f32.mrf.mxu1  ;;  %v13010_v17 = vld [vmem:[#allocation9 + $0x354] sm:$0xf] }
 0x45d   :  { %7747 = vmatmul.bf16.vlgmr.msra.gmra.mxu0 %v13923_v18  ;;  %7675 = vmatpush.bf16.msra.mxu3 %v11151_v39  ;;  %v12367_v38 = vor.u32 %v13409_v48, %v12364_v34  ;;  %v11667_v39 = vor.u32 %v13238_v52, %v11666_v43  ;;  %v10836_v34 = vld [vmem:[#allocation9 + $0x3f0] sm:$0xf0]  ;;  %v10775_v44 = vor.u32 %v13010_v17, %v10772_v61  ;;  %v12140_v25 = vld [vmem:[#allocation9 + $0xe28] sm:$0xf0] }
 0x45e   :  { %7795 = vmatpush.bf16.msrb.mxu0 %v11603_v60  ;;  %v11475_v60 = vor.u32 %v13190_v54, %v11474_v63  ;;  %v10580_v63 = vld [vmem:[#allocation9 + $0x1f0] sm:$0xf0]  ;;  %v7330_v54 = vpop.f32.mrf.mxu2 }
 0x45f   :  { %7761 = vmatmul.bf16.vlgmr.msra.gmra.mxu1 %v13925_v4  ;;  %v10583_v48 = vor.u32 %v12962_v37, %v10580_v63  ;;  %v7331_v49 = vadd.f32 %v7330_v54, %v7317_v47  ;;  %v13297_v54 = vld [vmem:[#allocation9 + $0xc4c] sm:$0xf]  ;;  %v4676_v47 = vperm.slane %v14033_v32, 1 }
 0x460   :  { %7809 = vmatpush.bf16.msrb.mxu1 %v11859_v2  ;;  %v7342_v2 = vpop.f32.mrf.mxu3  ;;  %7662 = vmatpush.bf16.msra.mxu2 %v10863_v28 }
 0x461   :  { %7676 = vmatpush.bf16.msra.mxu3 %v11119_v6  ;;  %v10548_v6 = vld [vmem:[#allocation9 + $0x1b0] sm:$0xf0] }
 0x462   :  { %7796 = vmatpush.bf16.msrb.mxu0 %v11571_v45  ;;  %v11731_v45 = vor.u32 %v13254_v14, %v11730_v19  ;;  %v13321_v19 = vld [vmem:[#allocation9 + $0xd0c] sm:$0xf] }
 0x463   :  { %7663 = vmatmul.bf16.vlgmr.msra.gmra.mxu2 %v13927_v11  ;;  %v12012_v14 = vld [vmem:[#allocation9 + $0xd28] sm:$0xf0] }
 0x464   :  { %7810 = vmatpush.bf16.msrb.mxu1 %v11827_v31  ;;  %v13401_v31 = vld [vmem:[#allocation9 + $0xf8c] sm:$0xf]  ;;  %7711 = vmatpush.bf16.msrb.mxu2 %v12111_v10  ;;  %v12015_v28 = vor.u32 %v13321_v19, %v12012_v14  ;;  %v10839_v10 = vor.u32 %v13026_v12, %v10836_v34  ;;  %v13002_v19 = vld [vmem:[#allocation9 + $0x314] sm:$0xf] }
 0x465   :  { %7725 = vmatpush.bf16.msrb.mxu3 %v12367_v38  ;;  %v12335_v53 = vor.u32 %v13401_v31, %v12332_v23  ;;  %v13377_v38 = vld [vmem:[#allocation9 + $0xecc] sm:$0xf]  ;;  %v10740_v14 = vld [vmem:[#allocation9 + $0x330] sm:$0xf0] }
 0x466   :  { %7797 = vmatpush.bf16.msrb.mxu0 %v11539_v41  ;;  %v7356_v41 = vpop.f32.mrf.mxu0  ;;  %7677 = vmatmul.bf16.vlgmr.msra.gmra.mxu3 %v13930_v13  ;;  %v7384_v22 = vpop.f32.mrf.mxu2  ;;  %v13289_v12 = vld [vmem:[#allocation9 + $0xc0c] sm:$0xf] }
 0x468   :  { %7811 = vmatpush.bf16.msrb.mxu1 %v11795_v57  ;;  %v13329_v57 = vld [vmem:[#allocation9 + $0xd4c] sm:$0xf]  ;;  %7712 = vmatpush.bf16.msrb.mxu2 %v12079_v50  ;;  %v7344_v59 = vpop.f32.mrf.mxu3 }
 0x469   :  { %v12047_v15 = vor.u32 %v13329_v57, %v12044_v1  ;;  %7726 = vmatpush.bf16.msrb.mxu3 %v12335_v53  ;;  %v7345_v27 = vadd.f32 %v7344_v59, %v7331_v49  ;;  %v13305_v53 = vld [vmem:[#allocation9 + $0xc8c] sm:$0xf]  ;;  %v7372_v1 = vpop.f32.mrf.mxu1 }
 0x46a   :  { %7798 = vmatpush.bf16.msrb.mxu0 %v11507_v58  ;;  %v11378_v58 = vld [vmem:[#allocation9 + $0x810] sm:$0xf]  ;;  %v13369_v57 = vld [vmem:[#allocation9 + $0xe8c] sm:$0xf] }
 0x46b   :  { %v11379_v20 = vor.u32 %v13166_v0, %v11378_v58  ;;  %v12207_v24 = vor.u32 %v13369_v57, %v12204_v56  ;;  %v13361_v59 = vld [vmem:[#allocation9 + $0xe4c] sm:$0xf]  ;;  %v12986_v57 = vld [vmem:[#allocation9 + $0x294] sm:$0xf]  ;;  %v11058_v56 = vld [vmem:[#allocation9 + $0x590] sm:$0xf] }
 0x46c   :  { %7812 = vmatpush.bf16.msrb.mxu1 %v11763_v8  ;;  %v7343_v8 = vadd.f32 %v7342_v2, %v7329_v16  ;;  %7713 = vmatpush.bf16.msrb.mxu2 %v12047_v15  ;;  %v12954_v2 = vld [vmem:[#allocation9 + $0x194] sm:$0xf]  ;;  %v10807_v16 = vor.u32 %v13018_v5, %v10804_v36  ;;  %v11884_v49 = vld [vmem:[#allocation9 + $0xc28] sm:$0xf0]  ;;  %v11090_v5 = vld [vmem:[#allocation9 + $0x5d0] sm:$0xf] }
 0x46d   :  { %7727 = vmatpush.bf16.msrb.mxu3 %v12303_v26  ;;  %v10551_v23 = vor.u32 %v12954_v2, %v10548_v6 }
 0x46e   :  { %7799 = vmatpush.bf16.msrb.mxu0 %v11475_v60  ;;  %v13385_v60 = vld [vmem:[#allocation9 + $0xf0c] sm:$0xf]  ;;  %v7357_v62 = vadd.f32 %v7356_v41, %v7343_v8  ;;  %v7358_v51 = vpop.f32.mrf.mxu0  ;;  %v12946_v41 = vld [vmem:[#allocation9 + $0x154] sm:$0xf]  ;;  %v7386_v34 = vpop.f32.mrf.mxu2 }
 0x46f   :  { %v7359_v58 = vadd.f32 %v7358_v51, %v7345_v27  ;;  %v11916_v8 = vld [vmem:[#allocation9 + $0xc68] sm:$0xf0]  ;;  %v12994_v51 = vld [vmem:[#allocation9 + $0x2d4] sm:$0xf]  ;;  %v11346_v27 = vld [vmem:[#allocation9 + $0x7d0] sm:$0xf] }
 0x470   :  { %7813 = vmatpush.bf16.msrb.mxu1 %v11731_v45  ;;  %v12271_v45 = vor.u32 %v13385_v60, %v12268_v9  ;;  %v7371_v31 = vadd.f32 %v7370_v7, %v7357_v62  ;;  %7714 = vmatpush.bf16.msrb.mxu2 %v12015_v28  ;;  %v7398_v43 = vpop.f32.mrf.mxu3  ;;  %v12938_v7 = vld [vmem:[#allocation9 + $0x114] sm:$0xf]  ;;  %v11919_v62 = vor.u32 %v13297_v54, %v11916_v8 }
 0x471   :  { %v7373_v60 = vadd.f32 %v7372_v1, %v7359_v58  ;;  %v10452_v28 = vld [vmem:[#allocation9 + $0xf0] sm:$0xf0]  ;;  %v13086_v58 = vld [vmem:[#allocation9 + $0x5ac] sm:$0xf0] }
 0x472   :  { %7800 = vmatpush.bf16.msrb.mxu0 %v11443_v46  ;;  %v12236_v46 = vld [vmem:[#allocation9 + $0xee8] sm:$0xf0]  ;;  %7728 = vmatpush.bf16.msrb.mxu3 %v12271_v45  ;;  %v7385_v50 = vadd.f32 %v7384_v22, %v7371_v31  ;;  %v13158_v22 = vld [vmem:[#allocation9 + $0x7ec] sm:$0xf0]  ;;  %v10676_v1 = vld [vmem:[#allocation9 + $0x2b0] sm:$0xf0]  ;;  %v11059_v8 = vor.u32 %v13086_v58, %v11058_v56 }
 0x473   :  { %v12239_v52 = vor.u32 %v13377_v38, %v12236_v46  ;;  %v7387_v2 = vadd.f32 %v7386_v34, %v7373_v60  ;;  %v7426_v38 = vpop.f32.mrf.mxu1  ;;  %v10708_v46 = vld [vmem:[#allocation9 + $0x2f0] sm:$0xf0]  ;;  %v13126_v58 = vld [vmem:[#allocation9 + $0x6ec] sm:$0xf0] }
 0x474   :  { %7814 = vmatpush.bf16.msrb.mxu1 %v11699_v42  ;;  %v10516_v42 = vld [vmem:[#allocation9 + $0x170] sm:$0xf0]  ;;  %v7399_v0 = vadd.f32 %v7398_v43, %v7385_v50  ;;  %7715 = vmatpush.bf16.msrb.mxu2 %v11983_v30  ;;  %v11887_v30 = vor.u32 %v13289_v12, %v11884_v49  ;;  %v13142_v12 = vld [vmem:[#allocation9 + $0x76c] sm:$0xf0] }
 0x475   :  { %v10519_v37 = vor.u32 %v12946_v41, %v10516_v42  ;;  %v12922_v41 = vld [vmem:[#allocation9 + $0x94] sm:$0xf] }
 0x476   :  { %7801 = vmatpush.bf16.msrb.mxu0 %v11411_v21  ;;  %v11948_v21 = vld [vmem:[#allocation9 + $0xca8] sm:$0xf0]  ;;  %v8187_v15 = vmul.f32 0.2, %v7399_v0  ;;  %7729 = vmatpush.bf16.msrb.mxu3 %v12239_v52  ;;  %v7412_v26 = vpop.f32.mrf.mxu0  ;;  %v10420_v42 = vld [vmem:[#allocation9 + $0xb0] sm:$0xf0]  ;;  %v12143_v52 = vor.u32 %v13353_v33, %v12140_v25  ;;  %v7440_v54 = vpop.f32.mrf.mxu2 }
 0x477   :  { %v11951_v63 = vor.u32 %v13305_v53, %v11948_v21  ;;  %v7413_v50 = vadd.f32 %v7412_v26, %v4676_v47  ;;  %v11347_v21 = vor.u32 %v13158_v22, %v11346_v27  ;;  %v10423_v61 = vor.u32 %v12922_v41, %v10420_v42  ;;  %v12978_v26 = vld [vmem:[#allocation9 + $0x254] sm:$0xf] }
 0x478   :  { %7815 = vmatpush.bf16.msrb.mxu1 %v11667_v39  ;;  %v10484_v39 = vld [vmem:[#allocation9 + $0x130] sm:$0xf0]  ;;  %v8203_v9 = vmax.f32 %v7399_v0, %v8187_v15  ;;  %v7400_v6 = vpop.f32.mrf.mxu3  ;;  %v11314_v0 = vld [vmem:[#allocation9 + $0x790] sm:$0xf] }
 0x479   :  { %7716 = vmatpush.bf16.msrb.mxu2 %v11951_v63  ;;  %v7401_v36 = vadd.f32 %v7400_v6, %v7387_v2  ;;  %v7427_v15 = vadd.f32 %v7426_v38, %v7413_v50  ;;  %v10356_v49 = vld [vmem:[#allocation9 + $0x30] sm:$0xf0]  ;;  %v10994_v38 = vld [vmem:[#allocation9 + $0x510] sm:$0xf] }
 0x47a   :  { %7802 = vmatpush.bf16.msrb.mxu0 %v11379_v20  ;;  %v12172_v20 = vld [vmem:[#allocation9 + $0xe68] sm:$0xf0]  ;;  %8219 = vst [vmem:[#allocation12] sm:$0xff] %v8203_v9  ;;  %7730 = vmatpush.bf16.msrb.mxu3 %v12207_v24  ;;  %v13078_v9 = vld [vmem:[#allocation9 + $0x56c] sm:$0xf0] }
 0x47b   :  { %v12175_v45 = vor.u32 %v13361_v59, %v12172_v20  ;;  %v8195_v43 = vmul.f32 0.2, %v7401_v36  ;;  %v10644_v20 = vld [vmem:[#allocation9 + $0x270] sm:$0xf0]  ;;  %v7428_v34 = vpop.f32.mrf.mxu1 }
 0x47c   :  { %7816 = vmatpush.bf16.msrb.mxu1 %v11635_v40  ;;  %v12930_v40 = vld [vmem:[#allocation9 + $0xd4] sm:$0xf] }
 0x47d   :  { %7803 = vmatmul.bf16.vlgmr.msrb.gmra.mxu0 %v13935_v55  ;;  %v10455_v31 = vor.u32 %v12930_v40, %v10452_v28  ;;  %7717 = vmatpush.bf16.msrb.mxu2 %v11919_v62  ;;  %v8211_v17 = vmax.f32 %v7401_v36, %v8195_v43  ;;  %v12906_v62 = vld [vmem:[#allocation9 + $0x14] sm:$0xf]  ;;  %v10647_v28 = vor.u32 %v12978_v26, %v10644_v20  ;;  %v11250_v36 = vld [vmem:[#allocation9 + $0x710] sm:$0xf] }
 0x47e   :  { %7851 = vmatpush.bf16.msra.mxu0 %v10583_v48  ;;  %v10487_v48 = vor.u32 %v12938_v7, %v10484_v39  ;;  %7731 = vmatpush.bf16.msrb.mxu3 %v12175_v45  ;;  %v7414_v63 = vpop.f32.mrf.mxu0  ;;  %v12914_v7 = vld [vmem:[#allocation9 + $0x54] sm:$0xf]  ;;  %v7442_v27 = vpop.f32.mrf.mxu2  ;;  %v13054_v20 = vld [vmem:[#allocation9 + $0x4ac] sm:$0xf0] }
 0x47f   :  { %7817 = vmatmul.bf16.vlgmr.msrb.gmra.mxu1 %v13937_v3  ;;  %v10388_v39 = vld [vmem:[#allocation9 + $0x70] sm:$0xf0]  ;;  %8227 = vst [vmem:[#allocation12 + $0x40] sm:$0xff] %v8211_v17  ;;  %v7415_v40 = vadd.f32 %v7414_v63, %v4676_v47  ;;  %v13062_v17 = vld [vmem:[#allocation9 + $0x4ec] sm:$0xf0] }
 0x480   :  { %7865 = vmatpush.bf16.msra.mxu1 %v10839_v10  ;;  %v10743_v10 = vor.u32 %v13002_v19, %v10740_v14  ;;  %v7454_v24 = vpop.f32.mrf.mxu3  ;;  %v11026_v19 = vld [vmem:[#allocation9 + $0x550] sm:$0xf]  ;;  %v7441_v14 = vadd.f32 %v7440_v54, %v7427_v15  ;;  %v10391_v60 = vor.u32 %v12914_v7, %v10388_v39  ;;  %v13218_v2 = vld [vmem:[#allocation9 + $0x9d4] sm:$0xf] }
 0x481   :  { %7718 = vmatpush.bf16.msrb.mxu2 %v11887_v30  ;;  %v11604_v6 = vld [vmem:[#allocation9 + $0x9f0] sm:$0xf0]  ;;  %v11027_v45 = vor.u32 %v13078_v9, %v11026_v19  ;;  %v7429_v41 = vadd.f32 %v7428_v34, %v7415_v40  ;;  %v11186_v19 = vld [vmem:[#allocation9 + $0x690] sm:$0xf] }
 0x482   :  { %7852 = vmatpush.bf16.msra.mxu0 %v10551_v23  ;;  %v13094_v23 = vld [vmem:[#allocation9 + $0x5ec] sm:$0xf0]  ;;  %7732 = vmatpush.bf16.msrb.mxu3 %v12143_v52  ;;  %v12970_v33 = vld [vmem:[#allocation9 + $0x214] sm:$0xf]  ;;  %v11607_v47 = vor.u32 %v13218_v2, %v11604_v6 }
 0x483   :  { %v11091_v53 = vor.u32 %v13094_v23, %v11090_v5  ;;  %v10612_v25 = vld [vmem:[#allocation9 + $0x230] sm:$0xf0]  ;;  %v13070_v5 = vld [vmem:[#allocation9 + $0x52c] sm:$0xf0] }
 0x484   :  { %7866 = vmatpush.bf16.msra.mxu1 %v10807_v16  ;;  %v10711_v16 = vor.u32 %v12994_v51, %v10708_v46  ;;  %7719 = vmatmul.bf16.vlgmr.msrb.gmra.mxu2 %v14007_v29  ;;  %v7455_v51 = vadd.f32 %v7454_v24, %v7441_v14  ;;  %v10359_v46 = vor.u32 %v12906_v62, %v10356_v49  ;;  %v13282_v22 = vld [vmem:[#allocation9 + $0xbd4] sm:$0xf]  ;;  %v13118_v14 = vld [vmem:[#allocation9 + $0x6ac] sm:$0xf0] }
 0x485   :  { %7767 = vmatpush.bf16.msra.mxu2 %v11091_v53  ;;  %7733 = vmatmul.bf16.vlgmr.msrb.gmra.mxu3 %v14009_v35  ;;  %v11860_v30 = vld [vmem:[#allocation9 + $0xbf0] sm:$0xf0]  ;;  %v10615_v50 = vor.u32 %v12970_v33, %v10612_v25  ;;  %v11187_v6 = vor.u32 %v13118_v14, %v11186_v19  ;;  %v12082_v19 = vld [vmem:[#allocation9 + $0xd90] sm:$0xf] }
 0x486   :  { %7853 = vmatpush.bf16.msra.mxu0 %v10519_v37  ;;  %v13150_v37 = vld [vmem:[#allocation9 + $0x7ac] sm:$0xf0]  ;;  %7781 = vmatpush.bf16.msra.mxu3 %v11347_v21  ;;  %v7468_v23 = vpop.f32.mrf.mxu0  ;;  %v13210_v43 = vld [vmem:[#allocation9 + $0x994] sm:$0xf]  ;;  %v11863_v56 = vor.u32 %v13282_v22, %v11860_v30 }
 0x487   :  { %v11315_v59 = vor.u32 %v13150_v37, %v11314_v0  ;;  %v11572_v52 = vld [vmem:[#allocation9 + $0x9b0] sm:$0xf0]  ;;  %v10962_v21 = vld [vmem:[#allocation9 + $0x4d0] sm:$0xf]  ;;  %v7482_v0 = vpop.f32.mrf.mxu1 }
 0x488   :  { %7867 = vmatpush.bf16.msra.mxu1 %v10775_v44  ;;  %v10679_v44 = vor.u32 %v12986_v57, %v10676_v1  ;;  %v7456_v42 = vpop.f32.mrf.mxu3  ;;  %v7469_v57 = vadd.f32 %v7468_v23, %v7455_v51  ;;  %v7443_v1 = vadd.f32 %v7442_v27, %v7429_v41  ;;  %v11575_v37 = vor.u32 %v13210_v43, %v11572_v52  ;;  %v13274_v63 = vld [vmem:[#allocation9 + $0xb94] sm:$0xf]  ;;  %v11154_v51 = vld [vmem:[#allocation9 + $0x650] sm:$0xf] }
 0x489   :  { %7768 = vmatpush.bf16.msra.mxu2 %v11059_v8  ;;  %v11828_v54 = vld [vmem:[#allocation9 + $0xbb0] sm:$0xf0]  ;;  %v10963_v15 = vor.u32 %v13062_v17, %v10962_v21  ;;  %v10866_v27 = vld [vmem:[#allocation9 + $0x410] sm:$0xf] }
 0x48a   :  { %7854 = vmatpush.bf16.msra.mxu0 %v10487_v48  ;;  %v11282_v48 = vld [vmem:[#allocation9 + $0x750] sm:$0xf]  ;;  %7782 = vmatpush.bf16.msra.mxu3 %v11315_v59  ;;  %v13202_v7 = vld [vmem:[#allocation9 + $0x954] sm:$0xf]  ;;  %v7457_v8 = vadd.f32 %v7456_v42, %v7443_v1  ;;  %v11831_v59 = vor.u32 %v13274_v63, %v11828_v54  ;;  %v7483_v26 = vadd.f32 %v7482_v0, %v7469_v57 }
 0x48b   :  { %v11540_v39 = vld [vmem:[#allocation9 + $0x970] sm:$0xf0]  ;;  %v11122_v43 = vld [vmem:[#allocation9 + $0x610] sm:$0xf] }
 0x48c   :  { %7868 = vmatpush.bf16.msra.mxu1 %v10743_v10  ;;  %v11283_v10 = vor.u32 %v13142_v12, %v11282_v48  ;;  %v11543_v9 = vor.u32 %v13202_v7, %v11540_v39  ;;  %v13266_v48 = vld [vmem:[#allocation9 + $0xb54] sm:$0xf]  ;;  %v13102_v52 = vld [vmem:[#allocation9 + $0x62c] sm:$0xf0] }
 0x48d   :  { %7769 = vmatpush.bf16.msra.mxu2 %v11027_v45  ;;  %v11796_v12 = vld [vmem:[#allocation9 + $0xb70] sm:$0xf0]  ;;  %v10898_v45 = vld [vmem:[#allocation9 + $0x450] sm:$0xf] }
 0x48e   :  { %7855 = vmatpush.bf16.msra.mxu0 %v10455_v31  ;;  %v13134_v31 = vld [vmem:[#allocation9 + $0x72c] sm:$0xf0]  ;;  %7783 = vmatpush.bf16.msra.mxu3 %v11283_v10  ;;  %v13194_v49 = vld [vmem:[#allocation9 + $0x914] sm:$0xf]  ;;  %v11799_v25 = vor.u32 %v13266_v48, %v11796_v12 }
 0x48f   :  { %v11251_v53 = vor.u32 %v13134_v31, %v11250_v36  ;;  %v11508_v40 = vld [vmem:[#allocation9 + $0x930] sm:$0xf0]  ;;  %v7484_v30 = vpop.f32.mrf.mxu1  ;;  %v12370_v0 = vld [vmem:[#allocation9 + $0xfd0] sm:$0xf] }
 0x490   :  { %7869 = vmatpush.bf16.msra.mxu1 %v10711_v16  ;;  %v10995_v16 = vor.u32 %v13070_v5, %v10994_v38  ;;  %v7510_v62 = vpop.f32.mrf.mxu3  ;;  %v13046_v38 = vld [vmem:[#allocation9 + $0x46c] sm:$0xf0]  ;;  %v11511_v5 = vor.u32 %v13194_v49, %v11508_v40  ;;  %v13258_v36 = vld [vmem:[#allocation9 + $0xb14] sm:$0xf] }
 0x491   :  { %v11764_v31 = vld [vmem:[#allocation9 + $0xb30] sm:$0xf0]  ;;  %v10899_v41 = vor.u32 %v13046_v38, %v10898_v45  ;;  %v12338_v48 = vld [vmem:[#allocation9 + $0xf90] sm:$0xf] }
 0x492   :  { %7856 = vmatpush.bf16.msra.mxu0 %v10423_v61  ;;  %v11218_v61 = vld [vmem:[#allocation9 + $0x6d0] sm:$0xf]  ;;  %7770 = vmatpush.bf16.msra.mxu2 %v10995_v16  ;;  %v11476_v22 = vld [vmem:[#allocation9 + $0x8f0] sm:$0xf0] }
 0x493   :  { %7784 = vmatpush.bf16.msra.mxu3 %v11251_v53  ;;  %v11219_v24 = vor.u32 %v13126_v58, %v11218_v61  ;;  %v11767_v53 = vor.u32 %v13258_v36, %v11764_v31  ;;  %v13250_v57 = vld [vmem:[#allocation9 + $0xad4] sm:$0xf]  ;;  %v13350_v58 = vld [vmem:[#allocation9 + $0xdec] sm:$0xf0]  ;;  %v10586_v31 = vld [vmem:[#allocation9 + $0x1d8] sm:$0xf] }
 0x494   :  { %7870 = vmatpush.bf16.msra.mxu1 %v10679_v44  ;;  %v10930_v44 = vld [vmem:[#allocation9 + $0x490] sm:$0xf]  ;;  %v11732_v1 = vld [vmem:[#allocation9 + $0xaf0] sm:$0xf0] }
 0x495   :  { %v10931_v2 = vor.u32 %v13054_v20, %v10930_v44  ;;  %v13178_v54 = vld [vmem:[#allocation9 + $0x894] sm:$0xf]  ;;  %v13406_v12 = vld [vmem:[#allocation9 + $0xfac] sm:$0xf0] }
 0x496   :  { %7857 = vmatpush.bf16.msra.mxu0 %v10391_v60  ;;  %v7496_v60 = vpop.f32.mrf.mxu2  ;;  %7771 = vmatpush.bf16.msra.mxu2 %v10963_v15  ;;  %v11444_v7 = vld [vmem:[#allocation9 + $0x8b0] sm:$0xf0]  ;;  %v13334_v38 = vld [vmem:[#allocation9 + $0xd6c] sm:$0xf0] }
 0x497   :  { %v7497_v34 = vadd.f32 %v7496_v60, %v7483_v26  ;;  %7785 = vmatpush.bf16.msra.mxu3 %v11219_v24  ;;  %v11123_v24 = vor.u32 %v13102_v52, %v11122_v43  ;;  %v13242_v26 = vld [vmem:[#allocation9 + $0xa94] sm:$0xf]  ;;  %v11447_v60 = vor.u32 %v13178_v54, %v11444_v7  ;;  %v13326_v43 = vld [vmem:[#allocation9 + $0xd2c] sm:$0xf0] }
 0x498   :  { %7871 = vmatpush.bf16.msra.mxu1 %v10647_v28  ;;  %v7470_v28 = vpop.f32.mrf.mxu0  ;;  %v7512_v39 = vpop.f32.mrf.mxu3  ;;  %v11700_v20 = vld [vmem:[#allocation9 + $0xab0] sm:$0xf0]  ;;  %v12274_v52 = vld [vmem:[#allocation9 + $0xf10] sm:$0xf] }
 0x499   :  { %v7471_v10 = vadd.f32 %v7470_v28, %v7457_v8  ;;  %v7511_v33 = vadd.f32 %v7510_v62, %v7497_v34  ;;  %v11735_v8 = vor.u32 %v13250_v57, %v11732_v1  ;;  %v13170_v62 = vld [vmem:[#allocation9 + $0x854] sm:$0xf]  ;;  %v11703_v28 = vor.u32 %v13242_v26, %v11700_v20  ;;  %v13031_v57 = vld [vmem:[#allocation9 + $0x3f4] sm:$0xf0]  ;;  %v12242_v54 = vld [vmem:[#allocation9 + $0xed0] sm:$0xf] }
 0x49a   :  { %7858 = vmatpush.bf16.msra.mxu0 %v10359_v46  ;;  %v13110_v46 = vld [vmem:[#allocation9 + $0x66c] sm:$0xf0]  ;;  %7772 = vmatpush.bf16.msra.mxu2 %v10931_v2  ;;  %v11412_v49 = vld [vmem:[#allocation9 + $0x870] sm:$0xf0] }
 0x49b   :  { %v8188_v23 = vmul.f32 0.2, %v7511_v33  ;;  %7786 = vmatpush.bf16.msra.mxu3 %v11187_v6  ;;  %v11155_v42 = vor.u32 %v13110_v46, %v11154_v51  ;;  %v7485_v21 = vadd.f32 %v7484_v30, %v7471_v10  ;;  %v13234_v6 = vld [vmem:[#allocation9 + $0xa54] sm:$0xf]  ;;  %v12050_v10 = vld [vmem:[#allocation9 + $0xd50] sm:$0xf] }
 0x49c   :  { %7872 = vmatpush.bf16.msra.mxu1 %v10615_v50  ;;  %v13038_v50 = vld [vmem:[#allocation9 + $0x42c] sm:$0xf0]  ;;  %v11668_v45 = vld [vmem:[#allocation9 + $0xa70] sm:$0xf0] }
 0x49d   :  { %7859 = vmatmul.bf16.vlgmr.msra.gmra.mxu0 %v13923_v18  ;;  %v8204_v16 = vmax.f32 %v7511_v33, %v8188_v23  ;;  %v10867_v15 = vor.u32 %v13038_v50, %v10866_v27  ;;  %v12339_v33 = vor.u32 %v13406_v12, %v12338_v48  ;;  %v12306_v51 = vld [vmem:[#allocation9 + $0xf50] sm:$0xf]  ;;  %v11380_v36 = vld [vmem:[#allocation9 + $0x830] sm:$0xf0]  ;;  %v12967_v23 = vld [vmem:[#allocation9 + $0x1f4] sm:$0xf0]  ;;  %v11671_v27 = vor.u32 %v13234_v6, %v11668_v45 }
 0x49e   :  { %7907 = vmatpush.bf16.msrb.mxu0 %v11607_v47  ;;  %v13186_v47 = vld [vmem:[#allocation9 + $0x8d4] sm:$0xf]  ;;  %v7498_v17 = vpop.f32.mrf.mxu2  ;;  %7773 = vmatpush.bf16.msra.mxu2 %v10899_v41  ;;  %v13398_v46 = vld [vmem:[#allocation9 + $0xf6c] sm:$0xf0]  ;;  %v10778_v48 = vld [vmem:[#allocation9 + $0x358] sm:$0xf] }
 0x49f   :  { %7873 = vmatmul.bf16.vlgmr.msra.gmra.mxu1 %v13925_v4  ;;  %v11479_v61 = vor.u32 %v13186_v47, %v11476_v22  ;;  %8220 = vst [vmem:[#allocation12 + $0x8] sm:$0xff] %v8204_v16  ;;  %v7499_v63 = vadd.f32 %v7498_v17, %v7485_v21  ;;  %7787 = vmatpush.bf16.msra.mxu3 %v11155_v42  ;;  %v13226_v22 = vld [vmem:[#allocation9 + $0xa14] sm:$0xf]  ;;  %v12018_v50 = vld [vmem:[#allocation9 + $0xd10] sm:$0xf] }
 0x4a0   :  { %7921 = vmatpush.bf16.msrb.mxu1 %v11863_v56  ;;  %v12114_v56 = vld [vmem:[#allocation9 + $0xdd0] sm:$0xf]  ;;  %v12051_v47 = vor.u32 %v13334_v38, %v12050_v10  ;;  %v11636_v30 = vld [vmem:[#allocation9 + $0xa30] sm:$0xf0]  ;;  %v12307_v41 = vor.u32 %v13398_v46, %v12306_v51  ;;  %v10842_v21 = vld [vmem:[#allocation9 + $0x3d8] sm:$0xf] }
 0x4a1   :  { %v7513_v44 = vadd.f32 %v7512_v39, %v7499_v63  ;;  %v13390_v16 = vld [vmem:[#allocation9 + $0xf2c] sm:$0xf0]  ;;  %v11639_v1 = vor.u32 %v13226_v22, %v11636_v30  ;;  %v10554_v17 = vld [vmem:[#allocation9 + $0x198] sm:$0xf]  ;;  %v4677_v46 = vperm.slane %v14033_v32, 2 }
 0x4a2   :  { %7908 = vmatpush.bf16.msrb.mxu0 %v11575_v37  ;;  %v13414_v37 = vld [vmem:[#allocation9 + $0xfec] sm:$0xf0]  ;;  %7774 = vmatpush.bf16.msra.mxu2 %v10867_v15  ;;  %v10810_v39 = vld [vmem:[#allocation9 + $0x398] sm:$0xf] }
 0x4a3   :  { %v12371_v14 = vor.u32 %v13414_v37, %v12370_v0  ;;  %v8196_v34 = vmul.f32 0.2, %v7513_v44  ;;  %7788 = vmatpush.bf16.msra.mxu3 %v11123_v24  ;;  %v10843_v0 = vor.u32 %v13031_v57, %v10842_v21  ;;  %v11986_v37 = vld [vmem:[#allocation9 + $0xcd0] sm:$0xf]  ;;  %v13023_v15 = vld [vmem:[#allocation9 + $0x3b4] sm:$0xf0] }
 0x4a4   :  { %7922 = vmatpush.bf16.msrb.mxu1 %v11831_v59  ;;  %v12115_v59 = vor.u32 %v13350_v58, %v12114_v56  ;;  %v12019_v56 = vor.u32 %v13326_v43, %v12018_v50  ;;  %v12275_v58 = vor.u32 %v13390_v16, %v12274_v52  ;;  %v13318_v63 = vld [vmem:[#allocation9 + $0xcec] sm:$0xf0]  ;;  %v10811_v20 = vor.u32 %v13023_v15, %v10810_v39  ;;  %v13015_v12 = vld [vmem:[#allocation9 + $0x374] sm:$0xf0]  ;;  %v7538_v50 = vpop.f32.mrf.mxu1  ;;  %v13090_v16 = vld [vmem:[#allocation9 + $0x5d4] sm:$0xf] }
 0x4a5   :  { %v8212_v40 = vmax.f32 %v7513_v44, %v8196_v34  ;;  %7775 = vmatmul.bf16.vlgmr.msra.gmra.mxu2 %v13927_v11  ;;  %v13382_v7 = vld [vmem:[#allocation9 + $0xeec] sm:$0xf0]  ;;  %v11987_v44 = vor.u32 %v13318_v63, %v11986_v37  ;;  %v10746_v38 = vld [vmem:[#allocation9 + $0x318] sm:$0xf]  ;;  %v11092_v21 = vld [vmem:[#allocation9 + $0x5f0] sm:$0xf0] }
 0x4a6   :  { %7909 = vmatpush.bf16.msrb.mxu0 %v11543_v9  ;;  %v13342_v9 = vld [vmem:[#allocation9 + $0xdac] sm:$0xf0]  ;;  %7823 = vmatpush.bf16.msrb.mxu2 %v12115_v59  ;;  %v12951_v59 = vld [vmem:[#allocation9 + $0x174] sm:$0xf0]  ;;  %v12243_v26 = vor.u32 %v13382_v7, %v12242_v54  ;;  %v13154_v57 = vld [vmem:[#allocation9 + $0x7d4] sm:$0xf]  ;;  %v7552_v63 = vpop.f32.mrf.mxu2  ;;  %v11095_v54 = vor.u32 %v13090_v16, %v11092_v21 }
 0x4a7   :  { %v12083_v2 = vor.u32 %v13342_v9, %v12082_v19  ;;  %7837 = vmatpush.bf16.msrb.mxu3 %v12371_v14  ;;  %8228 = vst [vmem:[#allocation12 + $0x48] sm:$0xff] %v8212_v40  ;;  %v11954_v19 = vld [vmem:[#allocation9 + $0xc90] sm:$0xf]  ;;  %v12943_v40 = vld [vmem:[#allocation9 + $0x134] sm:$0xf0] }
 0x4a8   :  { %7923 = vmatpush.bf16.msrb.mxu1 %v11799_v25  ;;  %v11415_v25 = vor.u32 %v13170_v62, %v11412_v49  ;;  %7789 = vmatmul.bf16.vlgmr.msra.gmra.mxu3 %v13930_v13  ;;  %v13310_v14 = vld [vmem:[#allocation9 + $0xcac] sm:$0xf0]  ;;  %v10490_v49 = vld [vmem:[#allocation9 + $0x118] sm:$0xf] }
 0x4a9   :  { %v13374_v9 = vld [vmem:[#allocation9 + $0xeac] sm:$0xf0]  ;;  %v11955_v62 = vor.u32 %v13310_v14, %v11954_v19  ;;  %v13007_v51 = vld [vmem:[#allocation9 + $0x334] sm:$0xf0] }
 0x4aa   :  { %7910 = vmatpush.bf16.msrb.mxu0 %v11511_v5  ;;  %v13162_v5 = vld [vmem:[#allocation9 + $0x814] sm:$0xf]  ;;  %7824 = vmatpush.bf16.msrb.mxu2 %v12083_v2  ;;  %v10779_v2 = vor.u32 %v13015_v12, %v10778_v48  ;;  %v11922_v6 = vld [vmem:[#allocation9 + $0xc50] sm:$0xf]  ;;  %v10747_v22 = vor.u32 %v13007_v51, %v10746_v38  ;;  %v10714_v43 = vld [vmem:[#allocation9 + $0x2d8] sm:$0xf] }
 0x4ab   :  { %7838 = vmatpush.bf16.msrb.mxu3 %v12339_v33  ;;  %v11383_v42 = vor.u32 %v13162_v5, %v11380_v36  ;;  %v13302_v45 = vld [vmem:[#allocation9 + $0xc6c] sm:$0xf0]  ;;  %v7524_v33 = vpop.f32.mrf.mxu0  ;;  %v10491_v5 = vor.u32 %v12943_v40, %v10490_v49  ;;  %v12999_v52 = vld [vmem:[#allocation9 + $0x2f4] sm:$0xf0]  ;;  %v13074_v40 = vld [vmem:[#allocation9 + $0x554] sm:$0xf] }
 0x4ac   :  { %7924 = vmatpush.bf16.msrb.mxu1 %v11767_v53  ;;  %v10587_v53 = vor.u32 %v12967_v23, %v10586_v31  ;;  %v12178_v10 = vld [vmem:[#allocation9 + $0xe50] sm:$0xf]  ;;  %v11923_v36 = vor.u32 %v13302_v45, %v11922_v6  ;;  %v10458_v23 = vld [vmem:[#allocation9 + $0xd8] sm:$0xf]  ;;  %v10715_v37 = vor.u32 %v12999_v52, %v10714_v43  ;;  %v11028_v6 = vld [vmem:[#allocation9 + $0x570] sm:$0xf0] }
 0x4ad   :  { %v11890_v31 = vld [vmem:[#allocation9 + $0xc10] sm:$0xf]  ;;  %v10682_v39 = vld [vmem:[#allocation9 + $0x298] sm:$0xf]  ;;  %v13138_v45 = vld [vmem:[#allocation9 + $0x754] sm:$0xf] }
 0x4ae   :  { %7911 = vmatpush.bf16.msrb.mxu0 %v11479_v61  ;;  %7825 = vmatpush.bf16.msrb.mxu2 %v12051_v47  ;;  %v12959_v61 = vld [vmem:[#allocation9 + $0x1b4] sm:$0xf0]  ;;  %v13294_v30 = vld [vmem:[#allocation9 + $0xc2c] sm:$0xf0]  ;;  %v13130_v43 = vld [vmem:[#allocation9 + $0x714] sm:$0xf]  ;;  %v7554_v32 = vpop.f32.mrf.mxu2 }
 0x4af   :  { %7839 = vmatpush.bf16.msrb.mxu3 %v12307_v41  ;;  %v10555_v24 = vor.u32 %v12959_v61, %v10554_v17  ;;  %v12146_v41 = vld [vmem:[#allocation9 + $0xe10] sm:$0xf]  ;;  %v10426_v17 = vld [vmem:[#allocation9 + $0x98] sm:$0xf]  ;;  %v11252_v52 = vld [vmem:[#allocation9 + $0x730] sm:$0xf0] }
 0x4b0   :  { %7925 = vmatpush.bf16.msrb.mxu1 %v11735_v8  ;;  %v10522_v8 = vld [vmem:[#allocation9 + $0x158] sm:$0xf] }
 0x4b1   :  { %v10523_v34 = vor.u32 %v12951_v59, %v10522_v8  ;;  %v12927_v61 = vld [vmem:[#allocation9 + $0xb4] sm:$0xf0]  ;;  %v11060_v59 = vld [vmem:[#allocation9 + $0x5b0] sm:$0xf0] }
 0x4b2   :  { %7912 = vmatpush.bf16.msrb.mxu0 %v11447_v60  ;;  %7826 = vmatpush.bf16.msrb.mxu2 %v12019_v56  ;;  %v12210_v60 = vld [vmem:[#allocation9 + $0xe90] sm:$0xf]  ;;  %v11891_v56 = vor.u32 %v13294_v30, %v11890_v31  ;;  %v12991_v15 = vld [vmem:[#allocation9 + $0x2b4] sm:$0xf0]  ;;  %v10427_v8 = vor.u32 %v12927_v61, %v10426_v17  ;;  %v13066_v30 = vld [vmem:[#allocation9 + $0x514] sm:$0xf] }
 0x4b3   :  { %7840 = vmatpush.bf16.msrb.mxu3 %v12275_v58  ;;  %v7525_v58 = vadd.f32 %v7524_v33, %v4677_v46  ;;  %v7526_v19 = vpop.f32.mrf.mxu0  ;;  %v10394_v14 = vld [vmem:[#allocation9 + $0x58] sm:$0xf]  ;;  %v10683_v48 = vor.u32 %v12991_v15, %v10682_v39  ;;  %v7540_v33 = vpop.f32.mrf.mxu1  ;;  %v10964_v39 = vld [vmem:[#allocation9 + $0x4f0] sm:$0xf0] }
 0x4b4   :  { %7926 = vmatpush.bf16.msrb.mxu1 %v11703_v28  ;;  %v12211_v28 = vor.u32 %v13374_v9, %v12210_v60  ;;  %v12919_v60 = vld [vmem:[#allocation9 + $0x74] sm:$0xf0]  ;;  %v7527_v51 = vadd.f32 %v7526_v19, %v4677_v46  ;;  %v13122_v15 = vld [vmem:[#allocation9 + $0x6d4] sm:$0xf] }
 0x4b5   :  { %v7539_v9 = vadd.f32 %v7538_v50, %v7525_v58  ;;  %v12983_v49 = vld [vmem:[#allocation9 + $0x274] sm:$0xf0]  ;;  %v10996_v50 = vld [vmem:[#allocation9 + $0x530] sm:$0xf0] }
 0x4b6   :  { %7913 = vmatpush.bf16.msrb.mxu0 %v11415_v25  ;;  %7827 = vmatpush.bf16.msrb.mxu2 %v11987_v44  ;;  %v13366_v25 = vld [vmem:[#allocation9 + $0xe6c] sm:$0xf0]  ;;  %v7566_v44 = vpop.f32.mrf.mxu3  ;;  %v12911_v38 = vld [vmem:[#allocation9 + $0x34] sm:$0xf0]  ;;  %v10999_v58 = vor.u32 %v13066_v30, %v10996_v50  ;;  %v13106_v30 = vld [vmem:[#allocation9 + $0x654] sm:$0xf] }
 0x4b7   :  { %7841 = vmatpush.bf16.msrb.mxu3 %v12243_v26  ;;  %v12179_v47 = vor.u32 %v13366_v25, %v12178_v10  ;;  %v13146_v26 = vld [vmem:[#allocation9 + $0x794] sm:$0xf]  ;;  %v10362_v25 = vld [vmem:[#allocation9 + $0x18] sm:$0xf] }
 0x4b8   :  { %7927 = vmatpush.bf16.msrb.mxu1 %v11671_v27  ;;  %v12935_v27 = vld [vmem:[#allocation9 + $0xf4] sm:$0xf0]  ;;  %v11284_v10 = vld [vmem:[#allocation9 + $0x770] sm:$0xf0] }
 0x4b9   :  { %v13223_v31 = vld [vmem:[#allocation9 + $0x9f4] sm:$0xf0] }
 0x4ba   :  { %7914 = vmatpush.bf16.msrb.mxu0 %v11383_v42  ;;  %7828 = vmatpush.bf16.msrb.mxu2 %v11955_v62  ;;  %v13358_v42 = vld [vmem:[#allocation9 + $0xe2c] sm:$0xf0]  ;;  %v10650_v62 = vld [vmem:[#allocation9 + $0x258] sm:$0xf] }
 0x4bb   :  { %7842 = vmatpush.bf16.msrb.mxu3 %v12211_v28  ;;  %v7553_v28 = vadd.f32 %v7552_v63, %v7539_v9  ;;  %v7580_v16 = vpop.f32.mrf.mxu0  ;;  %v13287_v21 = vld [vmem:[#allocation9 + $0xbf4] sm:$0xf0]  ;;  %v13050_v9 = vld [vmem:[#allocation9 + $0x494] sm:$0xf] }
 0x4bc   :  { %7928 = vmatpush.bf16.msrb.mxu1 %v11639_v1  ;;  %v11348_v1 = vld [vmem:[#allocation9 + $0x7f0] sm:$0xf0]  ;;  %v11578_v17 = vld [vmem:[#allocation9 + $0x998] sm:$0xf] }
 0x4bd   :  { %7915 = vmatmul.bf16.vlgmr.msrb.gmra.mxu0 %v13935_v55  ;;  %v11351_v7 = vor.u32 %v13154_v57, %v11348_v1  ;;  %v7541_v57 = vadd.f32 %v7540_v33, %v7527_v51  ;;  %v13215_v61 = vld [vmem:[#allocation9 + $0x9b4] sm:$0xf0] }
 0x4be   :  { %7963 = vmatpush.bf16.msra.mxu0 %v10587_v53  ;;  %v10459_v53 = vor.u32 %v12935_v27, %v10458_v23  ;;  %7829 = vmatpush.bf16.msrb.mxu2 %v11923_v36  ;;  %v11610_v36 = vld [vmem:[#allocation9 + $0x9d8] sm:$0xf]  ;;  %v11031_v23 = vor.u32 %v13074_v40, %v11028_v6  ;;  %v11287_v27 = vor.u32 %v13138_v45, %v11284_v10  ;;  %v7568_v1 = vpop.f32.mrf.mxu3  ;;  %v11188_v40 = vld [vmem:[#allocation9 + $0x6b0] sm:$0xf0] }
 0x4bf   :  { %7929 = vmatmul.bf16.vlgmr.msrb.gmra.mxu1 %v13937_v3  ;;  %7843 = vmatpush.bf16.msrb.mxu3 %v12179_v47  ;;  %v10618_v47 = vld [vmem:[#allocation9 + $0x218] sm:$0xf]  ;;  %v11611_v46 = vor.u32 %v13223_v31, %v11610_v36  ;;  %v13042_v31 = vld [vmem:[#allocation9 + $0x454] sm:$0xf] }
 0x4c0   :  { %7977 = vmatpush.bf16.msra.mxu1 %v10843_v0  ;;  %v12147_v0 = vor.u32 %v13358_v42, %v12146_v41  ;;  %v7567_v41 = vadd.f32 %v7566_v44, %v7553_v28  ;;  %v10363_v42 = vor.u32 %v12911_v38, %v10362_v25  ;;  %v7594_v44 = vpop.f32.mrf.mxu1  ;;  %v13207_v19 = vld [vmem:[#allocation9 + $0x974] sm:$0xf0] }
 0x4c1   :  { %v11802_v6 = vld [vmem:[#allocation9 + $0xb58] sm:$0xf] }
 0x4c2   :  { %7964 = vmatpush.bf16.msra.mxu0 %v10555_v24  ;;  %v13082_v24 = vld [vmem:[#allocation9 + $0x594] sm:$0xf]  ;;  %7830 = vmatpush.bf16.msrb.mxu2 %v11891_v56  ;;  %v7581_v63 = vadd.f32 %v7580_v16, %v7567_v41  ;;  %v13271_v45 = vld [vmem:[#allocation9 + $0xb74] sm:$0xf0] }
 0x4c3   :  { %7844 = vmatpush.bf16.msrb.mxu3 %v12147_v0  ;;  %v11063_v12 = vor.u32 %v13082_v24, %v11060_v59  ;;  %v11255_v0 = vor.u32 %v13130_v43, %v11252_v52  ;;  %v11220_v24 = vld [vmem:[#allocation9 + $0x6f0] sm:$0xf0]  ;;  %v11834_v59 = vld [vmem:[#allocation9 + $0xb98] sm:$0xf]  ;;  %v7582_v51 = vpop.f32.mrf.mxu0 }
 0x4c4   :  { %7978 = vmatpush.bf16.msra.mxu1 %v10811_v20  ;;  %v11316_v20 = vld [vmem:[#allocation9 + $0x7b0] sm:$0xf0]  ;;  %v11514_v25 = vld [vmem:[#allocation9 + $0x918] sm:$0xf] }
 0x4c5   :  { %7831 = vmatmul.bf16.vlgmr.msrb.gmra.mxu2 %v14007_v29  ;;  %v13199_v38 = vld [vmem:[#allocation9 + $0x934] sm:$0xf0]  ;;  %v11156_v41 = vld [vmem:[#allocation9 + $0x670] sm:$0xf0] }
 0x4c6   :  { %7965 = vmatpush.bf16.msra.mxu0 %v10523_v34  ;;  %7879 = vmatpush.bf16.msra.mxu2 %v11095_v54  ;;  %v11319_v34 = vor.u32 %v13146_v26, %v11316_v20  ;;  %v7555_v54 = vadd.f32 %v7554_v32, %v7541_v57  ;;  %v13279_v26 = vld [vmem:[#allocation9 + $0xbb4] sm:$0xf0]  ;;  %v7608_v28 = vpop.f32.mrf.mxu2  ;;  %v13034_v16 = vld [vmem:[#allocation9 + $0x414] sm:$0xf]  ;;  %v11159_v57 = vor.u32 %v13106_v30, %v11156_v41 }
 0x4c7   :  { %7893 = vmatpush.bf16.msra.mxu3 %v11351_v7  ;;  %v11546_v20 = vld [vmem:[#allocation9 + $0x958] sm:$0xf]  ;;  %v12308_v30 = vld [vmem:[#allocation9 + $0xf70] sm:$0xf0] }
 0x4c8   :  { %7979 = vmatpush.bf16.msra.mxu1 %v10779_v2  ;;  %v10395_v2 = vor.u32 %v12919_v60, %v10394_v14  ;;  %7845 = vmatmul.bf16.vlgmr.msrb.gmra.mxu3 %v14009_v35  ;;  %v11223_v60 = vor.u32 %v13122_v15, %v11220_v24  ;;  %v11770_v50 = vld [vmem:[#allocation9 + $0xb18] sm:$0xf]  ;;  %v12116_v15 = vld [vmem:[#allocation9 + $0xdf0] sm:$0xf0] }
 0x4c9   :  { %v7622_v33 = vpop.f32.mrf.mxu3  ;;  %v13263_v43 = vld [vmem:[#allocation9 + $0xb34] sm:$0xf0]  ;;  %v13410_v24 = vld [vmem:[#allocation9 + $0xfd4] sm:$0xf] }
 0x4ca   :  { %7966 = vmatpush.bf16.msra.mxu0 %v10491_v5  ;;  %v10651_v5 = vor.u32 %v12983_v49, %v10650_v62  ;;  %7880 = vmatpush.bf16.msra.mxu2 %v11063_v12  ;;  %v11835_v12 = vor.u32 %v13279_v26, %v11834_v59  ;;  %v10932_v62 = vld [vmem:[#allocation9 + $0x4b0] sm:$0xf0]  ;;  %v11482_v32 = vld [vmem:[#allocation9 + $0x8d8] sm:$0xf] }
 0x4cb   :  { %7894 = vmatpush.bf16.msra.mxu3 %v11319_v34  ;;  %v7595_v34 = vadd.f32 %v7594_v44, %v7581_v63  ;;  %v13114_v49 = vld [vmem:[#allocation9 + $0x694] sm:$0xf]  ;;  %v13255_v63 = vld [vmem:[#allocation9 + $0xaf4] sm:$0xf0] }
 0x4cc   :  { %7980 = vmatpush.bf16.msra.mxu1 %v10747_v22  ;;  %v12975_v22 = vld [vmem:[#allocation9 + $0x234] sm:$0xf0]  ;;  %v11191_v36 = vor.u32 %v13114_v49, %v11188_v40  ;;  %v12372_v44 = vld [vmem:[#allocation9 + $0xff0] sm:$0xf0] }
 0x4cd   :  { %v10619_v56 = vor.u32 %v12975_v22, %v10618_v47  ;;  %v7609_v10 = vadd.f32 %v7608_v28, %v7595_v34  ;;  %v11803_v47 = vor.u32 %v13271_v45, %v11802_v6  ;;  %v10900_v22 = vld [vmem:[#allocation9 + $0x470] sm:$0xf0]  ;;  %v11450_v59 = vld [vmem:[#allocation9 + $0x898] sm:$0xf]  ;;  %v12375_v49 = vor.u32 %v13410_v24, %v12372_v44 }
 0x4ce   :  { %7967 = vmatpush.bf16.msra.mxu0 %v10459_v53  ;;  %v11866_v53 = vld [vmem:[#allocation9 + $0xbd8] sm:$0xf]  ;;  %7881 = vmatpush.bf16.msra.mxu2 %v11031_v23  ;;  %v12084_v28 = vld [vmem:[#allocation9 + $0xdb0] sm:$0xf0] }
 0x4cf   :  { %7895 = vmatpush.bf16.msra.mxu3 %v11287_v27  ;;  %v11867_v7 = vor.u32 %v13287_v21, %v11866_v53  ;;  %v7623_v27 = vadd.f32 %v7622_v33, %v7609_v10  ;;  %v7596_v53 = vpop.f32.mrf.mxu1  ;;  %v10903_v21 = vor.u32 %v13042_v31, %v10900_v22  ;;  %v13183_v26 = vld [vmem:[#allocation9 + $0x8b4] sm:$0xf0]  ;;  %v12340_v6 = vld [vmem:[#allocation9 + $0xfb0] sm:$0xf0] }
 0x4d0   :  { %7981 = vmatpush.bf16.msra.mxu1 %v10715_v37  ;;  %v13058_v37 = vld [vmem:[#allocation9 + $0x4d4] sm:$0xf]  ;;  %v13247_v34 = vld [vmem:[#allocation9 + $0xab4] sm:$0xf0]  ;;  %v11451_v40 = vor.u32 %v13183_v26, %v11450_v59  ;;  %v13019_v26 = vld [vmem:[#allocation9 + $0x39c] sm:$0xf] }
 0x4d1   :  { %v10967_v14 = vor.u32 %v13058_v37, %v10964_v39  ;;  %v8189_v52 = vmul.f32 0.2, %v7623_v27  ;;  %v11738_v37 = vld [vmem:[#allocation9 + $0xad8] sm:$0xf]  ;;  %v13330_v31 = vld [vmem:[#allocation9 + $0xd54] sm:$0xf] }
 0x4d2   :  { %7968 = vmatpush.bf16.msra.mxu0 %v10427_v8  ;;  %v11579_v8 = vor.u32 %v13215_v61, %v11578_v17  ;;  %7882 = vmatpush.bf16.msra.mxu2 %v10999_v58  ;;  %v11124_v17 = vld [vmem:[#allocation9 + $0x630] sm:$0xf0]  ;;  %v11771_v58 = vor.u32 %v13263_v43, %v11770_v50  ;;  %v11418_v10 = vld [vmem:[#allocation9 + $0x858] sm:$0xf]  ;;  %v12963_v50 = vld [vmem:[#allocation9 + $0x1dc] sm:$0xf] }
 0x4d3   :  { %7896 = vmatpush.bf16.msra.mxu3 %v11255_v0  ;;  %v8205_v61 = vmax.f32 %v7623_v27, %v8189_v52  ;;  %v13175_v33 = vld [vmem:[#allocation9 + $0x874] sm:$0xf0]  ;;  %v13394_v22 = vld [vmem:[#allocation9 + $0xf54] sm:$0xf]  ;;  %v10588_v43 = vld [vmem:[#allocation9 + $0x1f8] sm:$0xf0] }
 0x4d4   :  { %7982 = vmatpush.bf16.msra.mxu1 %v10683_v48  ;;  %v7569_v48 = vadd.f32 %v7568_v1, %v7555_v54  ;;  %v10868_v1 = vld [vmem:[#allocation9 + $0x430] sm:$0xf0]  ;;  %v11419_v27 = vor.u32 %v13175_v33, %v11418_v10  ;;  %v11386_v41 = vld [vmem:[#allocation9 + $0x818] sm:$0xf]  ;;  %v12939_v10 = vld [vmem:[#allocation9 + $0x11c] sm:$0xf] }
 0x4d5   :  { %v13346_v54 = vld [vmem:[#allocation9 + $0xdd4] sm:$0xf]  ;;  %8221 = vst [vmem:[#allocation12 + $0x10] sm:$0xff] %v8205_v61  ;;  %v10591_v61 = vor.u32 %v12963_v50, %v10588_v43  ;;  %v10492_v33 = vld [vmem:[#allocation9 + $0x138] sm:$0xf0] }
 0x4d6   :  { %7969 = vmatpush.bf16.msra.mxu0 %v10395_v2  ;;  %v11547_v2 = vor.u32 %v13207_v19, %v11546_v20  ;;  %7883 = vmatpush.bf16.msra.mxu2 %v10967_v14  ;;  %v7583_v23 = vadd.f32 %v7582_v51, %v7569_v48  ;;  %v7624_v20 = vpop.f32.mrf.mxu3  ;;  %v10871_v19 = vor.u32 %v13034_v16, %v10868_v1  ;;  %v12020_v1 = vld [vmem:[#allocation9 + $0xd30] sm:$0xf0]  ;;  %v12931_v43 = vld [vmem:[#allocation9 + $0xdc] sm:$0xf] }
 0x4d7   :  { %7897 = vmatpush.bf16.msra.mxu3 %v11223_v60  ;;  %v12119_v48 = vor.u32 %v13346_v54, %v12116_v15  ;;  %v12955_v54 = vld [vmem:[#allocation9 + $0x19c] sm:$0xf]  ;;  %v13314_v24 = vld [vmem:[#allocation9 + $0xcd4] sm:$0xf] }
 0x4d8   :  { %7983 = vmatpush.bf16.msra.mxu1 %v10651_v5  ;;  %v10935_v5 = vor.u32 %v13050_v9, %v10932_v62  ;;  %v7597_v0 = vadd.f32 %v7596_v53, %v7583_v23  ;;  %v11739_v9 = vor.u32 %v13255_v63, %v11738_v37  ;;  %v13338_v62 = vld [vmem:[#allocation9 + $0xd94] sm:$0xf]  ;;  %v12311_v53 = vor.u32 %v13394_v22, %v12308_v30  ;;  %v14072_v22 = vld [vmem:[#allocation11] sm:$0xff] }
 0x4d9   :  { %v12087_v51 = vor.u32 %v13338_v62, %v12084_v28  ;;  %v11988_v44 = vld [vmem:[#allocation9 + $0xcf0] sm:$0xf0]  ;;  %v13011_v28 = vld [vmem:[#allocation9 + $0x35c] sm:$0xf]  ;;  %v4678_v30 = vperm.slane %v14072_v22, 3 }
 0x4da   :  { %7970 = vmatpush.bf16.msra.mxu0 %v10363_v42  ;;  %v11515_v42 = vor.u32 %v13199_v38, %v11514_v25  ;;  %7884 = vmatpush.bf16.msra.mxu2 %v10935_v5  ;;  %v11674_v5 = vld [vmem:[#allocation9 + $0xa58] sm:$0xf]  ;;  %v12244_v59 = vld [vmem:[#allocation9 + $0xef0] sm:$0xf0] }
 0x4db   :  { %7898 = vmatpush.bf16.msra.mxu3 %v11191_v36  ;;  %v13239_v36 = vld [vmem:[#allocation9 + $0xa74] sm:$0xf0]  ;;  %v11956_v62 = vld [vmem:[#allocation9 + $0xcb0] sm:$0xf0] }
 0x4dc   :  { %7984 = vmatpush.bf16.msra.mxu1 %v10619_v56  ;;  %v13098_v56 = vld [vmem:[#allocation9 + $0x614] sm:$0xf]  ;;  %v11675_v52 = vor.u32 %v13239_v36, %v11674_v5 }
 0x4dd   :  { %7971 = vmatmul.bf16.vlgmr.msra.gmra.mxu0 %v13923_v18  ;;  %v11127_v14 = vor.u32 %v13098_v56, %v11124_v17  ;;  %v13386_v56 = vld [vmem:[#allocation9 + $0xf14] sm:$0xf] }
 0x4de   :  { %8019 = vmatpush.bf16.msrb.mxu0 %v11611_v46  ;;  %v13191_v46 = vld [vmem:[#allocation9 + $0x8f4] sm:$0xf0]  ;;  %7885 = vmatpush.bf16.msra.mxu2 %v10903_v21  ;;  %v12276_v17 = vld [vmem:[#allocation9 + $0xf30] sm:$0xf0] }
 0x4df   :  { %7985 = vmatmul.bf16.vlgmr.msra.gmra.mxu1 %v13925_v4  ;;  %v11483_v39 = vor.u32 %v13191_v46, %v11482_v32  ;;  %7899 = vmatpush.bf16.msra.mxu3 %v11159_v57  ;;  %v11642_v32 = vld [vmem:[#allocation9 + $0xa18] sm:$0xf]  ;;  %v13322_v57 = vld [vmem:[#allocation9 + $0xd14] sm:$0xf] }
 0x4e0   :  { %8033 = vmatpush.bf16.msrb.mxu1 %v11867_v7  ;;  %v7610_v7 = vpop.f32.mrf.mxu2  ;;  %v13231_v46 = vld [vmem:[#allocation9 + $0xa34] sm:$0xf0]  ;;  %v12023_v63 = vor.u32 %v13322_v57, %v12020_v1  ;;  %v11924_v5 = vld [vmem:[#allocation9 + $0xc70] sm:$0xf0]  ;;  %v7650_v57 = vpop.f32.mrf.mxu1  ;;  %v12995_v1 = vld [vmem:[#allocation9 + $0x2dc] sm:$0xf] }
 0x4e1   :  { %v11643_v37 = vor.u32 %v13231_v46, %v11642_v32  ;;  %v13362_v36 = vld [vmem:[#allocation9 + $0xe54] sm:$0xf] }
 0x4e2   :  { %8020 = vmatpush.bf16.msrb.mxu0 %v11579_v8  ;;  %v7611_v8 = vadd.f32 %v7610_v7, %v7597_v0  ;;  %7886 = vmatpush.bf16.msra.mxu2 %v10871_v19  ;;  %v10844_v0 = vld [vmem:[#allocation9 + $0x3f8] sm:$0xf0]  ;;  %v13290_v50 = vld [vmem:[#allocation9 + $0xc14] sm:$0xf] }
 0x4e3   :  { %7900 = vmatpush.bf16.msra.mxu3 %v11127_v14  ;;  %v10556_v7 = vld [vmem:[#allocation9 + $0x1b8] sm:$0xf0]  ;;  %v11991_v14 = vor.u32 %v13314_v24, %v11988_v44  ;;  %v11892_v46 = vld [vmem:[#allocation9 + $0xc30] sm:$0xf0] }
 0x4e4   :  { %8034 = vmatpush.bf16.msrb.mxu1 %v11835_v12  ;;  %v7625_v60 = vadd.f32 %v7624_v20, %v7611_v8  ;;  %v11706_v12 = vld [vmem:[#allocation9 + $0xa98] sm:$0xf]  ;;  %v13378_v8 = vld [vmem:[#allocation9 + $0xed4] sm:$0xf]  ;;  %v10812_v20 = vld [vmem:[#allocation9 + $0x3b8] sm:$0xf0]  ;;  %v10559_v19 = vor.u32 %v12955_v54, %v10556_v7 }
 0x4e5   :  { %v11707_v38 = vor.u32 %v13247_v34, %v11706_v12  ;;  %7887 = vmatmul.bf16.vlgmr.msra.gmra.mxu2 %v13927_v11  ;;  %v10815_v12 = vor.u32 %v13019_v26, %v10812_v20  ;;  %v13306_v34 = vld [vmem:[#allocation9 + $0xc94] sm:$0xf]  ;;  %v12923_v54 = vld [vmem:[#allocation9 + $0x9c] sm:$0xf] }
 0x4e6   :  { %8021 = vmatpush.bf16.msrb.mxu0 %v11547_v2  ;;  %v13402_v2 = vld [vmem:[#allocation9 + $0xf94] sm:$0xf]  ;;  %v8197_v45 = vmul.f32 0.2, %v7625_v60  ;;  %7935 = vmatpush.bf16.msrb.mxu2 %v12119_v48  ;;  %v12247_v48 = vor.u32 %v13378_v8, %v12244_v59  ;;  %v10428_v7 = vld [vmem:[#allocation9 + $0xb8] sm:$0xf0] }
 0x4e7   :  { %7949 = vmatpush.bf16.msrb.mxu3 %v12375_v49  ;;  %v12343_v23 = vor.u32 %v13402_v2, %v12340_v6  ;;  %v13370_v49 = vld [vmem:[#allocation9 + $0xe94] sm:$0xf]  ;;  %v10780_v2 = vld [vmem:[#allocation9 + $0x378] sm:$0xf0] }
 0x4e8   :  { %8035 = vmatpush.bf16.msrb.mxu1 %v11803_v47  ;;  %v8213_v25 = vmax.f32 %v7625_v60, %v8197_v45  ;;  %v12052_v47 = vld [vmem:[#allocation9 + $0xd70] sm:$0xf0]  ;;  %7901 = vmatmul.bf16.vlgmr.msra.gmra.mxu3 %v13930_v13  ;;  %v12947_v60 = vld [vmem:[#allocation9 + $0x15c] sm:$0xf]  ;;  %v11959_v45 = vor.u32 %v13306_v34, %v11956_v62  ;;  %v7664_v44 = vpop.f32.mrf.mxu2 }
 0x4e9   :  { %v12055_v16 = vor.u32 %v13330_v31, %v12052_v47  ;;  %v7636_v31 = vpop.f32.mrf.mxu0  ;;  %v10748_v47 = vld [vmem:[#allocation9 + $0x338] sm:$0xf0] }
 0x4ea   :  { %8022 = vmatpush.bf16.msrb.mxu0 %v11515_v42  ;;  %8229 = vst [vmem:[#allocation12 + $0x50] sm:$0xff] %v8213_v25  ;;  %v13167_v42 = vld [vmem:[#allocation9 + $0x834] sm:$0xf0]  ;;  %7936 = vmatpush.bf16.msrb.mxu2 %v12087_v51  ;;  %v13298_v51 = vld [vmem:[#allocation9 + $0xc54] sm:$0xf] }
 0x4eb   :  { %7950 = vmatpush.bf16.msrb.mxu3 %v12343_v23  ;;  %v11387_v21 = vor.u32 %v13167_v42, %v11386_v41  ;;  %v12180_v23 = vld [vmem:[#allocation9 + $0xe70] sm:$0xf0]  ;;  %v10495_v41 = vor.u32 %v12939_v10, %v10492_v33  ;;  %v11927_v42 = vor.u32 %v13298_v51, %v11924_v5  ;;  %v12987_v26 = vld [vmem:[#allocation9 + $0x29c] sm:$0xf]  ;;  %v11034_v33 = vld [vmem:[#allocation9 + $0x558] sm:$0xf] }
 0x4ec   :  { %8036 = vmatpush.bf16.msrb.mxu1 %v11771_v58  ;;  %v13027_v58 = vld [vmem:[#allocation9 + $0x3dc] sm:$0xf]  ;;  %v13079_v51 = vld [vmem:[#allocation9 + $0x574] sm:$0xf0] }
 0x4ed   :  { %v10847_v15 = vor.u32 %v13027_v58, %v10844_v0  ;;  %v13095_v58 = vld [vmem:[#allocation9 + $0x5f4] sm:$0xf0]  ;;  %v10684_v20 = vld [vmem:[#allocation9 + $0x2b8] sm:$0xf0] }
 0x4ee   :  { %8023 = vmatpush.bf16.msrb.mxu0 %v11483_v39  ;;  %7937 = vmatpush.bf16.msrb.mxu2 %v12055_v16  ;;  %v12279_v39 = vor.u32 %v13386_v56, %v12276_v17  ;;  %v12183_v16 = vor.u32 %v13362_v36, %v12180_v23  ;;  %v10716_v56 = vld [vmem:[#allocation9 + $0x2f8] sm:$0xf0]  ;;  %v11098_v17 = vld [vmem:[#allocation9 + $0x5d8] sm:$0xf] }
 0x4ef   :  { %7951 = vmatpush.bf16.msrb.mxu3 %v12311_v53  ;;  %v13354_v53 = vld [vmem:[#allocation9 + $0xe14] sm:$0xf]  ;;  %v11354_v0 = vld [vmem:[#allocation9 + $0x7d8] sm:$0xf]  ;;  %v10719_v24 = vor.u32 %v12995_v1, %v10716_v56  ;;  %v11099_v8 = vor.u32 %v13095_v58, %v11098_v17  ;;  %v12915_v62 = vld [vmem:[#allocation9 + $0x5c] sm:$0xf] }
 0x4f0   :  { %8037 = vmatpush.bf16.msrb.mxu1 %v11739_v9  ;;  %v10524_v9 = vld [vmem:[#allocation9 + $0x178] sm:$0xf0]  ;;  %v11290_v5 = vld [vmem:[#allocation9 + $0x758] sm:$0xf] }
 0x4f1   :  { %v10527_v6 = vor.u32 %v12947_v60, %v10524_v9  ;;  %v10431_v60 = vor.u32 %v12923_v54, %v10428_v7  ;;  %v13087_v9 = vld [vmem:[#allocation9 + $0x5b4] sm:$0xf0]  ;;  %v7638_v34 = vpop.f32.mrf.mxu0  ;;  %v10652_v10 = vld [vmem:[#allocation9 + $0x278] sm:$0xf0] }
 0x4f2   :  { %8024 = vmatpush.bf16.msrb.mxu0 %v11451_v40  ;;  %7938 = vmatpush.bf16.msrb.mxu2 %v12023_v63  ;;  %v12212_v40 = vld [vmem:[#allocation9 + $0xeb0] sm:$0xf0]  ;;  %v11895_v63 = vor.u32 %v13290_v50, %v11892_v46  ;;  %v13143_v36 = vld [vmem:[#allocation9 + $0x774] sm:$0xf0]  ;;  %v12907_v23 = vld [vmem:[#allocation9 + $0x1c] sm:$0xf] }
 0x4f3   :  { %7952 = vmatpush.bf16.msrb.mxu3 %v12279_v39  ;;  %v12215_v25 = vor.u32 %v13370_v49, %v12212_v40  ;;  %v7637_v39 = vadd.f32 %v7636_v31, %v4678_v30  ;;  %v10396_v49 = vld [vmem:[#allocation9 + $0x78] sm:$0xf0]  ;;  %v7652_v31 = vpop.f32.mrf.mxu1  ;;  %v11002_v46 = vld [vmem:[#allocation9 + $0x518] sm:$0xf] }
 0x4f4   :  { %8038 = vmatpush.bf16.msrb.mxu1 %v11707_v38  ;;  %v10783_v38 = vor.u32 %v13011_v28, %v10780_v2  ;;  %v10687_v28 = vor.u32 %v12987_v26, %v10684_v20  ;;  %v11612_v50 = vld [vmem:[#allocation9 + $0x9f8] sm:$0xf0]  ;;  %v11258_v1 = vld [vmem:[#allocation9 + $0x718] sm:$0xf] }
 0x4f5   :  { %v7651_v40 = vadd.f32 %v7650_v57, %v7637_v39  ;;  %v13071_v57 = vld [vmem:[#allocation9 + $0x534] sm:$0xf0]  ;;  %v13283_v58 = vld [vmem:[#allocation9 + $0xbdc] sm:$0xf] }
 0x4f6   :  { %8025 = vmatpush.bf16.msrb.mxu0 %v11419_v27  ;;  %7939 = vmatpush.bf16.msrb.mxu2 %v11991_v14  ;;  %v13003_v27 = vld [vmem:[#allocation9 + $0x31c] sm:$0xf]  ;;  %v7678_v14 = vpop.f32.mrf.mxu3  ;;  %v13135_v56 = vld [vmem:[#allocation9 + $0x734] sm:$0xf0] }
 0x4f7   :  { %7953 = vmatpush.bf16.msrb.mxu3 %v12247_v48  ;;  %v10751_v32 = vor.u32 %v13003_v27, %v10748_v47  ;;  %v11322_v48 = vld [vmem:[#allocation9 + $0x798] sm:$0xf]  ;;  %v10364_v27 = vld [vmem:[#allocation9 + $0x38] sm:$0xf0]  ;;  %v7639_v47 = vadd.f32 %v7638_v34, %v4678_v30 }
 0x4f8   :  { %8039 = vmatpush.bf16.msrb.mxu1 %v11675_v52  ;;  %v10460_v52 = vld [vmem:[#allocation9 + $0xf8] sm:$0xf0]  ;;  %v13063_v20 = vld [vmem:[#allocation9 + $0x4f4] sm:$0xf0] }
 0x4f9   :  { %v7692_v17 = vpop.f32.mrf.mxu0  ;;  %v13211_v7 = vld [vmem:[#allocation9 + $0x99c] sm:$0xf] }
 0x4fa   :  { %8026 = vmatpush.bf16.msrb.mxu0 %v11387_v21  ;;  %7940 = vmatpush.bf16.msrb.mxu2 %v11959_v45  ;;  %v12148_v21 = vld [vmem:[#allocation9 + $0xe30] sm:$0xf0]  ;;  %v12979_v45 = vld [vmem:[#allocation9 + $0x25c] sm:$0xf] }
 0x4fb   :  { %7954 = vmatpush.bf16.msrb.mxu3 %v12215_v25  ;;  %v7665_v25 = vadd.f32 %v7664_v44, %v7651_v40  ;;  %v11580_v39 = vld [vmem:[#allocation9 + $0x9b8] sm:$0xf0]  ;;  %v10970_v44 = vld [vmem:[#allocation9 + $0x4d8] sm:$0xf] }
 0x4fc   :  { %8040 = vmatpush.bf16.msrb.mxu1 %v11643_v37  ;;  %v13159_v37 = vld [vmem:[#allocation9 + $0x7f4] sm:$0xf0]  ;;  %v13203_v34 = vld [vmem:[#allocation9 + $0x95c] sm:$0xf] }
 0x4fd   :  { %8027 = vmatmul.bf16.vlgmr.msrb.gmra.mxu0 %v13935_v55  ;;  %v11355_v59 = vor.u32 %v13159_v37, %v11354_v0  ;;  %v11868_v0 = vld [vmem:[#allocation9 + $0xbf8] sm:$0xf0]  ;;  %v7653_v37 = vadd.f32 %v7652_v31, %v7639_v47 }
 0x4fe   :  { %8075 = vmatpush.bf16.msra.mxu0 %v10591_v61  ;;  %v10463_v61 = vor.u32 %v12931_v43, %v10460_v52  ;;  %7941 = vmatpush.bf16.msrb.mxu2 %v11927_v42  ;;  %v13219_v42 = vld [vmem:[#allocation9 + $0x9dc] sm:$0xf]  ;;  %v11035_v43 = vor.u32 %v13079_v51, %v11034_v33  ;;  %v11291_v52 = vor.u32 %v13143_v36, %v11290_v5  ;;  %v11194_v33 = vld [vmem:[#allocation9 + $0x698] sm:$0xf] }
 0x4ff   :  { %8041 = vmatmul.bf16.vlgmr.msrb.gmra.mxu1 %v13937_v3  ;;  %7955 = vmatpush.bf16.msrb.mxu3 %v12183_v16  ;;  %v12971_v16 = vld [vmem:[#allocation9 + $0x21c] sm:$0xf]  ;;  %v11615_v30 = vor.u32 %v13219_v42, %v11612_v50  ;;  %v11871_v26 = vor.u32 %v13283_v58, %v11868_v0  ;;  %v10906_v50 = vld [vmem:[#allocation9 + $0x458] sm:$0xf] }
 0x500   :  { %8089 = vmatpush.bf16.msra.mxu1 %v10847_v15  ;;  %v12151_v15 = vor.u32 %v13354_v53, %v12148_v21  ;;  %v7679_v53 = vadd.f32 %v7678_v14, %v7665_v25  ;;  %v10367_v21 = vor.u32 %v12907_v23, %v10364_v27  ;;  %v13127_v14 = vld [vmem:[#allocation9 + $0x6f4] sm:$0xf0]  ;;  %v13267_v5 = vld [vmem:[#allocation9 + $0xb5c] sm:$0xf] }
 0x501   :  { %v13119_v25 = vld [vmem:[#allocation9 + $0x6b4] sm:$0xf0]  ;;  %v11804_v36 = vld [vmem:[#allocation9 + $0xb78] sm:$0xf0] }
 0x502   :  { %8076 = vmatpush.bf16.msra.mxu0 %v10559_v19  ;;  %v11066_v19 = vld [vmem:[#allocation9 + $0x598] sm:$0xf]  ;;  %7942 = vmatpush.bf16.msrb.mxu2 %v11895_v63  ;;  %v7680_v63 = vpop.f32.mrf.mxu3  ;;  %v13195_v27 = vld [vmem:[#allocation9 + $0x91c] sm:$0xf]  ;;  %v11195_v42 = vor.u32 %v13119_v25, %v11194_v33 }
 0x503   :  { %7956 = vmatpush.bf16.msrb.mxu3 %v12151_v15  ;;  %v11067_v2 = vor.u32 %v13087_v9, %v11066_v19  ;;  %v11003_v15 = vor.u32 %v13071_v57, %v11002_v46  ;;  %v11226_v19 = vld [vmem:[#allocation9 + $0x6d8] sm:$0xf]  ;;  %v11583_v9 = vor.u32 %v13211_v7, %v11580_v39  ;;  %v11516_v47 = vld [vmem:[#allocation9 + $0x938] sm:$0xf0] }
 0x504   :  { %8090 = vmatpush.bf16.msra.mxu1 %v10815_v12  ;;  %v13151_v12 = vld [vmem:[#allocation9 + $0x7b4] sm:$0xf0]  ;;  %v11227_v40 = vor.u32 %v13127_v14, %v11226_v19  ;;  %v11772_v57 = vld [vmem:[#allocation9 + $0xb38] sm:$0xf0] }
 0x505   :  { %7943 = vmatmul.bf16.vlgmr.msrb.gmra.mxu2 %v14007_v29  ;;  %v13111_v46 = vld [vmem:[#allocation9 + $0x674] sm:$0xf0] }
 0x506   :  { %8077 = vmatpush.bf16.msra.mxu0 %v10527_v6  ;;  %7991 = vmatpush.bf16.msra.mxu2 %v11099_v8  ;;  %v11323_v6 = vor.u32 %v13151_v12, %v11322_v48  ;;  %v7693_v8 = vadd.f32 %v7692_v17, %v7679_v53  ;;  %v13275_v48 = vld [vmem:[#allocation9 + $0xb9c] sm:$0xf]  ;;  %v11519_v53 = vor.u32 %v13195_v27, %v11516_v47  ;;  %v12378_v19 = vld [vmem:[#allocation9 + $0xfd8] sm:$0xf] }
 0x507   :  { %8005 = vmatpush.bf16.msra.mxu3 %v11355_v59  ;;  %v11836_v12 = vld [vmem:[#allocation9 + $0xbb8] sm:$0xf0]  ;;  %v13415_v14 = vld [vmem:[#allocation9 + $0xff4] sm:$0xf0] }
 0x508   :  { %8091 = vmatpush.bf16.msra.mxu1 %v10783_v38  ;;  %v10399_v38 = vor.u32 %v12915_v62, %v10396_v49  ;;  %7957 = vmatmul.bf16.vlgmr.msrb.gmra.mxu3 %v14009_v35  ;;  %v11548_v62 = vld [vmem:[#allocation9 + $0x978] sm:$0xf0]  ;;  %v10971_v49 = vor.u32 %v13063_v20, %v10970_v44  ;;  %v13351_v20 = vld [vmem:[#allocation9 + $0xdf4] sm:$0xf0] }
 0x509   :  { %v11551_v51 = vor.u32 %v13203_v34, %v11548_v62  ;;  %v13187_v17 = vld [vmem:[#allocation9 + $0x8dc] sm:$0xf]  ;;  %v13343_v25 = vld [vmem:[#allocation9 + $0xdb4] sm:$0xf0] }
 0x50a   :  { %8078 = vmatpush.bf16.msra.mxu0 %v10495_v41  ;;  %v10655_v41 = vor.u32 %v12979_v45, %v10652_v10  ;;  %7992 = vmatpush.bf16.msra.mxu2 %v11067_v2  ;;  %v13055_v10 = vld [vmem:[#allocation9 + $0x4b4] sm:$0xf0]  ;;  %v7734_v23 = vpop.f32.mrf.mxu3  ;;  %v11740_v44 = vld [vmem:[#allocation9 + $0xaf8] sm:$0xf0] }
 0x50b   :  { %8006 = vmatpush.bf16.msra.mxu3 %v11323_v6  ;;  %v11839_v6 = vor.u32 %v13275_v48, %v11836_v12  ;;  %v11452_v48 = vld [vmem:[#allocation9 + $0x8b8] sm:$0xf0] }
 0x50c   :  { %8092 = vmatpush.bf16.msra.mxu1 %v10751_v32  ;;  %v10620_v32 = vld [vmem:[#allocation9 + $0x238] sm:$0xf0] }
 0x50d   :  { %v10623_v54 = vor.u32 %v12971_v16, %v10620_v32  ;;  %v11807_v16 = vor.u32 %v13267_v5, %v11804_v36  ;;  %v11162_v32 = vld [vmem:[#allocation9 + $0x658] sm:$0xf]  ;;  %v13171_v36 = vld [vmem:[#allocation9 + $0x85c] sm:$0xf] }
 0x50e   :  { %8079 = vmatpush.bf16.msra.mxu0 %v10463_v61  ;;  %v7666_v61 = vpop.f32.mrf.mxu2  ;;  %7993 = vmatpush.bf16.msra.mxu2 %v11035_v43  ;;  %v11163_v0 = vor.u32 %v13111_v46, %v11162_v32  ;;  %v13163_v32 = vld [vmem:[#allocation9 + $0x81c] sm:$0xf] }
 0x50f   :  { %8007 = vmatpush.bf16.msra.mxu3 %v11291_v52  ;;  %v7667_v59 = vadd.f32 %v7666_v61, %v7653_v37  ;;  %v11484_v61 = vld [vmem:[#allocation9 + $0x8f8] sm:$0xf0]  ;;  %v13039_v37 = vld [vmem:[#allocation9 + $0x434] sm:$0xf0] }
 0x510   :  { %8093 = vmatpush.bf16.msra.mxu1 %v10719_v24  ;;  %v11259_v24 = vor.u32 %v13135_v56, %v11258_v1  ;;  %v10874_v56 = vld [vmem:[#allocation9 + $0x418] sm:$0xf]  ;;  %v11388_v46 = vld [vmem:[#allocation9 + $0x838] sm:$0xf0] }
 0x511   :  { %v7681_v2 = vadd.f32 %v7680_v63, %v7667_v59  ;;  %v11130_v63 = vld [vmem:[#allocation9 + $0x618] sm:$0xf]  ;;  %v10875_v34 = vor.u32 %v13039_v37, %v10874_v56  ;;  %v11391_v56 = vor.u32 %v13163_v32, %v11388_v46  ;;  %v13075_v32 = vld [vmem:[#allocation9 + $0x55c] sm:$0xf] }
 0x512   :  { %8080 = vmatpush.bf16.msra.mxu0 %v10431_v60  ;;  %v7706_v60 = vpop.f32.mrf.mxu1  ;;  %7994 = vmatpush.bf16.msra.mxu2 %v11003_v15  ;;  %v7736_v12 = vpop.f32.mrf.mxu3  ;;  %v11036_v46 = vld [vmem:[#allocation9 + $0x578] sm:$0xf0] }
 0x513   :  { %8008 = vmatpush.bf16.msra.mxu3 %v11259_v24  ;;  %v7707_v45 = vadd.f32 %v7706_v60, %v7693_v8  ;;  %v13251_v24 = vld [vmem:[#allocation9 + $0xadc] sm:$0xf]  ;;  %v12122_v8 = vld [vmem:[#allocation9 + $0xdd8] sm:$0xf] }
 0x514   :  { %8094 = vmatpush.bf16.msra.mxu1 %v10687_v28  ;;  %v10938_v28 = vld [vmem:[#allocation9 + $0x498] sm:$0xf] }
 0x516   :  { %8081 = vmatpush.bf16.msra.mxu0 %v10399_v38  ;;  %v7720_v38 = vpop.f32.mrf.mxu2  ;;  %7995 = vmatpush.bf16.msra.mxu2 %v10971_v49 }
 0x517   :  { %v7721_v31 = vadd.f32 %v7720_v38, %v7707_v45  ;;  %8009 = vmatpush.bf16.msra.mxu3 %v11227_v40  ;;  %v11743_v40 = vor.u32 %v13251_v24, %v11740_v44  ;;  %v12090_v45 = vld [vmem:[#allocation9 + $0xd98] sm:$0xf] }
 0x518   :  { %8095 = vmatpush.bf16.msra.mxu1 %v10655_v41  ;;  %v7694_v41 = vpop.f32.mrf.mxu0  ;;  %v12346_v38 = vld [vmem:[#allocation9 + $0xf98] sm:$0xf]  ;;  %v12091_v47 = vor.u32 %v13343_v25, %v12090_v45  ;;  %v13155_v25 = vld [vmem:[#allocation9 + $0x7dc] sm:$0xf] }
 0x519   :  { %v7695_v43 = vadd.f32 %v7694_v41, %v7681_v2  ;;  %v7735_v52 = vadd.f32 %v7734_v23, %v7721_v31  ;;  %v13243_v2 = vld [vmem:[#allocation9 + $0xa9c] sm:$0xf]  ;;  %v13383_v24 = vld [vmem:[#allocation9 + $0xef4] sm:$0xf0] }
 0x51a   :  { %8082 = vmatpush.bf16.msra.mxu0 %v10367_v21  ;;  %v13259_v21 = vld [vmem:[#allocation9 + $0xb1c] sm:$0xf] }
 0x51b   :  { %v8190_v1 = vmul.f32 0.2, %v7735_v52  ;;  %8010 = vmatpush.bf16.msra.mxu3 %v11195_v42  ;;  %v11775_v39 = vor.u32 %v13259_v21, %v11772_v57  ;;  %v11420_v31 = vld [vmem:[#allocation9 + $0x878] sm:$0xf0]  ;;  %v12058_v42 = vld [vmem:[#allocation9 + $0xd58] sm:$0xf] }
 0x51c   :  { %8096 = vmatpush.bf16.msra.mxu1 %v10623_v54  ;;  %v13103_v54 = vld [vmem:[#allocation9 + $0x634] sm:$0xf0]  ;;  %v13235_v41 = vld [vmem:[#allocation9 + $0xa5c] sm:$0xf] }
 0x51d   :  { %8083 = vmatmul.bf16.vlgmr.msra.gmra.mxu0 %v13923_v18  ;;  %v10939_v18 = vor.u32 %v13055_v10, %v10938_v28  ;;  %v8206_v7 = vmax.f32 %v7735_v52, %v8190_v1  ;;  %v11131_v62 = vor.u32 %v13103_v54, %v11130_v63  ;;  %v12123_v28 = vor.u32 %v13351_v20, %v12122_v8  ;;  %v13335_v52 = vld [vmem:[#allocation9 + $0xd74] sm:$0xf0]  ;;  %v13227_v57 = vld [vmem:[#allocation9 + $0xa1c] sm:$0xf] }
 0x51e   :  { %8131 = vmatpush.bf16.msrb.mxu0 %v11615_v30  ;;  %v7708_v30 = vpop.f32.mrf.mxu1  ;;  %v7722_v59 = vpop.f32.mrf.mxu2  ;;  %v12379_v10 = vor.u32 %v13415_v14, %v12378_v19  ;;  %v12059_v21 = vor.u32 %v13335_v52, %v12058_v42  ;;  %v12218_v20 = vld [vmem:[#allocation9 + $0xe98] sm:$0xf]  ;;  %v13147_v42 = vld [vmem:[#allocation9 + $0x79c] sm:$0xf] }
 0x51f   :  { %8097 = vmatmul.bf16.vlgmr.msra.gmra.mxu1 %v13925_v4  ;;  %v13047_v4 = vld [vmem:[#allocation9 + $0x474] sm:$0xf0]  ;;  %7996 = vmatpush.bf16.msra.mxu2 %v10939_v18  ;;  %v7709_v15 = vadd.f32 %v7708_v30, %v7695_v43  ;;  %8222 = vst [vmem:[#allocation12 + $0x18] sm:$0xff] %v8206_v7  ;;  %v11676_v18 = vld [vmem:[#allocation9 + $0xa78] sm:$0xf0]  ;;  %v11423_v43 = vor.u32 %v13171_v36, %v11420_v31 }
 0x520   :  { %8145 = vmatpush.bf16.msrb.mxu1 %v11871_v26  ;;  %v10907_v58 = vor.u32 %v13047_v4, %v10906_v50  ;;  %v11487_v26 = vor.u32 %v13187_v17, %v11484_v61  ;;  %8011 = vmatpush.bf16.msra.mxu3 %v11163_v0  ;;  %v13399_v4 = vld [vmem:[#allocation9 + $0xf74] sm:$0xf0]  ;;  %v11644_v17 = vld [vmem:[#allocation9 + $0xa38] sm:$0xf0] }
 0x521   :  { %v7723_v60 = vadd.f32 %v7722_v59, %v7709_v15  ;;  %v12026_v61 = vld [vmem:[#allocation9 + $0xd18] sm:$0xf]  ;;  %v11647_v37 = vor.u32 %v13227_v57, %v11644_v17  ;;  %v11292_v57 = vld [vmem:[#allocation9 + $0x778] sm:$0xf0]  ;;  %v11039_v17 = vor.u32 %v13075_v32, %v11036_v46 }
 0x522   :  { %8132 = vmatpush.bf16.msrb.mxu0 %v11583_v9  ;;  %v13179_v9 = vld [vmem:[#allocation9 + $0x89c] sm:$0xf]  ;;  %v13327_v30 = vld [vmem:[#allocation9 + $0xd34] sm:$0xf0] }
 0x523   :  { %7997 = vmatpush.bf16.msra.mxu2 %v10907_v58  ;;  %v7737_v49 = vadd.f32 %v7736_v12, %v7723_v60  ;;  %v11455_v33 = vor.u32 %v13179_v9, %v11452_v48  ;;  %v12282_v58 = vld [vmem:[#allocation9 + $0xf18] sm:$0xf]  ;;  %v12027_v63 = vor.u32 %v13327_v30, %v12026_v61  ;;  %v7748_v12 = vpop.f32.mrf.mxu0  ;;  %v13067_v30 = vld [vmem:[#allocation9 + $0x51c] sm:$0xf] }
 0x524   :  { %8146 = vmatpush.bf16.msrb.mxu1 %v11839_v6  ;;  %v11708_v6 = vld [vmem:[#allocation9 + $0xab8] sm:$0xf0]  ;;  %8012 = vmatpush.bf16.msra.mxu3 %v11131_v62  ;;  %v13391_v0 = vld [vmem:[#allocation9 + $0xf34] sm:$0xf0] }
 0x525   :  { %v8198_v5 = vmul.f32 0.2, %v7737_v49  ;;  %v11711_v27 = vor.u32 %v13243_v2, %v11708_v6  ;;  %v12283_v54 = vor.u32 %v13391_v0, %v12282_v58  ;;  %v11994_v7 = vld [vmem:[#allocation9 + $0xcd8] sm:$0xf]  ;;  %v11004_v58 = vld [vmem:[#allocation9 + $0x538] sm:$0xf0] }
 0x526   :  { %8133 = vmatpush.bf16.msrb.mxu0 %v11551_v51  ;;  %v13407_v51 = vld [vmem:[#allocation9 + $0xfb4] sm:$0xf0]  ;;  %v7762_v45 = vpop.f32.mrf.mxu1  ;;  %v13411_v46 = vld [vmem:[#allocation9 + $0xfdc] sm:$0xf] }
 0x527   :  { %7998 = vmatpush.bf16.msra.mxu2 %v10875_v34  ;;  %v8214_v23 = vmax.f32 %v7737_v49, %v8198_v5  ;;  %v12347_v50 = vor.u32 %v13407_v51, %v12346_v38  ;;  %8013 = vmatmul.bf16.vlgmr.msra.gmra.mxu3 %v13930_v13  ;;  %v12250_v15 = vld [vmem:[#allocation9 + $0xed8] sm:$0xf]  ;;  %v4679_v49 = vperm.slane %v14072_v22, 4  ;;  %v11356_v38 = vld [vmem:[#allocation9 + $0x7f8] sm:$0xf0] }
 0x528   :  { %8147 = vmatpush.bf16.msrb.mxu1 %v11807_v16  ;;  %8061 = vmatpush.bf16.msrb.mxu3 %v12379_v10  ;;  %v12314_v16 = vld [vmem:[#allocation9 + $0xf58] sm:$0xf]  ;;  %v12251_v8 = vor.u32 %v13383_v24, %v12250_v15  ;;  %v13091_v10 = vld [vmem:[#allocation9 + $0x5dc] sm:$0xf]  ;;  %v11007_v24 = vor.u32 %v13067_v30, %v11004_v58 }
 0x529   :  { %8230 = vst [vmem:[#allocation12 + $0x58] sm:$0xff] %v8214_v23  ;;  %v12315_v1 = vor.u32 %v13399_v4, %v12314_v16  ;;  %v11962_v59 = vld [vmem:[#allocation9 + $0xc98] sm:$0xf]  ;;  %v7749_v5 = vadd.f32 %v7748_v12, %v4679_v49  ;;  %v7776_v23 = vpop.f32.mrf.mxu2  ;;  %v13051_v12 = vld [vmem:[#allocation9 + $0x49c] sm:$0xf] }
 0x52a   :  { %8134 = vmatpush.bf16.msrb.mxu0 %v11519_v53  ;;  %7999 = vmatmul.bf16.vlgmr.msra.gmra.mxu2 %v13927_v11  ;;  %v11679_v53 = vor.u32 %v13235_v41, %v11676_v18  ;;  %v13375_v19 = vld [vmem:[#allocation9 + $0xeb4] sm:$0xf0]  ;;  %v11068_v41 = vld [vmem:[#allocation9 + $0x5b8] sm:$0xf0] }
 0x52b   :  { %8047 = vmatpush.bf16.msrb.mxu2 %v12123_v28  ;;  %v12219_v60 = vor.u32 %v13375_v19, %v12218_v20  ;;  %v11930_v9 = vld [vmem:[#allocation9 + $0xc58] sm:$0xf]  ;;  %v7790_v18 = vpop.f32.mrf.mxu3  ;;  %v7763_v52 = vadd.f32 %v7762_v45, %v7749_v5  ;;  %v13123_v19 = vld [vmem:[#allocation9 + $0x6dc] sm:$0xf] }
 0x52c   :  { %8148 = vmatpush.bf16.msrb.mxu1 %v11775_v39  ;;  %8062 = vmatpush.bf16.msrb.mxu3 %v12347_v50  ;;  %v13319_v39 = vld [vmem:[#allocation9 + $0xcf4] sm:$0xf0]  ;;  %v11324_v50 = vld [vmem:[#allocation9 + $0x7b8] sm:$0xf0] }
 0x52d   :  { %v11995_v44 = vor.u32 %v13319_v39, %v11994_v7  ;;  %v13303_v48 = vld [vmem:[#allocation9 + $0xc74] sm:$0xf0]  ;;  %v11327_v4 = vor.u32 %v13147_v42, %v11324_v50  ;;  %v13107_v5 = vld [vmem:[#allocation9 + $0x65c] sm:$0xf] }
 0x52e   :  { %8135 = vmatpush.bf16.msrb.mxu0 %v11487_v26  ;;  %v13311_v26 = vld [vmem:[#allocation9 + $0xcb4] sm:$0xf0]  ;;  %v13099_v42 = vld [vmem:[#allocation9 + $0x61c] sm:$0xf] }
 0x52f   :  { %8048 = vmatpush.bf16.msrb.mxu2 %v12091_v47  ;;  %v11963_v14 = vor.u32 %v13311_v26, %v11962_v59  ;;  %v12186_v34 = vld [vmem:[#allocation9 + $0xe58] sm:$0xf]  ;;  %v13083_v47 = vld [vmem:[#allocation9 + $0x59c] sm:$0xf] }
 0x530   :  { %8149 = vmatpush.bf16.msrb.mxu1 %v11743_v40  ;;  %8063 = vmatpush.bf16.msrb.mxu3 %v12315_v1  ;;  %v13367_v62 = vld [vmem:[#allocation9 + $0xe74] sm:$0xf0]  ;;  %v11071_v16 = vor.u32 %v13083_v47, %v11068_v41  ;;  %v7764_v1 = vpop.f32.mrf.mxu1  ;;  %v10972_v59 = vld [vmem:[#allocation9 + $0x4f8] sm:$0xf0] }
 0x531   :  { %v12187_v40 = vor.u32 %v13367_v62, %v12186_v34  ;;  %v11898_v28 = vld [vmem:[#allocation9 + $0xc18] sm:$0xf]  ;;  %v7778_v7 = vpop.f32.mrf.mxu2  ;;  %v10940_v34 = vld [vmem:[#allocation9 + $0x4b8] sm:$0xf0] }
 0x532   :  { %8136 = vmatpush.bf16.msrb.mxu0 %v11455_v33  ;;  %v13295_v2 = vld [vmem:[#allocation9 + $0xc34] sm:$0xf0]  ;;  %v11100_v33 = vld [vmem:[#allocation9 + $0x5f8] sm:$0xf0]  ;;  %v10943_v45 = vor.u32 %v13051_v12, %v10940_v34 }
 0x533   :  { %8049 = vmatpush.bf16.msrb.mxu2 %v12059_v21  ;;  %v12154_v6 = vld [vmem:[#allocation9 + $0xe18] sm:$0xf]  ;;  %v11899_v51 = vor.u32 %v13295_v2, %v11898_v28  ;;  %v11103_v31 = vor.u32 %v13091_v10, %v11100_v33  ;;  %v13139_v21 = vld [vmem:[#allocation9 + $0x75c] sm:$0xf]  ;;  %v7792_v15 = vpop.f32.mrf.mxu3 }
 0x534   :  { %8150 = vmatpush.bf16.msrb.mxu1 %v11711_v27  ;;  %8064 = vmatpush.bf16.msrb.mxu3 %v12283_v54  ;;  %v11359_v27 = vor.u32 %v13155_v25, %v11356_v38  ;;  %v11295_v61 = vor.u32 %v13139_v21, %v11292_v57  ;;  %v13043_v33 = vld [vmem:[#allocation9 + $0x45c] sm:$0xf] }
 0x535   :  { %v10908_v25 = vld [vmem:[#allocation9 + $0x478] sm:$0xf0] }
 0x536   :  { %8137 = vmatpush.bf16.msrb.mxu0 %v11423_v43  ;;  %v7750_v43 = vpop.f32.mrf.mxu0  ;;  %v13035_v41 = vld [vmem:[#allocation9 + $0x41c] sm:$0xf] }
 0x537   :  { %8050 = vmatpush.bf16.msrb.mxu2 %v12027_v63  ;;  %v11260_v63 = vld [vmem:[#allocation9 + $0x738] sm:$0xf0] }
 0x538   :  { %8151 = vmatpush.bf16.msrb.mxu1 %v11679_v53  ;;  %8065 = vmatpush.bf16.msrb.mxu3 %v12251_v8  ;;  %v7777_v53 = vadd.f32 %v7776_v23, %v7763_v52  ;;  %v13059_v8 = vld [vmem:[#allocation9 + $0x4dc] sm:$0xf]  ;;  %v10911_v23 = vor.u32 %v13043_v33, %v10908_v25 }
 0x539   :  { %v11132_v52 = vld [vmem:[#allocation9 + $0x638] sm:$0xf0] }
 0x53a   :  { %8138 = vmatpush.bf16.msrb.mxu0 %v11391_v56  ;;  %v7751_v56 = vadd.f32 %v7750_v43, %v4679_v49  ;;  %v7791_v0 = vadd.f32 %v7790_v18, %v7777_v53  ;;  %v10876_v18 = vld [vmem:[#allocation9 + $0x438] sm:$0xf0] }
 0x53b   :  { %8051 = vmatpush.bf16.msrb.mxu2 %v11995_v44  ;;  %v12380_v53 = vld [vmem:[#allocation9 + $0xff8] sm:$0xf0]  ;;  %v10879_v57 = vor.u32 %v13035_v41, %v10876_v18 }
 0x53c   :  { %8152 = vmatpush.bf16.msrb.mxu1 %v11647_v37  ;;  %8066 = vmatpush.bf16.msrb.mxu3 %v12219_v60  ;;  %v13131_v37 = vld [vmem:[#allocation9 + $0x71c] sm:$0xf]  ;;  %v7765_v39 = vadd.f32 %v7764_v1, %v7751_v56  ;;  %v7818_v60 = vpop.f32.mrf.mxu1  ;;  %v11135_v56 = vor.u32 %v13099_v42, %v11132_v52  ;;  %v12383_v30 = vor.u32 %v13411_v46, %v12380_v53 }
 0x53d   :  { %8139 = vmatmul.bf16.vlgmr.msrb.gmra.mxu0 %v13935_v55  ;;  %v11931_v55 = vor.u32 %v13303_v48, %v11930_v9  ;;  %v11263_v44 = vor.u32 %v13131_v37, %v11260_v63  ;;  %v10975_v9 = vor.u32 %v13059_v8, %v10972_v59  ;;  %v13339_v58 = vld [vmem:[#allocation9 + $0xd9c] sm:$0xf] }
 0x53e   :  { %v7804_v54 = vpop.f32.mrf.mxu0  ;;  %v7779_v20 = vadd.f32 %v7778_v7, %v7765_v39  ;;  %v13403_v37 = vld [vmem:[#allocation9 + $0xf9c] sm:$0xf] }
 0x53f   :  { %8153 = vmatmul.bf16.vlgmr.msrb.gmra.mxu1 %v13937_v3  ;;  %8052 = vmatpush.bf16.msrb.mxu2 %v11963_v14  ;;  %v13359_v3 = vld [vmem:[#allocation9 + $0xe34] sm:$0xf0]  ;;  %v7805_v26 = vadd.f32 %v7804_v54, %v7791_v0  ;;  %v11228_v14 = vld [vmem:[#allocation9 + $0x6f8] sm:$0xf0] }
 0x540   :  { %8067 = vmatpush.bf16.msrb.mxu3 %v12187_v40  ;;  %v12155_v36 = vor.u32 %v13359_v3, %v12154_v6  ;;  %v11231_v48 = vor.u32 %v13123_v19, %v11228_v14  ;;  %v7793_v62 = vadd.f32 %v7792_v15, %v7779_v20  ;;  %v11196_v40 = vld [vmem:[#allocation9 + $0x6b8] sm:$0xf0] }
 0x541   :  { %v7819_v49 = vadd.f32 %v7818_v60, %v7805_v26  ;;  %v12092_v0 = vld [vmem:[#allocation9 + $0xdb8] sm:$0xf0] }
 0x542   :  { %v12348_v63 = vld [vmem:[#allocation9 + $0xfb8] sm:$0xf0]  ;;  %v12095_v7 = vor.u32 %v13339_v58, %v12092_v0 }
 0x543   :  { %8053 = vmatpush.bf16.msrb.mxu2 %v11931_v55  ;;  %v13115_v55 = vld [vmem:[#allocation9 + $0x69c] sm:$0xf]  ;;  %v12351_v15 = vor.u32 %v13403_v37, %v12348_v63 }
 0x544   :  { %8068 = vmatpush.bf16.msrb.mxu3 %v12155_v36  ;;  %v11199_v10 = vor.u32 %v13115_v55, %v11196_v40  ;;  %v11164_v36 = vld [vmem:[#allocation9 + $0x678] sm:$0xf0] }
 0x545   :  { %v11167_v47 = vor.u32 %v13107_v5, %v11164_v36  ;;  %v13395_v8 = vld [vmem:[#allocation9 + $0xf5c] sm:$0xf] }
 0x546   :  { %v7806_v3 = vpop.f32.mrf.mxu0  ;;  %v12316_v59 = vld [vmem:[#allocation9 + $0xf78] sm:$0xf0] }
 0x547   :  { %8054 = vmatpush.bf16.msrb.mxu2 %v11899_v51  ;;  %8069 = vmatmul.bf16.vlgmr.msrb.gmra.mxu3 %v14009_v35  ;;  %v7807_v38 = vadd.f32 %v7806_v3, %v7793_v62  ;;  %v12319_v20 = vor.u32 %v13395_v8, %v12316_v59  ;;  %v13323_v19 = vld [vmem:[#allocation9 + $0xd1c] sm:$0xf] }
 0x548   :  { %8117 = vmatpush.bf16.msra.mxu3 %v11359_v27  ;;  %v7832_v28 = vpop.f32.mrf.mxu2  ;;  %v7820_v27 = vpop.f32.mrf.mxu1  ;;  %v12028_v14 = vld [vmem:[#allocation9 + $0xd38] sm:$0xf0] }
 0x549   :  { %v7833_v2 = vadd.f32 %v7832_v28, %v7819_v49  ;;  %v7821_v43 = vadd.f32 %v7820_v27, %v7807_v38  ;;  %v13387_v60 = vld [vmem:[#allocation9 + $0xf1c] sm:$0xf]  ;;  %v4680_v27 = vperm.slane %v14072_v22, 5 }
 0x54a   :  { %8055 = vmatmul.bf16.vlgmr.msrb.gmra.mxu2 %v14007_v29  ;;  %v13315_v34 = vld [vmem:[#allocation9 + $0xcdc] sm:$0xf] }
 0x54b   :  { %8103 = vmatpush.bf16.msra.mxu2 %v11103_v31  ;;  %v7846_v6 = vpop.f32.mrf.mxu3  ;;  %v11996_v62 = vld [vmem:[#allocation9 + $0xcf8] sm:$0xf0] }
 0x54c   :  { %8118 = vmatpush.bf16.msra.mxu3 %v11327_v4  ;;  %v7847_v51 = vadd.f32 %v7846_v6, %v7833_v2  ;;  %v12124_v4 = vld [vmem:[#allocation9 + $0xdf8] sm:$0xf0]  ;;  %v11999_v55 = vor.u32 %v13315_v34, %v11996_v62 }
 0x54d   :  { %v12252_v49 = vld [vmem:[#allocation9 + $0xef8] sm:$0xf0] }
 0x54e   :  { %v8191_v31 = vmul.f32 0.2, %v7847_v51  ;;  %v13307_v40 = vld [vmem:[#allocation9 + $0xc9c] sm:$0xf] }
 0x54f   :  { %8104 = vmatpush.bf16.msra.mxu2 %v11071_v16  ;;  %v13347_v16 = vld [vmem:[#allocation9 + $0xddc] sm:$0xf] }
 0x550   :  { %8119 = vmatpush.bf16.msra.mxu3 %v11295_v61  ;;  %v8207_v50 = vmax.f32 %v7847_v51, %v8191_v31  ;;  %v7834_v32 = vpop.f32.mrf.mxu2  ;;  %v11964_v28 = vld [vmem:[#allocation9 + $0xcb8] sm:$0xf0]  ;;  %v7860_v51 = vpop.f32.mrf.mxu0 }
 0x551   :  { %v7835_v21 = vadd.f32 %v7834_v32, %v7821_v43  ;;  %v13371_v2 = vld [vmem:[#allocation9 + $0xe9c] sm:$0xf]  ;;  %v7874_v18 = vpop.f32.mrf.mxu1  ;;  %v7861_v43 = vadd.f32 %v7860_v51, %v4680_v27 }
 0x552   :  { %8223 = vst [vmem:[#allocation12 + $0x20] sm:$0xff] %v8207_v50  ;;  %v12220_v6 = vld [vmem:[#allocation9 + $0xeb8] sm:$0xf0] }
 0x553   :  { %8105 = vmatpush.bf16.msra.mxu2 %v11039_v17  ;;  %v7848_v1 = vpop.f32.mrf.mxu3  ;;  %v12127_v17 = vor.u32 %v13347_v16, %v12124_v4  ;;  %v12223_v3 = vor.u32 %v13371_v2, %v12220_v6  ;;  %v11932_v33 = vld [vmem:[#allocation9 + $0xc78] sm:$0xf0]  ;;  %v7875_v32 = vadd.f32 %v7874_v18, %v7861_v43 }
 0x554   :  { %8120 = vmatpush.bf16.msra.mxu3 %v11263_v44  ;;  %v7849_v61 = vadd.f32 %v7848_v1, %v7835_v21  ;;  %v12060_v44 = vld [vmem:[#allocation9 + $0xd78] sm:$0xf0] }
 0x555   :  { %v13363_v25 = vld [vmem:[#allocation9 + $0xe5c] sm:$0xf] }
 0x556   :  { %v8199_v54 = vmul.f32 0.2, %v7849_v61  ;;  %v12188_v38 = vld [vmem:[#allocation9 + $0xe78] sm:$0xf0] }
 0x557   :  { %8106 = vmatpush.bf16.msra.mxu2 %v11007_v24  ;;  %v13331_v24 = vld [vmem:[#allocation9 + $0xd5c] sm:$0xf]  ;;  %v12191_v36 = vor.u32 %v13363_v25, %v12188_v38 }
 0x558   :  { %8121 = vmatpush.bf16.msra.mxu3 %v11231_v48  ;;  %v8215_v39 = vmax.f32 %v7849_v61, %v8199_v54  ;;  %v12063_v26 = vor.u32 %v13331_v24, %v12060_v44  ;;  %v12031_v48 = vor.u32 %v13323_v19, %v12028_v14  ;;  %v13291_v31 = vld [vmem:[#allocation9 + $0xc1c] sm:$0xf]  ;;  %v7862_v4 = vpop.f32.mrf.mxu0 }
 0x559   :  { %v12156_v41 = vld [vmem:[#allocation9 + $0xe38] sm:$0xf0]  ;;  %v7876_v53 = vpop.f32.mrf.mxu1  ;;  %v7863_v21 = vadd.f32 %v7862_v4, %v4680_v27 }
 0x55a   :  { %8231 = vst [vmem:[#allocation12 + $0x60] sm:$0xff] %v8215_v39 }
 0x55b   :  { %8107 = vmatpush.bf16.msra.mxu2 %v10975_v9  ;;  %v12284_v9 = vld [vmem:[#allocation9 + $0xf38] sm:$0xf0] }
 0x55c   :  { %8122 = vmatpush.bf16.msra.mxu3 %v11199_v10  ;;  %v12287_v12 = vor.u32 %v13387_v60, %v12284_v9  ;;  %v13299_v10 = vld [vmem:[#allocation9 + $0xc5c] sm:$0xf] }
 0x55d   :  { %v11935_v5 = vor.u32 %v13299_v10, %v11932_v33 }
 0x55f   :  { %8108 = vmatpush.bf16.msra.mxu2 %v10943_v45  ;;  %v11967_v45 = vor.u32 %v13307_v40, %v11964_v28 }
 0x560   :  { %8123 = vmatpush.bf16.msra.mxu3 %v11167_v47  ;;  %v13355_v47 = vld [vmem:[#allocation9 + $0xe1c] sm:$0xf]  ;;  %v7916_v1 = vpop.f32.mrf.mxu0 }
 0x561   :  { %v12159_v50 = vor.u32 %v13355_v47, %v12156_v41  ;;  %v7930_v0 = vpop.f32.mrf.mxu1 }
 0x563   :  { %8109 = vmatpush.bf16.msra.mxu2 %v10911_v23  ;;  %v11900_v23 = vld [vmem:[#allocation9 + $0xc38] sm:$0xf0] }
 0x564   :  { %8124 = vmatpush.bf16.msra.mxu3 %v11135_v56  ;;  %v11903_v42 = vor.u32 %v13291_v31, %v11900_v23 }
 0x567   :  { %8110 = vmatpush.bf16.msra.mxu2 %v10879_v57  ;;  %8125 = vmatmul.bf16.vlgmr.msra.gmra.mxu3 %v13930_v13 }
 0x568   :  { %8173 = vmatpush.bf16.msrb.mxu3 %v12383_v30  ;;  %v7888_v52 = vpop.f32.mrf.mxu2 }
 0x569   :  { %v7889_v46 = vadd.f32 %v7888_v52, %v7875_v32 }
 0x56a   :  { %8111 = vmatmul.bf16.vlgmr.msra.gmra.mxu2 %v13927_v11  ;;  %v13379_v11 = vld [vmem:[#allocation9 + $0xedc] sm:$0xf] }
 0x56b   :  { %8159 = vmatpush.bf16.msrb.mxu2 %v12127_v17  ;;  %v12255_v13 = vor.u32 %v13379_v11, %v12252_v49  ;;  %v7902_v16 = vpop.f32.mrf.mxu3  ;;  %v7877_v17 = vadd.f32 %v7876_v53, %v7863_v21 }
 0x56c   :  { %8174 = vmatpush.bf16.msrb.mxu3 %v12351_v15  ;;  %v7903_v57 = vadd.f32 %v7902_v16, %v7889_v46  ;;  %v7918_v15 = vpop.f32.mrf.mxu0 }
 0x56e   :  { %v7917_v30 = vadd.f32 %v7916_v1, %v7903_v57  ;;  %v13430_v57 = vld [vmem:[#allocation11] sm:$0xff] }
 0x56f   :  { %8160 = vmatpush.bf16.msrb.mxu2 %v12095_v7  ;;  %v4682_v1 = vperm.slane %v13430_v57, 7 }
 0x570   :  { %8175 = vmatpush.bf16.msrb.mxu3 %v12319_v20  ;;  %v7890_v56 = vpop.f32.mrf.mxu2  ;;  %v7931_v63 = vadd.f32 %v7930_v0, %v7917_v30 }
 0x571   :  { %v7891_v58 = vadd.f32 %v7890_v56, %v7877_v17 }
 0x573   :  { %8161 = vmatpush.bf16.msrb.mxu2 %v12063_v26  ;;  %v7904_v61 = vpop.f32.mrf.mxu3 }
 0x574   :  { %8176 = vmatpush.bf16.msrb.mxu3 %v12287_v12  ;;  %v7905_v37 = vadd.f32 %v7904_v61, %v7891_v58  ;;  %v4681_v12 = vperm.slane %v14072_v22, 6 }
 0x577   :  { %8162 = vmatpush.bf16.msrb.mxu2 %v12031_v48  ;;  %v7972_v48 = vpop.f32.mrf.mxu0 }
 0x578   :  { %8177 = vmatpush.bf16.msrb.mxu3 %v12255_v13  ;;  %v7973_v62 = vadd.f32 %v7972_v48, %v4681_v12 }
 0x57b   :  { %8163 = vmatpush.bf16.msrb.mxu2 %v11999_v55 }
 0x57c   :  { %8178 = vmatpush.bf16.msrb.mxu3 %v12223_v3 }
 0x57f   :  { %8164 = vmatpush.bf16.msrb.mxu2 %v11967_v45  ;;  %v7974_v55 = vpop.f32.mrf.mxu0 }
 0x580   :  { %8179 = vmatpush.bf16.msrb.mxu3 %v12191_v36  ;;  %v7975_v2 = vadd.f32 %v7974_v55, %v4681_v12 }
 0x583   :  { %8165 = vmatpush.bf16.msrb.mxu2 %v11935_v5 }
 0x584   :  { %8180 = vmatpush.bf16.msrb.mxu3 %v12159_v50 }
 0x587   :  { %8166 = vmatpush.bf16.msrb.mxu2 %v11903_v42  ;;  %8181 = vmatmul.bf16.vlgmr.msrb.gmra.mxu3 %v14009_v35  ;;  %v7932_v35 = vpop.f32.mrf.mxu1  ;;  %v8028_v45 = vpop.f32.mrf.mxu0 }
 0x588   :  { %v7944_v54 = vpop.f32.mrf.mxu2 }
 0x589   :  { %v7945_v7 = vadd.f32 %v7944_v54, %v7931_v63 }
 0x58a   :  { %8167 = vmatmul.bf16.vlgmr.msrb.gmra.mxu2 %v14007_v29  ;;  %v7919_v29 = vadd.f32 %v7918_v15, %v7905_v37 }
 0x58b   :  { %v7958_v39 = vpop.f32.mrf.mxu3 }
 0x58c   :  { %v7959_v24 = vadd.f32 %v7958_v39, %v7945_v7  ;;  %v7933_v59 = vadd.f32 %v7932_v35, %v7919_v29 }
 0x58e   :  { %v8192_v44 = vmul.f32 0.2, %v7959_v24 }
 0x58f   :  { %v7986_v34 = vpop.f32.mrf.mxu1  ;;  %v8030_v27 = vpop.f32.mrf.mxu0 }
 0x590   :  { %v8208_v8 = vmax.f32 %v7959_v24, %v8192_v44  ;;  %v7946_v26 = vpop.f32.mrf.mxu2  ;;  %v7987_v13 = vadd.f32 %v7986_v34, %v7973_v62 }
 0x591   :  { %v7947_v20 = vadd.f32 %v7946_v26, %v7933_v59 }
 0x592   :  { %8224 = vst [vmem:[#allocation12 + $0x28] sm:$0xff] %v8208_v8 }
 0x593   :  { %v7960_v19 = vpop.f32.mrf.mxu3 }
 0x594   :  { %v7961_v14 = vadd.f32 %v7960_v19, %v7947_v20 }
 0x596   :  { %v8200_v60 = vmul.f32 0.2, %v7961_v14 }
 0x597   :  { %v7988_v28 = vpop.f32.mrf.mxu1 }
 0x598   :  { %v8216_v9 = vmax.f32 %v7961_v14, %v8200_v60  ;;  %v7989_v10 = vadd.f32 %v7988_v28, %v7975_v2 }
 0x59a   :  { %8232 = vst [vmem:[#allocation12 + $0x68] sm:$0xff] %v8216_v9  ;;  %v8084_v21 = vpop.f32.mrf.mxu0 }
 0x59b   :  { %v8085_v17 = vadd.f32 %v8084_v21, %v4682_v1 }
 0x59f   :  { %v8042_v51 = vpop.f32.mrf.mxu1 }
 0x5a2   :  { %v8086_v58 = vpop.f32.mrf.mxu0 }
 0x5a3   :  { %v8087_v54 = vadd.f32 %v8086_v58, %v4682_v1 }
 0x5a7   :  { %v8044_v42 = vpop.f32.mrf.mxu1 }
 0x5aa   :  { %v8014_v49 = vpop.f32.mrf.mxu3 }
 0x5ad   :  { %v8000_v11 = vpop.f32.mrf.mxu2 }
 0x5ae   :  { %v8001_v40 = vadd.f32 %v8000_v11, %v7987_v13 }
 0x5af   :  { %v8098_v56 = vpop.f32.mrf.mxu1 }
 0x5b0   :  { %v8015_v6 = vadd.f32 %v8014_v49, %v8001_v40  ;;  %v8099_v0 = vadd.f32 %v8098_v56, %v8085_v17 }
 0x5b2   :  { %v8016_v33 = vpop.f32.mrf.mxu3  ;;  %v8029_v25 = vadd.f32 %v8028_v45, %v8015_v6 }
 0x5b4   :  { %v8043_v36 = vadd.f32 %v8042_v51, %v8029_v25 }
 0x5b5   :  { %v8002_v3 = vpop.f32.mrf.mxu2 }
 0x5b6   :  { %v8003_v38 = vadd.f32 %v8002_v3, %v7989_v10 }
 0x5b7   :  { %v8100_v63 = vpop.f32.mrf.mxu1 }
 0x5b8   :  { %v8017_v5 = vadd.f32 %v8016_v33, %v8003_v38  ;;  %v8101_v29 = vadd.f32 %v8100_v63, %v8087_v54 }
 0x5ba   :  { %v8031_v47 = vadd.f32 %v8030_v27, %v8017_v5  ;;  %v8140_v39 = vpop.f32.mrf.mxu0 }
 0x5bc   :  { %v8045_v43 = vadd.f32 %v8044_v42, %v8031_v47 }
 0x5bf   :  { %v8154_v8 = vpop.f32.mrf.mxu1 }
 0x5c2   :  { %v8142_v60 = vpop.f32.mrf.mxu0 }
 0x5c7   :  { %v8156_v34 = vpop.f32.mrf.mxu1 }
 0x5ca   :  { %v8070_v23 = vpop.f32.mrf.mxu3 }
 0x5cd   :  { %v8056_v22 = vpop.f32.mrf.mxu2 }
 0x5ce   :  { %v8057_v31 = vadd.f32 %v8056_v22, %v8043_v36 }
 0x5d0   :  { %v8071_v41 = vadd.f32 %v8070_v23, %v8057_v31 }
 0x5d2   :  { %v8193_v18 = vmul.f32 0.2, %v8071_v41  ;;  %v8072_v4 = vpop.f32.mrf.mxu3 }
 0x5d4   :  { %v8209_v50 = vmax.f32 %v8071_v41, %v8193_v18 }
 0x5d5   :  { %v8058_v52 = vpop.f32.mrf.mxu2 }
 0x5d6   :  { %8225 = vst [vmem:[#allocation12 + $0x30] sm:$0xff] %v8209_v50  ;;  %v8059_v16 = vadd.f32 %v8058_v52, %v8045_v43 }
 0x5d8   :  { %v8073_v32 = vadd.f32 %v8072_v4, %v8059_v16 }
 0x5da   :  { %v8201_v46 = vmul.f32 0.2, %v8073_v32 }
 0x5dc   :  { %v8217_v53 = vmax.f32 %v8073_v32, %v8201_v46 }
 0x5de   :  { %8233 = vst [vmem:[#allocation12 + $0x70] sm:$0xff] %v8217_v53 }
 0x5ea   :  { %v8126_v30 = vpop.f32.mrf.mxu3 }
 0x5ed   :  { %v8112_v61 = vpop.f32.mrf.mxu2 }
 0x5ee   :  { %v8113_v37 = vadd.f32 %v8112_v61, %v8099_v0 }
 0x5f0   :  { %v8127_v7 = vadd.f32 %v8126_v30, %v8113_v37 }
 0x5f2   :  { %v8128_v24 = vpop.f32.mrf.mxu3  ;;  %v8141_v44 = vadd.f32 %v8140_v39, %v8127_v7 }
 0x5f4   :  { %v8155_v26 = vadd.f32 %v8154_v8, %v8141_v44 }
 0x5f5   :  { %v8114_v15 = vpop.f32.mrf.mxu2 }
 0x5f6   :  { %v8115_v35 = vadd.f32 %v8114_v15, %v8101_v29 }
 0x5f8   :  { %v8129_v59 = vadd.f32 %v8128_v24, %v8115_v35 }
 0x5fa   :  { %v8143_v9 = vadd.f32 %v8142_v60, %v8129_v59 }
 0x5fc   :  { %v8157_v11 = vadd.f32 %v8156_v34, %v8143_v9 }
 0x60a   :  { %v8182_v14 = vpop.f32.mrf.mxu3 }
 0x60d   :  { %v8168_v20 = vpop.f32.mrf.mxu2 }
 0x60e   :  { %v8169_v19 = vadd.f32 %v8168_v20, %v8155_v26 }
 0x610   :  { %v8183_v48 = vadd.f32 %v8182_v14, %v8169_v19 }
 0x612   :  { %v8194_v12 = vmul.f32 0.2, %v8183_v48  ;;  %v8184_v13 = vpop.f32.mrf.mxu3 }
 0x614   :  { %v8210_v62 = vmax.f32 %v8183_v48, %v8194_v12 }
 0x615   :  { %v8170_v49 = vpop.f32.mrf.mxu2 }
 0x616   :  { %8226 = vst [vmem:[#allocation12 + $0x38] sm:$0xff] %v8210_v62  ;;  %v8171_v55 = vadd.f32 %v8170_v49, %v8157_v11 }
 0x618   :  { %v8185_v40 = vadd.f32 %v8184_v13, %v8171_v55 }
 0x61a   :  { %v8202_v28 = vmul.f32 0.2, %v8185_v40 }
 0x61c   :  { %v8218_v2 = vmax.f32 %v8185_v40, %v8202_v28 }
 0x61e   :  { %8234 = vst [vmem:[#allocation12 + $0x78] sm:$0xff] %v8218_v2 }
 0x61f   :  { %8247 = dma.vmem_to_hbm [thread:$0]  %s8240_s4, 2048, %s8242_s21, [#allocation5], %s13588_s11, %s13588_s11, %s13589_s12  }
 0x620   :  { %13581 = dma.done.wait [#allocation5], 2048  }
 0x621   :  { %13582 = vsyncadd [#allocation5], 4294965248 }
 0x622   :  { %8252 = vsyncpa [#allocation4], 1 }
 0x623   :  { %8253 = vsyncpa [#allocation7], 1 }
 0x624   :  { %8254 = vsyncpa [#allocation10], 1 }
 0x625   :  { %8255 = vsyncpa [#allocation5], 1 }

</bundles_post_ra>
